<compile_context>
chip_gen: v7x
topology: tpu7x:2x2x1
jax: 0.10.0
libtpu: 0.0.40
codegen_flags: <defaults>
</compile_context>

<pallas_src>
import math
import jax
import jax.numpy as jnp
from jax import lax
from jax.experimental import pallas as pl
from jax.experimental.pallas import tpu as pltpu


# ----------------------------------------------------------------------------- #
# Pallas kernel: all 4 ensemble branches of the imnet MLP (Linear+ReLU x4), folded
# into the M dimension, then the area-weighted ensemble folded into the hidden
# activations before the final Linear.
#   inp_ref : (4, tm, Dpad)  bf16
#   wgt_ref : (tm, 4)        f32
#   w*_ref  : bf16 weights, b*_ref : f32 biases (resident, constant index_map)
#   out_ref : (tm, OUT_PAD)  f32   (lane-dense; real output is columns [:3])
# ----------------------------------------------------------------------------- #
def liif_ensemble_mlp_kernel(inp_ref, wgt_ref,
                             w1_ref, b1_ref, w2_ref, b2_ref, w3_ref, b3_ref,
                             w4_ref, b4_ref, w5_ref, b5_ref, out_ref):
    s4, tm, dpad = inp_ref.shape
    # Merge the 4 shifts into M: (4, tm, Dpad) -> (4*tm, Dpad).  Layout-preserving
    # (leading-dim merge, minor dims untouched) so this is effectively a free view.
    x = inp_ref[...].reshape(s4 * tm, dpad)

    # bf16 operands on the MXU, f32 accumulation; bias add / ReLU in f32 (VPU).
    h = jnp.maximum(jnp.dot(x, w1_ref[...],
                            preferred_element_type=jnp.float32) + b1_ref[...], 0.0)
    h = jnp.maximum(jnp.dot(h.astype(jnp.bfloat16), w2_ref[...],
                            preferred_element_type=jnp.float32) + b2_ref[...], 0.0)
    h = jnp.maximum(jnp.dot(h.astype(jnp.bfloat16), w3_ref[...],
                            preferred_element_type=jnp.float32) + b3_ref[...], 0.0)
    h = jnp.maximum(jnp.dot(h.astype(jnp.bfloat16), w4_ref[...],
                            preferred_element_type=jnp.float32) + b4_ref[...], 0.0)
    # h: (4*tm, hidden) f32

    # Fold the area-weighted ensemble into the hidden activations (linear final layer):
    #   sum_s w_s (h_s @ W5 + b5) == (sum_s w_s h_s) @ W5 + b5 * sum_s w_s
    wgt = wgt_ref[...]                                   # (tm, 4) f32
    hw = h[0:tm, :] * wgt[:, 0:1]
    wsum = wgt[:, 0:1]
    for s in range(1, 4):
        hw = hw + h[s * tm:(s + 1) * tm, :] * wgt[:, s:s + 1]
        wsum = wsum + wgt[:, s:s + 1]

    out_ref[...] = (jnp.dot(hw.astype(jnp.bfloat16), w5_ref[...],
                            preferred_element_type=jnp.float32)
                    + b5_ref[...] * wsum)                # (tm, OUT_PAD) f32


def _choose_tile(n):
    # Largest row tile (per-shift) that still gives >=2 grid steps when possible,
    # capped at 1024 so the (4*tm)-row activation block stays well inside VMEM.
    for tm in (1024, 512, 256, 128):
        if n >= 2 * tm:
            return tm
    return 128


def liif_mlp_ensemble(inp_all, wgt, mlp_params_p):
    """inp_all: (4, N, Dpad) bf16, wgt: (N, 4) f32, padded bf16/f32 params -> (N, 3) f32."""
    S, N, Dp = inp_all.shape
    assert S == 4
    tm = _choose_tile(N)
    n_pad = ((N + tm - 1) // tm) * tm
    if n_pad != N:
        # Padded rows get zero weights; their (zero) outputs are sliced off below.
        inp_all = jnp.pad(inp_all, ((0, 0), (0, n_pad - N), (0, 0)))
        wgt = jnp.pad(wgt, ((0, n_pad - N), (0, 0)))

    (w1, b1), (w2, b2), (w3, b3), (w4, b4), (w5, b5) = mlp_params_p
    out_pad = w5.shape[1]

    def full_spec(arr):
        nd = arr.ndim
        return pl.BlockSpec(arr.shape, lambda i, _nd=nd: (0,) * _nd)

    out = pl.pallas_call(
        liif_ensemble_mlp_kernel,
        out_shape=jax.ShapeDtypeStruct((n_pad, out_pad), jnp.float32),
        grid_spec=pltpu.PrefetchScalarGridSpec(
            num_scalar_prefetch=0,
            grid=(n_pad // tm,),
            in_specs=[
                pl.BlockSpec((S, tm, Dp), lambda i: (0, i, 0)),
                pl.BlockSpec((tm, S), lambda i: (i, 0)),
                full_spec(w1), full_spec(b1),
                full_spec(w2), full_spec(b2),
                full_spec(w3), full_spec(b3),
                full_spec(w4), full_spec(b4),
                full_spec(w5), full_spec(b5),
            ],
            out_specs=pl.BlockSpec((tm, out_pad), lambda i: (i, 0)),
        ),
        compiler_params=pltpu.CompilerParams(dimension_semantics=("parallel",)),
    )(inp_all, wgt, w1, b1, w2, b2, w3, b3, w4, b4, w5, b5)
    return out[:N, :3]


# ----------------------------------------------------------------------------- #
# Plain-JAX glue reproducing the PyTorch ops around the hot path.
# ----------------------------------------------------------------------------- #
def conv2d_nchw(x, w, b):
    y = lax.conv_general_dilated(
        x, w, window_strides=(1, 1), padding="SAME",
        dimension_numbers=("NCHW", "OIHW", "NCHW"))
    return y + b[None, :, None, None]


def nearest_index(coord_, H, W):
    """grid_sample(..., mode='nearest', align_corners=False) source indices.
    coord_ stores (y, x) like the LIIF coord tensor (flip happens implicitly)."""
    y = coord_[..., 0]
    x = coord_[..., 1]
    iy = jnp.rint(((y + 1.0) * H - 1.0) * 0.5).astype(jnp.int32)   # round-half-to-even
    ix = jnp.rint(((x + 1.0) * W - 1.0) * 0.5).astype(jnp.int32)
    return jnp.clip(iy, 0, H - 1), jnp.clip(ix, 0, W - 1)


_OFFSETS = [(-1, -1), (-1, 0), (-1, 1), (0, -1), (0, 0), (0, 1), (1, -1), (1, 0), (1, 1)]


def gather_unfold3x3(feat, iy, ix):
    """Equivalent of sampling F.unfold(feat, 3, padding=1).view(B, C*9, H, W) at the
    nearest index (iy, ix), but without materializing the 9x-inflated tensor.
    Single combined gather over the 9 offsets; feature ordering matches F.unfold:
    index = c*9 + (di*3 + dj); zero padding outside the image."""
    B, C, H, W = feat.shape
    Q = iy.shape[-1]
    flat = feat.reshape(B, C, H * W)
    doff = jnp.array([o[0] for o in _OFFSETS], jnp.int32)[None, :, None]   # (1, 9, 1)
    woff = jnp.array([o[1] for o in _OFFSETS], jnp.int32)[None, :, None]
    ny = iy[:, None, :] + doff                                             # (B, 9, Q)
    nx = ix[:, None, :] + woff
    valid = ((ny >= 0) & (ny < H) & (nx >= 0) & (nx < W)).astype(feat.dtype)
    idx = (jnp.clip(ny, 0, H - 1) * W + jnp.clip(nx, 0, W - 1)).reshape(B, 1, 9 * Q)
    g = jnp.take_along_axis(flat, idx, axis=2).reshape(B, C, 9, Q)         # (B, C, 9, Q)
    g = g * valid[:, None, :, :]
    return jnp.transpose(g, (0, 3, 1, 2)).reshape(B, Q, C * 9)


def build_liif_kernel_inputs(feat, coord, cell, d_in_pad):
    """Build (4, N, Dpad) bf16 MLP inputs and (N, 4) f32 ensemble weights."""
    B, C, H, W = feat.shape
    rx = 2.0 / H / 2.0
    ry = 2.0 / W / 2.0
    eps = 1e-6
    scale_hw = jnp.array([H, W], jnp.float32)
    rel_cell = cell * scale_hw                                    # shared across shifts

    inps, areas = [], []
    for vx in (-1, 1):
        for vy in (-1, 1):
            shift = jnp.array([vx * rx + eps, vy * ry + eps], jnp.float32)
            coord_ = jnp.clip(coord + shift, -1.0 + 1e-6, 1.0 - 1e-6)
            iy, ix = nearest_index(coord_, H, W)
            q_feat = gather_unfold3x3(feat, iy, ix)               # (B, Q, C*9)
            # q_coord = make_coord value at the nearest texel (analytic, no gather)
            q_coord = jnp.stack(
                [-1.0 + 1.0 / H + 2.0 / H * iy.astype(jnp.float32),
                 -1.0 + 1.0 / W + 2.0 / W * ix.astype(jnp.float32)], axis=-1)
            rel_coord = (coord - q_coord) * scale_hw              # (B, Q, 2)
            mlp_in = jnp.concatenate([q_feat, rel_coord, rel_cell], axis=-1)
            din = mlp_in.shape[-1]
            if d_in_pad > din:
                mlp_in = jnp.pad(mlp_in, ((0, 0), (0, 0), (0, d_in_pad - din)))
            inps.append(mlp_in.reshape(-1, d_in_pad))
            areas.append((jnp.abs(rel_coord[..., 0] * rel_coord[..., 1]) + 1e-9)
                         .reshape(-1))

    tot_area = areas[0] + areas[1] + areas[2] + areas[3]
    # local_ensemble swap: areas[0]<->areas[3], areas[1]<->areas[2]
    swapped = [areas[3], areas[2], areas[1], areas[0]]
    wgt = jnp.stack([a / tot_area for a in swapped], axis=-1)     # (N, 4) f32
    inp_all = jnp.stack(inps, axis=0).astype(jnp.bfloat16)        # (4, N, Dpad) bf16
    return inp_all, wgt


def prepare_mlp_params(mlp_params, d_in_pad, out_pad=128):
    """Zero-pad w1 rows (Din->Dpad) and w5/b5 output cols (3->out_pad); cast weights
    to bf16 (MXU dtype), keep biases f32."""
    (w1, b1), (w2, b2), (w3, b3), (w4, b4), (w5, b5) = mlp_params
    w1p = jnp.zeros((d_in_pad, w1.shape[1]), w1.dtype).at[:w1.shape[0]].set(w1)
    w5p = jnp.zeros((w5.shape[0], out_pad), w5.dtype).at[:, :w5.shape[1]].set(w5)
    b5p = jnp.zeros((1, out_pad), b5.dtype).at[:, :b5.shape[1]].set(b5)

    def cvt(w, b):
        return (w.astype(jnp.bfloat16), b.astype(jnp.float32))

    return (cvt(w1p, b1), cvt(w2, b2), cvt(w3, b3), cvt(w4, b4), cvt(w5p, b5p))


def liif_forward(inp, coord, cell, enc_w, enc_b, mlp_params_p):
    # encoder (stand-in for encoder_spec): single 3x3 conv, out_dim channels
    feat = conv2d_nchw(inp, enc_w, enc_b)                         # (B, C, H, W)
    B, C, _, _ = feat.shape
    Q = coord.shape[1]
    d_in = C * 9 + 2 + 2
    d_in_pad = ((d_in + 127) // 128) * 128
    inp_all, wgt = build_liif_kernel_inputs(feat, coord, cell, d_in_pad)
    out = liif_mlp_ensemble(inp_all, wgt, mlp_params_p)           # (N, 3)  <- Pallas kernel
    return out.reshape(B, Q, 3)


# pure-JAX reference of the kernel math (same bf16-operand / f32-accum recipe,
# same weighted-fold of the final layer, same reduction order)
def mlp_ensemble_ref(inp_all, wgt, mlp_params_p):
    (w1, b1), (w2, b2), (w3, b3), (w4, b4), (w5, b5) = mlp_params_p
    S, N, Dp = inp_all.shape
    x = inp_all.reshape(S * N, Dp)
    h = jnp.maximum(jnp.dot(x, w1, preferred_element_type=jnp.float32) + b1, 0.0)
    h = jnp.maximum(jnp.dot(h.astype(jnp.bfloat16), w2,
                            preferred_element_type=jnp.float32) + b2, 0.0)
    h = jnp.maximum(jnp.dot(h.astype(jnp.bfloat16), w3,
                            preferred_element_type=jnp.float32) + b3, 0.0)
    h = jnp.maximum(jnp.dot(h.astype(jnp.bfloat16), w4,
                            preferred_element_type=jnp.float32) + b4, 0.0)
    h = h.reshape(S, N, -1)
    hw = h[0] * wgt[:, 0:1]
    wsum = wgt[:, 0:1]
    for s in range(1, 4):
        hw = hw + h[s] * wgt[:, s:s + 1]
        wsum = wsum + wgt[:, s:s + 1]
    return (jnp.dot(hw.astype(jnp.bfloat16), w5,
                    preferred_element_type=jnp.float32) + b5 * wsum)


# ----------------------------------------------------------------------------- #
if __name__ == "__main__":
    B, Cin, H, W = 2, 3, 16, 16
    C = 8                      # encoder out_dim
    Q = 256                    # queries per image  -> N = B*Q = 512
    Din = C * 9 + 2 + 2        # feat_unfold(3x3) + rel_coord + rel_cell = 76
    Dpad = ((Din + 127) // 128) * 128
    hidden = [256, 256, 256, 256]

    key = jax.random.PRNGKey(0)
    k_inp, k_coord, k_enc_w, k_enc_b, k_mlp = jax.random.split(key, 5)

    inp = jax.random.normal(k_inp, (B, Cin, H, W), jnp.float32)
    coord = jax.random.uniform(k_coord, (B, Q, 2), jnp.float32, -1.0, 1.0)
    cell = jnp.full((B, Q, 2), 2.0 / 32.0, jnp.float32)   # as if querying a 32x32 target

    # deterministic parameter init (PyTorch-Linear-style uniform bounds)
    def linear_init(k, fan_in, fan_out):
        kw, kb = jax.random.split(k)
        bound = 1.0 / math.sqrt(fan_in)
        w = jax.random.uniform(kw, (fan_in, fan_out), jnp.float32, -bound, bound)
        b = jax.random.uniform(kb, (1, fan_out), jnp.float32, -bound, bound)
        return w, b

    bound_c = 1.0 / math.sqrt(Cin * 9)
    enc_w = jax.random.uniform(k_enc_w, (C, Cin, 3, 3), jnp.float32, -bound_c, bound_c)
    enc_b = jax.random.uniform(k_enc_b, (C,), jnp.float32, -bound_c, bound_c)

    mlp_keys = jax.random.split(k_mlp, 5)
    dims = [Din] + hidden + [3]
    mlp_params = tuple(linear_init(mlp_keys[i], dims[i], dims[i + 1]) for i in range(5))
    mlp_params_p = prepare_mlp_params(mlp_params, Dpad, out_pad=128)

    fwd = jax.jit(liif_forward)
    out = fwd(inp, coord, cell, enc_w, enc_b, mlp_params_p)
    out = jax.block_until_ready(out)
    assert out.shape == (B, Q, 3), out.shape

    # sanity check the Pallas kernel against a pure-JAX reference of the same math
    feat = conv2d_nchw(inp, enc_w, enc_b)
    inp_all, wgt = build_liif_kernel_inputs(feat, coord, cell, Dpad)
    ref = mlp_ensemble_ref(inp_all, wgt, mlp_params_p)[:, :3].reshape(B, Q, 3)
    assert jnp.allclose(out, ref, atol=2e-3, rtol=2e-3), float(jnp.max(jnp.abs(out - ref)))

    # TODO(synk): encoder_spec is external to the module; a 3x3 conv stand-in is used and
    # kept in plain-JAX glue (the LIIF hot path — the imnet MLP over all ensemble shifts
    # plus the area-weighted ensemble — runs inside the Pallas kernel; the nearest-neighbor
    # gather stays in XLA but never materializes the 9x-unfolded feature tensor).
    print("KERNEL_OK")
</pallas_src>

<mosaic_0001>
module attributes {stable_mosaic.version = 11 : i64} {
  func.func @liif_ensemble_mlp_kernel(%arg0: i32, %arg1: memref<4x256x128xbf16, #tpu.memory_space<vmem>>, %arg2: memref<256x4xf32, #tpu.memory_space<vmem>>, %arg3: memref<128x256xbf16, #tpu.memory_space<vmem>>, %arg4: memref<1x256xf32, #tpu.memory_space<vmem>>, %arg5: memref<256x256xbf16, #tpu.memory_space<vmem>>, %arg6: memref<1x256xf32, #tpu.memory_space<vmem>>, %arg7: memref<256x256xbf16, #tpu.memory_space<vmem>>, %arg8: memref<1x256xf32, #tpu.memory_space<vmem>>, %arg9: memref<256x256xbf16, #tpu.memory_space<vmem>>, %arg10: memref<1x256xf32, #tpu.memory_space<vmem>>, %arg11: memref<256x128xbf16, #tpu.memory_space<vmem>>, %arg12: memref<1x128xf32, #tpu.memory_space<vmem>>, %arg13: memref<256x128xf32, #tpu.memory_space<vmem>>) attributes {dimension_semantics = [#tpu.dimension_semantics<parallel>], iteration_bounds = array<i64: 2>, scalar_prefetch = 0 : i64, scratch_operands = 0 : i64, tpu.core_type = #tpu.core_type<tc>, window_params = [{transform_indices = @transform_0, window_bounds = array<i64: 4, 256, 128>}, {transform_indices = @transform_1, window_bounds = array<i64: 256, 4>}, {pipeline_mode = #tpu.pipeline_mode<synchronous>, transform_indices = @transform_2, window_bounds = array<i64: 128, 256>}, {pipeline_mode = #tpu.pipeline_mode<synchronous>, transform_indices = @transform_3, window_bounds = array<i64: 1, 256>}, {pipeline_mode = #tpu.pipeline_mode<synchronous>, transform_indices = @transform_4, window_bounds = array<i64: 256, 256>}, {pipeline_mode = #tpu.pipeline_mode<synchronous>, transform_indices = @transform_5, window_bounds = array<i64: 1, 256>}, {pipeline_mode = #tpu.pipeline_mode<synchronous>, transform_indices = @transform_6, window_bounds = array<i64: 256, 256>}, {pipeline_mode = #tpu.pipeline_mode<synchronous>, transform_indices = @transform_7, window_bounds = array<i64: 1, 256>}, {pipeline_mode = #tpu.pipeline_mode<synchronous>, transform_indices = @transform_8, window_bounds = array<i64: 256, 256>}, {pipeline_mode = #tpu.pipeline_mode<synchronous>, transform_indices = @transform_9, window_bounds = array<i64: 1, 256>}, {pipeline_mode = #tpu.pipeline_mode<synchronous>, transform_indices = @transform_10, window_bounds = array<i64: 256, 128>}, {pipeline_mode = #tpu.pipeline_mode<synchronous>, transform_indices = @transform_11, window_bounds = array<i64: 1, 128>}, {transform_indices = @transform_12, window_bounds = array<i64: 256, 128>}]} {
    %c0 = arith.constant 0 : index
    %c0_0 = arith.constant 0 : index
    %c0_1 = arith.constant 0 : index
    %0 = vector.load %arg1[%c0, %c0_0, %c0_1] : memref<4x256x128xbf16, #tpu.memory_space<vmem>>, vector<4x256x128xbf16>
    %1 = vector.shape_cast %0 : vector<4x256x128xbf16> to vector<1024x128xbf16>
    %c0_2 = arith.constant 0 : index
    %c0_3 = arith.constant 0 : index
    %2 = vector.load %arg3[%c0_2, %c0_3] : memref<128x256xbf16, #tpu.memory_space<vmem>>, vector<128x256xbf16>
    %cst = arith.constant dense<0.000000e+00> : vector<1024x256xf32>
    %3 = tpu.matmul %1, %2, %cst {dimension_numbers = #tpu.dot_dimension_numbers<[1], [0], [0], [1], [0, 0, 1, 1], [], []>} : vector<1024x128xbf16>, vector<128x256xbf16>, vector<1024x256xf32> -> vector<1024x256xf32>
    %c0_4 = arith.constant 0 : index
    %c0_5 = arith.constant 0 : index
    %4 = vector.load %arg4[%c0_4, %c0_5] : memref<1x256xf32, #tpu.memory_space<vmem>>, vector<1x256xf32>
    %5 = vector.broadcast %4 : vector<1x256xf32> to vector<1024x256xf32>
    %6 = arith.addf %3, %5 : vector<1024x256xf32>
    %cst_6 = arith.constant 0.000000e+00 : f32
    %7 = vector.broadcast %cst_6 : f32 to vector<1024x256xf32>
    %8 = arith.maximumf %6, %7 : vector<1024x256xf32>
    %9 = arith.truncf %8 : vector<1024x256xf32> to vector<1024x256xbf16>
    %c0_7 = arith.constant 0 : index
    %c0_8 = arith.constant 0 : index
    %10 = vector.load %arg5[%c0_7, %c0_8] : memref<256x256xbf16, #tpu.memory_space<vmem>>, vector<256x256xbf16>
    %cst_9 = arith.constant dense<0.000000e+00> : vector<1024x256xf32>
    %11 = tpu.matmul %9, %10, %cst_9 {dimension_numbers = #tpu.dot_dimension_numbers<[1], [0], [0], [1], [0, 0, 1, 1], [], []>} : vector<1024x256xbf16>, vector<256x256xbf16>, vector<1024x256xf32> -> vector<1024x256xf32>
    %c0_10 = arith.constant 0 : index
    %c0_11 = arith.constant 0 : index
    %12 = vector.load %arg6[%c0_10, %c0_11] : memref<1x256xf32, #tpu.memory_space<vmem>>, vector<1x256xf32>
    %13 = vector.broadcast %12 : vector<1x256xf32> to vector<1024x256xf32>
    %14 = arith.addf %11, %13 : vector<1024x256xf32>
    %cst_12 = arith.constant 0.000000e+00 : f32
    %15 = vector.broadcast %cst_12 : f32 to vector<1024x256xf32>
    %16 = arith.maximumf %14, %15 : vector<1024x256xf32>
    %17 = arith.truncf %16 : vector<1024x256xf32> to vector<1024x256xbf16>
    %c0_13 = arith.constant 0 : index
    %c0_14 = arith.constant 0 : index
    %18 = vector.load %arg7[%c0_13, %c0_14] : memref<256x256xbf16, #tpu.memory_space<vmem>>, vector<256x256xbf16>
    %cst_15 = arith.constant dense<0.000000e+00> : vector<1024x256xf32>
    %19 = tpu.matmul %17, %18, %cst_15 {dimension_numbers = #tpu.dot_dimension_numbers<[1], [0], [0], [1], [0, 0, 1, 1], [], []>} : vector<1024x256xbf16>, vector<256x256xbf16>, vector<1024x256xf32> -> vector<1024x256xf32>
    %c0_16 = arith.constant 0 : index
    %c0_17 = arith.constant 0 : index
    %20 = vector.load %arg8[%c0_16, %c0_17] : memref<1x256xf32, #tpu.memory_space<vmem>>, vector<1x256xf32>
    %21 = vector.broadcast %20 : vector<1x256xf32> to vector<1024x256xf32>
    %22 = arith.addf %19, %21 : vector<1024x256xf32>
    %cst_18 = arith.constant 0.000000e+00 : f32
    %23 = vector.broadcast %cst_18 : f32 to vector<1024x256xf32>
    %24 = arith.maximumf %22, %23 : vector<1024x256xf32>
    %25 = arith.truncf %24 : vector<1024x256xf32> to vector<1024x256xbf16>
    %c0_19 = arith.constant 0 : index
    %c0_20 = arith.constant 0 : index
    %26 = vector.load %arg9[%c0_19, %c0_20] : memref<256x256xbf16, #tpu.memory_space<vmem>>, vector<256x256xbf16>
    %cst_21 = arith.constant dense<0.000000e+00> : vector<1024x256xf32>
    %27 = tpu.matmul %25, %26, %cst_21 {dimension_numbers = #tpu.dot_dimension_numbers<[1], [0], [0], [1], [0, 0, 1, 1], [], []>} : vector<1024x256xbf16>, vector<256x256xbf16>, vector<1024x256xf32> -> vector<1024x256xf32>
    %c0_22 = arith.constant 0 : index
    %c0_23 = arith.constant 0 : index
    %28 = vector.load %arg10[%c0_22, %c0_23] : memref<1x256xf32, #tpu.memory_space<vmem>>, vector<1x256xf32>
    %29 = vector.broadcast %28 : vector<1x256xf32> to vector<1024x256xf32>
    %30 = arith.addf %27, %29 : vector<1024x256xf32>
    %cst_24 = arith.constant 0.000000e+00 : f32
    %31 = vector.broadcast %cst_24 : f32 to vector<1024x256xf32>
    %32 = arith.maximumf %30, %31 : vector<1024x256xf32>
    %c0_25 = arith.constant 0 : index
    %c0_26 = arith.constant 0 : index
    %33 = vector.load %arg2[%c0_25, %c0_26] : memref<256x4xf32, #tpu.memory_space<vmem>>, vector<256x4xf32>
    %34 = vector.extract_strided_slice %32 {offsets = [0, 0], sizes = [256, 256], strides = [1, 1]} : vector<1024x256xf32> to vector<256x256xf32>
    %35 = vector.extract_strided_slice %33 {offsets = [0, 0], sizes = [256, 1], strides = [1, 1]} : vector<256x4xf32> to vector<256x1xf32>
    %36 = vector.broadcast %35 : vector<256x1xf32> to vector<256x256xf32>
    %37 = arith.mulf %34, %36 : vector<256x256xf32>
    %38 = vector.extract_strided_slice %33 {offsets = [0, 0], sizes = [256, 1], strides = [1, 1]} : vector<256x4xf32> to vector<256x1xf32>
    %39 = vector.extract_strided_slice %32 {offsets = [256, 0], sizes = [256, 256], strides = [1, 1]} : vector<1024x256xf32> to vector<256x256xf32>
    %40 = vector.extract_strided_slice %33 {offsets = [0, 1], sizes = [256, 1], strides = [1, 1]} : vector<256x4xf32> to vector<256x1xf32>
    %41 = vector.broadcast %40 : vector<256x1xf32> to vector<256x256xf32>
    %42 = arith.mulf %39, %41 : vector<256x256xf32>
    %43 = arith.addf %37, %42 : vector<256x256xf32>
    %44 = vector.extract_strided_slice %33 {offsets = [0, 1], sizes = [256, 1], strides = [1, 1]} : vector<256x4xf32> to vector<256x1xf32>
    %45 = arith.addf %38, %44 : vector<256x1xf32>
    %46 = vector.extract_strided_slice %32 {offsets = [512, 0], sizes = [256, 256], strides = [1, 1]} : vector<1024x256xf32> to vector<256x256xf32>
    %47 = vector.extract_strided_slice %33 {offsets = [0, 2], sizes = [256, 1], strides = [1, 1]} : vector<256x4xf32> to vector<256x1xf32>
    %48 = vector.broadcast %47 : vector<256x1xf32> to vector<256x256xf32>
    %49 = arith.mulf %46, %48 : vector<256x256xf32>
    %50 = arith.addf %43, %49 : vector<256x256xf32>
    %51 = vector.extract_strided_slice %33 {offsets = [0, 2], sizes = [256, 1], strides = [1, 1]} : vector<256x4xf32> to vector<256x1xf32>
    %52 = arith.addf %45, %51 : vector<256x1xf32>
    %53 = vector.extract_strided_slice %32 {offsets = [768, 0], sizes = [256, 256], strides = [1, 1]} : vector<1024x256xf32> to vector<256x256xf32>
    %54 = vector.extract_strided_slice %33 {offsets = [0, 3], sizes = [256, 1], strides = [1, 1]} : vector<256x4xf32> to vector<256x1xf32>
    %55 = vector.broadcast %54 : vector<256x1xf32> to vector<256x256xf32>
    %56 = arith.mulf %53, %55 : vector<256x256xf32>
    %57 = arith.addf %50, %56 : vector<256x256xf32>
    %58 = vector.extract_strided_slice %33 {offsets = [0, 3], sizes = [256, 1], strides = [1, 1]} : vector<256x4xf32> to vector<256x1xf32>
    %59 = arith.addf %52, %58 : vector<256x1xf32>
    %60 = arith.truncf %57 : vector<256x256xf32> to vector<256x256xbf16>
    %c0_27 = arith.constant 0 : index
    %c0_28 = arith.constant 0 : index
    %61 = vector.load %arg11[%c0_27, %c0_28] : memref<256x128xbf16, #tpu.memory_space<vmem>>, vector<256x128xbf16>
    %cst_29 = arith.constant dense<0.000000e+00> : vector<256x128xf32>
    %62 = tpu.matmul %60, %61, %cst_29 {dimension_numbers = #tpu.dot_dimension_numbers<[1], [0], [0], [1], [0, 0, 1, 1], [], []>} : vector<256x256xbf16>, vector<256x128xbf16>, vector<256x128xf32> -> vector<256x128xf32>
    %c0_30 = arith.constant 0 : index
    %c0_31 = arith.constant 0 : index
    %63 = vector.load %arg12[%c0_30, %c0_31] : memref<1x128xf32, #tpu.memory_space<vmem>>, vector<1x128xf32>
    %64 = vector.broadcast %63 : vector<1x128xf32> to vector<256x128xf32>
    %65 = vector.broadcast %59 : vector<256x1xf32> to vector<256x128xf32>
    %66 = arith.mulf %64, %65 : vector<256x128xf32>
    %67 = arith.addf %62, %66 : vector<256x128xf32>
    %c0_32 = arith.constant 0 : index
    %c0_33 = arith.constant 0 : index
    %68 = vector.load %arg13[%c0_32, %c0_33] : memref<256x128xf32, #tpu.memory_space<vmem>>, vector<256x128xf32>
    tpu.vector_store %arg13[%c0_32, %c0_33], %67 {strides = array<i32>} : memref<256x128xf32, #tpu.memory_space<vmem>>, vector<256x128xf32>,
    return
  }
  func.func @transform_0(%arg0: i32) -> (i32, i32, i32) {
    %c0_i32 = arith.constant 0 : i32
    %c0_i32_0 = arith.constant 0 : i32
    %c0_i32_1 = arith.constant 0 : i32
    return %c0_i32, %arg0, %c0_i32_0 : i32, i32, i32
  }
  func.func @transform_1(%arg0: i32) -> (i32, i32) {
    %c0_i32 = arith.constant 0 : i32
    %c0_i32_0 = arith.constant 0 : i32
    return %arg0, %c0_i32 : i32, i32
  }
  func.func @transform_2(%arg0: i32) -> (i32, i32) {
    %c0_i32 = arith.constant 0 : i32
    %c0_i32_0 = arith.constant 0 : i32
    %c0_i32_1 = arith.constant 0 : i32
    return %c0_i32, %c0_i32_0 : i32, i32
  }
  func.func @transform_3(%arg0: i32) -> (i32, i32) {
    %c0_i32 = arith.constant 0 : i32
    %c0_i32_0 = arith.constant 0 : i32
    %c0_i32_1 = arith.constant 0 : i32
    return %c0_i32, %c0_i32_0 : i32, i32
  }
  func.func @transform_4(%arg0: i32) -> (i32, i32) {
    %c0_i32 = arith.constant 0 : i32
    %c0_i32_0 = arith.constant 0 : i32
    %c0_i32_1 = arith.constant 0 : i32
    return %c0_i32, %c0_i32_0 : i32, i32
  }
  func.func @transform_5(%arg0: i32) -> (i32, i32) {
    %c0_i32 = arith.constant 0 : i32
    %c0_i32_0 = arith.constant 0 : i32
    %c0_i32_1 = arith.constant 0 : i32
    return %c0_i32, %c0_i32_0 : i32, i32
  }
  func.func @transform_6(%arg0: i32) -> (i32, i32) {
    %c0_i32 = arith.constant 0 : i32
    %c0_i32_0 = arith.constant 0 : i32
    %c0_i32_1 = arith.constant 0 : i32
    return %c0_i32, %c0_i32_0 : i32, i32
  }
  func.func @transform_7(%arg0: i32) -> (i32, i32) {
    %c0_i32 = arith.constant 0 : i32
    %c0_i32_0 = arith.constant 0 : i32
    %c0_i32_1 = arith.constant 0 : i32
    return %c0_i32, %c0_i32_0 : i32, i32
  }
  func.func @transform_8(%arg0: i32) -> (i32, i32) {
    %c0_i32 = arith.constant 0 : i32
    %c0_i32_0 = arith.constant 0 : i32
    %c0_i32_1 = arith.constant 0 : i32
    return %c0_i32, %c0_i32_0 : i32, i32
  }
  func.func @transform_9(%arg0: i32) -> (i32, i32) {
    %c0_i32 = arith.constant 0 : i32
    %c0_i32_0 = arith.constant 0 : i32
    %c0_i32_1 = arith.constant 0 : i32
    return %c0_i32, %c0_i32_0 : i32, i32
  }
  func.func @transform_10(%arg0: i32) -> (i32, i32) {
    %c0_i32 = arith.constant 0 : i32
    %c0_i32_0 = arith.constant 0 : i32
    %c0_i32_1 = arith.constant 0 : i32
    return %c0_i32, %c0_i32_0 : i32, i32
  }
  func.func @transform_11(%arg0: i32) -> (i32, i32) {
    %c0_i32 = arith.constant 0 : i32
    %c0_i32_0 = arith.constant 0 : i32
    %c0_i32_1 = arith.constant 0 : i32
    return %c0_i32, %c0_i32_0 : i32, i32
  }
  func.func @transform_12(%arg0: i32) -> (i32, i32) {
    %c0_i32 = arith.constant 0 : i32
    %c0_i32_0 = arith.constant 0 : i32
    return %arg0, %c0_i32 : i32, i32
  }
}

</mosaic_0001>

<bundles_post_ra>
// kernel: liif_forward.1
= control target key start
LH: loop header
LB: loop body
LE: loop exit
PB: predicated region body
PF: predicated region fallthrough
CT: control target
= control target key end

     0   :  { %s9166_s21 = smov 0   ;;  %s9168_s22 = smov 0   ;;  %s13711_s0 = inlined_call_operand.vmem [shape: bf16[4,512,128], index: 0, kind: input, shape index: {}]   ;;  %s13712_s1 = inlined_call_operand.vmem [shape: f32[512,4], index: 1, kind: input, shape index: {}]   ;;  %s13713_s2 = inlined_call_operand.vmem [shape: bf16[128,256], index: 2, kind: input, shape index: {}]   ;;  %s13714_s3 = inlined_call_operand.vmem [shape: f32[1,256], index: 3, kind: input, shape index: {}]   ;;  %s13715_s4 = inlined_call_operand.vmem [shape: bf16[256,256], index: 4, kind: input, shape index: {}]   ;;  %s13716_s5 = inlined_call_operand.vmem [shape: f32[1,256], index: 5, kind: input, shape index: {}]   ;;  %s13717_s6 = inlined_call_operand.vmem [shape: bf16[256,256], index: 6, kind: input, shape index: {}]   ;;  %s13718_s7 = inlined_call_operand.vmem [shape: f32[1,256], index: 7, kind: input, shape index: {}]   ;;  %s13719_s8 = inlined_call_operand.vmem [shape: bf16[256,256], index: 8, kind: input, shape index: {}]   ;;  %s13720_s9 = inlined_call_operand.vmem [shape: f32[1,256], index: 9, kind: input, shape index: {}]   ;;  %s13721_s10 = inlined_call_operand.vmem [shape: bf16[256,128], index: 10, kind: input, shape index: {}]   ;;  %s13722_s11 = inlined_call_operand.vmem [shape: f32[1,128], index: 11, kind: input, shape index: {}]   ;;  %s13723_s12 = inlined_call_operand.vmem [shape: f32[512,128], index: 12, kind: output, shape index: {}]  }
   0x1   :  { %s9170_s23 = smov 0  }
   0x2 LB: > { %s8355_s24 = sadd.s32 4294967295, %s9092_s23   ;;  %s9183_s25 = sadd.s32 1, %s9092_s23   ;;  %s9092_s23 = sphi %s9170_s23, %s14590_s23   ;;  %s9088_s22 = sphi %s9168_s22, %s14589_s22   ;;  %s9084_s21 = sphi %s9166_s21, %s14588_s21  }
   0x3   : > { %s26_s26 = ssub.s32 %s9092_s23, %s9183_s25  ;;  %s29_s27 = sadd.s32 1, %s9088_s22 }
   0x4   : > { %p27_p0 = scmp.eq.s32.totalorder %s26_s26, 0  ;;  %p36_p1 = scmp.ne.s32.totalorder %s9088_s22, %s9084_s21 }
   0x5   : > { %p37_p2 = scmp.eq.s32.totalorder %s9092_s23, 0  ;;  %p8358_p4 = scmp.ge.s32.totalorder %s9092_s23, 2 }
   0x6   : > { %s9192_s28 = scalar_select %p27_p0, %s9088_s22, %s29_s27  }
   0x7   : > { %p38_p3 = por %p37_p2, %p36_p1  ;;  %354 = sbr.rel (%p8358_p4) target bundleno = 50 (0x32), region = 56 }
   0xe   : > { %357 = sbr.rel (!%p38_p3) target bundleno = 50 (0x32), region = 60  ;;  %s359_s29 = sand.u32 (%p38_p3), 1, %s9088_s22  }
   0xf   : > { %s8563_s30 = sshll.u32 (%p38_p3), %s9092_s23, 7  ;;  %s8359_s13 = sshll.u32 (%p38_p3), %s359_s29, 9 }
  0x10   : > { %s9200_s16 = scalar_lea.vmem (%p38_p3), %s13711_s0, %s8563_s30  ;;  %s9205_s17 = scalar_lea.vmem (%p38_p3), [#allocation2], %s8359_s13 }
  0x11   : > { %v380_v0 = vld [vmem:[%s9200_s16] sm:$0xff] (%p38_p3)   ;;  %v384_v1 = vld [vmem:[%s9200_s16 + $0x8] sm:$0xff] (%p38_p3)   ;;  %v388_v2 = vld [vmem:[%s9200_s16 + $0x10] sm:$0xff] (%p38_p3)  }
  0x12   : > { %381 = vst [vmem:[%s9205_s17] sm:$0xff] (%p38_p3), %v380_v0   ;;  %385 = vst [vmem:[%s9205_s17 + $0x8] sm:$0xff] (%p38_p3), %v384_v1   ;;  %v392_v3 = vld [vmem:[%s9200_s16 + $0x18] sm:$0xff] (%p38_p3)   ;;  %v396_v4 = vld [vmem:[%s9200_s16 + $0x20] sm:$0xff] (%p38_p3)  }
  0x13   : > { %389 = vst [vmem:[%s9205_s17 + $0x10] sm:$0xff] (%p38_p3), %v388_v2   ;;  %v400_v5 = vld [vmem:[%s9200_s16 + $0x28] sm:$0xff] (%p38_p3)   ;;  %393 = vst [vmem:[%s9205_s17 + $0x18] sm:$0xff] (%p38_p3), %v392_v3   ;;  %v404_v6 = vld [vmem:[%s9200_s16 + $0x30] sm:$0xff] (%p38_p3)  }
  0x14   : > { %397 = vst [vmem:[%s9205_s17 + $0x20] sm:$0xff] (%p38_p3), %v396_v4   ;;  %401 = vst [vmem:[%s9205_s17 + $0x28] sm:$0xff] (%p38_p3), %v400_v5   ;;  %v408_v7 = vld [vmem:[%s9200_s16 + $0x38] sm:$0xff] (%p38_p3)   ;;  %v412_v8 = vld [vmem:[%s9200_s16 + $0x40] sm:$0xff] (%p38_p3)  }
  0x15   : > { %405 = vst [vmem:[%s9205_s17 + $0x30] sm:$0xff] %v404_v6   ;;  %409 = vst [vmem:[%s9205_s17 + $0x38] sm:$0xff] %v408_v7   ;;  %v416_v9 = vld [vmem:[%s9200_s16 + $0x48] sm:$0xff]   ;;  %v420_v10 = vld [vmem:[%s9200_s16 + $0x50] sm:$0xff]  }
  0x16   : > { %413 = vst [vmem:[%s9205_s17 + $0x40] sm:$0xff] %v412_v8   ;;  %v424_v11 = vld [vmem:[%s9200_s16 + $0x58] sm:$0xff]   ;;  %417 = vst [vmem:[%s9205_s17 + $0x48] sm:$0xff] %v416_v9   ;;  %v428_v12 = vld [vmem:[%s9200_s16 + $0x60] sm:$0xff]  }
  0x17   : > { %421 = vst [vmem:[%s9205_s17 + $0x50] sm:$0xff] %v420_v10   ;;  %425 = vst [vmem:[%s9205_s17 + $0x58] sm:$0xff] %v424_v11   ;;  %v432_v13 = vld [vmem:[%s9200_s16 + $0x68] sm:$0xff]   ;;  %v436_v14 = vld [vmem:[%s9200_s16 + $0x70] sm:$0xff]  }
  0x18   : > { %429 = vst [vmem:[%s9205_s17 + $0x60] sm:$0xff] %v428_v12   ;;  %433 = vst [vmem:[%s9205_s17 + $0x68] sm:$0xff] %v432_v13   ;;  %v440_v15 = vld [vmem:[%s9200_s16 + $0x78] sm:$0xff]   ;;  %v444_v16 = vld [vmem:[%s9200_s16 + $0x100] sm:$0xff]  }
  0x19   : > { %437 = vst [vmem:[%s9205_s17 + $0x70] sm:$0xff] %v436_v14   ;;  %v448_v17 = vld [vmem:[%s9200_s16 + $0x108] sm:$0xff]   ;;  %441 = vst [vmem:[%s9205_s17 + $0x78] sm:$0xff] %v440_v15   ;;  %v452_v18 = vld [vmem:[%s9200_s16 + $0x110] sm:$0xff]  }
  0x1a   : > { %445 = vst [vmem:[%s9205_s17 + $0x80] sm:$0xff] %v444_v16   ;;  %449 = vst [vmem:[%s9205_s17 + $0x88] sm:$0xff] %v448_v17   ;;  %v456_v19 = vld [vmem:[%s9200_s16 + $0x118] sm:$0xff]   ;;  %v460_v20 = vld [vmem:[%s9200_s16 + $0x120] sm:$0xff]  }
  0x1b   : > { %453 = vst [vmem:[%s9205_s17 + $0x90] sm:$0xff] %v452_v18   ;;  %457 = vst [vmem:[%s9205_s17 + $0x98] sm:$0xff] %v456_v19   ;;  %v464_v21 = vld [vmem:[%s9200_s16 + $0x128] sm:$0xff]   ;;  %v468_v22 = vld [vmem:[%s9200_s16 + $0x130] sm:$0xff]  }
  0x1c   : > { %461 = vst [vmem:[%s9205_s17 + $0xa0] sm:$0xff] %v460_v20   ;;  %v472_v23 = vld [vmem:[%s9200_s16 + $0x138] sm:$0xff]   ;;  %465 = vst [vmem:[%s9205_s17 + $0xa8] sm:$0xff] %v464_v21   ;;  %v476_v24 = vld [vmem:[%s9200_s16 + $0x140] sm:$0xff]  }
  0x1d   : > { %469 = vst [vmem:[%s9205_s17 + $0xb0] sm:$0xff] %v468_v22   ;;  %473 = vst [vmem:[%s9205_s17 + $0xb8] sm:$0xff] %v472_v23   ;;  %v480_v25 = vld [vmem:[%s9200_s16 + $0x148] sm:$0xff]   ;;  %v484_v26 = vld [vmem:[%s9200_s16 + $0x150] sm:$0xff]  }
  0x1e   : > { %477 = vst [vmem:[%s9205_s17 + $0xc0] sm:$0xff] %v476_v24   ;;  %481 = vst [vmem:[%s9205_s17 + $0xc8] sm:$0xff] %v480_v25   ;;  %v488_v27 = vld [vmem:[%s9200_s16 + $0x158] sm:$0xff]   ;;  %v492_v28 = vld [vmem:[%s9200_s16 + $0x160] sm:$0xff]  }
  0x1f   : > { %485 = vst [vmem:[%s9205_s17 + $0xd0] sm:$0xff] %v484_v26   ;;  %v496_v29 = vld [vmem:[%s9200_s16 + $0x168] sm:$0xff]   ;;  %489 = vst [vmem:[%s9205_s17 + $0xd8] sm:$0xff] %v488_v27   ;;  %v500_v30 = vld [vmem:[%s9200_s16 + $0x170] sm:$0xff]  }
  0x20   : > { %493 = vst [vmem:[%s9205_s17 + $0xe0] sm:$0xff] %v492_v28   ;;  %497 = vst [vmem:[%s9205_s17 + $0xe8] sm:$0xff] %v496_v29   ;;  %v504_v31 = vld [vmem:[%s9200_s16 + $0x178] sm:$0xff]   ;;  %v508_v32 = vld [vmem:[%s9200_s16 + $0x200] sm:$0xff]  }
  0x21   : > { %501 = vst [vmem:[%s9205_s17 + $0xf0] sm:$0xff] %v500_v30   ;;  %505 = vst [vmem:[%s9205_s17 + $0xf8] sm:$0xff] %v504_v31   ;;  %v512_v33 = vld [vmem:[%s9200_s16 + $0x208] sm:$0xff]   ;;  %v516_v34 = vld [vmem:[%s9200_s16 + $0x210] sm:$0xff]  }
  0x22   : > { %509 = vst [vmem:[%s9205_s17 + $0x100] sm:$0xff] %v508_v32   ;;  %v520_v35 = vld [vmem:[%s9200_s16 + $0x218] sm:$0xff]   ;;  %513 = vst [vmem:[%s9205_s17 + $0x108] sm:$0xff] %v512_v33   ;;  %v524_v36 = vld [vmem:[%s9200_s16 + $0x220] sm:$0xff]  }
  0x23   : > { %517 = vst [vmem:[%s9205_s17 + $0x110] sm:$0xff] %v516_v34   ;;  %521 = vst [vmem:[%s9205_s17 + $0x118] sm:$0xff] %v520_v35   ;;  %v528_v37 = vld [vmem:[%s9200_s16 + $0x228] sm:$0xff]   ;;  %v532_v38 = vld [vmem:[%s9200_s16 + $0x230] sm:$0xff]  }
  0x24   : > { %525 = vst [vmem:[%s9205_s17 + $0x120] sm:$0xff] %v524_v36   ;;  %529 = vst [vmem:[%s9205_s17 + $0x128] sm:$0xff] %v528_v37   ;;  %v536_v39 = vld [vmem:[%s9200_s16 + $0x238] sm:$0xff]   ;;  %v540_v40 = vld [vmem:[%s9200_s16 + $0x240] sm:$0xff]  }
  0x25   : > { %533 = vst [vmem:[%s9205_s17 + $0x130] sm:$0xff] %v532_v38   ;;  %v544_v41 = vld [vmem:[%s9200_s16 + $0x248] sm:$0xff]   ;;  %537 = vst [vmem:[%s9205_s17 + $0x138] sm:$0xff] %v536_v39   ;;  %v548_v42 = vld [vmem:[%s9200_s16 + $0x250] sm:$0xff]  }
  0x26   : > { %541 = vst [vmem:[%s9205_s17 + $0x140] sm:$0xff] %v540_v40   ;;  %545 = vst [vmem:[%s9205_s17 + $0x148] sm:$0xff] %v544_v41   ;;  %v552_v43 = vld [vmem:[%s9200_s16 + $0x258] sm:$0xff]   ;;  %v556_v44 = vld [vmem:[%s9200_s16 + $0x260] sm:$0xff]  }
  0x27   : > { %549 = vst [vmem:[%s9205_s17 + $0x150] sm:$0xff] %v548_v42   ;;  %553 = vst [vmem:[%s9205_s17 + $0x158] sm:$0xff] %v552_v43   ;;  %v560_v45 = vld [vmem:[%s9200_s16 + $0x268] sm:$0xff]   ;;  %v564_v46 = vld [vmem:[%s9200_s16 + $0x270] sm:$0xff]  }
  0x28   : > { %557 = vst [vmem:[%s9205_s17 + $0x160] sm:$0xff] %v556_v44   ;;  %v568_v47 = vld [vmem:[%s9200_s16 + $0x278] sm:$0xff]   ;;  %561 = vst [vmem:[%s9205_s17 + $0x168] sm:$0xff] %v560_v45   ;;  %v572_v48 = vld [vmem:[%s9200_s16 + $0x300] sm:$0xff]  }
  0x29   : > { %565 = vst [vmem:[%s9205_s17 + $0x170] sm:$0xff] %v564_v46   ;;  %569 = vst [vmem:[%s9205_s17 + $0x178] sm:$0xff] %v568_v47   ;;  %v576_v49 = vld [vmem:[%s9200_s16 + $0x308] sm:$0xff]   ;;  %v580_v50 = vld [vmem:[%s9200_s16 + $0x310] sm:$0xff]  }
  0x2a   : > { %573 = vst [vmem:[%s9205_s17 + $0x180] sm:$0xff] %v572_v48   ;;  %577 = vst [vmem:[%s9205_s17 + $0x188] sm:$0xff] %v576_v49   ;;  %v584_v51 = vld [vmem:[%s9200_s16 + $0x318] sm:$0xff]   ;;  %v588_v52 = vld [vmem:[%s9200_s16 + $0x320] sm:$0xff]  }
  0x2b   : > { %581 = vst [vmem:[%s9205_s17 + $0x190] sm:$0xff] %v580_v50   ;;  %v592_v53 = vld [vmem:[%s9200_s16 + $0x328] sm:$0xff]   ;;  %585 = vst [vmem:[%s9205_s17 + $0x198] sm:$0xff] %v584_v51   ;;  %v596_v54 = vld [vmem:[%s9200_s16 + $0x330] sm:$0xff]  }
  0x2c   : > { %589 = vst [vmem:[%s9205_s17 + $0x1a0] sm:$0xff] %v588_v52   ;;  %593 = vst [vmem:[%s9205_s17 + $0x1a8] sm:$0xff] %v592_v53   ;;  %v600_v55 = vld [vmem:[%s9200_s16 + $0x338] sm:$0xff]   ;;  %v604_v56 = vld [vmem:[%s9200_s16 + $0x340] sm:$0xff]  }
  0x2d   : > { %597 = vst [vmem:[%s9205_s17 + $0x1b0] sm:$0xff] %v596_v54   ;;  %601 = vst [vmem:[%s9205_s17 + $0x1b8] sm:$0xff] %v600_v55   ;;  %v608_v57 = vld [vmem:[%s9200_s16 + $0x348] sm:$0xff]   ;;  %v612_v58 = vld [vmem:[%s9200_s16 + $0x350] sm:$0xff]  }
  0x2e   : > { %605 = vst [vmem:[%s9205_s17 + $0x1c0] sm:$0xff] %v604_v56   ;;  %v616_v59 = vld [vmem:[%s9200_s16 + $0x358] sm:$0xff]   ;;  %609 = vst [vmem:[%s9205_s17 + $0x1c8] sm:$0xff] %v608_v57   ;;  %v620_v60 = vld [vmem:[%s9200_s16 + $0x360] sm:$0xff]  }
  0x2f   : > { %613 = vst [vmem:[%s9205_s17 + $0x1d0] sm:$0xff] %v612_v58   ;;  %617 = vst [vmem:[%s9205_s17 + $0x1d8] sm:$0xff] %v616_v59   ;;  %v624_v61 = vld [vmem:[%s9200_s16 + $0x368] sm:$0xff]   ;;  %v628_v62 = vld [vmem:[%s9200_s16 + $0x370] sm:$0xff]  }
  0x30   : > { %621 = vst [vmem:[%s9205_s17 + $0x1e0] sm:$0xff] %v620_v60   ;;  %625 = vst [vmem:[%s9205_s17 + $0x1e8] sm:$0xff] %v624_v61   ;;  %v632_v63 = vld [vmem:[%s9200_s16 + $0x378] sm:$0xff]  }
  0x31   : > { %629 = vst [vmem:[%s9205_s17 + $0x1f0] sm:$0xff] %v628_v62   ;;  %633 = vst [vmem:[%s9205_s17 + $0x1f8] sm:$0xff] %v632_v63  }
  0x32 PF: > { %p8362_p5 = scmp.ge.s32.totalorder %s9092_s23, 1  ;;  %p922_p6 = scmp.lt.s32.totalorder %s9092_s23, 3 }
  0x34   : > { %p923_p7 = pnand %p8362_p5, %p922_p6 }
  0x36   : > { %926 = sbr.rel (%p923_p7) target bundleno = 1783 (0x6f7), region = 105 }
  0x3d   : > { %v8742_v0 = vld [vmem:[%s13713_s2 + $0x4] ss:$8 sps:$4 sm:$0xff]   ;;  %v8744_v1 = vld [vmem:[%s13713_s2] ss:$8 sps:$4 sm:$0xff]   ;;  %v13724_v2 = vmov 0   ;;  %s929_s14 = sand.u32 1, %s9084_s21  }
  0x3e   : > { %1641 = vmatprep.mubr.bf16.mxu0 %v13724_v2  ;;  %2201 = vmatprep.mubr.bf16.mxu1 %v13724_v2  ;;  %v8745_v3 = vld [vmem:[%s13713_s2 + $0x14] ss:$8 sps:$4 sm:$0xff]   ;;  %v8747_v4 = vld [vmem:[%s13713_s2 + $0x10] ss:$8 sps:$4 sm:$0xff]   ;;  %v8748_v5 = vld [vmem:[%s13713_s2 + $0x24] ss:$8 sps:$4 sm:$0xff]  }
  0x3f   : > { %1609 = vmatprep.subr.bf16.mxu0 %v8742_v0  ;;  %8676 = vmatprep.subr.bf16.mxu1 %v8742_v0  ;;  %s8363_s17 = sshll.u32 %s929_s14, 9  ;;  %v8750_v6 = vld [vmem:[%s13713_s2 + $0x20] ss:$8 sps:$4 sm:$0xff]   ;;  %v8751_v7 = vld [vmem:[%s13713_s2 + $0x34] ss:$8 sps:$4 sm:$0xff]   ;;  %s8364_s29 = sshll.u32 %s8355_s24, 5 }
  0x40   : > { %1610 = vmatpush1.bf16.msra.mxu0 %v8744_v1  ;;  %8684 = vmatpush1.bf16.msra.mxu1 %v8744_v1  ;;  %s9360_s26 = scalar_lea.vmem [#allocation2], %s8363_s17  ;;  %v8753_v8 = vld [vmem:[%s13713_s2 + $0x30] ss:$8 sps:$4 sm:$0xff]   ;;  %v8754_v9 = vld [vmem:[%s13713_s2 + $0x44] ss:$8 sps:$4 sm:$0xff]   ;;  %p977_p8 = scmp.lt.s32.totalorder %s8364_s29, 63 }
  0x41   : > { %1611 = vmatprep.subr.bf16.mxu0 %v8745_v3  ;;  %8677 = vmatprep.subr.bf16.mxu1 %v8745_v3  ;;  %v8756_v10 = vld [vmem:[%s13713_s2 + $0x40] ss:$8 sps:$4 sm:$0xff]   ;;  %v8757_v11 = vld [vmem:[%s13713_s2 + $0x54] ss:$8 sps:$4 sm:$0xff]   ;;  %v8759_v12 = vld [vmem:[%s13713_s2 + $0x50] ss:$8 sps:$4 sm:$0xff]  }
  0x42   : > { %8724 = vset.pattern.permute.xlu1 %v13724_v2  ;;  %8723 = vset.pattern.permute.xlu0 %v13724_v2  ;;  %v8760_v13 = vld [vmem:[%s13713_s2 + $0x64] ss:$8 sps:$4 sm:$0xff]   ;;  %v8762_v14 = vld [vmem:[%s13713_s2 + $0x60] ss:$8 sps:$4 sm:$0xff]   ;;  %v8763_v15 = vld [vmem:[%s13713_s2 + $0x74] ss:$8 sps:$4 sm:$0xff]  }
  0x43   : > { %v8765_v16 = vld [vmem:[%s13713_s2 + $0x70] ss:$8 sps:$4 sm:$0xff]   ;;  %v8776_v17 = vld [vmem:[%s13717_s6 + $0x4] ss:$8 sps:$4 sm:$0xff]   ;;  %v8774_v19 = vld [vmem:[%s13717_s6] ss:$8 sps:$4 sm:$0xff]  }
  0x44   : > { %1612 = vmatpush1.bf16.msra.mxu0 %v8747_v4  ;;  %8685 = vmatpush1.bf16.msra.mxu1 %v8747_v4  ;;  %v8766_v18 = vld [vmem:[%s9360_s26] sm:$0xff]   ;;  %v8783_v20 = vld [vmem:[%s13717_s6 + $0x14] ss:$8 sps:$4 sm:$0xff]   ;;  %v8781_v21 = vld [vmem:[%s13717_s6 + $0x10] ss:$8 sps:$4 sm:$0xff]   ;;  %s14592_s29 = smov (!%p977_p8, %s8364_s29), 63 }
  0x45   : > { %1613 = vmatprep.subr.bf16.mxu0 %v8748_v5  ;;  %8678 = vmatprep.subr.bf16.mxu1 %v8748_v5  ;;  %v8789_v22 = vld [vmem:[%s13717_s6 + $0x24] ss:$8 sps:$4 sm:$0xff]   ;;  %v8787_v24 = vld [vmem:[%s13717_s6 + $0x20] ss:$8 sps:$4 sm:$0xff]   ;;  %v8768_v25 = vld [vmem:[%s9360_s26 + $0x10] sm:$0xff]   ;;  %s8365_s23 = sshll.u32 %s14592_s29, 3 }
  0x46   : > { %v8767_v23 = vld [vmem:[%s9360_s26 + $0x8] sm:$0xff]   ;;  %v8794_v26 = vld [vmem:[%s13717_s6 + $0x30] ss:$8 sps:$4 sm:$0xff]   ;;  %v8796_v27 = vld [vmem:[%s13717_s6 + $0x34] ss:$8 sps:$4 sm:$0xff]   ;;  %s10111_s30 = scalar_lea.vmem %s13712_s1, %s8365_s23  ;;  %s9096_s24 = smov 127  }
  0x47   : > { %v8769_v28 = vld [vmem:[%s9360_s26 + $0x18] sm:$0xff]   ;;  %v8798_v29 = vld [vmem:[%s9360_s26 + $0x1c0] sm:$0xff]   ;;  %v8806_v35 = vld [vmem:[%s9360_s26 + $0x1c8] sm:$0xff]   ;;  %s9100_s20 = smov 125   ;;  %s13636_s14 = scalar_lea.vmem %s13723_s12, %s8365_s23 }
  0x48   : > { %1614 = vmatpush1.bf16.msra.mxu0 %v8750_v6  ;;  %8686 = vmatpush1.bf16.msra.mxu1 %v8750_v6  ;;  %v8799_v30 = vld [vmem:[%s13715_s4] ss:$8 sps:$4 sm:$0xff]   ;;  %v8801_v31 = vld [vmem:[%s13715_s4 + $0x4] ss:$8 sps:$4 sm:$0xff]   ;;  %v8803_v33 = vld [vmem:[%s13715_s4 + $0x10] ss:$8 sps:$4 sm:$0xff]  }
  0x49   : > { %1615 = vmatprep.subr.bf16.mxu0 %v8751_v7  ;;  %8679 = vmatprep.subr.bf16.mxu1 %v8751_v7  ;;  %v8770_v32 = vld [vmem:[%s9360_s26 + $0x20] sm:$0xff]   ;;  %v8805_v34 = vld [vmem:[%s13715_s4 + $0x14] ss:$8 sps:$4 sm:$0xff]   ;;  %v8771_v38 = vld [vmem:[%s9360_s26 + $0x28] sm:$0xff]  }
  0x4a   : > { %v8807_v36 = vld [vmem:[%s13715_s4 + $0x20] ss:$8 sps:$4 sm:$0xff]   ;;  %v8809_v37 = vld [vmem:[%s13715_s4 + $0x24] ss:$8 sps:$4 sm:$0xff]   ;;  %v8811_v39 = vld [vmem:[%s13715_s4 + $0x30] ss:$8 sps:$4 sm:$0xff]  }
  0x4b   : > { %v8813_v40 = vld [vmem:[%s13715_s4 + $0x34] ss:$8 sps:$4 sm:$0xff]   ;;  %v8817_v42 = vld [vmem:[%s13715_s4 + $0x44] ss:$8 sps:$4 sm:$0xff]   ;;  %v8818_v43 = vld [vmem:[%s13717_s6 + $0x40] ss:$8 sps:$4 sm:$0xff]  }
  0x4c   : > { %1616 = vmatpush1.bf16.msra.mxu0 %v8753_v8  ;;  %8687 = vmatpush1.bf16.msra.mxu1 %v8753_v8  ;;  %v8814_v41 = vld [vmem:[%s9360_s26 + $0x1d0] sm:$0xff]   ;;  %v8815_v45 = vld [vmem:[%s13715_s4 + $0x40] ss:$8 sps:$4 sm:$0xff]   ;;  %v8820_v46 = vld [vmem:[%s13717_s6 + $0x44] ss:$8 sps:$4 sm:$0xff]  }
  0x4d   : > { %1617 = vmatprep.subr.bf16.mxu0 %v8754_v9  ;;  %8680 = vmatprep.subr.bf16.mxu1 %v8754_v9  ;;  %v8772_v44 = vld [vmem:[%s9360_s26 + $0x30] sm:$0xff]   ;;  %v8825_v49 = vld [vmem:[%s9360_s26 + $0x1d8] sm:$0xff]   ;;  %v8826_v50 = vld [vmem:[%s13715_s4 + $0x60] ss:$8 sps:$4 sm:$0xff]  }
  0x4e   : > { %v8822_v47 = vld [vmem:[%s13715_s4 + $0x50] ss:$8 sps:$4 sm:$0xff]   ;;  %v8824_v48 = vld [vmem:[%s13715_s4 + $0x54] ss:$8 sps:$4 sm:$0xff]   ;;  %v8828_v51 = vld [vmem:[%s13715_s4 + $0x64] ss:$8 sps:$4 sm:$0xff]  }
  0x4f   : > { %v8773_v52 = vld [vmem:[%s9360_s26 + $0x38] sm:$0xff]   ;;  %v8833_v55 = vld [vmem:[%s9360_s26 + $0x1e0] sm:$0xff]   ;;  %v8841_v61 = vld [vmem:[%s9360_s26 + $0x1e8] sm:$0xff]  }
  0x50   : > { %1618 = vmatpush1.bf16.msra.mxu0 %v8756_v10  ;;  %8688 = vmatpush1.bf16.msra.mxu1 %v8756_v10  ;;  %v8830_v53 = vld [vmem:[%s13715_s4 + $0x70] ss:$8 sps:$4 sm:$0xff]   ;;  %v8832_v54 = vld [vmem:[%s13715_s4 + $0x74] ss:$8 sps:$4 sm:$0xff]   ;;  %v8834_v56 = vld [vmem:[%s13715_s4 + $0x80] ss:$8 sps:$4 sm:$0xff]  }
  0x51   : > { %1619 = vmatprep.subr.bf16.mxu0 %v8757_v11  ;;  %8681 = vmatprep.subr.bf16.mxu1 %v8757_v11  ;;  %v8836_v57 = vld [vmem:[%s13715_s4 + $0x84] ss:$8 sps:$4 sm:$0xff]   ;;  %v8838_v59 = vld [vmem:[%s13715_s4 + $0x90] ss:$8 sps:$4 sm:$0xff]   ;;  %v8840_v60 = vld [vmem:[%s13715_s4 + $0x94] ss:$8 sps:$4 sm:$0xff]  }
  0x52   : > { %v8777_v58 = vld [vmem:[%s9360_s26 + $0x40] sm:$0xff]   ;;  %v8778_v0 = vld [vmem:[%s9360_s26 + $0x48] sm:$0xff]   ;;  %v8846_v1 = vld [vmem:[%s13715_s4 + $0xb0] ss:$8 sps:$4 sm:$0xff]  }
  0x53   : > { %v8842_v62 = vld [vmem:[%s13715_s4 + $0xa0] ss:$8 sps:$4 sm:$0xff]   ;;  %v8844_v63 = vld [vmem:[%s13715_s4 + $0xa4] ss:$8 sps:$4 sm:$0xff]   ;;  %v8848_v3 = vld [vmem:[%s13715_s4 + $0xb4] ss:$8 sps:$4 sm:$0xff]  }
  0x54   : > { %1620 = vmatpush1.bf16.msra.mxu0 %v8759_v12  ;;  %8689 = vmatpush1.bf16.msra.mxu1 %v8759_v12  ;;  %v8849_v4 = vld [vmem:[%s9360_s26 + $0x1f0] sm:$0xff]   ;;  %v8853_v8 = vld [vmem:[%s13715_s4 + $0xc0] ss:$8 sps:$4 sm:$0xff]   ;;  %v8855_v9 = vld [vmem:[%s13715_s4 + $0xc4] ss:$8 sps:$4 sm:$0xff]  }
  0x55   : > { %1621 = vmatprep.subr.bf16.mxu0 %v8760_v13  ;;  %8682 = vmatprep.subr.bf16.mxu1 %v8760_v13  ;;  %v8850_v5 = vld [vmem:[%s13717_s6 + $0x50] ss:$8 sps:$4 sm:$0xff]   ;;  %v8852_v6 = vld [vmem:[%s13717_s6 + $0x54] ss:$8 sps:$4 sm:$0xff]  }
  0x56   : > { %v8779_v7 = vld [vmem:[%s9360_s26 + $0x50] sm:$0xff]   ;;  %v8860_v12 = vld [vmem:[%s9360_s26 + $0x1f8] sm:$0xff]  }
  0x57   : > { %v8857_v10 = vld [vmem:[%s13715_s4 + $0xd0] ss:$8 sps:$4 sm:$0xff]   ;;  %v8859_v11 = vld [vmem:[%s13715_s4 + $0xd4] ss:$8 sps:$4 sm:$0xff]  }
  0x58   : > { %1622 = vmatpush1.bf16.msra.mxu0 %v8762_v14  ;;  %8690 = vmatpush1.bf16.msra.mxu1 %v8762_v14  ;;  %v8780_v13 = vld [vmem:[%s9360_s26 + $0x58] sm:$0xff]   ;;  %v8863_v14 = vld [vmem:[%s13715_s4 + $0xe4] ss:$8 sps:$4 sm:$0xff]  }
  0x59   : > { %1623 = vmatprep.subr.bf16.mxu0 %v8763_v15  ;;  %8683 = vmatprep.subr.bf16.mxu1 %v8763_v15  ;;  %v8861_v15 = vld [vmem:[%s13715_s4 + $0xe0] ss:$8 sps:$4 sm:$0xff]  }
  0x5c   : > { %1624 = vmatpush1.bf16.msra.mxu0 %v8765_v16  ;;  %8691 = vmatpush1.bf16.msra.mxu1 %v8765_v16  ;;  %v8867_v16 = vld [vmem:[%s13715_s4 + $0xf4] ss:$8 sps:$4 sm:$0xff]  }
  0x5d   : > { %4131 = vmatprep.subr.bf16.mxu0 %v8776_v17  ;;  %2870 = vmatprep.subr.bf16.mxu1 %v8801_v31  ;;  %v8865_v17 = vld [vmem:[%s13715_s4 + $0xf0] ss:$8 sps:$4 sm:$0xff]   ;;  %v8802_v31 = vld [vmem:[%s9360_s26 + $0xa0] sm:$0xff]  }
  0x5f   : > { %1642 = vmatmul.mubr.bf16.vlgmr.msra.gmra.mrb[0].mxu0 %v8766_v18  ;;  %2202 = vmatmul.mubr.bf16.vlgmr.msra.gmra.mrb[0].mxu1 %v8798_v29  ;;  %v8784_v18 = vld [vmem:[%s9360_s26 + $0x60] sm:$0xff]   ;;  %v8793_v29 = vld [vmem:[%s9360_s26 + $0x90] sm:$0xff]  }
  0x60   : > { %1651 = vmatprep.mubr.bf16.mxu0 %v13724_v2  ;;  %4132 = vmatpush1.bf16.msra.mxu0 %v8774_v19  ;;  %v8870_v19 = vld [vmem:[%s13719_s8 + $0x4] ss:$8 sps:$4 sm:$0xff]  }
  0x61   : > { %4133 = vmatprep.subr.bf16.mxu0 %v8783_v20  ;;  %2871 = vmatpush1.bf16.msra.mxu1 %v8799_v30  ;;  %v8785_v20 = vld [vmem:[%s9360_s26 + $0x68] sm:$0xff]   ;;  %v8797_v30 = vld [vmem:[%s9360_s26 + $0x98] sm:$0xff]  }
  0x62   : > { %2211 = vmatprep.mubr.bf16.mxu1 %v13724_v2  ;;  %2872 = vmatprep.subr.bf16.mxu1 %v8805_v34  ;;  %v8810_v34 = vld [vmem:[%s9360_s26 + $0xa8] sm:$0xff]  }
  0x64   : > { %4134 = vmatpush1.bf16.msra.mxu0 %v8781_v21  ;;  %v8872_v21 = vld [vmem:[%s13717_s6 + $0x60] ss:$8 sps:$4 sm:$0xff]  }
  0x65   : > { %4135 = vmatprep.subr.bf16.mxu0 %v8789_v22  ;;  %2873 = vmatpush1.bf16.msra.mxu1 %v8803_v33  ;;  %v8874_v22 = vld [vmem:[%s13717_s6 + $0x64] ss:$8 sps:$4 sm:$0xff]  }
  0x66   : > { %2874 = vmatprep.subr.bf16.mxu1 %v8809_v37  ;;  %v8893_v33 = vld [vmem:[%s13717_s6 + $0x84] ss:$8 sps:$4 sm:$0xff]  }
  0x67   : > { %1652 = vmatmul.mubr.bf16.gmra.mrb[4].mxu0 %v8767_v23  ;;  %2212 = vmatmul.mubr.bf16.gmra.mrb[4].mxu1 %v8806_v35  ;;  %v8786_v23 = vld [vmem:[%s9360_s26 + $0x70] sm:$0xff]   ;;  %v8837_v37 = vld [vmem:[%s9360_s26 + $0xc0] sm:$0xff]  }
  0x68   : > { %1661 = vmatprep.mubr.bf16.mxu0 %v13724_v2  ;;  %4136 = vmatpush1.bf16.msra.mxu0 %v8787_v24  ;;  %v8790_v24 = vld [vmem:[%s9360_s26 + $0x78] sm:$0xff]   ;;  %v8821_v35 = vld [vmem:[%s9360_s26 + $0xb0] sm:$0xff]  }
  0x69   : > { %4137 = vmatprep.subr.bf16.mxu0 %v8796_v27  ;;  %2221 = vmatprep.mubr.bf16.mxu1 %v13724_v2  ;;  %v8882_v27 = vld [vmem:[%s13717_s6 + $0x70] ss:$8 sps:$4 sm:$0xff]  }
  0x6a   : > { %2875 = vmatpush1.bf16.msra.mxu1 %v8807_v36  ;;  %v8829_v36 = vld [vmem:[%s9360_s26 + $0xb8] sm:$0xff]  }
  0x6b   : > { %2876 = vmatprep.subr.bf16.mxu1 %v8813_v40  ;;  %v8845_v40 = vld [vmem:[%s9360_s26 + $0xc8] sm:$0xff]  }
  0x6c   : > { %4138 = vmatpush1.bf16.msra.mxu0 %v8794_v26  ;;  %v8792_v26 = vld [vmem:[%s9360_s26 + $0x88] sm:$0xff]  }
  0x6d   : > { %4139 = vmatprep.subr.bf16.mxu0 %v8820_v46 }
  0x6e   : > { %2877 = vmatpush1.bf16.msra.mxu1 %v8811_v39  ;;  %v8900_v39 = vld [vmem:[%s13717_s6 + $0x94] ss:$8 sps:$4 sm:$0xff]  }
  0x6f   : > { %1662 = vmatmul.mubr.bf16.gmra.mrb[8].mxu0 %v8768_v25  ;;  %2222 = vmatmul.mubr.bf16.gmra.mrb[8].mxu1 %v8814_v41  ;;  %v8791_v25 = vld [vmem:[%s9360_s26 + $0x80] sm:$0xff]   ;;  %v1135_v41 = vlaneseq }
  0x70   : > { %1671 = vmatprep.mubr.bf16.mxu0 %v13724_v2  ;;  %2231 = vmatprep.mubr.bf16.mxu1 %v13724_v2 }
  0x71   : > { %2878 = vmatprep.subr.bf16.mxu1 %v8817_v42  ;;  %4140 = vmatpush1.bf16.msra.mxu0 %v8818_v43  ;;  %v1136_v42 = vshrl.u32 %v1135_v41, 7  ;;  %v8856_v43 = vld [vmem:[%s9360_s26 + $0xd0] sm:$0xff]  }
  0x72   : > { %2879 = vmatpush1.bf16.msra.mxu1 %v8815_v45  ;;  %4141 = vmatprep.subr.bf16.mxu0 %v8852_v6  ;;  %v1133_v45 = vld [vmem:[%s13714_s3] sm:$0x3] }
  0x73   : > { %2880 = vmatprep.subr.bf16.mxu1 %v8824_v48  ;;  %v9621_v46 = vsub.s32 1, %v1136_v42 }
  0x75   : > { %4142 = vmatpush1.bf16.msra.mxu0 %v8850_v5  ;;  %13863 = vst [vmem:[#allocation3_spill] sm:$0xff] %v9621_v46  ;;  %v9627_v48 = vrot.slane %v1133_v45, %v9621_v46 }
  0x76   : > { %2881 = vmatpush1.bf16.msra.mxu1 %v8822_v47  ;;  %4143 = vmatprep.subr.bf16.mxu0 %v8874_v22 }
  0x77   : > { %1672 = vmatmul.mubr.bf16.gmra.mrb[12].mxu0 %v8769_v28  ;;  %2232 = vmatmul.mubr.bf16.gmra.mrb[12].mxu1 %v8825_v49  ;;  %v8884_v28 = vld [vmem:[%s13717_s6 + $0x74] ss:$8 sps:$4 sm:$0xff]  }
  0x78   : > { %1681 = vmatprep.mubr.bf16.mxu0 %v13724_v2  ;;  %2241 = vmatprep.mubr.bf16.mxu1 %v13724_v2 }
  0x79   : > { %2882 = vmatprep.subr.bf16.mxu1 %v8828_v51  ;;  %4144 = vmatpush1.bf16.msra.mxu0 %v8872_v21 }
  0x7a   : > { %2883 = vmatpush1.bf16.msra.mxu1 %v8826_v50  ;;  %4145 = vmatprep.subr.bf16.mxu0 %v8884_v28 }
  0x7b   : > { %2884 = vmatprep.subr.bf16.mxu1 %v8832_v54 }
  0x7d   : > { %4146 = vmatpush1.bf16.msra.mxu0 %v8882_v27  ;;  %v8903_v27 = vld [vmem:[%s13719_s8 + $0x34] ss:$8 sps:$4 sm:$0xff]  }
  0x7e   : > { %2885 = vmatpush1.bf16.msra.mxu1 %v8830_v53  ;;  %4147 = vmatprep.subr.bf16.mxu0 %v8893_v33  ;;  %v8901_v33 = vld [vmem:[%s13719_s8 + $0x30] ss:$8 sps:$4 sm:$0xff]  }
  0x7f   : > { %1682 = vmatmul.mubr.bf16.gmra.mrb[16].mxu0 %v8770_v32  ;;  %2242 = vmatmul.mubr.bf16.gmra.mrb[16].mxu1 %v8833_v55  ;;  %v8891_v32 = vld [vmem:[%s13717_s6 + $0x80] ss:$8 sps:$4 sm:$0xff]  }
  0x80   : > { %1691 = vmatprep.mubr.bf16.mxu0 %v13724_v2  ;;  %2251 = vmatprep.mubr.bf16.mxu1 %v13724_v2 }
  0x81   : > { %2886 = vmatprep.subr.bf16.mxu1 %v8836_v57  ;;  %4148 = vmatpush1.bf16.msra.mxu0 %v8891_v32 }
  0x82   : > { %2887 = vmatpush1.bf16.msra.mxu1 %v8834_v56  ;;  %4149 = vmatprep.subr.bf16.mxu0 %v8900_v39 }
  0x83   : > { %2888 = vmatprep.subr.bf16.mxu1 %v8840_v60 }
  0x86   : > { %2889 = vmatpush1.bf16.msra.mxu1 %v8838_v59 }
  0x87   : > { %1692 = vmatmul.mubr.bf16.gmra.mrb[20].mxu0 %v8771_v38  ;;  %2252 = vmatmul.mubr.bf16.gmra.mrb[20].mxu1 %v8841_v61  ;;  %v8898_v38 = vld [vmem:[%s13717_s6 + $0x90] ss:$8 sps:$4 sm:$0xff]  }
  0x88   : > { %1701 = vmatprep.mubr.bf16.mxu0 %v13724_v2  ;;  %2261 = vmatprep.mubr.bf16.mxu1 %v13724_v2 }
  0x89   : > { %2890 = vmatprep.subr.bf16.mxu1 %v8844_v63  ;;  %4150 = vmatpush1.bf16.msra.mxu0 %v8898_v38  ;;  %v8909_v63 = vld [vmem:[%s13717_s6 + $0xa4] ss:$8 sps:$4 sm:$0xff]  }
  0x8a   : > { %2891 = vmatpush1.bf16.msra.mxu1 %v8842_v62  ;;  %v8907_v62 = vld [vmem:[%s13717_s6 + $0xa0] ss:$8 sps:$4 sm:$0xff]   ;;  %4151 = vmatprep.subr.bf16.mxu0 %v8909_v63 }
  0x8b   : > { %2892 = vmatprep.subr.bf16.mxu1 %v8848_v3 }
  0x8d   : > { %4152 = vmatpush1.bf16.msra.mxu0 %v8907_v62 }
  0x8e   : > { %2893 = vmatpush1.bf16.msra.mxu1 %v8846_v1 }
  0x8f   : > { %1702 = vmatmul.mubr.bf16.gmra.mrb[24].mxu0 %v8772_v44  ;;  %2262 = vmatmul.mubr.bf16.gmra.mrb[24].mxu1 %v8849_v4  ;;  %v9616_v44 = vsub.s32 0, %v1136_v42  ;;  %v8868_v4 = vld [vmem:[%s13719_s8] ss:$8 sps:$4 sm:$0xff]  }
  0x90   : > { %1711 = vmatprep.mubr.bf16.mxu0 %v13724_v2  ;;  %2894 = vmatprep.subr.bf16.mxu1 %v8855_v9  ;;  %v8911_v42 = vld [vmem:[%s13719_s8 + $0x40] ss:$8 sps:$4 sm:$0xff]  }
  0x91   : > { %2271 = vmatprep.mubr.bf16.mxu1 %v13724_v2  ;;  %v9624_v47 = vrot.slane %v1133_v45, %v9616_v44 }
  0x92   : > { %2895 = vmatpush1.bf16.msra.mxu1 %v8853_v8  ;;  %v8880_v8 = vld [vmem:[%s13719_s8 + $0x14] ss:$8 sps:$4 sm:$0xff]  }
  0x93   : > { %2896 = vmatprep.subr.bf16.mxu1 %v8859_v11 }
  0x96   : > { %2897 = vmatpush1.bf16.msra.mxu1 %v8857_v10 }
  0x97   : > { %1712 = vmatmul.mubr.bf16.gmra.mrb[28].mxu0 %v8773_v52  ;;  %2272 = vmatmul.mubr.bf16.gmra.mrb[28].mxu1 %v8860_v12  ;;  %v8864_v52 = vld [vmem:[%s9360_s26 + $0xd8] sm:$0xff]  }
  0x98   : > { %1721 = vmatprep.mubr.bf16.mxu0 %v13724_v2  ;;  %2898 = vmatprep.subr.bf16.mxu1 %v8863_v14  ;;  %v8878_v14 = vld [vmem:[%s13719_s8 + $0x10] ss:$8 sps:$4 sm:$0xff]  }
  0x9a   : > { %2899 = vmatpush1.bf16.msra.mxu1 %v8861_v15 }
  0x9b   : > { %2900 = vmatprep.subr.bf16.mxu1 %v8867_v16 }
  0x9e   : > { %2901 = vmatpush1.bf16.msra.mxu1 %v8865_v17  ;;  %v8890_v17 = vld [vmem:[%s13719_s8 + $0x24] ss:$8 sps:$4 sm:$0xff]  }
  0x9f   : > { %1722 = vmatmul.mubr.bf16.gmra.mrb[32].mxu0 %v8777_v58  ;;  %5392 = vmatprep.subr.bf16.mxu1 %v8870_v19 }
  0xa0   : > { %1731 = vmatprep.mubr.bf16.mxu0 %v13724_v2 }
  0xa7   : > { %1732 = vmatmul.mubr.bf16.gmra.mrb[36].mxu0 %v8778_v0 }
  0xa8   : > { %1741 = vmatprep.mubr.bf16.mxu0 %v13724_v2 }
  0xaf   : > { %1742 = vmatmul.mubr.bf16.gmra.mrb[40].mxu0 %v8779_v7  ;;  %v8871_v7 = vld [vmem:[%s9360_s26 + $0xe0] sm:$0xff]  }
  0xb0   : > { %1751 = vmatprep.mubr.bf16.mxu0 %v13724_v2 }
  0xb7   : > { %1752 = vmatmul.mubr.bf16.gmra.mrb[44].mxu0 %v8780_v13 }
  0xb8   : > { %1761 = vmatprep.mubr.bf16.mxu0 %v13724_v2 }
  0xbf   : > { %1762 = vmatmul.mubr.bf16.gmra.mrb[48].mxu0 %v8784_v18 }
  0xc0   : > { %1771 = vmatprep.mubr.bf16.mxu0 %v13724_v2 }
  0xc7   : > { %1772 = vmatmul.mubr.bf16.gmra.mrb[52].mxu0 %v8785_v20 }
  0xc8   : > { %1781 = vmatprep.mubr.bf16.mxu0 %v13724_v2 }
  0xcf   : > { %1782 = vmatmul.mubr.bf16.gmra.mrb[56].mxu0 %v8786_v23  ;;  %v8888_v23 = vld [vmem:[%s13719_s8 + $0x20] ss:$8 sps:$4 sm:$0xff]  }
  0xd0   : > { %1791 = vmatprep.mubr.bf16.mxu0 %v13724_v2 }
  0xd7   : > { %1792 = vmatmul.mubr.bf16.gmra.mrb[60].mxu0 %v8790_v24 }
  0xd8   : > { %1801 = vmatprep.mubr.bf16.mxu0 %v13724_v2 }
  0xdf   : > { %1802 = vmatmul.mubr.bf16.gmra.mrb[64].mxu0 %v8791_v25 }
  0xe0   : > { %1811 = vmatprep.mubr.bf16.mxu0 %v13724_v2 }
  0xe7   : > { %1812 = vmatmul.mubr.bf16.gmra.mrb[68].mxu0 %v8792_v26  ;;  %v8875_v26 = vld [vmem:[%s9360_s26 + $0xe8] sm:$0xff]  }
  0xe8   : > { %1821 = vmatprep.mubr.bf16.mxu0 %v13724_v2 }
  0xef   : > { %1822 = vmatmul.mubr.bf16.gmra.mrb[72].mxu0 %v8793_v29 }
  0xf0   : > { %1831 = vmatprep.mubr.bf16.mxu0 %v13724_v2 }
  0xf7   : > { %1832 = vmatmul.mubr.bf16.gmra.mrb[76].mxu0 %v8797_v30 }
  0xf8   : > { %1841 = vmatprep.mubr.bf16.mxu0 %v13724_v2 }
  0xff   : > { %1842 = vmatmul.mubr.bf16.gmra.mrb[80].mxu0 %v8802_v31 }
 0x100   : > { %1851 = vmatprep.mubr.bf16.mxu0 %v13724_v2 }
 0x107   : > { %1852 = vmatmul.mubr.bf16.gmra.mrb[84].mxu0 %v8810_v34 }
 0x108   : > { %1861 = vmatprep.mubr.bf16.mxu0 %v13724_v2 }
 0x10f   : > { %1862 = vmatmul.mubr.bf16.gmra.mrb[88].mxu0 %v8821_v35 }
 0x110   : > { %1871 = vmatprep.mubr.bf16.mxu0 %v13724_v2 }
 0x117   : > { %1872 = vmatmul.mubr.bf16.gmra.mrb[92].mxu0 %v8829_v36  ;;  %v8913_v36 = vld [vmem:[%s13719_s8 + $0x44] ss:$8 sps:$4 sm:$0xff]  }
 0x118   : > { %1881 = vmatprep.mubr.bf16.mxu0 %v13724_v2 }
 0x11f   : > { %1882 = vmatmul.mubr.bf16.gmra.mrb[96].mxu0 %v8837_v37 }
 0x120   : > { %1891 = vmatprep.mubr.bf16.mxu0 %v13724_v2 }
 0x127   : > { %1892 = vmatmul.mubr.bf16.gmra.mrb[100].mxu0 %v8845_v40 }
 0x128   : > { %1901 = vmatprep.mubr.bf16.mxu0 %v13724_v2 }
 0x12f   : > { %1902 = vmatmul.mubr.bf16.gmra.mrb[104].mxu0 %v8856_v43 }
 0x130   : > { %1911 = vmatprep.mubr.bf16.mxu0 %v13724_v2 }
 0x132   : > { %v1643_v49 = vpop.f32.mrb[0].mxu0 }
 0x133   : > { %v1644_v50 = vadd.f32 %v1643_v49, %v9624_v47  ;;  %v1645_v51 = vpop.f32.mrb[1].mxu0  ;;  %v8876_v49 = vld [vmem:[%s9360_s26 + $0xf0] sm:$0xff]  }
 0x134   : > { %v1646_v53 = vadd.f32 %v1645_v51, %v9627_v48  ;;  %v1647_v54 = vpop.f32.mrb[2].mxu0 }
 0x135   : > { %v1648_v55 = vadd.f32 %v1647_v54, %v9624_v47  ;;  %v1649_v56 = vpop.f32.mrb[3].mxu0  ;;  %v2282_v58 = vmax.f32 %v1644_v50, 0.0  ;;  %v2203_v54 = vpop.f32.mrb[0].mxu1 }
 0x136   : > { %v1650_v57 = vadd.f32 %v1649_v56, %v9627_v48  ;;  %v2283_v60 = vmax.f32 %v1646_v53, 0.0  ;;  %v2205_v56 = vpop.f32.mrb[1].mxu1  ;;  %v2204_v62 = vadd.f32 %v2203_v54, %v9624_v47 }
 0x137   : > { %v2284_v59 = vmax.f32 %v1648_v55, 0.0  ;;  %1912 = vmatmul.mubr.bf16.gmra.mrb[108].mxu0 %v8864_v52  ;;  %v2206_v63 = vadd.f32 %v2205_v56, %v9627_v48 }
 0x138   : > { %v2285_v61 = vmax.f32 %v1650_v57, 0.0  ;;  %1921 = vmatprep.mubr.bf16.mxu0 %v13724_v2 }
 0x139   : > { %v2538_v0 = vpack.c.bf16 %v2284_v59, %v2282_v58 }
 0x13a   : > { %v1653_v1 = vpop.f32.mrb[4].mxu0  ;;  %v2539_v3 = vpack.c.bf16 %v2285_v61, %v2283_v60  ;;  %v2207_v60 = vpop.f32.mrb[2].mxu1 }
 0x13b   : > { %v1654_v5 = vadd.f32 %v1653_v1, %v9624_v47  ;;  %v1655_v6 = vpop.f32.mrb[5].mxu0  ;;  %v2209_v1 = vpop.f32.mrb[3].mxu1 }
 0x13c   : > { %v1656_v9 = vadd.f32 %v1655_v6, %v9627_v48  ;;  %v1657_v10 = vpop.f32.mrb[6].mxu0  ;;  %2902 = vmatprep.mubr.bf16.mxu1 %v2539_v3 }
 0x13d   : > { %v1658_v11 = vadd.f32 %v1657_v10, %v9624_v47  ;;  %v1659_v12 = vpop.f32.mrb[7].mxu0  ;;  %2903 = vmatmul.mubr.bf16.vlgmr.msra.gmra.mrb[32].mxu1 %v2538_v0  ;;  %v2286_v15 = vmax.f32 %v1654_v5, 0.0  ;;  %v2208_v0 = vadd.f32 %v2207_v60, %v9624_v47 }
 0x13e   : > { %v1660_v13 = vadd.f32 %v1659_v12, %v9627_v48  ;;  %5393 = vmatpush1.bf16.msra.mxu1 %v8868_v4  ;;  %v2287_v18 = vmax.f32 %v1656_v9, 0.0  ;;  %v2210_v4 = vadd.f32 %v2209_v1, %v9627_v48  ;;  %v8877_v12 = vld [vmem:[%s9360_s26 + $0xf8] sm:$0xff]  }
 0x13f   : > { %v2288_v16 = vmax.f32 %v1658_v11, 0.0  ;;  %1922 = vmatmul.mubr.bf16.gmra.mrb[112].mxu0 %v8871_v7  ;;  %5394 = vmatprep.subr.bf16.mxu1 %v8880_v8  ;;  %v2506_v7 = vmax.f32 %v2204_v62, 0.0  ;;  %v2507_v8 = vmax.f32 %v2206_v63, 0.0  ;;  %v2508_v9 = vmax.f32 %v2208_v0, 0.0  ;;  %v8923_v62 = vld [vmem:[%s13719_s8 + $0x54] ss:$8 sps:$4 sm:$0xff]  }
 0x140   : > { %v2289_v19 = vmax.f32 %v1660_v13, 0.0  ;;  %1931 = vmatprep.mubr.bf16.mxu0 %v13724_v2  ;;  %v2509_v13 = vmax.f32 %v2210_v4, 0.0 }
 0x141   : > { %v2540_v20 = vpack.c.bf16 %v2288_v16, %v2286_v15  ;;  %v9694_v16 = vpack.c.bf16 %v2508_v9, %v2506_v7 }
 0x142   : > { %v1663_v21 = vpop.f32.mrb[8].mxu0  ;;  %v2541_v22 = vpack.c.bf16 %v2289_v19, %v2287_v18  ;;  %5395 = vmatpush1.bf16.msra.mxu1 %v8878_v14  ;;  %v8917_v19 = vld [vmem:[%s13717_s6 + $0xb0] ss:$8 sps:$4 sm:$0xff]  }
 0x143   : > { %v1664_v24 = vadd.f32 %v1663_v21, %v9624_v47  ;;  %v1665_v25 = vpop.f32.mrb[9].mxu0  ;;  %5396 = vmatprep.subr.bf16.mxu1 %v8890_v17  ;;  %v9703_v21 = vpack.c.bf16 %v2509_v13, %v2507_v8 }
 0x144   : > { %v1666_v28 = vadd.f32 %v1665_v25, %v9627_v48  ;;  %v1667_v29 = vpop.f32.mrb[10].mxu0  ;;  %2912 = vmatprep.mubr.bf16.mxu1 %v2541_v22 }
 0x145   : > { %v1668_v30 = vadd.f32 %v1667_v29, %v9624_v47  ;;  %v1669_v31 = vpop.f32.mrb[11].mxu0  ;;  %2913 = vmatmul.mubr.bf16.gmra.mrb[36].mxu1 %v2540_v20  ;;  %v2290_v34 = vmax.f32 %v1664_v24, 0.0  ;;  %v8919_v20 = vld [vmem:[%s13717_s6 + $0xb4] ss:$8 sps:$4 sm:$0xff]  }
 0x146   : > { %v1670_v32 = vadd.f32 %v1669_v31, %v9627_v48  ;;  %5397 = vmatpush1.bf16.msra.mxu1 %v8888_v23  ;;  %v2291_v37 = vmax.f32 %v1666_v28, 0.0  ;;  %v2213_v23 = vpop.f32.mrb[4].mxu1  ;;  %4153 = vmatprep.subr.bf16.mxu0 %v8919_v20 }
 0x147   : > { %v2292_v35 = vmax.f32 %v1668_v30, 0.0  ;;  %1932 = vmatmul.mubr.bf16.gmra.mrb[116].mxu0 %v8875_v26  ;;  %5398 = vmatprep.subr.bf16.mxu1 %v8903_v27  ;;  %v2215_v26 = vpop.f32.mrb[5].mxu1  ;;  %v2214_v29 = vadd.f32 %v2213_v23, %v9624_v47 }
 0x148   : > { %v2293_v38 = vmax.f32 %v1670_v32, 0.0  ;;  %1941 = vmatprep.mubr.bf16.mxu0 %v13724_v2  ;;  %4154 = vmatpush1.bf16.msra.mxu0 %v8917_v19  ;;  %v2216_v30 = vadd.f32 %v2215_v26, %v9627_v48  ;;  %v2217_v31 = vpop.f32.mrb[6].mxu1 }
 0x149   : > { %v2542_v39 = vpack.c.bf16 %v2292_v35, %v2290_v34  ;;  %v2219_v34 = vpop.f32.mrb[7].mxu1 }
 0x14a   : > { %v1673_v40 = vpop.f32.mrb[12].mxu0  ;;  %v2543_v41 = vpack.c.bf16 %v2293_v38, %v2291_v37  ;;  %5399 = vmatpush1.bf16.msra.mxu1 %v8901_v33  ;;  %v2218_v33 = vadd.f32 %v2217_v31, %v9624_v47  ;;  %v2510_v37 = vmax.f32 %v2214_v29, 0.0  ;;  %v2511_v38 = vmax.f32 %v2216_v30, 0.0  ;;  %v2223_v54 = vpop.f32.mrb[8].mxu1 }
 0x14b   : > { %v1674_v43 = vadd.f32 %v1673_v40, %v9624_v47  ;;  %v1675_v45 = vpop.f32.mrb[13].mxu0  ;;  %5400 = vmatprep.subr.bf16.mxu1 %v8913_v36  ;;  %v2224_v1 = vadd.f32 %v2223_v54, %v9624_v47 }
 0x14c   : > { %v1676_v50 = vadd.f32 %v1675_v45, %v9627_v48  ;;  %v1677_v51 = vpop.f32.mrb[14].mxu0  ;;  %2922 = vmatprep.mubr.bf16.mxu1 %v2543_v41 }
 0x14d   : > { %v1678_v52 = vadd.f32 %v1677_v51, %v9624_v47  ;;  %v1679_v53 = vpop.f32.mrb[15].mxu0  ;;  %2923 = vmatmul.mubr.bf16.gmra.mrb[40].mxu1 %v2542_v39  ;;  %v2294_v57 = vmax.f32 %v1674_v43, 0.0  ;;  %v2220_v39 = vadd.f32 %v2219_v34, %v9627_v48  ;;  %v2512_v43 = vmax.f32 %v2218_v33, 0.0 }
 0x14e   : > { %v1680_v55 = vadd.f32 %v1679_v53, %v9627_v48  ;;  %5401 = vmatpush1.bf16.msra.mxu1 %v8911_v42  ;;  %v2295_v58 = vmax.f32 %v1676_v50, 0.0  ;;  %v8881_v42 = vld [vmem:[%s9360_s26 + $0x100] sm:$0xff]  }
 0x14f   : > { %v2296_v59 = vmax.f32 %v1678_v52, 0.0  ;;  %1942 = vmatmul.mubr.bf16.gmra.mrb[120].mxu0 %v8876_v49  ;;  %v2513_v50 = vmax.f32 %v2220_v39, 0.0  ;;  %v9715_v53 = vpack.c.bf16 %v2512_v43, %v2510_v37  ;;  %5402 = vmatprep.subr.bf16.mxu1 %v8923_v62 }
 0x150   : > { %v2297_v61 = vmax.f32 %v1680_v55, 0.0  ;;  %1951 = vmatprep.mubr.bf16.mxu0 %v13724_v2 }
 0x151   : > { %v2544_v3 = vpack.c.bf16 %v2296_v59, %v2294_v57  ;;  %v9718_v59 = vpack.c.bf16 %v2513_v50, %v2511_v38  ;;  %v8886_v50 = vld [vmem:[%s9360_s26 + $0x110] sm:$0xff]  }
 0x152   : > { %v1683_v5 = vpop.f32.mrb[16].mxu0  ;;  %v2545_v6 = vpack.c.bf16 %v2297_v61, %v2295_v58  ;;  %v2225_v58 = vpop.f32.mrb[9].mxu1  ;;  %v8921_v61 = vld [vmem:[%s13719_s8 + $0x50] ss:$8 sps:$4 sm:$0xff]  }
 0x153   : > { %v1684_v10 = vadd.f32 %v1683_v5, %v9624_v47  ;;  %v1685_v11 = vpop.f32.mrb[17].mxu0  ;;  %v2227_v63 = vpop.f32.mrb[10].mxu1  ;;  %5403 = vmatpush1.bf16.msra.mxu1 %v8921_v61 }
 0x154   : > { %v1686_v14 = vadd.f32 %v1685_v11, %v9627_v48  ;;  %v1687_v15 = vpop.f32.mrb[18].mxu0  ;;  %2932 = vmatprep.mubr.bf16.mxu1 %v2545_v6  ;;  %v2228_v4 = vadd.f32 %v2227_v63, %v9624_v47  ;;  %v2229_v5 = vpop.f32.mrb[11].mxu1 }
 0x155   : > { %v1688_v17 = vadd.f32 %v1687_v15, %v9624_v47  ;;  %v1689_v18 = vpop.f32.mrb[19].mxu0  ;;  %2933 = vmatmul.mubr.bf16.gmra.mrb[44].mxu1 %v2544_v3  ;;  %v2298_v24 = vmax.f32 %v1684_v10, 0.0  ;;  %v2226_v3 = vadd.f32 %v2225_v58, %v9627_v48  ;;  %v2230_v7 = vadd.f32 %v2229_v5, %v9627_v48  ;;  %v8885_v15 = vld [vmem:[%s9360_s26 + $0x108] sm:$0xff]  }
 0x156   : > { %v1690_v22 = vadd.f32 %v1689_v18, %v9627_v48  ;;  %v2299_v27 = vmax.f32 %v1686_v14, 0.0  ;;  %v2514_v10 = vmax.f32 %v2224_v1, 0.0 }
 0x157   : > { %v2300_v25 = vmax.f32 %v1688_v17, 0.0  ;;  %1952 = vmatmul.mubr.bf16.gmra.mrb[124].mxu0 %v8877_v12  ;;  %v2515_v11 = vmax.f32 %v2226_v3, 0.0  ;;  %v2516_v12 = vmax.f32 %v2228_v4, 0.0  ;;  %v2517_v17 = vmax.f32 %v2230_v7, 0.0  ;;  %v8926_v7 = vld [vmem:[%s13717_s6 + $0xc0] ss:$8 sps:$4 sm:$0xff]  }
 0x158   : > { %v2301_v28 = vmax.f32 %v1690_v22, 0.0  ;;  %1961 = vmatprep.mubr.bf16.mxu0 %v13724_v2 }
 0x159   : > { %v2546_v32 = vpack.c.bf16 %v2300_v25, %v2298_v24  ;;  %v9734_v20 = vpack.c.bf16 %v2516_v12, %v2514_v10  ;;  %v2233_v24 = vpop.f32.mrb[12].mxu1  ;;  %v9737_v25 = vpack.c.bf16 %v2517_v17, %v2515_v11 }
 0x15a   : > { %v1693_v35 = vpop.f32.mrb[20].mxu0  ;;  %v2547_v36 = vpack.c.bf16 %v2301_v28, %v2299_v27  ;;  %v2235_v27 = vpop.f32.mrb[13].mxu1  ;;  %v2234_v33 = vadd.f32 %v2233_v24, %v9624_v47 }
 0x15b   : > { %v1694_v40 = vadd.f32 %v1693_v35, %v9624_v47  ;;  %v1695_v41 = vpop.f32.mrb[21].mxu0  ;;  %v2237_v31 = vpop.f32.mrb[14].mxu1  ;;  %v2236_v34 = vadd.f32 %v2235_v27, %v9627_v48 }
 0x15c   : > { %v1696_v45 = vadd.f32 %v1695_v41, %v9627_v48  ;;  %v1697_v49 = vpop.f32.mrb[22].mxu0  ;;  %2942 = vmatprep.mubr.bf16.mxu1 %v2547_v36  ;;  %v2238_v35 = vadd.f32 %v2237_v31, %v9624_v47  ;;  %v2239_v36 = vpop.f32.mrb[15].mxu1  ;;  %v2518_v41 = vmax.f32 %v2234_v33, 0.0 }
 0x15d   : > { %v1698_v51 = vadd.f32 %v1697_v49, %v9624_v47  ;;  %v1699_v52 = vpop.f32.mrb[23].mxu0  ;;  %2943 = vmatmul.mubr.bf16.gmra.mrb[48].mxu1 %v2546_v32  ;;  %v2302_v55 = vmax.f32 %v1694_v40, 0.0  ;;  %v2240_v38 = vadd.f32 %v2239_v36, %v9627_v48  ;;  %v2243_v58 = vpop.f32.mrb[16].mxu1 }
 0x15e   : > { %v2303_v56 = vmax.f32 %v1696_v45, 0.0  ;;  %v1700_v57 = vadd.f32 %v1699_v52, %v9627_v48  ;;  %v2520_v43 = vmax.f32 %v2238_v35, 0.0  ;;  %v2245_v62 = vpop.f32.mrb[17].mxu1  ;;  %v2244_v5 = vadd.f32 %v2243_v58, %v9624_v47 }
 0x15f   : > { %v2304_v60 = vmax.f32 %v1698_v51, 0.0  ;;  %1962 = vmatmul.mubr.bf16.gmra.mrb[128].mxu0 %v8881_v42  ;;  %v2519_v42 = vmax.f32 %v2236_v34, 0.0  ;;  %v2521_v51 = vmax.f32 %v2240_v38, 0.0  ;;  %v2247_v3 = vpop.f32.mrb[18].mxu1 }
 0x160   : > { %v2305_v0 = vmax.f32 %v1700_v57, 0.0  ;;  %1971 = vmatprep.mubr.bf16.mxu0 %v13724_v2  ;;  %v2249_v10 = vpop.f32.mrb[19].mxu1 }
 0x161   : > { %v2548_v6 = vpack.c.bf16 %v2304_v60, %v2302_v55  ;;  %v9748_v55 = vpack.c.bf16 %v2520_v43, %v2518_v41  ;;  %v9751_v60 = vpack.c.bf16 %v2521_v51, %v2519_v42  ;;  %v2250_v12 = vadd.f32 %v2249_v10, %v9627_v48  ;;  %v2253_v31 = vpop.f32.mrb[20].mxu1 }
 0x162   : > { %v1703_v8 = vpop.f32.mrb[24].mxu0  ;;  %v2549_v9 = vpack.c.bf16 %v2305_v0, %v2303_v56  ;;  %v2255_v34 = vpop.f32.mrb[21].mxu1 }
 0x163   : > { %v1704_v13 = vadd.f32 %v1703_v8, %v9624_v47  ;;  %v1705_v14 = vpop.f32.mrb[25].mxu0  ;;  %13864 = vst [vmem:[#allocation4_spill] sm:$0xff] %v9748_v55  ;;  %v8928_v8 = vld [vmem:[%s13717_s6 + $0xc4] ss:$8 sps:$4 sm:$0xff]   ;;  %v2525_v24 = vmax.f32 %v2250_v12, 0.0  ;;  %v2257_v38 = vpop.f32.mrb[22].mxu1  ;;  %v2256_v41 = vadd.f32 %v2255_v34, %v9627_v48 }
 0x164   : > { %v1706_v18 = vadd.f32 %v1705_v14, %v9627_v48  ;;  %v1707_v19 = vpop.f32.mrb[26].mxu0  ;;  %2952 = vmatprep.mubr.bf16.mxu1 %v2549_v9  ;;  %v2248_v9 = vadd.f32 %v2247_v3, %v9624_v47  ;;  %4155 = vmatprep.subr.bf16.mxu0 %v8928_v8  ;;  %v2258_v42 = vadd.f32 %v2257_v38, %v9624_v47  ;;  %v2259_v43 = vpop.f32.mrb[23].mxu1  ;;  %v8931_v12 = vld [vmem:[%s13719_s8 + $0x60] ss:$8 sps:$4 sm:$0xff]  }
 0x165   : > { %v1708_v22 = vadd.f32 %v1707_v19, %v9624_v47  ;;  %v1709_v23 = vpop.f32.mrb[27].mxu0  ;;  %2953 = vmatmul.mubr.bf16.gmra.mrb[52].mxu1 %v2548_v6  ;;  %v2306_v28 = vmax.f32 %v1704_v13, 0.0  ;;  %v2246_v6 = vadd.f32 %v2245_v62, %v9627_v48  ;;  %4156 = vmatpush1.bf16.msra.mxu0 %v8926_v7 }
 0x166   : > { %v1710_v26 = vadd.f32 %v1709_v23, %v9627_v48  ;;  %v2307_v29 = vmax.f32 %v1706_v18, 0.0  ;;  %v2524_v18 = vmax.f32 %v2248_v9, 0.0  ;;  %v8887_v23 = vld [vmem:[%s9360_s26 + $0x118] sm:$0xff]  }
 0x167   : > { %v2308_v30 = vmax.f32 %v1708_v22, 0.0  ;;  %1972 = vmatmul.mubr.bf16.gmra.mrb[132].mxu0 %v8885_v15  ;;  %v2522_v15 = vmax.f32 %v2244_v5, 0.0  ;;  %v2523_v17 = vmax.f32 %v2246_v6, 0.0  ;;  %v2263_v5 = vpop.f32.mrb[24].mxu1 }
 0x168   : > { %v2309_v32 = vmax.f32 %v1710_v26, 0.0  ;;  %1981 = vmatprep.mubr.bf16.mxu0 %v13724_v2  ;;  %v2265_v10 = vpop.f32.mrb[25].mxu1 }
 0x169   : > { %v2550_v37 = vpack.c.bf16 %v2308_v30, %v2306_v28  ;;  %v9768_v28 = vpack.c.bf16 %v2524_v18, %v2522_v15  ;;  %v2266_v18 = vadd.f32 %v2265_v10, %v9627_v48  ;;  %v8896_v10 = vld [vmem:[%s9360_s26 + $0x130] sm:$0xff]  }
 0x16a   : > { %v1713_v39 = vpop.f32.mrb[28].mxu0  ;;  %v2551_v40 = vpack.c.bf16 %v2309_v32, %v2307_v29  ;;  %v9771_v32 = vpack.c.bf16 %v2525_v24, %v2523_v17  ;;  %v2264_v17 = vadd.f32 %v2263_v5, %v9624_v47 }
 0x16b   : > { %v1714_v45 = vadd.f32 %v1713_v39, %v9624_v47  ;;  %v1715_v49 = vpop.f32.mrb[29].mxu0  ;;  %13865 = vst [vmem:[#allocation5_spill] sm:$0xff] %v9768_v28 }
 0x16c   : > { %v1716_v52 = vadd.f32 %v1715_v49, %v9627_v48  ;;  %v1717_v54 = vpop.f32.mrb[30].mxu0  ;;  %2962 = vmatprep.mubr.bf16.mxu1 %v2551_v40  ;;  %13866 = vst [vmem:[#allocation6_spill] sm:$0xff] %v9771_v32  ;;  %v2254_v40 = vadd.f32 %v2253_v31, %v9624_v47  ;;  %v2260_v49 = vadd.f32 %v2259_v43, %v9627_v48 }
 0x16d   : > { %v1718_v56 = vadd.f32 %v1717_v54, %v9624_v47  ;;  %v1719_v57 = vpop.f32.mrb[31].mxu0  ;;  %2963 = vmatmul.mubr.bf16.gmra.mrb[56].mxu1 %v2550_v37  ;;  %v2310_v63 = vmax.f32 %v1714_v45, 0.0  ;;  %v2527_v54 = vmax.f32 %v2256_v41, 0.0 }
 0x16e   : > { %v1720_v61 = vadd.f32 %v1719_v57, %v9627_v48  ;;  %v2311_v0 = vmax.f32 %v1716_v52, 0.0  ;;  %v2526_v52 = vmax.f32 %v2254_v40, 0.0  ;;  %v2529_v62 = vmax.f32 %v2260_v49, 0.0 }
 0x16f   : > { %v2312_v1 = vmax.f32 %v1718_v56, 0.0  ;;  %1982 = vmatmul.mubr.bf16.gmra.mrb[136].mxu0 %v8886_v50  ;;  %v2528_v56 = vmax.f32 %v2258_v42, 0.0 }
 0x170   : > { %v2313_v4 = vmax.f32 %v1720_v61, 0.0  ;;  %1991 = vmatprep.mubr.bf16.mxu0 %v13724_v2  ;;  %v8894_v61 = vld [vmem:[%s9360_s26 + $0x120] sm:$0xff]   ;;  %v9785_v6 = vpack.c.bf16 %v2529_v62, %v2527_v54 }
 0x171   : > { %v2552_v11 = vpack.c.bf16 %v2312_v1, %v2310_v63  ;;  %v9782_v1 = vpack.c.bf16 %v2528_v56, %v2526_v52 }
 0x172   : > { %v1723_v13 = vpop.f32.mrb[32].mxu0  ;;  %v2553_v14 = vpack.c.bf16 %v2313_v4, %v2311_v0  ;;  %13868 = vst [vmem:[#allocation8_spill] sm:$0xff] %v9785_v6 }
 0x173   : > { %v1724_v19 = vadd.f32 %v1723_v13, %v9624_v47  ;;  %v1725_v22 = vpop.f32.mrb[33].mxu0  ;;  %13867 = vst [vmem:[#allocation7_spill] sm:$0xff] %v9782_v1  ;;  %v8933_v13 = vld [vmem:[%s13719_s8 + $0x64] ss:$8 sps:$4 sm:$0xff]  }
 0x174   : > { %v1726_v26 = vadd.f32 %v1725_v22, %v9627_v48  ;;  %v1727_v27 = vpop.f32.mrb[34].mxu0  ;;  %2972 = vmatprep.mubr.bf16.mxu1 %v2553_v14  ;;  %v2267_v14 = vpop.f32.mrb[26].mxu1  ;;  %5404 = vmatprep.subr.bf16.mxu1 %v8933_v13 }
 0x175   : > { %v1728_v29 = vadd.f32 %v1727_v27, %v9624_v47  ;;  %v1729_v30 = vpop.f32.mrb[35].mxu0  ;;  %2973 = vmatmul.mubr.bf16.gmra.mrb[60].mxu1 %v2552_v11  ;;  %v2314_v35 = vmax.f32 %v1724_v19, 0.0  ;;  %v2268_v19 = vadd.f32 %v2267_v14, %v9624_v47  ;;  %v2269_v22 = vpop.f32.mrb[27].mxu1 }
 0x176   : > { %v1730_v33 = vadd.f32 %v1729_v30, %v9627_v48  ;;  %v2315_v36 = vmax.f32 %v1726_v26, 0.0  ;;  %v2270_v24 = vadd.f32 %v2269_v22, %v9627_v48  ;;  %5405 = vmatpush1.bf16.msra.mxu1 %v8931_v12  ;;  %v2531_v30 = vmax.f32 %v2266_v18, 0.0  ;;  %v8938_v22 = vld [vmem:[%s13717_s6 + $0xd4] ss:$8 sps:$4 sm:$0xff]  }
 0x177   : > { %v2316_v37 = vmax.f32 %v1728_v29, 0.0  ;;  %1992 = vmatmul.mubr.bf16.gmra.mrb[140].mxu0 %v8887_v23  ;;  %v2530_v29 = vmax.f32 %v2264_v17, 0.0  ;;  %v2532_v31 = vmax.f32 %v2268_v19, 0.0  ;;  %v8936_v19 = vld [vmem:[%s13717_s6 + $0xd0] ss:$8 sps:$4 sm:$0xff]   ;;  %4157 = vmatprep.subr.bf16.mxu0 %v8938_v22 }
 0x178   : > { %v2317_v39 = vmax.f32 %v1730_v33, 0.0  ;;  %2001 = vmatprep.mubr.bf16.mxu0 %v13724_v2  ;;  %4158 = vmatpush1.bf16.msra.mxu0 %v8936_v19 }
 0x179   : > { %v2554_v45 = vpack.c.bf16 %v2316_v37, %v2314_v35  ;;  %v8895_v35 = vld [vmem:[%s9360_s26 + $0x128] sm:$0xff]  }
 0x17a   : > { %v1733_v50 = vpop.f32.mrb[36].mxu0  ;;  %v2555_v51 = vpack.c.bf16 %v2317_v39, %v2315_v36  ;;  %v2533_v36 = vmax.f32 %v2270_v24, 0.0  ;;  %v9802_v39 = vpack.c.bf16 %v2532_v31, %v2530_v29 }
 0x17b   : > { %v1734_v57 = vadd.f32 %v1733_v50, %v9624_v47  ;;  %v1735_v58 = vpop.f32.mrb[37].mxu0 }
 0x17c   : > { %v1736_v63 = vadd.f32 %v1735_v58, %v9627_v48  ;;  %v1737_v0 = vpop.f32.mrb[38].mxu0  ;;  %2982 = vmatprep.mubr.bf16.mxu1 %v2555_v51  ;;  %13869 = vst [vmem:[#allocation9_spill] sm:$0xff] %v9802_v39  ;;  %v9805_v42 = vpack.c.bf16 %v2533_v36, %v2531_v30  ;;  %v10290_v39 = vld [vmem:[%s10111_s30 + $0x90] sm:$0xff] }
 0x17d   : > { %v1738_v3 = vadd.f32 %v1737_v0, %v9624_v47  ;;  %v1739_v4 = vpop.f32.mrb[39].mxu0  ;;  %2983 = vmatmul.mubr.bf16.gmra.mrb[64].mxu1 %v2554_v45  ;;  %v2318_v7 = vmax.f32 %v1734_v57, 0.0  ;;  %v2273_v45 = vpop.f32.mrb[28].mxu1 }
 0x17e   : > { %v2319_v8 = vmax.f32 %v1736_v63, 0.0  ;;  %v1740_v9 = vadd.f32 %v1739_v4, %v9627_v48  ;;  %13870 = vst [vmem:[#allocation10_spill] sm:$0xff] %v9805_v42  ;;  %v2275_v51 = vpop.f32.mrb[29].mxu1  ;;  %v2274_v56 = vadd.f32 %v2273_v45, %v9624_v47  ;;  %v8943_v45 = vld [vmem:[%s13717_s6 + $0xe4] ss:$8 sps:$4 sm:$0xff]  }
 0x17f   : > { %v2320_v11 = vmax.f32 %v1738_v3, 0.0  ;;  %2002 = vmatmul.mubr.bf16.gmra.mrb[144].mxu0 %v8894_v61  ;;  %v2276_v57 = vadd.f32 %v2275_v51, %v9627_v48  ;;  %v2277_v58 = vpop.f32.mrb[30].mxu1  ;;  %4159 = vmatprep.subr.bf16.mxu0 %v8943_v45 }
 0x180   : > { %v2321_v15 = vmax.f32 %v1740_v9, 0.0  ;;  %2011 = vmatprep.mubr.bf16.mxu0 %v13724_v2  ;;  %v2278_v62 = vadd.f32 %v2277_v58, %v9624_v47  ;;  %v2279_v63 = vpop.f32.mrb[31].mxu1  ;;  %v2534_v4 = vmax.f32 %v2274_v56, 0.0  ;;  %v8946_v58 = vld [vmem:[%s13717_s6 + $0xf4] ss:$8 sps:$4 sm:$0xff]  }
 0x181   : > { %v2556_v23 = vpack.c.bf16 %v2320_v11, %v2318_v7  ;;  %v2535_v5 = vmax.f32 %v2276_v57, 0.0  ;;  %v2280_v7 = vadd.f32 %v2279_v63, %v9627_v48  ;;  %v8944_v63 = vld [vmem:[%s13717_s6 + $0xf0] ss:$8 sps:$4 sm:$0xff]  }
 0x182   : > { %v1743_v26 = vpop.f32.mrb[40].mxu0  ;;  %v2557_v27 = vpack.c.bf16 %v2321_v15, %v2319_v8  ;;  %v2536_v11 = vmax.f32 %v2278_v62, 0.0 }
 0x183   : > { %v1744_v33 = vadd.f32 %v1743_v26, %v9624_v47  ;;  %v1745_v34 = vpop.f32.mrb[41].mxu0  ;;  %v2537_v14 = vmax.f32 %v2280_v7, 0.0 }
 0x184   : > { %v1746_v37 = vadd.f32 %v1745_v34, %v9627_v48  ;;  %v1747_v38 = vpop.f32.mrb[42].mxu0  ;;  %2992 = vmatprep.mubr.bf16.mxu1 %v2557_v27  ;;  %v9817_v18 = vpack.c.bf16 %v2536_v11, %v2534_v4  ;;  %v8904_v4 = vld [vmem:[%s9360_s26 + $0x140] sm:$0xff]  }
 0x185   : > { %v1748_v40 = vadd.f32 %v1747_v38, %v9624_v47  ;;  %v1749_v41 = vpop.f32.mrb[43].mxu0  ;;  %2993 = vmatmul.mubr.bf16.gmra.mrb[68].mxu1 %v2556_v23  ;;  %v2322_v49 = vmax.f32 %v1744_v33, 0.0  ;;  %v9826_v24 = vpack.c.bf16 %v2537_v14, %v2535_v5  ;;  %v8949_v14 = vld [vmem:[%s13719_s8 + $0x74] ss:$8 sps:$4 sm:$0xff]  }
 0x186   : > { %v1750_v43 = vadd.f32 %v1749_v41, %v9627_v48  ;;  %v2323_v52 = vmax.f32 %v1746_v37, 0.0  ;;  %13871 = vst [vmem:[#allocation11_spill] sm:$0xff] %v9817_v18  ;;  %v8897_v37 = vld [vmem:[%s9360_s26 + $0x138] sm:$0xff]   ;;  %5406 = vmatprep.subr.bf16.mxu1 %v8949_v14 }
 0x187   : > { %v2324_v50 = vmax.f32 %v1748_v40, 0.0  ;;  %2012 = vmatmul.mubr.bf16.gmra.mrb[148].mxu0 %v8895_v35  ;;  %13872 = vst [vmem:[#allocation12_spill] sm:$0xff] %v9826_v24 }
 0x188   : > { %v2325_v54 = vmax.f32 %v1750_v43, 0.0  ;;  %2021 = vmatprep.mubr.bf16.mxu0 %v13724_v2 }
 0x189   : > { %v2558_v61 = vpack.c.bf16 %v2324_v50, %v2322_v49  ;;  %v8941_v50 = vld [vmem:[%s13717_s6 + $0xe0] ss:$8 sps:$4 sm:$0xff]  }
 0x18a   : > { %v1753_v0 = vpop.f32.mrb[44].mxu0  ;;  %v2559_v3 = vpack.c.bf16 %v2325_v54, %v2323_v52  ;;  %4160 = vmatpush1.bf16.msra.mxu0 %v8941_v50 }
 0x18b   : > { %v1754_v8 = vadd.f32 %v1753_v0, %v9624_v47  ;;  %v1755_v9 = vpop.f32.mrb[45].mxu0  ;;  %4161 = vmatprep.subr.bf16.mxu0 %v8946_v58 }
 0x18c   : > { %v1756_v12 = vadd.f32 %v1755_v9, %v9627_v48  ;;  %v1757_v13 = vpop.f32.mrb[46].mxu0  ;;  %3002 = vmatprep.mubr.bf16.mxu1 %v2559_v3 }
 0x18d   : > { %v1758_v15 = vadd.f32 %v1757_v13, %v9624_v47  ;;  %v1759_v17 = vpop.f32.mrb[47].mxu0  ;;  %3003 = vmatmul.mubr.bf16.gmra.mrb[72].mxu1 %v2558_v61  ;;  %v2326_v26 = vmax.f32 %v1754_v8, 0.0  ;;  %v8947_v13 = vld [vmem:[%s13719_s8 + $0x70] ss:$8 sps:$4 sm:$0xff]  }
 0x18e   : > { %v1760_v23 = vadd.f32 %v1759_v17, %v9627_v48  ;;  %v2327_v29 = vmax.f32 %v1756_v12, 0.0  ;;  %4162 = vmatpush1.bf16.msra.mxu0 %v8944_v63  ;;  %5407 = vmatpush1.bf16.msra.mxu1 %v8947_v13 }
 0x18f   : > { %v2328_v27 = vmax.f32 %v1758_v15, 0.0  ;;  %2022 = vmatmul.mubr.bf16.gmra.mrb[152].mxu0 %v8896_v10 }
 0x190   : > { %v2329_v30 = vmax.f32 %v1760_v23, 0.0  ;;  %2031 = vmatprep.mubr.bf16.mxu0 %v13724_v2 }
 0x191   : > { %v2560_v31 = vpack.c.bf16 %v2328_v27, %v2326_v26 }
 0x192   : > { %v1763_v33 = vpop.f32.mrb[48].mxu0  ;;  %v2561_v34 = vpack.c.bf16 %v2329_v30, %v2327_v29  ;;  %v8905_v29 = vld [vmem:[%s9360_s26 + $0x148] sm:$0xff]  }
 0x193   : > { %v1764_v35 = vadd.f32 %v1763_v33, %v9624_v47  ;;  %v1765_v36 = vpop.f32.mrb[49].mxu0 }
 0x194   : > { %v1766_v38 = vadd.f32 %v1765_v36, %v9627_v48  ;;  %v1767_v40 = vpop.f32.mrb[50].mxu0  ;;  %3012 = vmatprep.mubr.bf16.mxu1 %v2561_v34 }
 0x195   : > { %v1768_v41 = vadd.f32 %v1767_v40, %v9624_v47  ;;  %v1769_v43 = vpop.f32.mrb[51].mxu0  ;;  %3013 = vmatmul.mubr.bf16.gmra.mrb[76].mxu1 %v2560_v31  ;;  %v2330_v51 = vmax.f32 %v1764_v35, 0.0 }
 0x196   : > { %v1770_v49 = vadd.f32 %v1769_v43, %v9627_v48  ;;  %v2331_v54 = vmax.f32 %v1766_v38, 0.0 }
 0x197   : > { %v2332_v52 = vmax.f32 %v1768_v41, 0.0  ;;  %2032 = vmatmul.mubr.bf16.gmra.mrb[156].mxu0 %v8897_v37 }
 0x198   : > { %v2333_v56 = vmax.f32 %v1770_v49, 0.0  ;;  %2041 = vmatprep.mubr.bf16.mxu0 %v13724_v2 }
 0x199   : > { %v2562_v57 = vpack.c.bf16 %v2332_v52, %v2330_v51  ;;  %v8906_v51 = vld [vmem:[%s9360_s26 + $0x150] sm:$0xff]  }
 0x19a   : > { %v1773_v61 = vpop.f32.mrb[52].mxu0  ;;  %v2563_v62 = vpack.c.bf16 %v2333_v56, %v2331_v54 }
 0x19b   : > { %v1774_v0 = vadd.f32 %v1773_v61, %v9624_v47  ;;  %v1775_v3 = vpop.f32.mrb[53].mxu0 }
 0x19c   : > { %v1776_v5 = vadd.f32 %v1775_v3, %v9627_v48  ;;  %v1777_v7 = vpop.f32.mrb[54].mxu0  ;;  %3022 = vmatprep.mubr.bf16.mxu1 %v2563_v62 }
 0x19d   : > { %v1778_v8 = vadd.f32 %v1777_v7, %v9624_v47  ;;  %v1779_v9 = vpop.f32.mrb[55].mxu0  ;;  %3023 = vmatmul.mubr.bf16.gmra.mrb[80].mxu1 %v2562_v57  ;;  %v2334_v11 = vmax.f32 %v1774_v0, 0.0 }
 0x19e   : > { %v1780_v10 = vadd.f32 %v1779_v9, %v9627_v48  ;;  %v2335_v15 = vmax.f32 %v1776_v5, 0.0  ;;  %v8910_v9 = vld [vmem:[%s9360_s26 + $0x158] sm:$0xff]  }
 0x19f   : > { %v2336_v12 = vmax.f32 %v1778_v8, 0.0  ;;  %2042 = vmatmul.mubr.bf16.gmra.mrb[160].mxu0 %v8904_v4 }
 0x1a0   : > { %v2337_v17 = vmax.f32 %v1780_v10, 0.0  ;;  %2051 = vmatprep.mubr.bf16.mxu0 %v13724_v2 }
 0x1a1   : > { %v2564_v19 = vpack.c.bf16 %v2336_v12, %v2334_v11 }
 0x1a2   : > { %v1783_v22 = vpop.f32.mrb[56].mxu0  ;;  %v2565_v23 = vpack.c.bf16 %v2337_v17, %v2335_v15 }
 0x1a3   : > { %v1784_v26 = vadd.f32 %v1783_v22, %v9624_v47  ;;  %v1785_v27 = vpop.f32.mrb[57].mxu0 }
 0x1a4   : > { %v1786_v30 = vadd.f32 %v1785_v27, %v9627_v48  ;;  %v1787_v31 = vpop.f32.mrb[58].mxu0  ;;  %3032 = vmatprep.mubr.bf16.mxu1 %v2565_v23 }
 0x1a5   : > { %v1788_v33 = vadd.f32 %v1787_v31, %v9624_v47  ;;  %v1789_v34 = vpop.f32.mrb[59].mxu0  ;;  %3033 = vmatmul.mubr.bf16.gmra.mrb[84].mxu1 %v2564_v19  ;;  %v2338_v36 = vmax.f32 %v1784_v26, 0.0  ;;  %v8914_v31 = vld [vmem:[%s9360_s26 + $0x160] sm:$0xff]  }
 0x1a6   : > { %v1790_v35 = vadd.f32 %v1789_v34, %v9627_v48  ;;  %v2339_v38 = vmax.f32 %v1786_v30, 0.0 }
 0x1a7   : > { %v2340_v37 = vmax.f32 %v1788_v33, 0.0  ;;  %2052 = vmatmul.mubr.bf16.gmra.mrb[164].mxu0 %v8905_v29 }
 0x1a8   : > { %v2341_v40 = vmax.f32 %v1790_v35, 0.0  ;;  %2061 = vmatprep.mubr.bf16.mxu0 %v13724_v2 }
 0x1a9   : > { %v2566_v41 = vpack.c.bf16 %v2340_v37, %v2338_v36 }
 0x1aa   : > { %v1793_v43 = vpop.f32.mrb[60].mxu0  ;;  %v2567_v45 = vpack.c.bf16 %v2341_v40, %v2339_v38 }
 0x1ab   : > { %v1794_v49 = vadd.f32 %v1793_v43, %v9624_v47  ;;  %v1795_v50 = vpop.f32.mrb[61].mxu0  ;;  %v8952_v43 = vld [vmem:[%s13719_s8 + $0x84] ss:$8 sps:$4 sm:$0xff]  }
 0x1ac   : > { %v1796_v52 = vadd.f32 %v1795_v50, %v9627_v48  ;;  %v1797_v54 = vpop.f32.mrb[62].mxu0  ;;  %3042 = vmatprep.mubr.bf16.mxu1 %v2567_v45  ;;  %5408 = vmatprep.subr.bf16.mxu1 %v8952_v43 }
 0x1ad   : > { %v1798_v56 = vadd.f32 %v1797_v54, %v9624_v47  ;;  %v1799_v57 = vpop.f32.mrb[63].mxu0  ;;  %3043 = vmatmul.mubr.bf16.gmra.mrb[88].mxu1 %v2566_v41  ;;  %v2342_v61 = vmax.f32 %v1794_v49, 0.0  ;;  %v8950_v41 = vld [vmem:[%s13719_s8 + $0x80] ss:$8 sps:$4 sm:$0xff]  }
 0x1ae   : > { %v1800_v58 = vadd.f32 %v1799_v57, %v9627_v48  ;;  %v2343_v63 = vmax.f32 %v1796_v52, 0.0  ;;  %5409 = vmatpush1.bf16.msra.mxu1 %v8950_v41  ;;  %v8915_v57 = vld [vmem:[%s9360_s26 + $0x168] sm:$0xff]  }
 0x1af   : > { %v2344_v62 = vmax.f32 %v1798_v56, 0.0  ;;  %2062 = vmatmul.mubr.bf16.gmra.mrb[168].mxu0 %v8906_v51 }
 0x1b0   : > { %v2345_v0 = vmax.f32 %v1800_v58, 0.0  ;;  %2071 = vmatprep.mubr.bf16.mxu0 %v13724_v2 }
 0x1b1   : > { %v2568_v3 = vpack.c.bf16 %v2344_v62, %v2342_v61 }
 0x1b2   : > { %v1803_v4 = vpop.f32.mrb[64].mxu0  ;;  %v2569_v5 = vpack.c.bf16 %v2345_v0, %v2343_v63 }
 0x1b3   : > { %v1804_v7 = vadd.f32 %v1803_v4, %v9624_v47  ;;  %v1805_v8 = vpop.f32.mrb[65].mxu0 }
 0x1b4   : > { %v1806_v10 = vadd.f32 %v1805_v8, %v9627_v48  ;;  %v1807_v11 = vpop.f32.mrb[66].mxu0  ;;  %3052 = vmatprep.mubr.bf16.mxu1 %v2569_v5 }
 0x1b5   : > { %v1808_v12 = vadd.f32 %v1807_v11, %v9624_v47  ;;  %v1809_v13 = vpop.f32.mrb[67].mxu0  ;;  %3053 = vmatmul.mubr.bf16.gmra.mrb[92].mxu1 %v2568_v3  ;;  %v2346_v15 = vmax.f32 %v1804_v7, 0.0 }
 0x1b6   : > { %v1810_v14 = vadd.f32 %v1809_v13, %v9627_v48  ;;  %v2347_v19 = vmax.f32 %v1806_v10, 0.0  ;;  %v8916_v13 = vld [vmem:[%s9360_s26 + $0x170] sm:$0xff]  }
 0x1b7   : > { %v2348_v17 = vmax.f32 %v1808_v12, 0.0  ;;  %2072 = vmatmul.mubr.bf16.gmra.mrb[172].mxu0 %v8910_v9 }
 0x1b8   : > { %v2349_v22 = vmax.f32 %v1810_v14, 0.0  ;;  %2081 = vmatprep.mubr.bf16.mxu0 %v13724_v2 }
 0x1b9   : > { %v2570_v23 = vpack.c.bf16 %v2348_v17, %v2346_v15 }
 0x1ba   : > { %v1813_v26 = vpop.f32.mrb[68].mxu0  ;;  %v2571_v27 = vpack.c.bf16 %v2349_v22, %v2347_v19 }
 0x1bb   : > { %v1814_v29 = vadd.f32 %v1813_v26, %v9624_v47  ;;  %v1815_v30 = vpop.f32.mrb[69].mxu0 }
 0x1bc   : > { %v1816_v33 = vadd.f32 %v1815_v30, %v9627_v48  ;;  %v1817_v34 = vpop.f32.mrb[70].mxu0  ;;  %3062 = vmatprep.mubr.bf16.mxu1 %v2571_v27 }
 0x1bd   : > { %v1818_v35 = vadd.f32 %v1817_v34, %v9624_v47  ;;  %v1819_v36 = vpop.f32.mrb[71].mxu0  ;;  %3063 = vmatmul.mubr.bf16.gmra.mrb[96].mxu1 %v2570_v23  ;;  %v2350_v38 = vmax.f32 %v1814_v29, 0.0 }
 0x1be   : > { %v1820_v37 = vadd.f32 %v1819_v36, %v9627_v48  ;;  %v2351_v45 = vmax.f32 %v1816_v33, 0.0  ;;  %v8920_v36 = vld [vmem:[%s9360_s26 + $0x178] sm:$0xff]  }
 0x1bf   : > { %v2352_v40 = vmax.f32 %v1818_v35, 0.0  ;;  %2082 = vmatmul.mubr.bf16.gmra.mrb[176].mxu0 %v8914_v31 }
 0x1c0   : > { %v2353_v49 = vmax.f32 %v1820_v37, 0.0  ;;  %2091 = vmatprep.mubr.bf16.mxu0 %v13724_v2 }
 0x1c1   : > { %v2572_v50 = vpack.c.bf16 %v2352_v40, %v2350_v38 }
 0x1c2   : > { %v1823_v51 = vpop.f32.mrb[72].mxu0  ;;  %v2573_v52 = vpack.c.bf16 %v2353_v49, %v2351_v45 }
 0x1c3   : > { %v1824_v54 = vadd.f32 %v1823_v51, %v9624_v47  ;;  %v1825_v56 = vpop.f32.mrb[73].mxu0 }
 0x1c4   : > { %v1826_v58 = vadd.f32 %v1825_v56, %v9627_v48  ;;  %v1827_v61 = vpop.f32.mrb[74].mxu0  ;;  %3072 = vmatprep.mubr.bf16.mxu1 %v2573_v52 }
 0x1c5   : > { %v1828_v62 = vadd.f32 %v1827_v61, %v9624_v47  ;;  %v1829_v63 = vpop.f32.mrb[75].mxu0  ;;  %3073 = vmatmul.mubr.bf16.gmra.mrb[100].mxu1 %v2572_v50  ;;  %v2354_v3 = vmax.f32 %v1824_v54, 0.0  ;;  %v8924_v61 = vld [vmem:[%s9360_s26 + $0x180] sm:$0xff]  }
 0x1c6   : > { %v1830_v0 = vadd.f32 %v1829_v63, %v9627_v48  ;;  %v2355_v5 = vmax.f32 %v1826_v58, 0.0 }
 0x1c7   : > { %v2356_v4 = vmax.f32 %v1828_v62, 0.0  ;;  %2092 = vmatmul.mubr.bf16.gmra.mrb[180].mxu0 %v8915_v57 }
 0x1c8   : > { %v2357_v7 = vmax.f32 %v1830_v0, 0.0  ;;  %2101 = vmatprep.mubr.bf16.mxu0 %v13724_v2 }
 0x1c9   : > { %v2574_v8 = vpack.c.bf16 %v2356_v4, %v2354_v3 }
 0x1ca   : > { %v1833_v9 = vpop.f32.mrb[76].mxu0  ;;  %v2575_v10 = vpack.c.bf16 %v2357_v7, %v2355_v5 }
 0x1cb   : > { %v1834_v11 = vadd.f32 %v1833_v9, %v9624_v47  ;;  %v1835_v12 = vpop.f32.mrb[77].mxu0  ;;  %v8955_v9 = vld [vmem:[%s13719_s8 + $0x94] ss:$8 sps:$4 sm:$0xff]  }
 0x1cc   : > { %v1836_v14 = vadd.f32 %v1835_v12, %v9627_v48  ;;  %v1837_v15 = vpop.f32.mrb[78].mxu0  ;;  %3082 = vmatprep.mubr.bf16.mxu1 %v2575_v10  ;;  %5410 = vmatprep.subr.bf16.mxu1 %v8955_v9 }
 0x1cd   : > { %v1838_v17 = vadd.f32 %v1837_v15, %v9624_v47  ;;  %v1839_v19 = vpop.f32.mrb[79].mxu0  ;;  %3083 = vmatmul.mubr.bf16.gmra.mrb[104].mxu1 %v2574_v8  ;;  %v2358_v23 = vmax.f32 %v1834_v11, 0.0  ;;  %v8953_v8 = vld [vmem:[%s13719_s8 + $0x90] ss:$8 sps:$4 sm:$0xff]  }
 0x1ce   : > { %v1840_v22 = vadd.f32 %v1839_v19, %v9627_v48  ;;  %v2359_v27 = vmax.f32 %v1836_v14, 0.0  ;;  %5411 = vmatpush1.bf16.msra.mxu1 %v8953_v8  ;;  %v8925_v19 = vld [vmem:[%s9360_s26 + $0x188] sm:$0xff]  }
 0x1cf   : > { %v2360_v26 = vmax.f32 %v1838_v17, 0.0  ;;  %2102 = vmatmul.mubr.bf16.gmra.mrb[184].mxu0 %v8916_v13 }
 0x1d0   : > { %v2361_v29 = vmax.f32 %v1840_v22, 0.0  ;;  %2111 = vmatprep.mubr.bf16.mxu0 %v13724_v2 }
 0x1d1   : > { %v2576_v30 = vpack.c.bf16 %v2360_v26, %v2358_v23 }
 0x1d2   : > { %v1843_v31 = vpop.f32.mrb[80].mxu0  ;;  %v2577_v33 = vpack.c.bf16 %v2361_v29, %v2359_v27 }
 0x1d3   : > { %v1844_v34 = vadd.f32 %v1843_v31, %v9624_v47  ;;  %v1845_v35 = vpop.f32.mrb[81].mxu0 }
 0x1d4   : > { %v1846_v37 = vadd.f32 %v1845_v35, %v9627_v48  ;;  %v1847_v38 = vpop.f32.mrb[82].mxu0  ;;  %3092 = vmatprep.mubr.bf16.mxu1 %v2577_v33 }
 0x1d5   : > { %v1848_v40 = vadd.f32 %v1847_v38, %v9624_v47  ;;  %v1849_v41 = vpop.f32.mrb[83].mxu0  ;;  %3093 = vmatmul.mubr.bf16.gmra.mrb[108].mxu1 %v2576_v30  ;;  %v2362_v45 = vmax.f32 %v1844_v34, 0.0 }
 0x1d6   : > { %v1850_v43 = vadd.f32 %v1849_v41, %v9627_v48  ;;  %v2363_v50 = vmax.f32 %v1846_v37, 0.0  ;;  %v8929_v41 = vld [vmem:[%s9360_s26 + $0x190] sm:$0xff]  }
 0x1d7   : > { %v2364_v49 = vmax.f32 %v1848_v40, 0.0  ;;  %2112 = vmatmul.mubr.bf16.gmra.mrb[188].mxu0 %v8920_v36 }
 0x1d8   : > { %v2365_v51 = vmax.f32 %v1850_v43, 0.0  ;;  %2121 = vmatprep.mubr.bf16.mxu0 %v13724_v2 }
 0x1d9   : > { %v2578_v52 = vpack.c.bf16 %v2364_v49, %v2362_v45 }
 0x1da   : > { %v1853_v54 = vpop.f32.mrb[84].mxu0  ;;  %v2579_v56 = vpack.c.bf16 %v2365_v51, %v2363_v50 }
 0x1db   : > { %v1854_v57 = vadd.f32 %v1853_v54, %v9624_v47  ;;  %v1855_v58 = vpop.f32.mrb[85].mxu0 }
 0x1dc   : > { %v1856_v62 = vadd.f32 %v1855_v58, %v9627_v48  ;;  %v1857_v63 = vpop.f32.mrb[86].mxu0  ;;  %3102 = vmatprep.mubr.bf16.mxu1 %v2579_v56 }
 0x1dd   : > { %v1858_v0 = vadd.f32 %v1857_v63, %v9624_v47  ;;  %v1859_v3 = vpop.f32.mrb[87].mxu0  ;;  %3103 = vmatmul.mubr.bf16.gmra.mrb[112].mxu1 %v2578_v52  ;;  %v2366_v5 = vmax.f32 %v1854_v57, 0.0 }
 0x1de   : > { %v1860_v4 = vadd.f32 %v1859_v3, %v9627_v48  ;;  %v2367_v10 = vmax.f32 %v1856_v62, 0.0  ;;  %v8930_v3 = vld [vmem:[%s9360_s26 + $0x198] sm:$0xff]  }
 0x1df   : > { %v2368_v7 = vmax.f32 %v1858_v0, 0.0  ;;  %2122 = vmatmul.mubr.bf16.gmra.mrb[192].mxu0 %v8924_v61 }
 0x1e0   : > { %v2369_v11 = vmax.f32 %v1860_v4, 0.0  ;;  %2131 = vmatprep.mubr.bf16.mxu0 %v13724_v2 }
 0x1e1   : > { %v2580_v12 = vpack.c.bf16 %v2368_v7, %v2366_v5 }
 0x1e2   : > { %v1863_v13 = vpop.f32.mrb[88].mxu0  ;;  %v2581_v14 = vpack.c.bf16 %v2369_v11, %v2367_v10 }
 0x1e3   : > { %v1864_v15 = vadd.f32 %v1863_v13, %v9624_v47  ;;  %v1865_v17 = vpop.f32.mrb[89].mxu0 }
 0x1e4   : > { %v1866_v22 = vadd.f32 %v1865_v17, %v9627_v48  ;;  %v1867_v23 = vpop.f32.mrb[90].mxu0  ;;  %3112 = vmatprep.mubr.bf16.mxu1 %v2581_v14 }
 0x1e5   : > { %v1868_v26 = vadd.f32 %v1867_v23, %v9624_v47  ;;  %v1869_v27 = vpop.f32.mrb[91].mxu0  ;;  %3113 = vmatmul.mubr.bf16.gmra.mrb[116].mxu1 %v2580_v12  ;;  %v2370_v30 = vmax.f32 %v1864_v15, 0.0  ;;  %v8934_v23 = vld [vmem:[%s9360_s26 + $0x1a0] sm:$0xff]  }
 0x1e6   : > { %v1870_v29 = vadd.f32 %v1869_v27, %v9627_v48  ;;  %v2371_v33 = vmax.f32 %v1866_v22, 0.0 }
 0x1e7   : > { %v2372_v31 = vmax.f32 %v1868_v26, 0.0  ;;  %2132 = vmatmul.mubr.bf16.gmra.mrb[196].mxu0 %v8925_v19 }
 0x1e8   : > { %v2373_v34 = vmax.f32 %v1870_v29, 0.0  ;;  %2141 = vmatprep.mubr.bf16.mxu0 %v13724_v2 }
 0x1e9   : > { %v2582_v35 = vpack.c.bf16 %v2372_v31, %v2370_v30 }
 0x1ea   : > { %v1873_v36 = vpop.f32.mrb[92].mxu0  ;;  %v2583_v37 = vpack.c.bf16 %v2373_v34, %v2371_v33 }
 0x1eb   : > { %v1874_v38 = vadd.f32 %v1873_v36, %v9624_v47  ;;  %v1875_v40 = vpop.f32.mrb[93].mxu0  ;;  %v8958_v36 = vld [vmem:[%s13719_s8 + $0xa4] ss:$8 sps:$4 sm:$0xff]  }
 0x1ec   : > { %v1876_v43 = vadd.f32 %v1875_v40, %v9627_v48  ;;  %v1877_v45 = vpop.f32.mrb[94].mxu0  ;;  %3122 = vmatprep.mubr.bf16.mxu1 %v2583_v37  ;;  %5412 = vmatprep.subr.bf16.mxu1 %v8958_v36 }
 0x1ed   : > { %v1878_v49 = vadd.f32 %v1877_v45, %v9624_v47  ;;  %v1879_v50 = vpop.f32.mrb[95].mxu0  ;;  %3123 = vmatmul.mubr.bf16.gmra.mrb[120].mxu1 %v2582_v35  ;;  %v2374_v52 = vmax.f32 %v1874_v38, 0.0  ;;  %v8956_v35 = vld [vmem:[%s13719_s8 + $0xa0] ss:$8 sps:$4 sm:$0xff]  }
 0x1ee   : > { %v1880_v51 = vadd.f32 %v1879_v50, %v9627_v48  ;;  %v2375_v56 = vmax.f32 %v1876_v43, 0.0  ;;  %5413 = vmatpush1.bf16.msra.mxu1 %v8956_v35  ;;  %v8935_v50 = vld [vmem:[%s9360_s26 + $0x1a8] sm:$0xff]  }
 0x1ef   : > { %v2376_v54 = vmax.f32 %v1878_v49, 0.0  ;;  %2142 = vmatmul.mubr.bf16.gmra.mrb[200].mxu0 %v8929_v41 }
 0x1f0   : > { %v2377_v57 = vmax.f32 %v1880_v51, 0.0  ;;  %2151 = vmatprep.mubr.bf16.mxu0 %v13724_v2 }
 0x1f1   : > { %v2584_v58 = vpack.c.bf16 %v2376_v54, %v2374_v52 }
 0x1f2   : > { %v1883_v61 = vpop.f32.mrb[96].mxu0  ;;  %v2585_v62 = vpack.c.bf16 %v2377_v57, %v2375_v56 }
 0x1f3   : > { %v1884_v63 = vadd.f32 %v1883_v61, %v9624_v47  ;;  %v1885_v0 = vpop.f32.mrb[97].mxu0 }
 0x1f4   : > { %v1886_v4 = vadd.f32 %v1885_v0, %v9627_v48  ;;  %v1887_v5 = vpop.f32.mrb[98].mxu0  ;;  %3132 = vmatprep.mubr.bf16.mxu1 %v2585_v62 }
 0x1f5   : > { %v1888_v7 = vadd.f32 %v1887_v5, %v9624_v47  ;;  %v1889_v8 = vpop.f32.mrb[99].mxu0  ;;  %3133 = vmatmul.mubr.bf16.gmra.mrb[124].mxu1 %v2584_v58  ;;  %v2378_v10 = vmax.f32 %v1884_v63, 0.0  ;;  %v2698_v5 = vld [vmem:[%s13716_s5] sm:$0x3] }
 0x1f6   : > { %v1890_v9 = vadd.f32 %v1889_v8, %v9627_v48  ;;  %v2379_v12 = vmax.f32 %v1886_v4, 0.0 }
 0x1f7   : > { %v2380_v11 = vmax.f32 %v1888_v7, 0.0  ;;  %2152 = vmatmul.mubr.bf16.gmra.mrb[204].mxu0 %v8930_v3 }
 0x1f8   : > { %v2381_v13 = vmax.f32 %v1890_v9, 0.0  ;;  %2161 = vmatprep.mubr.bf16.mxu0 %v13724_v2  ;;  %v8939_v9 = vld [vmem:[%s9360_s26 + $0x1b0] sm:$0xff]  }
 0x1f9   : > { %v2586_v14 = vpack.c.bf16 %v2380_v11, %v2378_v10 }
 0x1fa   : > { %v1893_v15 = vpop.f32.mrb[100].mxu0  ;;  %v2587_v17 = vpack.c.bf16 %v2381_v13, %v2379_v12 }
 0x1fb   : > { %v1894_v19 = vadd.f32 %v1893_v15, %v9624_v47  ;;  %v1895_v22 = vpop.f32.mrb[101].mxu0 }
 0x1fc   : > { %v1896_v26 = vadd.f32 %v1895_v22, %v9627_v48  ;;  %v1897_v27 = vpop.f32.mrb[102].mxu0  ;;  %3142 = vmatprep.mubr.bf16.mxu1 %v2587_v17  ;;  %v9967_v17 = vrot.slane %v2698_v5, %v9621_v46 }
 0x1fd   : > { %v1898_v29 = vadd.f32 %v1897_v27, %v9624_v47  ;;  %v1899_v30 = vpop.f32.mrb[103].mxu0  ;;  %3143 = vmatmul.mubr.bf16.gmra.mrb[128].mxu1 %v2586_v14  ;;  %v2382_v33 = vmax.f32 %v1894_v19, 0.0  ;;  %v9963_v14 = vrot.slane %v2698_v5, %v9616_v44 }
 0x1fe   : > { %v1900_v31 = vadd.f32 %v1899_v30, %v9627_v48  ;;  %v2383_v37 = vmax.f32 %v1896_v26, 0.0 }
 0x1ff   : > { %v2384_v34 = vmax.f32 %v1898_v29, 0.0  ;;  %2162 = vmatmul.mubr.bf16.gmra.mrb[208].mxu0 %v8934_v23 }
 0x200   : > { %v2385_v38 = vmax.f32 %v1900_v31, 0.0  ;;  %2171 = vmatprep.mubr.bf16.mxu0 %v13724_v2 }
 0x201   : > { %v2588_v40 = vpack.c.bf16 %v2384_v34, %v2382_v33 }
 0x202   : > { %v1903_v41 = vpop.f32.mrb[104].mxu0  ;;  %v2589_v43 = vpack.c.bf16 %v2385_v38, %v2383_v37 }
 0x203   : > { %v1904_v45 = vadd.f32 %v1903_v41, %v9624_v47  ;;  %v1905_v49 = vpop.f32.mrb[105].mxu0 }
 0x204   : > { %v1906_v51 = vadd.f32 %v1905_v49, %v9627_v48  ;;  %v1907_v52 = vpop.f32.mrb[106].mxu0  ;;  %3152 = vmatprep.mubr.bf16.mxu1 %v2589_v43  ;;  %v8940_v43 = vld [vmem:[%s9360_s26 + $0x1b8] sm:$0xff]   ;;  %s9099_s26 = smov 126  }
 0x205   : > { %v1908_v54 = vadd.f32 %v1907_v52, %v9624_v47  ;;  %v1909_v56 = vpop.f32.mrb[107].mxu0  ;;  %3153 = vmatmul.mubr.bf16.gmra.mrb[132].mxu1 %v2588_v40  ;;  %v2386_v58 = vmax.f32 %v1904_v45, 0.0 }
 0x206   : > { %v1910_v57 = vadd.f32 %v1909_v56, %v9627_v48  ;;  %v2387_v62 = vmax.f32 %v1906_v51, 0.0 }
 0x207   : > { %v2388_v61 = vmax.f32 %v1908_v54, 0.0  ;;  %2172 = vmatmul.mubr.bf16.gmra.mrb[212].mxu0 %v8935_v50 }
 0x208   : > { %v2389_v63 = vmax.f32 %v1910_v57, 0.0  ;;  %2181 = vmatprep.mubr.bf16.mxu0 %v13724_v2 }
 0x209   : > { %v2590_v0 = vpack.c.bf16 %v2388_v61, %v2386_v58 }
 0x20a   : > { %v1913_v3 = vpop.f32.mrb[108].mxu0  ;;  %v2591_v4 = vpack.c.bf16 %v2389_v63, %v2387_v62 }
 0x20b   : > { %v1914_v7 = vadd.f32 %v1913_v3, %v9624_v47  ;;  %v1915_v8 = vpop.f32.mrb[109].mxu0 }
 0x20c   : > { %v1916_v10 = vadd.f32 %v1915_v8, %v9627_v48  ;;  %v1917_v11 = vpop.f32.mrb[110].mxu0  ;;  %3162 = vmatprep.mubr.bf16.mxu1 %v2591_v4 }
 0x20d   : > { %v1918_v12 = vadd.f32 %v1917_v11, %v9624_v47  ;;  %v1919_v13 = vpop.f32.mrb[111].mxu0  ;;  %3163 = vmatmul.mubr.bf16.gmra.mrb[136].mxu1 %v2590_v0  ;;  %v2390_v19 = vmax.f32 %v1914_v7, 0.0 }
 0x20e   : > { %v1920_v15 = vadd.f32 %v1919_v13, %v9627_v48  ;;  %v2391_v23 = vmax.f32 %v1916_v10, 0.0 }
 0x20f   : > { %v2392_v22 = vmax.f32 %v1918_v12, 0.0  ;;  %2182 = vmatmul.mubr.bf16.gmra.mrb[216].mxu0 %v8939_v9 }
 0x210   : > { %v2393_v26 = vmax.f32 %v1920_v15, 0.0  ;;  %v2904_v27 = vpop.f32.mrb[32].mxu1  ;;  %2191 = vmatprep.mubr.bf16.mxu0 %v13724_v2 }
 0x211   : > { %v2905_v29 = vadd.f32 %v2904_v27, %v9963_v14  ;;  %v2906_v30 = vpop.f32.mrb[33].mxu1  ;;  %v2592_v31 = vpack.c.bf16 %v2392_v22, %v2390_v19 }
 0x212   : > { %v2907_v33 = vadd.f32 %v2906_v30, %v9967_v17  ;;  %v1923_v34 = vpop.f32.mrb[112].mxu0  ;;  %v2908_v35 = vpop.f32.mrb[34].mxu1  ;;  %v2593_v36 = vpack.c.bf16 %v2393_v26, %v2391_v23 }
 0x213   : > { %v1924_v37 = vadd.f32 %v1923_v34, %v9624_v47  ;;  %v2909_v38 = vadd.f32 %v2908_v35, %v9963_v14  ;;  %v1925_v40 = vpop.f32.mrb[113].mxu0  ;;  %v2910_v41 = vpop.f32.mrb[35].mxu1  ;;  %v3543_v51 = vmax.f32 %v2905_v29, 0.0 }
 0x214   : > { %v1926_v45 = vadd.f32 %v1925_v40, %v9627_v48  ;;  %v2911_v49 = vadd.f32 %v2910_v41, %v9967_v17  ;;  %v1927_v50 = vpop.f32.mrb[114].mxu0  ;;  %3172 = vmatprep.mubr.bf16.mxu1 %v2593_v36  ;;  %v3544_v57 = vmax.f32 %v2907_v33, 0.0 }
 0x215   : > { %v3545_v52 = vmax.f32 %v2909_v38, 0.0  ;;  %v1928_v54 = vadd.f32 %v1927_v50, %v9624_v47  ;;  %v1929_v56 = vpop.f32.mrb[115].mxu0  ;;  %3173 = vmatmul.mubr.bf16.gmra.mrb[140].mxu1 %v2592_v31  ;;  %v2394_v62 = vmax.f32 %v1924_v37, 0.0 }
 0x216   : > { %v3546_v58 = vmax.f32 %v2911_v49, 0.0  ;;  %v1930_v61 = vadd.f32 %v1929_v56, %v9627_v48  ;;  %v2395_v3 = vmax.f32 %v1926_v45, 0.0  ;;  %v8959_v45 = vld [vmem:[%s13719_s8 + $0xb0] ss:$8 sps:$4 sm:$0xff]   ;;  %v8961_v49 = vld [vmem:[%s13719_s8 + $0xb4] ss:$8 sps:$4 sm:$0xff]  }
 0x217   : > { %v3799_v63 = vpack.c.bf16 %v3545_v52, %v3543_v51  ;;  %v2396_v0 = vmax.f32 %v1928_v54, 0.0  ;;  %2192 = vmatmul.mubr.bf16.gmra.mrb[220].mxu0 %v8940_v43  ;;  %5414 = vmatprep.subr.bf16.mxu1 %v8961_v49 }
 0x218   : > { %v2397_v4 = vmax.f32 %v1930_v61, 0.0  ;;  %v2914_v5 = vpop.f32.mrb[36].mxu1  ;;  %v3800_v7 = vpack.c.bf16 %v3546_v58, %v3544_v57  ;;  %5415 = vmatpush1.bf16.msra.mxu1 %v8959_v45 }
 0x219   : > { %v2915_v8 = vadd.f32 %v2914_v5, %v9963_v14  ;;  %v2916_v9 = vpop.f32.mrb[37].mxu1  ;;  %v2594_v10 = vpack.c.bf16 %v2396_v0, %v2394_v62 }
 0x21a   : > { %v2917_v11 = vadd.f32 %v2916_v9, %v9967_v17  ;;  %v1933_v12 = vpop.f32.mrb[116].mxu0  ;;  %v2918_v13 = vpop.f32.mrb[38].mxu1  ;;  %4163 = vmatprep.mubr.bf16.mxu0 %v3800_v7  ;;  %v2595_v15 = vpack.c.bf16 %v2397_v4, %v2395_v3 }
 0x21b   : > { %v1934_v19 = vadd.f32 %v1933_v12, %v9624_v47  ;;  %v2919_v22 = vadd.f32 %v2918_v13, %v9963_v14  ;;  %v1935_v23 = vpop.f32.mrb[117].mxu0  ;;  %v2920_v26 = vpop.f32.mrb[39].mxu1  ;;  %v3547_v31 = vmax.f32 %v2915_v8, 0.0 }
 0x21c   : > { %v1936_v27 = vadd.f32 %v1935_v23, %v9627_v48  ;;  %v2921_v29 = vadd.f32 %v2920_v26, %v9967_v17  ;;  %v1937_v30 = vpop.f32.mrb[118].mxu0  ;;  %3182 = vmatprep.mubr.bf16.mxu1 %v2595_v15  ;;  %v3548_v36 = vmax.f32 %v2917_v11, 0.0 }
 0x21d   : > { %v3549_v33 = vmax.f32 %v2919_v22, 0.0  ;;  %v1938_v34 = vadd.f32 %v1937_v30, %v9624_v47  ;;  %v1939_v35 = vpop.f32.mrb[119].mxu0  ;;  %3183 = vmatmul.mubr.bf16.gmra.mrb[144].mxu1 %v2594_v10  ;;  %v2398_v40 = vmax.f32 %v1934_v19, 0.0 }
 0x21e   : > { %v3550_v37 = vmax.f32 %v2921_v29, 0.0  ;;  %v1940_v38 = vadd.f32 %v1939_v35, %v9627_v48  ;;  %v2399_v50 = vmax.f32 %v1936_v27, 0.0 }
 0x21f   : > { %v2400_v41 = vmax.f32 %v1938_v34, 0.0  ;;  %4164 = vmatmul.mubr.bf16.vlgmr.msra.gmra.mrb[224].mxu0 %v3799_v63  ;;  %v3801_v43 = vpack.c.bf16 %v3549_v33, %v3547_v31 }
 0x220   : > { %v2401_v51 = vmax.f32 %v1940_v38, 0.0  ;;  %v2924_v52 = vpop.f32.mrb[40].mxu1  ;;  %v3802_v54 = vpack.c.bf16 %v3550_v37, %v3548_v36 }
 0x221   : > { %v2925_v56 = vadd.f32 %v2924_v52, %v9963_v14  ;;  %v2926_v57 = vpop.f32.mrb[41].mxu1  ;;  %v2596_v58 = vpack.c.bf16 %v2400_v41, %v2398_v40 }
 0x222   : > { %v2927_v61 = vadd.f32 %v2926_v57, %v9967_v17  ;;  %v1943_v62 = vpop.f32.mrb[120].mxu0  ;;  %v2928_v63 = vpop.f32.mrb[42].mxu1  ;;  %4173 = vmatprep.mubr.bf16.mxu0 %v3802_v54  ;;  %v2597_v0 = vpack.c.bf16 %v2401_v51, %v2399_v50 }
 0x223   : > { %v1944_v3 = vadd.f32 %v1943_v62, %v9624_v47  ;;  %v2929_v4 = vadd.f32 %v2928_v63, %v9963_v14  ;;  %v1945_v5 = vpop.f32.mrb[121].mxu0  ;;  %v2930_v7 = vpop.f32.mrb[43].mxu1  ;;  %v3551_v11 = vmax.f32 %v2925_v56, 0.0 }
 0x224   : > { %v1946_v8 = vadd.f32 %v1945_v5, %v9627_v48  ;;  %v2931_v9 = vadd.f32 %v2930_v7, %v9967_v17  ;;  %v1947_v10 = vpop.f32.mrb[122].mxu0  ;;  %3192 = vmatprep.mubr.bf16.mxu1 %v2597_v0  ;;  %v3552_v19 = vmax.f32 %v2927_v61, 0.0 }
 0x225   : > { %v3553_v12 = vmax.f32 %v2929_v4, 0.0  ;;  %v1948_v13 = vadd.f32 %v1947_v10, %v9624_v47  ;;  %v1949_v15 = vpop.f32.mrb[123].mxu0  ;;  %3193 = vmatmul.mubr.bf16.gmra.mrb[148].mxu1 %v2596_v58  ;;  %v2402_v26 = vmax.f32 %v1944_v3, 0.0 }
 0x226   : > { %v3554_v22 = vmax.f32 %v2931_v9, 0.0  ;;  %v1950_v23 = vadd.f32 %v1949_v15, %v9627_v48  ;;  %v2403_v30 = vmax.f32 %v1946_v8, 0.0 }
 0x227   : > { %v2404_v27 = vmax.f32 %v1948_v13, 0.0  ;;  %4174 = vmatmul.mubr.bf16.gmra.mrb[228].mxu0 %v3801_v43  ;;  %v3803_v29 = vpack.c.bf16 %v3553_v12, %v3551_v11 }
 0x228   : > { %v2405_v31 = vmax.f32 %v1950_v23, 0.0  ;;  %v2934_v33 = vpop.f32.mrb[44].mxu1  ;;  %v3804_v34 = vpack.c.bf16 %v3554_v22, %v3552_v19 }
 0x229   : > { %v2935_v35 = vadd.f32 %v2934_v33, %v9963_v14  ;;  %v2936_v36 = vpop.f32.mrb[45].mxu1  ;;  %v2598_v37 = vpack.c.bf16 %v2404_v27, %v2402_v26 }
 0x22a   : > { %v2937_v38 = vadd.f32 %v2936_v36, %v9967_v17  ;;  %v1953_v40 = vpop.f32.mrb[124].mxu0  ;;  %v2938_v41 = vpop.f32.mrb[46].mxu1  ;;  %4183 = vmatprep.mubr.bf16.mxu0 %v3804_v34  ;;  %v2599_v45 = vpack.c.bf16 %v2405_v31, %v2403_v30 }
 0x22b   : > { %v1954_v49 = vadd.f32 %v1953_v40, %v9624_v47  ;;  %v2939_v50 = vadd.f32 %v2938_v41, %v9963_v14  ;;  %v1955_v43 = vpop.f32.mrb[125].mxu0  ;;  %v2940_v51 = vpop.f32.mrb[47].mxu1  ;;  %v3555_v57 = vmax.f32 %v2935_v35, 0.0 }
 0x22c   : > { %v1956_v52 = vadd.f32 %v1955_v43, %v9627_v48  ;;  %v2941_v54 = vadd.f32 %v2940_v51, %v9967_v17  ;;  %v1957_v56 = vpop.f32.mrb[126].mxu0  ;;  %3202 = vmatprep.mubr.bf16.mxu1 %v2599_v45  ;;  %v3556_v63 = vmax.f32 %v2937_v38, 0.0 }
 0x22d   : > { %v3557_v58 = vmax.f32 %v2939_v50, 0.0  ;;  %v1958_v61 = vadd.f32 %v1957_v56, %v9624_v47  ;;  %v1959_v62 = vpop.f32.mrb[127].mxu0  ;;  %3203 = vmatmul.mubr.bf16.gmra.mrb[152].mxu1 %v2598_v37  ;;  %v2406_v4 = vmax.f32 %v1954_v49, 0.0 }
 0x22e   : > { %v3558_v0 = vmax.f32 %v2941_v54, 0.0  ;;  %v1960_v3 = vadd.f32 %v1959_v62, %v9627_v48  ;;  %v2407_v8 = vmax.f32 %v1956_v52, 0.0 }
 0x22f   : > { %v2408_v5 = vmax.f32 %v1958_v61, 0.0  ;;  %4184 = vmatmul.mubr.bf16.gmra.mrb[232].mxu0 %v3803_v29  ;;  %v3805_v7 = vpack.c.bf16 %v3557_v58, %v3555_v57 }
 0x230   : > { %v2409_v9 = vmax.f32 %v1960_v3, 0.0  ;;  %v2944_v10 = vpop.f32.mrb[48].mxu1  ;;  %v3806_v11 = vpack.c.bf16 %v3558_v0, %v3556_v63 }
 0x231   : > { %v2945_v12 = vadd.f32 %v2944_v10, %v9963_v14  ;;  %v2946_v13 = vpop.f32.mrb[49].mxu1  ;;  %v2600_v15 = vpack.c.bf16 %v2408_v5, %v2406_v4 }
 0x232   : > { %v2947_v19 = vadd.f32 %v2946_v13, %v9967_v17  ;;  %v1963_v22 = vpop.f32.mrb[128].mxu0  ;;  %v2948_v23 = vpop.f32.mrb[50].mxu1  ;;  %4193 = vmatprep.mubr.bf16.mxu0 %v3806_v11  ;;  %v2601_v26 = vpack.c.bf16 %v2409_v9, %v2407_v8 }
 0x233   : > { %v1964_v27 = vadd.f32 %v1963_v22, %v9624_v47  ;;  %v2949_v30 = vadd.f32 %v2948_v23, %v9963_v14  ;;  %v1965_v29 = vpop.f32.mrb[129].mxu0  ;;  %v2950_v31 = vpop.f32.mrb[51].mxu1  ;;  %v3559_v36 = vmax.f32 %v2945_v12, 0.0 }
 0x234   : > { %v1966_v33 = vadd.f32 %v1965_v29, %v9627_v48  ;;  %v2951_v34 = vadd.f32 %v2950_v31, %v9967_v17  ;;  %v1967_v35 = vpop.f32.mrb[130].mxu0  ;;  %3212 = vmatprep.mubr.bf16.mxu1 %v2601_v26  ;;  %v3560_v41 = vmax.f32 %v2947_v19, 0.0 }
 0x235   : > { %v3561_v37 = vmax.f32 %v2949_v30, 0.0  ;;  %v1968_v38 = vadd.f32 %v1967_v35, %v9624_v47  ;;  %v1969_v40 = vpop.f32.mrb[131].mxu0  ;;  %3213 = vmatmul.mubr.bf16.gmra.mrb[156].mxu1 %v2600_v15  ;;  %v2410_v50 = vmax.f32 %v1964_v27, 0.0 }
 0x236   : > { %v3562_v45 = vmax.f32 %v2951_v34, 0.0  ;;  %v1970_v49 = vadd.f32 %v1969_v40, %v9627_v48  ;;  %v2411_v52 = vmax.f32 %v1966_v33, 0.0  ;;  %v8962_v33 = vld [vmem:[%s13719_s8 + $0xc0] ss:$8 sps:$4 sm:$0xff]   ;;  %v8964_v34 = vld [vmem:[%s13719_s8 + $0xc4] ss:$8 sps:$4 sm:$0xff]  }
 0x237   : > { %v2412_v43 = vmax.f32 %v1968_v38, 0.0  ;;  %4194 = vmatmul.mubr.bf16.gmra.mrb[236].mxu0 %v3805_v7  ;;  %v3807_v51 = vpack.c.bf16 %v3561_v37, %v3559_v36  ;;  %5416 = vmatprep.subr.bf16.mxu1 %v8964_v34 }
 0x238   : > { %v2413_v54 = vmax.f32 %v1970_v49, 0.0  ;;  %v2954_v56 = vpop.f32.mrb[52].mxu1  ;;  %v3808_v57 = vpack.c.bf16 %v3562_v45, %v3560_v41  ;;  %5417 = vmatpush1.bf16.msra.mxu1 %v8962_v33 }
 0x239   : > { %v2955_v58 = vadd.f32 %v2954_v56, %v9963_v14  ;;  %v2956_v61 = vpop.f32.mrb[53].mxu1  ;;  %v2602_v62 = vpack.c.bf16 %v2412_v43, %v2410_v50 }
 0x23a   : > { %v2957_v63 = vadd.f32 %v2956_v61, %v9967_v17  ;;  %v1973_v0 = vpop.f32.mrb[132].mxu0  ;;  %v2958_v3 = vpop.f32.mrb[54].mxu1  ;;  %4203 = vmatprep.mubr.bf16.mxu0 %v3808_v57  ;;  %v2603_v4 = vpack.c.bf16 %v2413_v54, %v2411_v52 }
 0x23b   : > { %v1974_v5 = vadd.f32 %v1973_v0, %v9624_v47  ;;  %v2959_v8 = vadd.f32 %v2958_v3, %v9963_v14  ;;  %v1975_v7 = vpop.f32.mrb[133].mxu0  ;;  %v2960_v9 = vpop.f32.mrb[55].mxu1  ;;  %v3563_v13 = vmax.f32 %v2955_v58, 0.0 }
 0x23c   : > { %v1976_v10 = vadd.f32 %v1975_v7, %v9627_v48  ;;  %v2961_v11 = vadd.f32 %v2960_v9, %v9967_v17  ;;  %v1977_v12 = vpop.f32.mrb[134].mxu0  ;;  %3222 = vmatprep.mubr.bf16.mxu1 %v2603_v4  ;;  %v3564_v23 = vmax.f32 %v2957_v63, 0.0 }
 0x23d   : > { %v3565_v15 = vmax.f32 %v2959_v8, 0.0  ;;  %v1978_v19 = vadd.f32 %v1977_v12, %v9624_v47  ;;  %v1979_v22 = vpop.f32.mrb[135].mxu0  ;;  %3223 = vmatmul.mubr.bf16.gmra.mrb[160].mxu1 %v2602_v62  ;;  %v2414_v30 = vmax.f32 %v1974_v5, 0.0 }
 0x23e   : > { %v3566_v26 = vmax.f32 %v2961_v11, 0.0  ;;  %v1980_v27 = vadd.f32 %v1979_v22, %v9627_v48  ;;  %v2415_v35 = vmax.f32 %v1976_v10, 0.0 }
 0x23f   : > { %v2416_v29 = vmax.f32 %v1978_v19, 0.0  ;;  %4204 = vmatmul.mubr.bf16.gmra.mrb[240].mxu0 %v3807_v51  ;;  %v3809_v31 = vpack.c.bf16 %v3565_v15, %v3563_v13 }
 0x240   : > { %v2417_v36 = vmax.f32 %v1980_v27, 0.0  ;;  %v2964_v37 = vpop.f32.mrb[56].mxu1  ;;  %v3810_v38 = vpack.c.bf16 %v3566_v26, %v3564_v23 }
 0x241   : > { %v2965_v40 = vadd.f32 %v2964_v37, %v9963_v14  ;;  %v2966_v41 = vpop.f32.mrb[57].mxu1  ;;  %v2604_v45 = vpack.c.bf16 %v2416_v29, %v2414_v30 }
 0x242   : > { %v2967_v49 = vadd.f32 %v2966_v41, %v9967_v17  ;;  %v1983_v50 = vpop.f32.mrb[136].mxu0  ;;  %v2968_v43 = vpop.f32.mrb[58].mxu1  ;;  %4213 = vmatprep.mubr.bf16.mxu0 %v3810_v38  ;;  %v2605_v51 = vpack.c.bf16 %v2417_v36, %v2415_v35 }
 0x243   : > { %v1984_v52 = vadd.f32 %v1983_v50, %v9624_v47  ;;  %v2969_v54 = vadd.f32 %v2968_v43, %v9963_v14  ;;  %v1985_v56 = vpop.f32.mrb[137].mxu0  ;;  %v2970_v57 = vpop.f32.mrb[59].mxu1  ;;  %v3567_v63 = vmax.f32 %v2965_v40, 0.0 }
 0x244   : > { %v1986_v58 = vadd.f32 %v1985_v56, %v9627_v48  ;;  %v2971_v61 = vadd.f32 %v2970_v57, %v9967_v17  ;;  %v1987_v62 = vpop.f32.mrb[138].mxu0  ;;  %3232 = vmatprep.mubr.bf16.mxu1 %v2605_v51  ;;  %v3568_v5 = vmax.f32 %v2967_v49, 0.0 }
 0x245   : > { %v3569_v0 = vmax.f32 %v2969_v54, 0.0  ;;  %v1988_v3 = vadd.f32 %v1987_v62, %v9624_v47  ;;  %v1989_v4 = vpop.f32.mrb[139].mxu0  ;;  %3233 = vmatmul.mubr.bf16.gmra.mrb[164].mxu1 %v2604_v45  ;;  %v2418_v9 = vmax.f32 %v1984_v52, 0.0 }
 0x246   : > { %v3570_v8 = vmax.f32 %v2971_v61, 0.0  ;;  %v1990_v7 = vadd.f32 %v1989_v4, %v9627_v48  ;;  %v2419_v12 = vmax.f32 %v1986_v58, 0.0 }
 0x247   : > { %v2420_v10 = vmax.f32 %v1988_v3, 0.0  ;;  %4214 = vmatmul.mubr.bf16.gmra.mrb[244].mxu0 %v3809_v31  ;;  %v3811_v11 = vpack.c.bf16 %v3569_v0, %v3567_v63 }
 0x248   : > { %v2421_v13 = vmax.f32 %v1990_v7, 0.0  ;;  %v2974_v15 = vpop.f32.mrb[60].mxu1  ;;  %v3812_v19 = vpack.c.bf16 %v3570_v8, %v3568_v5 }
 0x249   : > { %v2975_v22 = vadd.f32 %v2974_v15, %v9963_v14  ;;  %v2976_v23 = vpop.f32.mrb[61].mxu1  ;;  %v2606_v26 = vpack.c.bf16 %v2420_v10, %v2418_v9 }
 0x24a   : > { %v2977_v27 = vadd.f32 %v2976_v23, %v9967_v17  ;;  %v1993_v30 = vpop.f32.mrb[140].mxu0  ;;  %v2978_v29 = vpop.f32.mrb[62].mxu1  ;;  %4223 = vmatprep.mubr.bf16.mxu0 %v3812_v19  ;;  %v2607_v33 = vpack.c.bf16 %v2421_v13, %v2419_v12 }
 0x24b   : > { %v1994_v34 = vadd.f32 %v1993_v30, %v9624_v47  ;;  %v2979_v35 = vadd.f32 %v2978_v29, %v9963_v14  ;;  %v1995_v31 = vpop.f32.mrb[141].mxu0  ;;  %v2980_v36 = vpop.f32.mrb[63].mxu1  ;;  %v3571_v41 = vmax.f32 %v2975_v22, 0.0 }
 0x24c   : > { %v1996_v37 = vadd.f32 %v1995_v31, %v9627_v48  ;;  %v2981_v38 = vadd.f32 %v2980_v36, %v9967_v17  ;;  %v1997_v40 = vpop.f32.mrb[142].mxu0  ;;  %3242 = vmatprep.mubr.bf16.mxu1 %v2607_v33  ;;  %v3572_v43 = vmax.f32 %v2977_v27, 0.0 }
 0x24d   : > { %v3573_v45 = vmax.f32 %v2979_v35, 0.0  ;;  %v1998_v49 = vadd.f32 %v1997_v40, %v9624_v47  ;;  %v1999_v50 = vpop.f32.mrb[143].mxu0  ;;  %3243 = vmatmul.mubr.bf16.gmra.mrb[168].mxu1 %v2606_v26  ;;  %v2422_v54 = vmax.f32 %v1994_v34, 0.0 }
 0x24e   : > { %v3574_v51 = vmax.f32 %v2981_v38, 0.0  ;;  %v2000_v52 = vadd.f32 %v1999_v50, %v9627_v48  ;;  %v2423_v58 = vmax.f32 %v1996_v37, 0.0 }
 0x24f   : > { %v2424_v56 = vmax.f32 %v1998_v49, 0.0  ;;  %4224 = vmatmul.mubr.bf16.gmra.mrb[248].mxu0 %v3811_v11  ;;  %v3813_v57 = vpack.c.bf16 %v3573_v45, %v3571_v41 }
 0x250   : > { %v2425_v61 = vmax.f32 %v2000_v52, 0.0  ;;  %v2984_v62 = vpop.f32.mrb[64].mxu1  ;;  %v3814_v63 = vpack.c.bf16 %v3574_v51, %v3572_v43 }
 0x251   : > { %v2985_v0 = vadd.f32 %v2984_v62, %v9963_v14  ;;  %v2986_v3 = vpop.f32.mrb[65].mxu1  ;;  %v2608_v4 = vpack.c.bf16 %v2424_v56, %v2422_v54 }
 0x252   : > { %v2987_v5 = vadd.f32 %v2986_v3, %v9967_v17  ;;  %v2003_v8 = vpop.f32.mrb[144].mxu0  ;;  %v2988_v7 = vpop.f32.mrb[66].mxu1  ;;  %4233 = vmatprep.mubr.bf16.mxu0 %v3814_v63  ;;  %v2609_v9 = vpack.c.bf16 %v2425_v61, %v2423_v58 }
 0x253   : > { %v2004_v10 = vadd.f32 %v2003_v8, %v9624_v47  ;;  %v2989_v12 = vadd.f32 %v2988_v7, %v9963_v14  ;;  %v2005_v11 = vpop.f32.mrb[145].mxu0  ;;  %v2990_v13 = vpop.f32.mrb[67].mxu1  ;;  %v3575_v23 = vmax.f32 %v2985_v0, 0.0 }
 0x254   : > { %v2006_v15 = vadd.f32 %v2005_v11, %v9627_v48  ;;  %v2991_v19 = vadd.f32 %v2990_v13, %v9967_v17  ;;  %v2007_v22 = vpop.f32.mrb[146].mxu0  ;;  %3252 = vmatprep.mubr.bf16.mxu1 %v2609_v9  ;;  %v3576_v29 = vmax.f32 %v2987_v5, 0.0 }
 0x255   : > { %v3577_v26 = vmax.f32 %v2989_v12, 0.0  ;;  %v2008_v27 = vadd.f32 %v2007_v22, %v9624_v47  ;;  %v2009_v30 = vpop.f32.mrb[147].mxu0  ;;  %3253 = vmatmul.mubr.bf16.gmra.mrb[172].mxu1 %v2608_v4  ;;  %v2426_v35 = vmax.f32 %v2004_v10, 0.0 }
 0x256   : > { %v3578_v33 = vmax.f32 %v2991_v19, 0.0  ;;  %v2010_v34 = vadd.f32 %v2009_v30, %v9627_v48  ;;  %v2427_v37 = vmax.f32 %v2006_v15, 0.0  ;;  %v8965_v15 = vld [vmem:[%s13719_s8 + $0xd0] ss:$8 sps:$4 sm:$0xff]   ;;  %v8967_v19 = vld [vmem:[%s13719_s8 + $0xd4] ss:$8 sps:$4 sm:$0xff]  }
 0x257   : > { %v3815_v31 = vpack.c.bf16 %v3577_v26, %v3575_v23  ;;  %v2428_v36 = vmax.f32 %v2008_v27, 0.0  ;;  %4234 = vmatmul.mubr.bf16.gmra.mrb[252].mxu0 %v3813_v57  ;;  %5418 = vmatprep.subr.bf16.mxu1 %v8967_v19 }
 0x258   : > { %v2429_v38 = vmax.f32 %v2010_v34, 0.0  ;;  %v2994_v40 = vpop.f32.mrb[68].mxu1  ;;  %v3816_v41 = vpack.c.bf16 %v3578_v33, %v3576_v29  ;;  %5419 = vmatpush1.bf16.msra.mxu1 %v8965_v15 }
 0x259   : > { %v2995_v45 = vadd.f32 %v2994_v40, %v9963_v14  ;;  %v2996_v49 = vpop.f32.mrb[69].mxu1  ;;  %v2610_v50 = vpack.c.bf16 %v2428_v36, %v2426_v35 }
 0x25a   : > { %v2997_v43 = vadd.f32 %v2996_v49, %v9967_v17  ;;  %v2013_v51 = vpop.f32.mrb[148].mxu0  ;;  %v2998_v52 = vpop.f32.mrb[70].mxu1  ;;  %4243 = vmatprep.mubr.bf16.mxu0 %v3816_v41  ;;  %v2611_v54 = vpack.c.bf16 %v2429_v38, %v2427_v37 }
 0x25b   : > { %v2014_v56 = vadd.f32 %v2013_v51, %v9624_v47  ;;  %v2999_v58 = vadd.f32 %v2998_v52, %v9963_v14  ;;  %v2015_v61 = vpop.f32.mrb[149].mxu0  ;;  %v3000_v57 = vpop.f32.mrb[71].mxu1  ;;  %v3579_v3 = vmax.f32 %v2995_v45, 0.0 }
 0x25c   : > { %v2016_v62 = vadd.f32 %v2015_v61, %v9627_v48  ;;  %v3001_v63 = vadd.f32 %v3000_v57, %v9967_v17  ;;  %v2017_v0 = vpop.f32.mrb[150].mxu0  ;;  %3262 = vmatprep.mubr.bf16.mxu1 %v2611_v54  ;;  %v3580_v7 = vmax.f32 %v2997_v43, 0.0 }
 0x25d   : > { %v3581_v4 = vmax.f32 %v2999_v58, 0.0  ;;  %v2018_v5 = vadd.f32 %v2017_v0, %v9624_v47  ;;  %v2019_v8 = vpop.f32.mrb[151].mxu0  ;;  %3263 = vmatmul.mubr.bf16.gmra.mrb[176].mxu1 %v2610_v50  ;;  %v2430_v12 = vmax.f32 %v2014_v56, 0.0 }
 0x25e   : > { %v3582_v9 = vmax.f32 %v3001_v63, 0.0  ;;  %v2020_v10 = vadd.f32 %v2019_v8, %v9627_v48  ;;  %v2431_v22 = vmax.f32 %v2016_v62, 0.0 }
 0x25f   : > { %v3817_v11 = vpack.c.bf16 %v3581_v4, %v3579_v3  ;;  %v2432_v13 = vmax.f32 %v2018_v5, 0.0  ;;  %4244 = vmatmul.mubr.bf16.gmra.mrb[0].mxu0 %v3815_v31 }
 0x260   : > { %v2433_v23 = vmax.f32 %v2020_v10, 0.0  ;;  %v3004_v26 = vpop.f32.mrb[72].mxu1  ;;  %v3818_v27 = vpack.c.bf16 %v3582_v9, %v3580_v7 }
 0x261   : > { %v3005_v30 = vadd.f32 %v3004_v26, %v9963_v14  ;;  %v3006_v29 = vpop.f32.mrb[73].mxu1  ;;  %v2612_v33 = vpack.c.bf16 %v2432_v13, %v2430_v12 }
 0x262   : > { %v3007_v34 = vadd.f32 %v3006_v29, %v9967_v17  ;;  %v2023_v35 = vpop.f32.mrb[152].mxu0  ;;  %v3008_v31 = vpop.f32.mrb[74].mxu1  ;;  %4253 = vmatprep.mubr.bf16.mxu0 %v3818_v27  ;;  %v2613_v36 = vpack.c.bf16 %v2433_v23, %v2431_v22 }
 0x263   : > { %v2024_v37 = vadd.f32 %v2023_v35, %v9624_v47  ;;  %v3009_v38 = vadd.f32 %v3008_v31, %v9963_v14  ;;  %v2025_v40 = vpop.f32.mrb[153].mxu0  ;;  %v3010_v41 = vpop.f32.mrb[75].mxu1  ;;  %v3583_v43 = vmax.f32 %v3005_v30, 0.0 }
 0x264   : > { %v2026_v45 = vadd.f32 %v2025_v40, %v9627_v48  ;;  %v3011_v49 = vadd.f32 %v3010_v41, %v9967_v17  ;;  %v2027_v50 = vpop.f32.mrb[154].mxu0  ;;  %3272 = vmatprep.mubr.bf16.mxu1 %v2613_v36  ;;  %v3584_v56 = vmax.f32 %v3007_v34, 0.0 }
 0x265   : > { %v3585_v51 = vmax.f32 %v3009_v38, 0.0  ;;  %v2028_v52 = vadd.f32 %v2027_v50, %v9624_v47  ;;  %v2029_v54 = vpop.f32.mrb[155].mxu0  ;;  %3273 = vmatmul.mubr.bf16.gmra.mrb[180].mxu1 %v2612_v33  ;;  %v2434_v57 = vmax.f32 %v2024_v37, 0.0 }
 0x266   : > { %v3586_v58 = vmax.f32 %v3011_v49, 0.0  ;;  %v2030_v61 = vadd.f32 %v2029_v54, %v9627_v48  ;;  %v2435_v0 = vmax.f32 %v2026_v45, 0.0 }
 0x267   : > { %v3819_v62 = vpack.c.bf16 %v3585_v51, %v3583_v43  ;;  %v2436_v63 = vmax.f32 %v2028_v52, 0.0  ;;  %4254 = vmatmul.mubr.bf16.gmra.mrb[4].mxu0 %v3817_v11 }
 0x268   : > { %v2437_v3 = vmax.f32 %v2030_v61, 0.0  ;;  %v3014_v4 = vpop.f32.mrb[76].mxu1  ;;  %v3820_v5 = vpack.c.bf16 %v3586_v58, %v3584_v56 }
 0x269   : > { %v3015_v8 = vadd.f32 %v3014_v4, %v9963_v14  ;;  %v3016_v7 = vpop.f32.mrb[77].mxu1  ;;  %v2614_v9 = vpack.c.bf16 %v2436_v63, %v2434_v57 }
 0x26a   : > { %v3017_v10 = vadd.f32 %v3016_v7, %v9967_v17  ;;  %v2033_v12 = vpop.f32.mrb[156].mxu0  ;;  %v3018_v13 = vpop.f32.mrb[78].mxu1  ;;  %4263 = vmatprep.mubr.bf16.mxu0 %v3820_v5  ;;  %v2615_v15 = vpack.c.bf16 %v2437_v3, %v2435_v0 }
 0x26b   : > { %v2034_v19 = vadd.f32 %v2033_v12, %v9624_v47  ;;  %v3019_v22 = vadd.f32 %v3018_v13, %v9963_v14  ;;  %v2035_v23 = vpop.f32.mrb[157].mxu0  ;;  %v3020_v11 = vpop.f32.mrb[79].mxu1  ;;  %v3587_v29 = vmax.f32 %v3015_v8, 0.0 }
 0x26c   : > { %v2036_v26 = vadd.f32 %v2035_v23, %v9627_v48  ;;  %v3021_v27 = vadd.f32 %v3020_v11, %v9967_v17  ;;  %v2037_v30 = vpop.f32.mrb[158].mxu0  ;;  %3282 = vmatprep.mubr.bf16.mxu1 %v2615_v15  ;;  %v3588_v31 = vmax.f32 %v3017_v10, 0.0 }
 0x26d   : > { %v3589_v33 = vmax.f32 %v3019_v22, 0.0  ;;  %v2038_v34 = vadd.f32 %v2037_v30, %v9624_v47  ;;  %v2039_v35 = vpop.f32.mrb[159].mxu0  ;;  %3283 = vmatmul.mubr.bf16.gmra.mrb[184].mxu1 %v2614_v9  ;;  %v2438_v38 = vmax.f32 %v2034_v19, 0.0 }
 0x26e   : > { %v3590_v36 = vmax.f32 %v3021_v27, 0.0  ;;  %v2040_v37 = vadd.f32 %v2039_v35, %v9627_v48  ;;  %v2439_v45 = vmax.f32 %v2036_v26, 0.0 }
 0x26f   : > { %v3821_v40 = vpack.c.bf16 %v3589_v33, %v3587_v29  ;;  %v2440_v41 = vmax.f32 %v2038_v34, 0.0  ;;  %4264 = vmatmul.mubr.bf16.gmra.mrb[8].mxu0 %v3819_v62 }
 0x270   : > { %v2441_v49 = vmax.f32 %v2040_v37, 0.0  ;;  %v3024_v50 = vpop.f32.mrb[80].mxu1  ;;  %v3822_v43 = vpack.c.bf16 %v3590_v36, %v3588_v31 }
 0x271   : > { %v3025_v51 = vadd.f32 %v3024_v50, %v9963_v14  ;;  %v3026_v52 = vpop.f32.mrb[81].mxu1  ;;  %v2616_v54 = vpack.c.bf16 %v2440_v41, %v2438_v38 }
 0x272   : > { %v3027_v56 = vadd.f32 %v3026_v52, %v9967_v17  ;;  %v2043_v58 = vpop.f32.mrb[160].mxu0  ;;  %v3028_v61 = vpop.f32.mrb[82].mxu1  ;;  %4273 = vmatprep.mubr.bf16.mxu0 %v3822_v43  ;;  %v2617_v57 = vpack.c.bf16 %v2441_v49, %v2439_v45 }
 0x273   : > { %v2044_v63 = vadd.f32 %v2043_v58, %v9624_v47  ;;  %v3029_v0 = vadd.f32 %v3028_v61, %v9963_v14  ;;  %v2045_v3 = vpop.f32.mrb[161].mxu0  ;;  %v3030_v62 = vpop.f32.mrb[83].mxu1  ;;  %v3591_v7 = vmax.f32 %v3025_v51, 0.0 }
 0x274   : > { %v2046_v4 = vadd.f32 %v2045_v3, %v9627_v48  ;;  %v3031_v5 = vadd.f32 %v3030_v62, %v9967_v17  ;;  %v2047_v8 = vpop.f32.mrb[162].mxu0  ;;  %3292 = vmatprep.mubr.bf16.mxu1 %v2617_v57  ;;  %v3592_v13 = vmax.f32 %v3027_v56, 0.0 }
 0x275   : > { %v3593_v9 = vmax.f32 %v3029_v0, 0.0  ;;  %v2048_v10 = vadd.f32 %v2047_v8, %v9624_v47  ;;  %v2049_v12 = vpop.f32.mrb[163].mxu0  ;;  %3293 = vmatmul.mubr.bf16.gmra.mrb[188].mxu1 %v2616_v54  ;;  %v2442_v22 = vmax.f32 %v2044_v63, 0.0 }
 0x276   : > { %v3594_v15 = vmax.f32 %v3031_v5, 0.0  ;;  %v2050_v19 = vadd.f32 %v2049_v12, %v9627_v48  ;;  %v2443_v26 = vmax.f32 %v2046_v4, 0.0  ;;  %v10114_v4 = vld [vmem:[%s10111_s30 + $0x10] sm:$0xff] }
 0x277   : > { %v3823_v23 = vpack.c.bf16 %v3593_v9, %v3591_v7  ;;  %v2444_v11 = vmax.f32 %v2048_v10, 0.0  ;;  %4274 = vmatmul.mubr.bf16.gmra.mrb[12].mxu0 %v3821_v40  ;;  %6365 = vperm.xlu1 %8724, %v10114_v4  }
 0x278   : > { %v2445_v27 = vmax.f32 %v2050_v19, 0.0  ;;  %v3034_v30 = vpop.f32.mrb[84].mxu1  ;;  %v3824_v29 = vpack.c.bf16 %v3594_v15, %v3592_v13  ;;  %v8968_v15 = vld [vmem:[%s13719_s8 + $0xe0] ss:$8 sps:$4 sm:$0xff]   ;;  %v8970_v19 = vld [vmem:[%s13719_s8 + $0xe4] ss:$8 sps:$4 sm:$0xff]  }
 0x279   : > { %v3035_v33 = vadd.f32 %v3034_v30, %v9963_v14  ;;  %v3036_v34 = vpop.f32.mrb[85].mxu1  ;;  %v2618_v35 = vpack.c.bf16 %v2444_v11, %v2442_v22  ;;  %5420 = vmatprep.subr.bf16.mxu1 %v8970_v19 }
 0x27a   : > { %v3037_v31 = vadd.f32 %v3036_v34, %v9967_v17  ;;  %v2053_v36 = vpop.f32.mrb[164].mxu0  ;;  %v3038_v37 = vpop.f32.mrb[86].mxu1  ;;  %4283 = vmatprep.mubr.bf16.mxu0 %v3824_v29  ;;  %v2619_v38 = vpack.c.bf16 %v2445_v27, %v2443_v26  ;;  %v10128_v34 = vld [vmem:[%s10111_s30 + $0x18] sm:$0xff]  ;;  %5421 = vmatpush1.bf16.msra.mxu1 %v8968_v15 }
 0x27b   : > { %v2054_v41 = vadd.f32 %v2053_v36, %v9624_v47  ;;  %v3039_v40 = vadd.f32 %v3038_v37, %v9963_v14  ;;  %v2055_v45 = vpop.f32.mrb[165].mxu0  ;;  %v3040_v49 = vpop.f32.mrb[87].mxu1  ;;  %v3595_v52 = vmax.f32 %v3035_v33, 0.0  ;;  %6370 = vperm.xlu1 %8724, %v10128_v34   ;;  %v10144_v15 = vld [vmem:[%s10111_s30 + $0x38] sm:$0xff] }
 0x27c   : > { %v2056_v50 = vadd.f32 %v2055_v45, %v9627_v48  ;;  %v3041_v43 = vadd.f32 %v3040_v49, %v9967_v17  ;;  %v2057_v51 = vpop.f32.mrb[166].mxu0  ;;  %3302 = vmatprep.mubr.bf16.mxu1 %v2619_v38  ;;  %v3596_v61 = vmax.f32 %v3037_v31, 0.0 }
 0x27d   : > { %v3597_v54 = vmax.f32 %v3039_v40, 0.0  ;;  %v2058_v56 = vadd.f32 %v2057_v51, %v9624_v47  ;;  %v2059_v58 = vpop.f32.mrb[167].mxu0  ;;  %3303 = vmatmul.mubr.bf16.gmra.mrb[192].mxu1 %v2618_v35  ;;  %v2446_v0 = vmax.f32 %v2054_v41, 0.0 }
 0x27e   : > { %v3598_v57 = vmax.f32 %v3041_v43, 0.0  ;;  %v2060_v63 = vadd.f32 %v2059_v58, %v9627_v48  ;;  %v2447_v5 = vmax.f32 %v2056_v50, 0.0 }
 0x27f   : > { %v3825_v3 = vpack.c.bf16 %v3597_v54, %v3595_v52  ;;  %v2448_v62 = vmax.f32 %v2058_v56, 0.0  ;;  %4284 = vmatmul.mubr.bf16.gmra.mrb[16].mxu0 %v3823_v23  ;;  %v10136_v54 = vld [vmem:[%s10111_s30 + $0x28] sm:$0xff] }
 0x280   : > { %v2449_v8 = vmax.f32 %v2060_v63, 0.0  ;;  %v3044_v7 = vpop.f32.mrb[88].mxu1  ;;  %v3826_v9 = vpack.c.bf16 %v3598_v57, %v3596_v61  ;;  %6380 = vperm.xlu1 %8724, %v10136_v54  }
 0x281   : > { %v3045_v10 = vadd.f32 %v3044_v7, %v9963_v14  ;;  %v3046_v12 = vpop.f32.mrb[89].mxu1  ;;  %v2620_v13 = vpack.c.bf16 %v2448_v62, %v2446_v0 }
 0x282   : > { %v3047_v22 = vadd.f32 %v3046_v12, %v9967_v17  ;;  %v2063_v23 = vpop.f32.mrb[168].mxu0  ;;  %v3048_v11 = vpop.f32.mrb[90].mxu1  ;;  %4293 = vmatprep.mubr.bf16.mxu0 %v3826_v9  ;;  %v2621_v26 = vpack.c.bf16 %v2449_v8, %v2447_v5 }
 0x283   : > { %v2064_v27 = vadd.f32 %v2063_v23, %v9624_v47  ;;  %v3049_v30 = vadd.f32 %v3048_v11, %v9963_v14  ;;  %v2065_v29 = vpop.f32.mrb[169].mxu0  ;;  %v3050_v33 = vpop.f32.mrb[91].mxu1  ;;  %v3599_v37 = vmax.f32 %v3045_v10, 0.0 }
 0x284   : > { %v2066_v35 = vadd.f32 %v2065_v29, %v9627_v48  ;;  %v3051_v31 = vadd.f32 %v3050_v33, %v9967_v17  ;;  %v2067_v36 = vpop.f32.mrb[170].mxu0  ;;  %3312 = vmatprep.mubr.bf16.mxu1 %v2621_v26  ;;  %v3600_v45 = vmax.f32 %v3047_v22, 0.0  ;;  %6390 = vperm.xlu1 %8724, %v10144_v15  }
 0x285   : > { %v3601_v38 = vmax.f32 %v3049_v30, 0.0  ;;  %v2068_v41 = vadd.f32 %v2067_v36, %v9624_v47  ;;  %v2069_v40 = vpop.f32.mrb[171].mxu0  ;;  %3313 = vmatmul.mubr.bf16.gmra.mrb[196].mxu1 %v2620_v13  ;;  %v2450_v43 = vmax.f32 %v2064_v27, 0.0 }
 0x286   : > { %v3602_v49 = vmax.f32 %v3051_v31, 0.0  ;;  %v2070_v50 = vadd.f32 %v2069_v40, %v9627_v48  ;;  %v2451_v56 = vmax.f32 %v2066_v35, 0.0 }
 0x287   : > { %v3827_v51 = vpack.c.bf16 %v3601_v38, %v3599_v37  ;;  %v2452_v52 = vmax.f32 %v2068_v41, 0.0  ;;  %4294 = vmatmul.mubr.bf16.gmra.mrb[20].mxu0 %v3825_v3  ;;  %v10152_v38 = vld [vmem:[%s10111_s30 + $0x48] sm:$0xff] }
 0x288   : > { %v2453_v58 = vmax.f32 %v2070_v50, 0.0  ;;  %v3054_v61 = vpop.f32.mrb[92].mxu1  ;;  %v3828_v57 = vpack.c.bf16 %v3602_v49, %v3600_v45  ;;  %6400 = vperm.xlu1 %8724, %v10152_v38  }
 0x289   : > { %v3055_v63 = vadd.f32 %v3054_v61, %v9963_v14  ;;  %v3056_v0 = vpop.f32.mrb[93].mxu1  ;;  %v2622_v62 = vpack.c.bf16 %v2452_v52, %v2450_v43 }
 0x28a   : > { %v3057_v5 = vadd.f32 %v3056_v0, %v9967_v17  ;;  %v2073_v8 = vpop.f32.mrb[172].mxu0  ;;  %v3058_v7 = vpop.f32.mrb[94].mxu1  ;;  %4303 = vmatprep.mubr.bf16.mxu0 %v3828_v57  ;;  %v2623_v9 = vpack.c.bf16 %v2453_v58, %v2451_v56 }
 0x28b   : > { %v2074_v3 = vadd.f32 %v2073_v8, %v9624_v47  ;;  %v3059_v10 = vadd.f32 %v3058_v7, %v9963_v14  ;;  %v2075_v12 = vpop.f32.mrb[173].mxu0  ;;  %v3060_v13 = vpop.f32.mrb[95].mxu1  ;;  %v3603_v11 = vmax.f32 %v3055_v63, 0.0 }
 0x28c   : > { %v2076_v19 = vadd.f32 %v2075_v12, %v9627_v48  ;;  %v3061_v22 = vadd.f32 %v3060_v13, %v9967_v17  ;;  %v2077_v23 = vpop.f32.mrb[174].mxu0  ;;  %3322 = vmatprep.mubr.bf16.mxu1 %v2623_v9  ;;  %v3604_v29 = vmax.f32 %v3057_v5, 0.0  ;;  %v10160_v5 = vld [vmem:[%s10111_s30 + $0x58] sm:$0xff] }
 0x28d   : > { %v3605_v26 = vmax.f32 %v3059_v10, 0.0  ;;  %v2078_v27 = vadd.f32 %v2077_v23, %v9624_v47  ;;  %v2079_v30 = vpop.f32.mrb[175].mxu0  ;;  %3323 = vmatmul.mubr.bf16.gmra.mrb[200].mxu1 %v2622_v62  ;;  %v2454_v31 = vmax.f32 %v2074_v3, 0.0  ;;  %6410 = vperm.xlu1 %8724, %v10160_v5  }
 0x28e   : > { %v3606_v33 = vmax.f32 %v3061_v22, 0.0  ;;  %v2080_v35 = vadd.f32 %v2079_v30, %v9627_v48  ;;  %v2455_v41 = vmax.f32 %v2076_v19, 0.0  ;;  %v10168_v30 = vld [vmem:[%s10111_s30 + $0x68] sm:$0xff] }
 0x28f   : > { %v3829_v36 = vpack.c.bf16 %v3605_v26, %v3603_v11  ;;  %v2456_v37 = vmax.f32 %v2078_v27, 0.0  ;;  %4304 = vmatmul.mubr.bf16.gmra.mrb[24].mxu0 %v3827_v51 }
 0x290   : > { %v2457_v40 = vmax.f32 %v2080_v35, 0.0  ;;  %v3064_v45 = vpop.f32.mrb[96].mxu1  ;;  %v3830_v49 = vpack.c.bf16 %v3606_v33, %v3604_v29 }
 0x291   : > { %v3065_v50 = vadd.f32 %v3064_v45, %v9963_v14  ;;  %v3066_v43 = vpop.f32.mrb[97].mxu1  ;;  %v2624_v52 = vpack.c.bf16 %v2456_v37, %v2454_v31  ;;  %6420 = vperm.xlu1 %8724, %v10168_v30  }
 0x292   : > { %v3067_v56 = vadd.f32 %v3066_v43, %v9967_v17  ;;  %v2083_v58 = vpop.f32.mrb[176].mxu0  ;;  %v3068_v61 = vpop.f32.mrb[98].mxu1  ;;  %4313 = vmatprep.mubr.bf16.mxu0 %v3830_v49  ;;  %v2625_v57 = vpack.c.bf16 %v2457_v40, %v2455_v41 }
 0x293   : > { %v2084_v51 = vadd.f32 %v2083_v58, %v9624_v47  ;;  %v3069_v63 = vadd.f32 %v3068_v61, %v9963_v14  ;;  %v2085_v0 = vpop.f32.mrb[177].mxu0  ;;  %v3070_v62 = vpop.f32.mrb[99].mxu1  ;;  %v3607_v3 = vmax.f32 %v3065_v50, 0.0 }
 0x294   : > { %v2086_v8 = vadd.f32 %v2085_v0, %v9627_v48  ;;  %v3071_v7 = vadd.f32 %v3070_v62, %v9967_v17  ;;  %v2087_v9 = vpop.f32.mrb[178].mxu0  ;;  %3332 = vmatprep.mubr.bf16.mxu1 %v2625_v57  ;;  %v3608_v19 = vmax.f32 %v3067_v56, 0.0  ;;  %v10180_v57 = vld [vmem:[%s10111_s30 + $0x78] sm:$0xff] }
 0x295   : > { %v3609_v10 = vmax.f32 %v3069_v63, 0.0  ;;  %v2088_v12 = vadd.f32 %v2087_v9, %v9624_v47  ;;  %v2089_v13 = vpop.f32.mrb[179].mxu0  ;;  %3333 = vmatmul.mubr.bf16.gmra.mrb[204].mxu1 %v2624_v52  ;;  %v2458_v11 = vmax.f32 %v2084_v51, 0.0  ;;  %6430 = vperm.xlu1 %8724, %v10180_v57  }
 0x296   : > { %v3610_v22 = vmax.f32 %v3071_v7, 0.0  ;;  %v2090_v23 = vadd.f32 %v2089_v13, %v9627_v48  ;;  %v2459_v29 = vmax.f32 %v2086_v8, 0.0  ;;  %v10188_v13 = vld [vmem:[%s10111_s30 + $0x8] sm:$0xff] }
 0x297   : > { %v3831_v26 = vpack.c.bf16 %v3609_v10, %v3607_v3  ;;  %v2460_v27 = vmax.f32 %v2088_v12, 0.0  ;;  %4314 = vmatmul.mubr.bf16.gmra.mrb[28].mxu0 %v3829_v36  ;;  %v10174_v36 = vld [vmem:[%s10111_s30] sm:$0xff] }
 0x298   : > { %v2461_v33 = vmax.f32 %v2090_v23, 0.0  ;;  %v3074_v35 = vpop.f32.mrb[100].mxu1  ;;  %v3832_v31 = vpack.c.bf16 %v3610_v22, %v3608_v19  ;;  %6355 = vperm.xlu0 %8723, %v10174_v36  }
 0x299   : > { %v3075_v37 = vadd.f32 %v3074_v35, %v9963_v14  ;;  %v3076_v41 = vpop.f32.mrb[101].mxu1  ;;  %v2626_v40 = vpack.c.bf16 %v2460_v27, %v2458_v11  ;;  %v10192_v11 = vld [vmem:[%s10111_s30 + $0x88] sm:$0xff] }
 0x29a   : > { %v3077_v45 = vadd.f32 %v3076_v41, %v9967_v17  ;;  %v2093_v49 = vpop.f32.mrb[180].mxu0  ;;  %v3078_v50 = vpop.f32.mrb[102].mxu1  ;;  %4323 = vmatprep.mubr.bf16.mxu0 %v3832_v31  ;;  %v2627_v43 = vpack.c.bf16 %v2461_v33, %v2459_v29  ;;  %6440 = vperm.xlu1 %8724, %v10192_v11  }
 0x29b   : > { %v2094_v52 = vadd.f32 %v2093_v49, %v9624_v47  ;;  %v3079_v56 = vadd.f32 %v3078_v50, %v9963_v14  ;;  %v2095_v58 = vpop.f32.mrb[181].mxu0  ;;  %v3080_v61 = vpop.f32.mrb[103].mxu1  ;;  %v3611_v62 = vmax.f32 %v3075_v37, 0.0 }
 0x29c   : > { %v2096_v51 = vadd.f32 %v2095_v58, %v9627_v48  ;;  %v3081_v63 = vadd.f32 %v3080_v61, %v9967_v17  ;;  %v2097_v0 = vpop.f32.mrb[182].mxu0  ;;  %3342 = vmatprep.mubr.bf16.mxu1 %v2627_v43  ;;  %v3612_v3 = vmax.f32 %v3077_v45, 0.0  ;;  %6360 = vperm.xlu0 %8723, %v10188_v13  }
 0x29d   : > { %v3613_v8 = vmax.f32 %v3079_v56, 0.0  ;;  %v2098_v7 = vadd.f32 %v2097_v0, %v9624_v47  ;;  %v2099_v9 = vpop.f32.mrb[183].mxu0  ;;  %3343 = vmatmul.mubr.bf16.gmra.mrb[208].mxu1 %v2626_v40  ;;  %v2462_v19 = vmax.f32 %v2094_v52, 0.0  ;;  %v8971_v40 = vld [vmem:[%s13719_s8 + $0xf0] ss:$8 sps:$4 sm:$0xff]   ;;  %v10204_v52 = vld [vmem:[%s10111_s30 + $0x20] sm:$0xff] }
 0x29e   : > { %v3614_v10 = vmax.f32 %v3081_v63, 0.0  ;;  %v2100_v12 = vadd.f32 %v2099_v9, %v9627_v48  ;;  %v2463_v27 = vmax.f32 %v2096_v51, 0.0  ;;  %v10210_v63 = vld [vmem:[%s10111_s30 + $0x98] sm:$0xff] }
 0x29f   : > { %v3833_v22 = vpack.c.bf16 %v3613_v8, %v3611_v62  ;;  %v2464_v23 = vmax.f32 %v2098_v7, 0.0  ;;  %4324 = vmatmul.mubr.bf16.gmra.mrb[32].mxu0 %v3831_v26  ;;  %v8973_v26 = vld [vmem:[%s13719_s8 + $0xf4] ss:$8 sps:$4 sm:$0xff]   ;;  %6450 = vperm.xlu1 %8724, %v10210_v63  }
 0x2a0   : > { %v2465_v29 = vmax.f32 %v2100_v12, 0.0  ;;  %v3084_v33 = vpop.f32.mrb[104].mxu1  ;;  %v3834_v35 = vpack.c.bf16 %v3614_v10, %v3612_v3  ;;  %5422 = vmatprep.subr.bf16.mxu1 %v8973_v26  ;;  %6375 = vperm.xlu0 %8723, %v10204_v52  }
 0x2a1   : > { %v3085_v31 = vadd.f32 %v3084_v33, %v9963_v14  ;;  %v3086_v37 = vpop.f32.mrb[105].mxu1  ;;  %v2628_v41 = vpack.c.bf16 %v2464_v23, %v2462_v19  ;;  %5423 = vmatpush1.bf16.msra.mxu1 %v8971_v40 }
 0x2a2   : > { %v3087_v45 = vadd.f32 %v3086_v37, %v9967_v17  ;;  %v2103_v49 = vpop.f32.mrb[184].mxu0  ;;  %v3088_v50 = vpop.f32.mrb[106].mxu1  ;;  %4333 = vmatprep.mubr.bf16.mxu0 %v3834_v35  ;;  %v2629_v43 = vpack.c.bf16 %v2465_v29, %v2463_v27  ;;  %v10218_v27 = vld [vmem:[%s10111_s30 + $0x30] sm:$0xff] }
 0x2a3   : > { %v2104_v56 = vadd.f32 %v2103_v49, %v9624_v47  ;;  %v3089_v58 = vadd.f32 %v3088_v50, %v9963_v14  ;;  %v2105_v61 = vpop.f32.mrb[185].mxu0  ;;  %v3090_v51 = vpop.f32.mrb[107].mxu1  ;;  %v3615_v7 = vmax.f32 %v3085_v31, 0.0  ;;  %v10222_v31 = vld [vmem:[%s10111_s30 + $0xa8] sm:$0xff] }
 0x2a4   : > { %v2106_v0 = vadd.f32 %v2105_v61, %v9627_v48  ;;  %v3091_v62 = vadd.f32 %v3090_v51, %v9967_v17  ;;  %v2107_v8 = vpop.f32.mrb[186].mxu0  ;;  %3352 = vmatprep.mubr.bf16.mxu1 %v2629_v43  ;;  %v3616_v12 = vmax.f32 %v3087_v45, 0.0  ;;  %6385 = vperm.xlu0 %8723, %v10218_v27   ;;  %v10228_v61 = vld [vmem:[%s10111_s30 + $0x40] sm:$0xff] }
 0x2a5   : > { %v3617_v9 = vmax.f32 %v3089_v58, 0.0  ;;  %v2108_v3 = vadd.f32 %v2107_v8, %v9624_v47  ;;  %v2109_v10 = vpop.f32.mrb[187].mxu0  ;;  %3353 = vmatmul.mubr.bf16.gmra.mrb[212].mxu1 %v2628_v41  ;;  %v2466_v29 = vmax.f32 %v2104_v56, 0.0  ;;  %6460 = vperm.xlu1 %8724, %v10222_v31  }
 0x2a6   : > { %v3618_v19 = vmax.f32 %v3091_v62, 0.0  ;;  %v2110_v23 = vadd.f32 %v2109_v10, %v9627_v48  ;;  %v2467_v37 = vmax.f32 %v2106_v0, 0.0 }
 0x2a7   : > { %v3835_v33 = vpack.c.bf16 %v3617_v9, %v3615_v7  ;;  %v2468_v35 = vmax.f32 %v2108_v3, 0.0  ;;  %4334 = vmatmul.mubr.bf16.gmra.mrb[36].mxu0 %v3833_v22  ;;  %v10234_v7 = vld [vmem:[%s10111_s30 + $0xb8] sm:$0xff] }
 0x2a8   : > { %v2469_v40 = vmax.f32 %v2110_v23, 0.0  ;;  %v3094_v41 = vpop.f32.mrb[108].mxu1  ;;  %v3836_v26 = vpack.c.bf16 %v3618_v19, %v3616_v12  ;;  %6395 = vperm.xlu0 %8723, %v10228_v61  }
 0x2a9   : > { %v3095_v45 = vadd.f32 %v3094_v41, %v9963_v14  ;;  %v3096_v49 = vpop.f32.mrb[109].mxu1  ;;  %v2630_v50 = vpack.c.bf16 %v2468_v35, %v2466_v29  ;;  %6470 = vperm.xlu1 %8724, %v10234_v7   ;;  %v10242_v41 = vld [vmem:[%s10111_s30 + $0x50] sm:$0xff] }
 0x2aa   : > { %v3097_v43 = vadd.f32 %v3096_v49, %v9967_v17  ;;  %v2113_v56 = vpop.f32.mrb[188].mxu0  ;;  %v3098_v22 = vpop.f32.mrb[110].mxu1  ;;  %4343 = vmatprep.mubr.bf16.mxu0 %v3836_v26  ;;  %v2631_v58 = vpack.c.bf16 %v2469_v40, %v2467_v37  ;;  %13873 = vst [vmem:[#allocation13_spill] sm:$0xff] %v10242_v41 }
 0x2ab   : > { %v2114_v51 = vadd.f32 %v2113_v56, %v9624_v47  ;;  %v3099_v0 = vadd.f32 %v3098_v22, %v9963_v14  ;;  %v2115_v62 = vpop.f32.mrb[189].mxu0  ;;  %v3100_v8 = vpop.f32.mrb[111].mxu1  ;;  %v3619_v12 = vmax.f32 %v3095_v45, 0.0  ;;  %v10246_v45 = vld [vmem:[%s10111_s30 + $0xc8] sm:$0xff] }
 0x2ac   : > { %v2116_v9 = vadd.f32 %v2115_v62, %v9627_v48  ;;  %v3101_v3 = vadd.f32 %v3100_v8, %v9967_v17  ;;  %v2117_v10 = vpop.f32.mrb[190].mxu0  ;;  %3362 = vmatprep.mubr.bf16.mxu1 %v2631_v58  ;;  %v3620_v35 = vmax.f32 %v3097_v43, 0.0  ;;  %6405 = vperm.xlu0 %8723, %v10242_v41  }
 0x2ad   : > { %v3621_v19 = vmax.f32 %v3099_v0, 0.0  ;;  %v2118_v23 = vadd.f32 %v2117_v10, %v9624_v47  ;;  %v2119_v29 = vpop.f32.mrb[191].mxu0  ;;  %3363 = vmatmul.mubr.bf16.gmra.mrb[216].mxu1 %v2630_v50  ;;  %v2470_v26 = vmax.f32 %v2114_v51, 0.0  ;;  %6480 = vperm.xlu1 %8724, %v10246_v45  }
 0x2ae   : > { %v3622_v37 = vmax.f32 %v3101_v3, 0.0  ;;  %v2120_v40 = vadd.f32 %v2119_v29, %v9627_v48  ;;  %v2471_v22 = vmax.f32 %v2116_v9, 0.0 }
 0x2af   : > { %v3837_v49 = vpack.c.bf16 %v3621_v19, %v3619_v12  ;;  %v2472_v56 = vmax.f32 %v2118_v23, 0.0  ;;  %4344 = vmatmul.mubr.bf16.gmra.mrb[40].mxu0 %v3835_v33  ;;  %v10252_v12 = vld [vmem:[%s10111_s30 + $0x60] sm:$0xff] }
 0x2b0   : > { %v2473_v58 = vmax.f32 %v2120_v40, 0.0  ;;  %v3104_v50 = vpop.f32.mrb[112].mxu1  ;;  %v3838_v0 = vpack.c.bf16 %v3622_v37, %v3620_v35  ;;  %6415 = vperm.xlu0 %8723, %v10252_v12   ;;  %v10258_v35 = vld [vmem:[%s10111_s30 + $0xd8] sm:$0xff] }
 0x2b1   : > { %v3105_v43 = vadd.f32 %v3104_v50, %v9963_v14  ;;  %v3106_v62 = vpop.f32.mrb[113].mxu1  ;;  %v2632_v8 = vpack.c.bf16 %v2472_v56, %v2470_v26  ;;  %6490 = vperm.xlu1 %8724, %v10258_v35  }
 0x2b2   : > { %v3107_v51 = vadd.f32 %v3106_v62, %v9967_v17  ;;  %v2123_v3 = vpop.f32.mrb[192].mxu0  ;;  %v3108_v33 = vpop.f32.mrb[114].mxu1  ;;  %4353 = vmatprep.mubr.bf16.mxu0 %v3838_v0  ;;  %v2633_v10 = vpack.c.bf16 %v2473_v58, %v2471_v22 }
 0x2b3   : > { %v2124_v9 = vadd.f32 %v2123_v3, %v9624_v47  ;;  %v3109_v19 = vadd.f32 %v3108_v33, %v9963_v14  ;;  %v2125_v23 = vpop.f32.mrb[193].mxu0  ;;  %v3110_v29 = vpop.f32.mrb[115].mxu1  ;;  %v3623_v56 = vmax.f32 %v3105_v43, 0.0  ;;  %v10266_v33 = vld [vmem:[%s10111_s30 + $0x70] sm:$0xff]  ;;  %v10270_v43 = vld [vmem:[%s10111_s30 + $0xe8] sm:$0xff] }
 0x2b4   : > { %v2126_v37 = vadd.f32 %v2125_v23, %v9627_v48  ;;  %v3111_v40 = vadd.f32 %v3110_v29, %v9967_v17  ;;  %v2127_v26 = vpop.f32.mrb[194].mxu0  ;;  %3372 = vmatprep.mubr.bf16.mxu1 %v2633_v10  ;;  %v3624_v0 = vmax.f32 %v3107_v51, 0.0  ;;  %6425 = vperm.xlu0 %8723, %v10266_v33  }
 0x2b5   : > { %v3625_v22 = vmax.f32 %v3109_v19, 0.0  ;;  %v2128_v58 = vadd.f32 %v2127_v26, %v9624_v47  ;;  %v2129_v50 = vpop.f32.mrb[195].mxu0  ;;  %3373 = vmatmul.mubr.bf16.gmra.mrb[220].mxu1 %v2632_v8  ;;  %v2474_v23 = vmax.f32 %v2124_v9, 0.0  ;;  %6500 = vperm.xlu1 %8724, %v10270_v43  }
 0x2b6   : > { %v3626_v62 = vmax.f32 %v3111_v40, 0.0  ;;  %v2130_v3 = vadd.f32 %v2129_v50, %v9627_v48  ;;  %v2475_v10 = vmax.f32 %v2126_v37, 0.0 }
 0x2b7   : > { %v3839_v2 = vpack.c.bf16 %v3625_v22, %v3623_v56  ;;  %v2476_v29 = vmax.f32 %v2128_v58, 0.0  ;;  %4354 = vmatmul.mubr.bf16.gmra.mrb[44].mxu0 %v3837_v49  ;;  %v10276_v58 = vld [vmem:[%s10111_s30 + $0x80] sm:$0xff] }
 0x2b8   : > { %v2477_v19 = vmax.f32 %v2130_v3, 0.0  ;;  %v3114_v8 = vpop.f32.mrb[116].mxu1  ;;  %v3840_v26 = vpack.c.bf16 %v3626_v62, %v3624_v0  ;;  %6435 = vperm.xlu0 %8723, %v10276_v58  }
 0x2b9   : > { %v3115_v51 = vadd.f32 %v3114_v8, %v9963_v14  ;;  %v3116_v40 = vpop.f32.mrb[117].mxu1  ;;  %v2634_v50 = vpack.c.bf16 %v2476_v29, %v2474_v23  ;;  %v10282_v23 = vld [vmem:[%s10111_s30 + $0xf8] sm:$0xff] }
 0x2ba   : > { %v3117_v9 = vadd.f32 %v3116_v40, %v9967_v17  ;;  %v2133_v56 = vpop.f32.mrb[196].mxu0  ;;  %v3118_v49 = vpop.f32.mrb[118].mxu1  ;;  %4363 = vmatprep.mubr.bf16.mxu0 %v3840_v26  ;;  %v2635_v22 = vpack.c.bf16 %v2477_v19, %v2475_v10  ;;  %13874 = vst [vmem:[#allocation14_spill] sm:$0xff] %v10282_v23  ;;  %6510 = vperm.xlu1 %8724, %v10282_v23  }
 0x2bb   : > { %v2134_v37 = vadd.f32 %v2133_v56, %v9624_v47  ;;  %v3119_v3 = vadd.f32 %v3118_v49, %v9963_v14  ;;  %v2135_v0 = vpop.f32.mrb[197].mxu0  ;;  %v3120_v62 = vpop.f32.mrb[119].mxu1  ;;  %v3627_v10 = vmax.f32 %v3115_v51, 0.0 }
 0x2bc   : > { %v2136_v29 = vadd.f32 %v2135_v0, %v9627_v48  ;;  %v3121_v8 = vadd.f32 %v3120_v62, %v9967_v17  ;;  %v2137_v40 = vpop.f32.mrb[198].mxu0  ;;  %3382 = vmatprep.mubr.bf16.mxu1 %v2635_v22  ;;  %v3628_v49 = vmax.f32 %v3117_v9, 0.0  ;;  %6445 = vperm.xlu0 %8723, %v10290_v39  }
 0x2bd   : > { %v3629_v19 = vmax.f32 %v3119_v3, 0.0  ;;  %v2138_v26 = vadd.f32 %v2137_v40, %v9624_v47  ;;  %v2139_v56 = vpop.f32.mrb[199].mxu0  ;;  %3383 = vmatmul.mubr.bf16.gmra.mrb[224].mxu1 %v2634_v50  ;;  %v2478_v42 = vmax.f32 %v2134_v37, 0.0 }
 0x2be   : > { %v3630_v18 = vmax.f32 %v3121_v8, 0.0  ;;  %v2140_v24 = vadd.f32 %v2139_v56, %v9627_v48  ;;  %v2479_v51 = vmax.f32 %v2136_v29, 0.0  ;;  %v13726_v8 = vmov 1  }
 0x2bf   : > { %v3841_v0 = vpack.c.bf16 %v3629_v19, %v3627_v10  ;;  %v2480_v1 = vmax.f32 %v2138_v26, 0.0  ;;  %4364 = vmatmul.mubr.bf16.gmra.mrb[48].mxu0 %v3839_v2  ;;  %8726 = vset.pattern.permute.xlu1 %v13726_v8  ;;  %v10298_v19 = vld [vmem:[%s10111_s30 + $0xa0] sm:$0xff] }
 0x2c0   : > { %v2481_v22 = vmax.f32 %v2140_v24, 0.0  ;;  %v3124_v3 = vpop.f32.mrb[120].mxu1  ;;  %v3842_v62 = vpack.c.bf16 %v3630_v18, %v3628_v49  ;;  %6582 = vperm.xlu1 %8726, %v10188_v13   ;;  %6455 = vperm.xlu0 %8723, %v10298_v19  }
 0x2c1   : > { %v3125_v50 = vadd.f32 %v3124_v3, %v9963_v14  ;;  %v3126_v40 = vpop.f32.mrb[121].mxu1  ;;  %v2636_v9 = vpack.c.bf16 %v2480_v1, %v2478_v42 }
 0x2c2   : > { %v3127_v56 = vadd.f32 %v3126_v40, %v9967_v17  ;;  %v2143_v37 = vpop.f32.mrb[200].mxu0  ;;  %v3128_v10 = vpop.f32.mrb[122].mxu1  ;;  %4373 = vmatprep.mubr.bf16.mxu0 %v3842_v62  ;;  %v2637_v2 = vpack.c.bf16 %v2481_v22, %v2479_v51 }
 0x2c3   : > { %v2144_v24 = vadd.f32 %v2143_v37, %v9624_v47  ;;  %v3129_v18 = vadd.f32 %v3128_v10, %v9963_v14  ;;  %v2145_v29 = vpop.f32.mrb[201].mxu0  ;;  %v3130_v1 = vpop.f32.mrb[123].mxu1  ;;  %v3631_v51 = vmax.f32 %v3125_v50, 0.0  ;;  %v10309_v10 = vld [vmem:[%s10111_s30 + $0xb0] sm:$0xff] }
 0x2c4   : > { %v2146_v42 = vadd.f32 %v2145_v29, %v9627_v48  ;;  %v3131_v26 = vadd.f32 %v3130_v1, %v9967_v17  ;;  %v2147_v49 = vpop.f32.mrb[202].mxu0  ;;  %3392 = vmatprep.mubr.bf16.mxu1 %v2637_v2  ;;  %v3632_v62 = vmax.f32 %v3127_v56, 0.0  ;;  %6586 = vperm.xlu1 %8726, %v10114_v4  }
 0x2c5   : > { %v3633_v22 = vmax.f32 %v3129_v18, 0.0  ;;  %v2148_v13 = vadd.f32 %v2147_v49, %v9624_v47  ;;  %v2149_v3 = vpop.f32.mrb[203].mxu0  ;;  %3393 = vmatmul.mubr.bf16.gmra.mrb[228].mxu1 %v2636_v9  ;;  %v2482_v8 = vmax.f32 %v2144_v24, 0.0  ;;  %6465 = vperm.xlu0 %8723, %v10309_v10  }
 0x2c6   : > { %v3634_v40 = vmax.f32 %v3131_v26, 0.0  ;;  %v2150_v37 = vadd.f32 %v2149_v3, %v9627_v48  ;;  %v2483_v50 = vmax.f32 %v2146_v42, 0.0 }
 0x2c7   : > { %v3843_v29 = vpack.c.bf16 %v3633_v22, %v3631_v51  ;;  %v2484_v6 = vmax.f32 %v2148_v13, 0.0  ;;  %4374 = vmatmul.mubr.bf16.gmra.mrb[52].mxu0 %v3841_v0  ;;  %v10316_v51 = vld [vmem:[%s10111_s30 + $0xc0] sm:$0xff] }
 0x2c8   : > { %v2485_v2 = vmax.f32 %v2150_v37, 0.0  ;;  %v3134_v18 = vpop.f32.mrb[124].mxu1  ;;  %v3844_v1 = vpack.c.bf16 %v3634_v40, %v3632_v62  ;;  %6594 = vperm.xlu1 %8726, %v10204_v52  }
 0x2c9   : > { %v3135_v9 = vadd.f32 %v3134_v18, %v9963_v14  ;;  %v3136_v56 = vpop.f32.mrb[125].mxu1  ;;  %v2638_v26 = vpack.c.bf16 %v2484_v6, %v2482_v8  ;;  %6475 = vperm.xlu0 %8723, %v10316_v51  }
 0x2ca   : > { %v3137_v49 = vadd.f32 %v3136_v56, %v9967_v17  ;;  %v2153_v4 = vpop.f32.mrb[204].mxu0  ;;  %v3138_v3 = vpop.f32.mrb[126].mxu1  ;;  %4383 = vmatprep.mubr.bf16.mxu0 %v3844_v1  ;;  %v2639_v24 = vpack.c.bf16 %v2485_v2, %v2483_v50 }
 0x2cb   : > { %v2154_v0 = vadd.f32 %v2153_v4, %v9624_v47  ;;  %v3139_v42 = vadd.f32 %v3138_v3, %v9963_v14  ;;  %v2155_v22 = vpop.f32.mrb[205].mxu0  ;;  %v3140_v13 = vpop.f32.mrb[127].mxu1  ;;  %v3635_v40 = vmax.f32 %v3135_v9, 0.0  ;;  %v10327_v4 = vld [vmem:[%s10111_s30 + $0xd0] sm:$0xff] }
 0x2cc   : > { %v2156_v6 = vadd.f32 %v2155_v22, %v9627_v48  ;;  %v3141_v8 = vadd.f32 %v3140_v13, %v9967_v17  ;;  %v2157_v62 = vpop.f32.mrb[206].mxu0  ;;  %3402 = vmatprep.mubr.bf16.mxu1 %v2639_v24  ;;  %v3636_v18 = vmax.f32 %v3137_v49, 0.0  ;;  %6602 = vperm.xlu1 %8726, %v10218_v27  }
 0x2cd   : > { %v3637_v37 = vmax.f32 %v3139_v42, 0.0  ;;  %v2158_v50 = vadd.f32 %v2157_v62, %v9624_v47  ;;  %v2159_v2 = vpop.f32.mrb[207].mxu0  ;;  %3403 = vmatmul.mubr.bf16.gmra.mrb[232].mxu1 %v2638_v26  ;;  %v2486_v3 = vmax.f32 %v2154_v0, 0.0  ;;  %6485 = vperm.xlu0 %8723, %v10327_v4  }
 0x2ce   : > { %v3638_v1 = vmax.f32 %v3141_v8, 0.0  ;;  %v2160_v56 = vadd.f32 %v2159_v2, %v9627_v48  ;;  %v2487_v9 = vmax.f32 %v2156_v6, 0.0 }
 0x2cf   : > { %v3845_v22 = vpack.c.bf16 %v3637_v37, %v3635_v40  ;;  %v2488_v28 = vmax.f32 %v2158_v50, 0.0  ;;  %4384 = vmatmul.mubr.bf16.gmra.mrb[56].mxu0 %v3843_v29  ;;  %v10334_v40 = vld [vmem:[%s10111_s30 + $0xe0] sm:$0xff] }
 0x2d0   : > { %v2489_v24 = vmax.f32 %v2160_v56, 0.0  ;;  %v3144_v42 = vpop.f32.mrb[128].mxu1  ;;  %v3846_v13 = vpack.c.bf16 %v3638_v1, %v3636_v18  ;;  %6610 = vperm.xlu1 %8726, %v10228_v61  }
 0x2d1   : > { %v3145_v26 = vadd.f32 %v3144_v42, %v9963_v14  ;;  %v3146_v49 = vpop.f32.mrb[129].mxu1  ;;  %v2640_v8 = vpack.c.bf16 %v2488_v28, %v2486_v3  ;;  %6495 = vperm.xlu0 %8723, %v10334_v40  }
 0x2d2   : > { %v3147_v62 = vadd.f32 %v3146_v49, %v9967_v17  ;;  %v2163_v2 = vpop.f32.mrb[208].mxu0  ;;  %v3148_v23 = vpop.f32.mrb[130].mxu1  ;;  %4393 = vmatprep.mubr.bf16.mxu0 %v3846_v13  ;;  %v2641_v0 = vpack.c.bf16 %v2489_v24, %v2487_v9  ;;  %v10345_v49 = vld [vmem:[%s10111_s30 + $0xf0] sm:$0xff] }
 0x2d3   : > { %v2164_v29 = vadd.f32 %v2163_v2, %v9624_v47  ;;  %v3149_v6 = vadd.f32 %v3148_v23, %v9963_v14  ;;  %v2165_v37 = vpop.f32.mrb[209].mxu0  ;;  %v3150_v50 = vpop.f32.mrb[131].mxu1  ;;  %v3639_v56 = vmax.f32 %v3145_v26, 0.0 }
 0x2d4   : > { %v2166_v28 = vadd.f32 %v2165_v37, %v9627_v48  ;;  %v3151_v18 = vadd.f32 %v3150_v50, %v9967_v17  ;;  %v2167_v1 = vpop.f32.mrb[210].mxu0  ;;  %3412 = vmatprep.mubr.bf16.mxu1 %v2641_v0  ;;  %v3640_v42 = vmax.f32 %v3147_v62, 0.0  ;;  %6618 = vperm.xlu1 %8726, %v10242_v41  }
 0x2d5   : > { %v3641_v3 = vmax.f32 %v3149_v6, 0.0  ;;  %v2168_v9 = vadd.f32 %v2167_v1, %v9624_v47  ;;  %v2169_v24 = vpop.f32.mrb[211].mxu0  ;;  %3413 = vmatmul.mubr.bf16.gmra.mrb[236].mxu1 %v2640_v8  ;;  %v2490_v2 = vmax.f32 %v2164_v29, 0.0  ;;  %6505 = vperm.xlu0 %8723, %v10345_v49  }
 0x2d6   : > { %v3642_v13 = vmax.f32 %v3151_v18, 0.0  ;;  %v2170_v23 = vadd.f32 %v2169_v24, %v9627_v48  ;;  %v2491_v26 = vmax.f32 %v2166_v28, 0.0 }
 0x2d7   : > { %v3847_v37 = vpack.c.bf16 %v3641_v3, %v3639_v56  ;;  %v2492_v32 = vmax.f32 %v2168_v9, 0.0  ;;  %4394 = vmatmul.mubr.bf16.gmra.mrb[60].mxu0 %v3845_v22  ;;  %v13875_v3 = vmov 1  }
 0x2d8   : > { %v2493_v0 = vmax.f32 %v2170_v23, 0.0  ;;  %v3154_v6 = vpop.f32.mrb[132].mxu1  ;;  %v3848_v50 = vpack.c.bf16 %v3642_v13, %v3640_v42  ;;  %6626 = vperm.xlu1 %8726, %v10252_v12  }
 0x2d9   : > { %v3155_v8 = vadd.f32 %v3154_v6, %v9963_v14  ;;  %v3156_v62 = vpop.f32.mrb[133].mxu1  ;;  %v2642_v18 = vpack.c.bf16 %v2492_v32, %v2490_v2  ;;  %8725 = vset.pattern.permute.xlu0 %v13875_v3 }
 0x2da   : > { %v3157_v1 = vadd.f32 %v3156_v62, %v9967_v17  ;;  %v2173_v24 = vpop.f32.mrb[212].mxu0  ;;  %v3158_v41 = vpop.f32.mrb[134].mxu1  ;;  %4403 = vmatprep.mubr.bf16.mxu0 %v3848_v50  ;;  %v2643_v55 = vpack.c.bf16 %v2493_v0, %v2491_v26  ;;  %6578 = vperm.xlu0 %8725, %v10174_v36  }
 0x2db   : > { %v2174_v22 = vadd.f32 %v2173_v24, %v9624_v47  ;;  %v3159_v29 = vadd.f32 %v3158_v41, %v9963_v14  ;;  %v2175_v28 = vpop.f32.mrb[213].mxu0  ;;  %v3160_v56 = vpop.f32.mrb[135].mxu1  ;;  %v3643_v13 = vmax.f32 %v3155_v8, 0.0 }
 0x2dc   : > { %v2176_v9 = vadd.f32 %v2175_v28, %v9627_v48  ;;  %v3161_v32 = vadd.f32 %v3160_v56, %v9967_v17  ;;  %v2177_v42 = vpop.f32.mrb[214].mxu0  ;;  %3422 = vmatprep.mubr.bf16.mxu1 %v2643_v55  ;;  %v3644_v0 = vmax.f32 %v3157_v1, 0.0  ;;  %6634 = vperm.xlu1 %8726, %v10266_v33  }
 0x2dd   : > { %v3645_v23 = vmax.f32 %v3159_v29, 0.0  ;;  %v2178_v2 = vadd.f32 %v2177_v42, %v9624_v47  ;;  %v2179_v26 = vpop.f32.mrb[215].mxu0  ;;  %3423 = vmatmul.mubr.bf16.gmra.mrb[240].mxu1 %v2642_v18  ;;  %v2494_v50 = vmax.f32 %v2174_v22, 0.0 }
 0x2de   : > { %v3646_v41 = vmax.f32 %v3161_v32, 0.0  ;;  %v2180_v6 = vadd.f32 %v2179_v26, %v9627_v48  ;;  %v2495_v28 = vmax.f32 %v2176_v9, 0.0  ;;  %6590 = vperm.xlu0 %8725, %v10128_v34  }
 0x2df   : > { %v3849_v62 = vpack.c.bf16 %v3645_v23, %v3643_v13  ;;  %v2496_v24 = vmax.f32 %v2178_v2, 0.0  ;;  %4404 = vmatmul.mubr.bf16.gmra.mrb[64].mxu0 %v3847_v37 }
 0x2e0   : > { %v2497_v55 = vmax.f32 %v2180_v6, 0.0  ;;  %v3164_v56 = vpop.f32.mrb[136].mxu1  ;;  %v3850_v3 = vpack.c.bf16 %v3646_v41, %v3644_v0  ;;  %6642 = vperm.xlu1 %8726, %v10276_v58  }
 0x2e1   : > { %v3165_v8 = vadd.f32 %v3164_v56, %v9963_v14  ;;  %v3166_v29 = vpop.f32.mrb[137].mxu1  ;;  %v2644_v18 = vpack.c.bf16 %v2496_v24, %v2494_v50 }
 0x2e2   : > { %v3167_v1 = vadd.f32 %v3166_v29, %v9967_v17  ;;  %v2183_v32 = vpop.f32.mrb[216].mxu0  ;;  %v3168_v42 = vpop.f32.mrb[138].mxu1  ;;  %4413 = vmatprep.mubr.bf16.mxu0 %v3850_v3  ;;  %v2645_v26 = vpack.c.bf16 %v2497_v55, %v2495_v28  ;;  %6598 = vperm.xlu0 %8725, %v10136_v54  }
 0x2e3   : > { %v2184_v37 = vadd.f32 %v2183_v32, %v9624_v47  ;;  %v3169_v22 = vadd.f32 %v3168_v42, %v9963_v14  ;;  %v2185_v9 = vpop.f32.mrb[217].mxu0  ;;  %v3170_v13 = vpop.f32.mrb[139].mxu1  ;;  %v3647_v0 = vmax.f32 %v3165_v8, 0.0 }
 0x2e4   : > { %v2186_v34 = vadd.f32 %v2185_v9, %v9627_v48  ;;  %v3171_v23 = vadd.f32 %v3170_v13, %v9967_v17  ;;  %v2187_v2 = vpop.f32.mrb[218].mxu0  ;;  %3432 = vmatprep.mubr.bf16.mxu1 %v2645_v26  ;;  %v3648_v24 = vmax.f32 %v3167_v1, 0.0  ;;  %6650 = vperm.xlu1 %8726, %v10290_v39  }
 0x2e5   : > { %v3649_v41 = vmax.f32 %v3169_v22, 0.0  ;;  %v2188_v6 = vadd.f32 %v2187_v2, %v9624_v47  ;;  %v2189_v50 = vpop.f32.mrb[219].mxu0  ;;  %3433 = vmatmul.mubr.bf16.gmra.mrb[244].mxu1 %v2644_v18  ;;  %v2498_v56 = vmax.f32 %v2184_v37, 0.0 }
 0x2e6   : > { %v3650_v28 = vmax.f32 %v3171_v23, 0.0  ;;  %v2190_v55 = vadd.f32 %v2189_v50, %v9627_v48  ;;  %v2499_v32 = vmax.f32 %v2186_v34, 0.0  ;;  %6606 = vperm.xlu0 %8725, %v10144_v15  }
 0x2e7   : > { %v3851_v3 = vpack.c.bf16 %v3649_v41, %v3647_v0  ;;  %v2500_v29 = vmax.f32 %v2188_v6, 0.0  ;;  %4414 = vmatmul.mubr.bf16.gmra.mrb[68].mxu0 %v3849_v62  ;;  %v3959_v6 = vld [vmem:[%s13718_s7] sm:$0x3] }
 0x2e8   : > { %v2501_v42 = vmax.f32 %v2190_v55, 0.0  ;;  %v3174_v26 = vpop.f32.mrb[140].mxu1  ;;  %v3852_v54 = vpack.c.bf16 %v3650_v28, %v3648_v24  ;;  %6658 = vperm.xlu1 %8726, %v10298_v19  }
 0x2e9   : > { %v3175_v8 = vadd.f32 %v3174_v26, %v9963_v14  ;;  %v3176_v22 = vpop.f32.mrb[141].mxu1  ;;  %v2646_v18 = vpack.c.bf16 %v2500_v29, %v2498_v56 }
 0x2ea   : > { %v3177_v1 = vadd.f32 %v3176_v22, %v9967_v17  ;;  %v2193_v9 = vpop.f32.mrb[220].mxu0  ;;  %v3178_v13 = vpop.f32.mrb[142].mxu1  ;;  %4423 = vmatprep.mubr.bf16.mxu0 %v3852_v54  ;;  %v2647_v23 = vpack.c.bf16 %v2501_v42, %v2499_v32  ;;  %6614 = vperm.xlu0 %8725, %v10152_v38   ;;  %v10388_v22 = vrot.slane %v3959_v6, %v9616_v44 }
 0x2eb   : > { %v2194_v62 = vadd.f32 %v2193_v9, %v9624_v47  ;;  %v3179_v37 = vadd.f32 %v3178_v13, %v9963_v14  ;;  %v2195_v34 = vpop.f32.mrb[221].mxu0  ;;  %v3180_v2 = vpop.f32.mrb[143].mxu1  ;;  %v3651_v50 = vmax.f32 %v3175_v8, 0.0 }
 0x2ec   : > { %v2196_v15 = vadd.f32 %v2195_v34, %v9627_v48  ;;  %v3181_v0 = vadd.f32 %v3180_v2, %v9967_v17  ;;  %v2197_v41 = vpop.f32.mrb[222].mxu0  ;;  %3442 = vmatprep.mubr.bf16.mxu1 %v2647_v23  ;;  %v3652_v56 = vmax.f32 %v3177_v1, 0.0  ;;  %6666 = vperm.xlu1 %8726, %v10309_v10  }
 0x2ed   : > { %v3653_v24 = vmax.f32 %v3179_v37, 0.0  ;;  %v2198_v28 = vadd.f32 %v2197_v41, %v9624_v47  ;;  %v2199_v55 = vpop.f32.mrb[223].mxu0  ;;  %3443 = vmatmul.mubr.bf16.gmra.mrb[248].mxu1 %v2646_v18  ;;  %v2502_v42 = vmax.f32 %v2194_v62, 0.0  ;;  %v10391_v47 = vrot.slane %v3959_v6, %v9621_v46 }
 0x2ee   : > { %v3654_v29 = vmax.f32 %v3181_v0, 0.0  ;;  %v2200_v32 = vadd.f32 %v2199_v55, %v9627_v48  ;;  %v2503_v38 = vmax.f32 %v2196_v15, 0.0  ;;  %6622 = vperm.xlu0 %8725, %v10160_v5  }
 0x2ef   : > { %v3853_v26 = vpack.c.bf16 %v3653_v24, %v3651_v50  ;;  %v2504_v54 = vmax.f32 %v2198_v28, 0.0  ;;  %4424 = vmatmul.mubr.bf16.gmra.mrb[72].mxu0 %v3851_v3 }
 0x2f0   : > { %v2505_v8 = vmax.f32 %v2200_v32, 0.0  ;;  %v3184_v9 = vpop.f32.mrb[144].mxu1  ;;  %v3854_v13 = vpack.c.bf16 %v3654_v29, %v3652_v56  ;;  %6674 = vperm.xlu1 %8726, %v10316_v51  }
 0x2f1   : > { %v3185_v48 = vadd.f32 %v3184_v9, %v9963_v14  ;;  %v3186_v18 = vpop.f32.mrb[145].mxu1  ;;  %v2648_v1 = vpack.c.bf16 %v2504_v54, %v2502_v42 }
 0x2f2   : > { %v3187_v23 = vadd.f32 %v3186_v18, %v9967_v17  ;;  %v3188_v62 = vpop.f32.mrb[146].mxu1  ;;  %v4165_v3 = vpop.f32.mrb[224].mxu0  ;;  %4433 = vmatprep.mubr.bf16.mxu0 %v3854_v13  ;;  %v2649_v37 = vpack.c.bf16 %v2505_v8, %v2503_v38  ;;  %6630 = vperm.xlu0 %8725, %v10168_v30  }
 0x2f3   : > { %v3189_v34 = vadd.f32 %v3188_v62, %v9963_v14  ;;  %v4166_v2 = vadd.f32 %v4165_v3, %v10388_v22  ;;  %v3190_v15 = vpop.f32.mrb[147].mxu1  ;;  %v4167_v0 = vpop.f32.mrb[225].mxu0  ;;  %v3655_v50 = vmax.f32 %v3185_v48, 0.0 }
 0x2f4   : > { %v3191_v5 = vadd.f32 %v3190_v15, %v9967_v17  ;;  %v4168_v41 = vadd.f32 %v4167_v0, %v10391_v47  ;;  %3452 = vmatprep.mubr.bf16.mxu1 %v2649_v37  ;;  %v4169_v6 = vpop.f32.mrb[226].mxu0  ;;  %v3656_v56 = vmax.f32 %v3187_v23, 0.0  ;;  %6682 = vperm.xlu1 %8726, %v10327_v4  }
 0x2f5   : > { %v3657_v24 = vmax.f32 %v3189_v34, 0.0  ;;  %v4170_v28 = vadd.f32 %v4169_v6, %v10388_v22  ;;  %3453 = vmatmul.mubr.bf16.gmra.mrb[252].mxu1 %v2648_v1  ;;  %v4171_v55 = vpop.f32.mrb[227].mxu0  ;;  %v4804_v54 = vmax.f32 %v4166_v2, 0.0 }
 0x2f6   : > { %v3658_v29 = vmax.f32 %v3191_v5, 0.0  ;;  %v4172_v32 = vadd.f32 %v4171_v55, %v10391_v47  ;;  %3462 = vmatprep.mubr.bf16.mxu1 %v9703_v21  ;;  %v4805_v8 = vmax.f32 %v4168_v41, 0.0  ;;  %6638 = vperm.xlu0 %8725, %v10180_v57  }
 0x2f7   : > { %v3855_v42 = vpack.c.bf16 %v3657_v24, %v3655_v50  ;;  %v4806_v38 = vmax.f32 %v4170_v28, 0.0  ;;  %4434 = vmatmul.mubr.bf16.gmra.mrb[76].mxu0 %v3853_v26 }
 0x2f8   : > { %v4807_v30 = vmax.f32 %v4172_v32, 0.0  ;;  %v3194_v9 = vpop.f32.mrb[148].mxu1  ;;  %v3856_v13 = vpack.c.bf16 %v3658_v29, %v3656_v56  ;;  %6690 = vperm.xlu1 %8726, %v10334_v40  }
 0x2f9   : > { %v10407_v48 = vpack.c.bf16 %v4806_v38, %v4804_v54  ;;  %v3195_v18 = vadd.f32 %v3194_v9, %v9963_v14  ;;  %v3196_v1 = vpop.f32.mrb[149].mxu1 }
 0x2fa   : > { %v3197_v23 = vadd.f32 %v3196_v1, %v9967_v17  ;;  %v3198_v21 = vpop.f32.mrb[150].mxu1  ;;  %v4175_v62 = vpop.f32.mrb[228].mxu0  ;;  %4443 = vmatprep.mubr.bf16.mxu0 %v3856_v13  ;;  %v10411_v3 = vpack.c.bf16 %v4807_v30, %v4805_v8  ;;  %6646 = vperm.xlu0 %8725, %v10192_v11  }
 0x2fb   : > { %v3199_v26 = vadd.f32 %v3198_v21, %v9963_v14  ;;  %v4176_v37 = vadd.f32 %v4175_v62, %v10388_v22  ;;  %v3200_v34 = vpop.f32.mrb[151].mxu1  ;;  %v4177_v57 = vpop.f32.mrb[229].mxu0  ;;  %v3659_v5 = vmax.f32 %v3195_v18, 0.0 }
 0x2fc   : > { %v3201_v2 = vadd.f32 %v3200_v34, %v9967_v17  ;;  %v4178_v15 = vadd.f32 %v4177_v57, %v10391_v47  ;;  %v4179_v0 = vpop.f32.mrb[230].mxu0  ;;  %v3660_v24 = vmax.f32 %v3197_v23, 0.0  ;;  %6698 = vperm.xlu1 %8726, %v10345_v49  }
 0x2fd   : > { %v3661_v41 = vmax.f32 %v3199_v26, 0.0  ;;  %v4180_v6 = vadd.f32 %v4179_v0, %v10388_v22  ;;  %3463 = vmatmul.mubr.bf16.gmra.mrb[0].mxu1 %v9694_v16  ;;  %v4181_v50 = vpop.f32.mrb[231].mxu0  ;;  %v4808_v29 = vmax.f32 %v4176_v37, 0.0 }
 0x2fe   : > { %v3662_v28 = vmax.f32 %v3201_v2, 0.0  ;;  %v4182_v55 = vadd.f32 %v4181_v50, %v10391_v47  ;;  %3472 = vmatprep.mubr.bf16.mxu1 %v9718_v59  ;;  %v4809_v11 = vmax.f32 %v4178_v15, 0.0  ;;  %6654 = vperm.xlu0 %8725, %v10210_v63  }
 0x2ff   : > { %v3857_v56 = vpack.c.bf16 %v3661_v41, %v3659_v5  ;;  %v4810_v32 = vmax.f32 %v4180_v6, 0.0  ;;  %4444 = vmatmul.mubr.bf16.gmra.mrb[80].mxu0 %v3855_v42  ;;  %v10443_v41 = vld [vmem:[%s10111_s30 + $0x10] sm:$0xff] }
 0x300   : > { %v4811_v54 = vmax.f32 %v4182_v55, 0.0  ;;  %v3204_v38 = vpop.f32.mrb[152].mxu1  ;;  %v3858_v8 = vpack.c.bf16 %v3662_v28, %v3660_v24  ;;  %6833 = vrot.lane.b32.xlu1 %v10174_v36, %s9096_s24  ;;  %v10447_v24 = vpop.permute.xlu1 %6365 }
 0x301   : > { %v10425_v16 = vpack.c.bf16 %v4810_v32, %v4808_v29  ;;  %v3205_v30 = vadd.f32 %v3204_v38, %v9963_v14  ;;  %v3206_v9 = vpop.f32.mrb[153].mxu1  ;;  %13876 = vst [vmem:[#allocation15_spill] sm:$0xff] %v10447_v24 }
 0x302   : > { %v3207_v13 = vadd.f32 %v3206_v9, %v9967_v17  ;;  %v3208_v59 = vpop.f32.mrb[154].mxu1  ;;  %v4185_v18 = vpop.f32.mrb[232].mxu0  ;;  %4453 = vmatprep.mubr.bf16.mxu0 %v3858_v8  ;;  %v10429_v1 = vpack.c.bf16 %v4811_v54, %v4809_v11  ;;  %6662 = vperm.xlu0 %8725, %v10222_v31  }
 0x303   : > { %v3209_v42 = vadd.f32 %v3208_v59, %v9963_v14  ;;  %v4186_v63 = vadd.f32 %v4185_v18, %v10388_v22  ;;  %v3210_v23 = vpop.f32.mrb[155].mxu1  ;;  %v4187_v21 = vpop.f32.mrb[233].mxu0  ;;  %v3663_v34 = vmax.f32 %v3205_v30, 0.0 }
 0x304   : > { %v3211_v62 = vadd.f32 %v3210_v23, %v9967_v17  ;;  %v4188_v26 = vadd.f32 %v4187_v21, %v10391_v47  ;;  %v4189_v37 = vpop.f32.mrb[234].mxu0  ;;  %v3664_v15 = vmax.f32 %v3207_v13, 0.0  ;;  %6837 = vrot.lane.b32.xlu1 %v10443_v41, %s9096_s24 }
 0x305   : > { %v3665_v57 = vmax.f32 %v3209_v42, 0.0  ;;  %v4190_v2 = vadd.f32 %v4189_v37, %v10388_v22  ;;  %3473 = vmatmul.mubr.bf16.gmra.mrb[4].mxu1 %v9715_v53  ;;  %v4191_v36 = vpop.f32.mrb[235].mxu0  ;;  %v4812_v31 = vmax.f32 %v4186_v63, 0.0  ;;  %v10462_v63 = vpop.permute.xlu1 %6370 }
 0x306   : > { %v3666_v0 = vmax.f32 %v3211_v62, 0.0  ;;  %v4192_v5 = vadd.f32 %v4191_v36, %v10391_v47  ;;  %3482 = vmatprep.mubr.bf16.mxu1 %v9737_v25  ;;  %v4813_v28 = vmax.f32 %v4188_v26, 0.0  ;;  %6670 = vperm.xlu0 %8725, %v10234_v7   ;;  %13877 = vst [vmem:[#allocation16_spill] sm:$0xff] %v10462_v63 }
 0x307   : > { %v3859_v6 = vpack.c.bf16 %v3665_v57, %v3663_v34  ;;  %v4814_v50 = vmax.f32 %v4190_v2, 0.0  ;;  %4454 = vmatmul.mubr.bf16.gmra.mrb[84].mxu0 %v3857_v56 }
 0x308   : > { %v4815_v53 = vmax.f32 %v4192_v5, 0.0  ;;  %v3214_v55 = vpop.f32.mrb[156].mxu1  ;;  %v3860_v29 = vpack.c.bf16 %v3666_v0, %v3664_v15  ;;  %6841 = vrot.lane.b32.xlu1 %v10204_v52, %s9096_s24 }
 0x309   : > { %v10450_v32 = vpack.c.bf16 %v4814_v50, %v4812_v31  ;;  %v3215_v25 = vadd.f32 %v3214_v55, %v9963_v14  ;;  %v3216_v11 = vpop.f32.mrb[157].mxu1  ;;  %v10471_v31 = vpop.permute.xlu1 %6380 }
 0x30a   : > { %v3217_v54 = vadd.f32 %v3216_v11, %v9967_v17  ;;  %v3218_v38 = vpop.f32.mrb[158].mxu1  ;;  %v4195_v8 = vpop.f32.mrb[236].mxu0  ;;  %4463 = vmatprep.mubr.bf16.mxu0 %v3860_v29  ;;  %v10454_v30 = vpack.c.bf16 %v4815_v53, %v4813_v28  ;;  %6678 = vperm.xlu0 %8725, %v10246_v45   ;;  %13878 = vst [vmem:[#allocation17_spill] sm:$0xff] %v10471_v31 }
 0x30b   : > { %v3219_v56 = vadd.f32 %v3218_v38, %v9963_v14  ;;  %v4196_v9 = vadd.f32 %v4195_v8, %v10388_v22  ;;  %v3220_v7 = vpop.f32.mrb[159].mxu1  ;;  %v4197_v13 = vpop.f32.mrb[237].mxu0  ;;  %v3667_v23 = vmax.f32 %v3215_v25, 0.0 }
 0x30c   : > { %v3221_v59 = vadd.f32 %v3220_v7, %v9967_v17  ;;  %v4198_v18 = vadd.f32 %v4197_v13, %v10391_v47  ;;  %v4199_v42 = vpop.f32.mrb[238].mxu0  ;;  %v3668_v26 = vmax.f32 %v3217_v54, 0.0  ;;  %6845 = vrot.lane.b32.xlu1 %v10218_v27, %s9096_s24 }
 0x30d   : > { %v3669_v21 = vmax.f32 %v3219_v56, 0.0  ;;  %v4200_v62 = vadd.f32 %v4199_v42, %v10388_v22  ;;  %3483 = vmatmul.mubr.bf16.gmra.mrb[8].mxu1 %v9734_v20  ;;  %v4201_v52 = vpop.f32.mrb[239].mxu0  ;;  %v4816_v2 = vmax.f32 %v4196_v9, 0.0  ;;  %v10486_v8 = vpop.permute.xlu1 %6390 }
 0x30e   : > { %v3670_v37 = vmax.f32 %v3221_v59, 0.0  ;;  %v4202_v34 = vadd.f32 %v4201_v52, %v10391_v47  ;;  %3492 = vmatprep.mubr.bf16.mxu1 %v9751_v60  ;;  %v4817_v45 = vmax.f32 %v4198_v18, 0.0  ;;  %6686 = vperm.xlu0 %8725, %v10258_v35   ;;  %13879 = vst [vmem:[#allocation18_spill] sm:$0xff] %v10486_v8  ;;  %v10715_v8 = vld [vmem:[%s10111_s30 + $0xb8] sm:$0xff] }
 0x30f   : > { %v3861_v57 = vpack.c.bf16 %v3669_v21, %v3667_v23  ;;  %v4818_v36 = vmax.f32 %v4200_v62, 0.0  ;;  %4464 = vmatmul.mubr.bf16.gmra.mrb[88].mxu0 %v3859_v6  ;;  %v13881_v23 = vld [vmem:[#allocation6_spill] sm:$0xff]  ;;  %v13882_v21 = vld [vmem:[#allocation13_spill] sm:$0xff] }
 0x310   : > { %v4819_v15 = vmax.f32 %v4202_v34, 0.0  ;;  %v3224_v0 = vpop.f32.mrb[160].mxu1  ;;  %v3862_v5 = vpack.c.bf16 %v3670_v37, %v3668_v26  ;;  %6849 = vrot.lane.b32.xlu1 %v10228_v61, %s9096_s24  ;;  %v13880_v61 = vld [vmem:[#allocation4_spill] sm:$0xff] }
 0x311   : > { %v10474_v20 = vpack.c.bf16 %v4818_v36, %v4816_v2  ;;  %v3225_v50 = vadd.f32 %v3224_v0, %v9963_v14  ;;  %v3226_v60 = vpop.f32.mrb[161].mxu1  ;;  %v10495_v36 = vpop.permute.xlu1 %6400 }
 0x312   : > { %v3227_v28 = vadd.f32 %v3226_v60, %v9967_v17  ;;  %v3228_v27 = vpop.f32.mrb[162].mxu1  ;;  %v4205_v53 = vpop.f32.mrb[240].mxu0  ;;  %4473 = vmatprep.mubr.bf16.mxu0 %v3862_v5  ;;  %v10478_v55 = vpack.c.bf16 %v4819_v15, %v4817_v45  ;;  %6694 = vperm.xlu0 %8725, %v10270_v43   ;;  %13883 = vst [vmem:[#allocation4_spill] sm:$0xff] %v10495_v36  ;;  %v13884_v45 = vld [vmem:[#allocation14_spill] sm:$0xff] }
 0x313   : > { %v3229_v6 = vadd.f32 %v3228_v27, %v9963_v14  ;;  %v4206_v29 = vadd.f32 %v4205_v53, %v10388_v22  ;;  %v3230_v35 = vpop.f32.mrb[163].mxu1  ;;  %v4207_v25 = vpop.f32.mrb[241].mxu0  ;;  %v3671_v56 = vmax.f32 %v3225_v50, 0.0 }
 0x314   : > { %v3231_v11 = vadd.f32 %v3230_v35, %v9967_v17  ;;  %v4208_v54 = vadd.f32 %v4207_v25, %v10391_v47  ;;  %v4209_v38 = vpop.f32.mrb[242].mxu0  ;;  %v3672_v59 = vmax.f32 %v3227_v28, 0.0  ;;  %6853 = vrot.lane.b32.xlu1 %v13882_v21, %s9096_s24 }
 0x315   : > { %v3673_v9 = vmax.f32 %v3229_v6, 0.0  ;;  %v4210_v7 = vadd.f32 %v4209_v38, %v10388_v22  ;;  %3493 = vmatmul.mubr.bf16.gmra.mrb[12].mxu1 %v13880_v61  ;;  %v4211_v13 = vpop.f32.mrb[243].mxu0  ;;  %v4820_v52 = vmax.f32 %v4206_v29, 0.0  ;;  %v10513_v38 = vld [vmem:[%s10111_s30 + $0x8] sm:$0xff] }
 0x316   : > { %v3674_v18 = vmax.f32 %v3231_v11, 0.0  ;;  %v4212_v42 = vadd.f32 %v4211_v13, %v10391_v47  ;;  %3502 = vmatprep.mubr.bf16.mxu1 %v13881_v23  ;;  %v4821_v43 = vmax.f32 %v4208_v54, 0.0  ;;  %6702 = vperm.xlu0 %8725, %v13884_v45   ;;  %v10510_v54 = vpop.permute.xlu1 %6410 }
 0x317   : > { %v3863_v62 = vpack.c.bf16 %v3673_v9, %v3671_v56  ;;  %v4822_v26 = vmax.f32 %v4210_v7, 0.0  ;;  %4474 = vmatmul.mubr.bf16.gmra.mrb[92].mxu0 %v3861_v57  ;;  %13885 = vst [vmem:[#allocation6_spill] sm:$0xff] %v10510_v54  ;;  %v13886_v7 = vld [vmem:[#allocation5_spill] sm:$0xff] }
 0x318   : > { %v4823_v37 = vmax.f32 %v4212_v42, 0.0  ;;  %v3234_v34 = vpop.f32.mrb[164].mxu1  ;;  %v3864_v2 = vpack.c.bf16 %v3674_v18, %v3672_v59  ;;  %6857 = vrot.lane.b32.xlu1 %v10252_v12, %s9096_s24  ;;  %v13887_v42 = vld [vmem:[#allocation8_spill] sm:$0xff] }
 0x319   : > { %v10498_v15 = vpack.c.bf16 %v4822_v26, %v4820_v52  ;;  %v3235_v0 = vadd.f32 %v3234_v34, %v9963_v14  ;;  %v3236_v5 = vpop.f32.mrb[165].mxu1  ;;  %v10523_v26 = vpop.permute.xlu0 %6355 }
 0x31a   : > { %v3237_v50 = vadd.f32 %v3236_v5, %v9967_v17  ;;  %v3238_v60 = vpop.f32.mrb[166].mxu1  ;;  %v4215_v28 = vpop.f32.mrb[244].mxu0  ;;  %4483 = vmatprep.mubr.bf16.mxu0 %v3864_v2  ;;  %v10502_v57 = vpack.c.bf16 %v4823_v37, %v4821_v43  ;;  %6835 = vrot.lane.b32.xlu0 %v10513_v38, %s9096_s24  ;;  %13888 = vst [vmem:[#allocation13_spill] sm:$0xff] %v10523_v26 }
 0x31b   : > { %v3239_v27 = vadd.f32 %v3238_v60, %v9963_v14  ;;  %v4216_v53 = vadd.f32 %v4215_v28, %v10388_v22  ;;  %v3240_v6 = vpop.f32.mrb[167].mxu1  ;;  %v4217_v29 = vpop.f32.mrb[245].mxu0  ;;  %v3675_v56 = vmax.f32 %v3235_v0, 0.0  ;;  %v10528_v0 = vld [vmem:[%s10111_s30 + $0x18] sm:$0xff] }
 0x31c   : > { %v3241_v35 = vadd.f32 %v3240_v6, %v9967_v17  ;;  %v4218_v25 = vadd.f32 %v4217_v29, %v10391_v47  ;;  %v4219_v11 = vpop.f32.mrb[246].mxu0  ;;  %v3676_v13 = vmax.f32 %v3237_v50, 0.0  ;;  %6861 = vrot.lane.b32.xlu1 %v10266_v33, %s9096_s24  ;;  %v10525_v45 = vpop.permute.xlu1 %6420  ;;  %v8975_v6 = vld [vmem:[%s13721_s10] sm:$0xff]  }
 0x31d   : > { %v3677_v12 = vmax.f32 %v3239_v27, 0.0  ;;  %v4220_v9 = vadd.f32 %v4219_v11, %v10388_v22  ;;  %3503 = vmatmul.mubr.bf16.gmra.mrb[16].mxu1 %v13886_v7  ;;  %v4221_v61 = vpop.f32.mrb[247].mxu0  ;;  %v4824_v21 = vmax.f32 %v4216_v53, 0.0  ;;  %13889 = vst [vmem:[#allocation14_spill] sm:$0xff] %v10525_v45  ;;  %v8974_v53 = vld [vmem:[%s13721_s10 + $0x40] sm:$0xff]  }
 0x31e   : > { %v3678_v59 = vmax.f32 %v3241_v35, 0.0  ;;  %v4222_v18 = vadd.f32 %v4221_v61, %v10391_v47  ;;  %3512 = vmatprep.mubr.bf16.mxu1 %v13887_v42  ;;  %v4825_v43 = vmax.f32 %v4218_v25, 0.0  ;;  %6839 = vrot.lane.b32.xlu0 %v10528_v0, %s9096_s24  ;;  %v10553_v61 = vld [vmem:[%s10111_s30 + $0x28] sm:$0xff] }
 0x31f   : > { %v3865_v23 = vpack.c.bf16 %v3677_v12, %v3675_v56  ;;  %v4826_v52 = vmax.f32 %v4220_v9, 0.0  ;;  %4484 = vmatmul.mubr.bf16.gmra.mrb[96].mxu0 %v3863_v62  ;;  %8564 = vmatprep.subr.bf16.mxu0 %v8974_v53 }
 0x320   : > { %v4827_v37 = vmax.f32 %v4222_v18, 0.0  ;;  %v3244_v34 = vpop.f32.mrb[168].mxu1  ;;  %v3866_v2 = vpack.c.bf16 %v3678_v59, %v3676_v13  ;;  %6865 = vrot.lane.b32.xlu1 %v10276_v58, %s9096_s24  ;;  %v10550_v7 = vpop.permute.xlu1 %6430  ;;  %v13891_v18 = vld [vmem:[#allocation7_spill] sm:$0xff]  ;;  %8565 = vmatpush3.bf16.msra.mxu0 %v8975_v6 }
 0x321   : > { %v10532_v5 = vpack.c.bf16 %v4826_v52, %v4824_v21  ;;  %v3245_v33 = vadd.f32 %v3244_v34, %v9963_v14  ;;  %v3246_v50 = vpop.f32.mrb[169].mxu1  ;;  %13890 = vst [vmem:[#allocation5_spill] sm:$0xff] %v10550_v7  ;;  %v10559_v21 = vpop.permute.xlu0 %6360  ;;  %v13893_v34 = vld [vmem:[#allocation10_spill] sm:$0xff] }
 0x322   : > { %v3247_v62 = vadd.f32 %v3246_v50, %v9967_v17  ;;  %v3248_v60 = vpop.f32.mrb[170].mxu1  ;;  %v4225_v28 = vpop.f32.mrb[248].mxu0  ;;  %4493 = vmatprep.mubr.bf16.mxu0 %v3866_v2  ;;  %v10536_v27 = vpack.c.bf16 %v4827_v37, %v4825_v43  ;;  %6843 = vrot.lane.b32.xlu0 %v10553_v61, %s9096_s24  ;;  %13892 = vst [vmem:[#allocation8_spill] sm:$0xff] %v10559_v21  ;;  %v10604_v7 = vld [vmem:[%s10111_s30 + $0x58] sm:$0xff] }
 0x323   : > { %v3249_v29 = vadd.f32 %v3248_v60, %v9963_v14  ;;  %v4226_v35 = vadd.f32 %v4225_v28, %v10388_v22  ;;  %v3250_v25 = vpop.f32.mrb[171].mxu1  ;;  %v4227_v11 = vpop.f32.mrb[249].mxu0  ;;  %v3679_v58 = vmax.f32 %v3245_v33, 0.0 }
 0x324   : > { %v3251_v56 = vadd.f32 %v3250_v25, %v9967_v17  ;;  %v4228_v12 = vadd.f32 %v4227_v11, %v10391_v47  ;;  %v4229_v9 = vpop.f32.mrb[250].mxu0  ;;  %v3680_v52 = vmax.f32 %v3247_v62, 0.0  ;;  %6869 = vrot.lane.b32.xlu1 %v10290_v39, %s9096_s24  ;;  %v10568_v25 = vld [vmem:[%s10111_s30 + $0x38] sm:$0xff] }
 0x325   : > { %v3681_v13 = vmax.f32 %v3249_v29, 0.0  ;;  %v4230_v59 = vadd.f32 %v4229_v9, %v10388_v22  ;;  %3513 = vmatmul.mubr.bf16.gmra.mrb[20].mxu1 %v13891_v18  ;;  %v4231_v42 = vpop.f32.mrb[251].mxu0  ;;  %v4828_v33 = vmax.f32 %v4226_v35, 0.0  ;;  %v10565_v29 = vpop.permute.xlu1 %6440 }
 0x326   : > { %v3682_v43 = vmax.f32 %v3251_v56, 0.0  ;;  %v4232_v37 = vadd.f32 %v4231_v42, %v10391_v47  ;;  %3522 = vmatprep.mubr.bf16.mxu1 %v13893_v34  ;;  %v4829_v60 = vmax.f32 %v4228_v12, 0.0  ;;  %13894 = vst [vmem:[#allocation7_spill] sm:$0xff] %v10565_v29  ;;  %6847 = vrot.lane.b32.xlu0 %v10568_v25, %s9096_s24  ;;  %v10575_v35 = vpop.permute.xlu0 %6375  ;;  %v10589_v34 = vld [vmem:[%s10111_s30 + $0x48] sm:$0xff] }
 0x327   : > { %v3867_v2 = vpack.c.bf16 %v3681_v13, %v3679_v58  ;;  %v4830_v50 = vmax.f32 %v4230_v59, 0.0  ;;  %4494 = vmatmul.mubr.bf16.gmra.mrb[100].mxu0 %v3865_v23  ;;  %13895 = vst [vmem:[#allocation10_spill] sm:$0xff] %v10575_v35 }
 0x328   : > { %v4831_v28 = vmax.f32 %v4232_v37, 0.0  ;;  %v3254_v53 = vpop.f32.mrb[172].mxu1  ;;  %v3868_v6 = vpack.c.bf16 %v3682_v43, %v3680_v52  ;;  %6873 = vrot.lane.b32.xlu1 %v10298_v19, %s9096_s24 }
 0x329   : > { %v10572_v62 = vpack.c.bf16 %v4830_v50, %v4828_v33  ;;  %v3255_v11 = vadd.f32 %v3254_v53, %v9963_v14  ;;  %v3256_v39 = vpop.f32.mrb[173].mxu1  ;;  %v10586_v37 = vpop.permute.xlu1 %6450 }
 0x32a   : > { %v3257_v23 = vadd.f32 %v3256_v39, %v9967_v17  ;;  %v3258_v56 = vpop.f32.mrb[174].mxu1  ;;  %v4235_v12 = vpop.f32.mrb[252].mxu0  ;;  %4503 = vmatprep.mubr.bf16.mxu0 %v3868_v6  ;;  %v10578_v9 = vpack.c.bf16 %v4831_v28, %v4829_v60  ;;  %13896 = vst [vmem:[#allocation19_spill] sm:$0xff] %v10586_v37  ;;  %6851 = vrot.lane.b32.xlu0 %v10589_v34, %s9096_s24  ;;  %v13897_v60 = vld [vmem:[#allocation9_spill] sm:$0xff] }
 0x32b   : > { %v3259_v58 = vadd.f32 %v3258_v56, %v9963_v14  ;;  %v4236_v13 = vadd.f32 %v4235_v12, %v10388_v22  ;;  %v3260_v59 = vpop.f32.mrb[175].mxu1  ;;  %v4237_v18 = vpop.f32.mrb[253].mxu0  ;;  %v3683_v33 = vmax.f32 %v3255_v11, 0.0  ;;  %v13899_v12 = vld [vmem:[#allocation12_spill] sm:$0xff] }
 0x32c   : > { %v3261_v42 = vadd.f32 %v3260_v59, %v9967_v17  ;;  %v4238_v52 = vadd.f32 %v4237_v18, %v10391_v47  ;;  %v4239_v43 = vpop.f32.mrb[254].mxu0  ;;  %v10595_v53 = vpop.permute.xlu0 %6385  ;;  %v3684_v6 = vmax.f32 %v3257_v23, 0.0  ;;  %6877 = vrot.lane.b32.xlu1 %v10309_v10, %s9096_s24 }
 0x32d   : > { %v3685_v19 = vmax.f32 %v3259_v58, 0.0  ;;  %v4240_v50 = vadd.f32 %v4239_v43, %v10388_v22  ;;  %3523 = vmatmul.mubr.bf16.gmra.mrb[24].mxu1 %v13897_v60  ;;  %v4241_v28 = vpop.f32.mrb[255].mxu0  ;;  %13898 = vst [vmem:[#allocation9_spill] sm:$0xff] %v10595_v53  ;;  %v4832_v11 = vmax.f32 %v4236_v13, 0.0  ;;  %v10601_v29 = vpop.permute.xlu1 %6460 }
 0x32e   : > { %v3686_v39 = vmax.f32 %v3261_v42, 0.0  ;;  %v4242_v56 = vadd.f32 %v4241_v28, %v10391_v47  ;;  %3532 = vmatprep.mubr.bf16.mxu1 %v13899_v12  ;;  %v4833_v18 = vmax.f32 %v4238_v52, 0.0  ;;  %13900 = vst [vmem:[#allocation12_spill] sm:$0xff] %v10601_v29  ;;  %6855 = vrot.lane.b32.xlu0 %v10604_v7, %s9096_s24 }
 0x32f   : > { %v3869_v59 = vpack.c.bf16 %v3685_v19, %v3683_v33  ;;  %v4834_v58 = vmax.f32 %v4240_v50, 0.0  ;;  %4504 = vmatmul.mubr.bf16.gmra.mrb[104].mxu0 %v3867_v2 }
 0x330   : > { %v4835_v43 = vmax.f32 %v4242_v56, 0.0  ;;  %v3264_v60 = vpop.f32.mrb[176].mxu1  ;;  %v3870_v37 = vpack.c.bf16 %v3686_v39, %v3684_v6  ;;  %v10611_v13 = vpop.permute.xlu0 %6395  ;;  %6881 = vrot.lane.b32.xlu1 %v10316_v51, %s9096_s24 }
 0x331   : > { %v10608_v23 = vpack.c.bf16 %v4834_v58, %v4832_v11  ;;  %v3265_v42 = vadd.f32 %v3264_v60, %v9963_v14  ;;  %v3266_v10 = vpop.f32.mrb[177].mxu1  ;;  %13901 = vst [vmem:[#allocation20_spill] sm:$0xff] %v10611_v13  ;;  %v10622_v58 = vpop.permute.xlu1 %6470  ;;  %v10625_v60 = vld [vmem:[%s10111_s30 + $0x68] sm:$0xff] }
 0x332   : > { %v3267_v2 = vadd.f32 %v3266_v10, %v9967_v17  ;;  %v3268_v52 = vpop.f32.mrb[178].mxu1  ;;  %v4245_v33 = vpop.f32.mrb[0].mxu0  ;;  %4513 = vmatprep.mubr.bf16.mxu0 %v3870_v37  ;;  %v10614_v19 = vpack.c.bf16 %v4835_v43, %v4833_v18  ;;  %13902 = vst [vmem:[#allocation21_spill] sm:$0xff] %v10622_v58  ;;  %6859 = vrot.lane.b32.xlu0 %v10625_v60, %s9096_s24  ;;  %v13903_v43 = vld [vmem:[#allocation11_spill] sm:$0xff] }
 0x333   : > { %v3269_v50 = vadd.f32 %v3268_v52, %v9963_v14  ;;  %v4246_v28 = vadd.f32 %v4245_v33, %v10388_v22  ;;  %v3270_v6 = vpop.f32.mrb[179].mxu1  ;;  %v4247_v39 = vpop.f32.mrb[1].mxu0  ;;  %v3687_v37 = vmax.f32 %v3265_v42, 0.0 }
 0x334   : > { %v3271_v56 = vadd.f32 %v3270_v6, %v9967_v17  ;;  %v4248_v12 = vadd.f32 %v4247_v39, %v10391_v47  ;;  %v4249_v11 = vpop.f32.mrb[2].mxu0  ;;  %v10631_v52 = vpop.permute.xlu0 %6405  ;;  %v3688_v33 = vmax.f32 %v3267_v2, 0.0  ;;  %6885 = vrot.lane.b32.xlu1 %v10327_v4, %s9096_s24 }
 0x335   : > { %v3689_v51 = vmax.f32 %v3269_v50, 0.0  ;;  %v4250_v18 = vadd.f32 %v4249_v11, %v10388_v22  ;;  %3533 = vmatmul.mubr.bf16.gmra.mrb[28].mxu1 %v13903_v43  ;;  %v4251_v10 = vpop.f32.mrb[3].mxu0  ;;  %13904 = vst [vmem:[#allocation11_spill] sm:$0xff] %v10631_v52  ;;  %v4836_v42 = vmax.f32 %v4246_v28, 0.0  ;;  %v10637_v54 = vpop.permute.xlu1 %6480  ;;  %v10640_v52 = vld [vmem:[%s10111_s30 + $0x78] sm:$0xff] }
 0x336   : > { %v3690_v6 = vmax.f32 %v3271_v56, 0.0  ;;  %v4252_v39 = vadd.f32 %v4251_v10, %v10391_v47  ;;  %5424 = vmatprep.mubr.bf16.mxu1 %v10411_v3  ;;  %v4837_v11 = vmax.f32 %v4248_v12, 0.0  ;;  %13905 = vst [vmem:[#allocation22_spill] sm:$0xff] %v10637_v54  ;;  %6863 = vrot.lane.b32.xlu0 %v10640_v52, %s9096_s24 }
 0x337   : > { %v3871_v58 = vpack.c.bf16 %v3689_v51, %v3687_v37  ;;  %v4838_v50 = vmax.f32 %v4250_v18, 0.0  ;;  %4514 = vmatmul.mubr.bf16.gmra.mrb[108].mxu0 %v3869_v59 }
 0x338   : > { %v4839_v29 = vmax.f32 %v4252_v39, 0.0  ;;  %v3274_v43 = vpop.f32.mrb[180].mxu1  ;;  %v3872_v45 = vpack.c.bf16 %v3690_v6, %v3688_v33  ;;  %v10647_v28 = vpop.permute.xlu0 %6415  ;;  %6889 = vrot.lane.b32.xlu1 %v10334_v40, %s9096_s24 }
 0x339   : > { %v10644_v2 = vpack.c.bf16 %v4838_v50, %v4836_v42  ;;  %v3275_v3 = vadd.f32 %v3274_v43, %v9963_v14  ;;  %v3276_v4 = vpop.f32.mrb[181].mxu1  ;;  %13906 = vst [vmem:[#allocation23_spill] sm:$0xff] %v10647_v28  ;;  %v10658_v50 = vpop.permute.xlu1 %6490  ;;  %v10661_v43 = vld [vmem:[%s10111_s30 + $0x88] sm:$0xff] }
 0x33a   : > { %v3277_v59 = vadd.f32 %v3276_v4, %v9967_v17  ;;  %v3278_v56 = vpop.f32.mrb[182].mxu1  ;;  %v4255_v12 = vpop.f32.mrb[4].mxu0  ;;  %4523 = vmatprep.mubr.bf16.mxu0 %v3872_v45  ;;  %v10650_v37 = vpack.c.bf16 %v4839_v29, %v4837_v11  ;;  %13907 = vst [vmem:[#allocation24_spill] sm:$0xff] %v10658_v50  ;;  %6867 = vrot.lane.b32.xlu0 %v10661_v43, %s9096_s24 }
 0x33b   : > { %v3279_v51 = vadd.f32 %v3278_v56, %v9963_v14  ;;  %v4256_v18 = vadd.f32 %v4255_v12, %v10388_v22  ;;  %v3280_v10 = vpop.f32.mrb[183].mxu1  ;;  %v4257_v33 = vpop.f32.mrb[5].mxu0  ;;  %v3691_v45 = vmax.f32 %v3275_v3, 0.0 }
 0x33c   : > { %v3281_v6 = vadd.f32 %v3280_v10, %v9967_v17  ;;  %v4258_v39 = vadd.f32 %v4257_v33, %v10391_v47  ;;  %v4259_v42 = vpop.f32.mrb[6].mxu0  ;;  %v10667_v4 = vpop.permute.xlu0 %6425  ;;  %v3692_v56 = vmax.f32 %v3277_v59, 0.0  ;;  %6893 = vrot.lane.b32.xlu1 %v10345_v49, %s9096_s24  ;;  %v13740_v59 = vmov 2  }
 0x33d   : > { %v3693_v40 = vmax.f32 %v3279_v51, 0.0  ;;  %v4260_v29 = vadd.f32 %v4259_v42, %v10388_v22  ;;  %v4261_v11 = vpop.f32.mrb[7].mxu0  ;;  %5425 = vmatmul.mubr.bf16.vlgmr.msra.gmra.mrb[32].mxu1 %v10407_v48  ;;  %13908 = vst [vmem:[#allocation25_spill] sm:$0xff] %v10667_v4  ;;  %v4840_v3 = vmax.f32 %v4256_v18, 0.0  ;;  %v10673_v4 = vpop.permute.xlu1 %6500  ;;  %8727 = vset.pattern.permute.xlu1 %v13740_v59 }
 0x33e   : > { %v3694_v12 = vmax.f32 %v3281_v6, 0.0  ;;  %v4262_v10 = vadd.f32 %v4261_v11, %v10391_v47  ;;  %5434 = vmatprep.mubr.bf16.mxu1 %v10429_v1  ;;  %v4841_v42 = vmax.f32 %v4258_v39, 0.0  ;;  %13909 = vst [vmem:[#allocation26_spill] sm:$0xff] %v10673_v4  ;;  %v10677_v6 = vld [vmem:[%s10111_s30 + $0x98] sm:$0xff]  ;;  %8728 = vset.pattern.permute.xlu0 %v13740_v59  ;;  %v10691_v11 = vld [vmem:[%s10111_s30] sm:$0xff] }
 0x33f   : > { %v3873_v33 = vpack.c.bf16 %v3693_v40, %v3691_v45  ;;  %v4842_v51 = vmax.f32 %v4260_v29, 0.0  ;;  %4524 = vmatmul.mubr.bf16.gmra.mrb[112].mxu0 %v3871_v58  ;;  %6871 = vrot.lane.b32.xlu0 %v10677_v6, %s9096_s24 }
 0x340   : > { %v4843_v50 = vmax.f32 %v4262_v10, 0.0  ;;  %v3284_v54 = vpop.f32.mrb[184].mxu1  ;;  %v3874_v48 = vpack.c.bf16 %v3694_v12, %v3692_v56  ;;  %v10684_v18 = vpop.permute.xlu0 %6435  ;;  %6962 = vperm.xlu1 %8727, %v10691_v11  }
 0x341   : > { %v10681_v49 = vpack.c.bf16 %v4842_v51, %v4840_v3  ;;  %v3285_v1 = vadd.f32 %v3284_v54, %v9963_v14  ;;  %v3286_v58 = vpop.f32.mrb[185].mxu1  ;;  %13910 = vst [vmem:[#allocation27_spill] sm:$0xff] %v10684_v18  ;;  %v10698_v59 = vpop.permute.xlu1 %6510 }
 0x342   : > { %v3287_v39 = vadd.f32 %v3286_v58, %v9967_v17  ;;  %v3288_v45 = vpop.f32.mrb[186].mxu1  ;;  %v4265_v40 = vpop.f32.mrb[8].mxu0  ;;  %4533 = vmatprep.mubr.bf16.mxu0 %v3874_v48  ;;  %v10688_v29 = vpack.c.bf16 %v4843_v50, %v4841_v42  ;;  %13911 = vst [vmem:[#allocation28_spill] sm:$0xff] %v10698_v59  ;;  %v10701_v48 = vld [vmem:[%s10111_s30 + $0xa8] sm:$0xff] }
 0x343   : > { %v3289_v56 = vadd.f32 %v3288_v45, %v9963_v14  ;;  %v4266_v54 = vadd.f32 %v4265_v40, %v10388_v22  ;;  %v3290_v12 = vpop.f32.mrb[187].mxu1  ;;  %v4267_v10 = vpop.f32.mrb[9].mxu0  ;;  %6875 = vrot.lane.b32.xlu0 %v10701_v48, %s9096_s24  ;;  %v3695_v50 = vmax.f32 %v3285_v1, 0.0 }
 0x344   : > { %v3291_v3 = vadd.f32 %v3290_v12, %v9967_v17  ;;  %v4268_v51 = vadd.f32 %v4267_v10, %v10391_v47  ;;  %v4269_v58 = vpop.f32.mrb[10].mxu0  ;;  %v10707_v40 = vpop.permute.xlu0 %6445  ;;  %v3696_v12 = vmax.f32 %v3287_v39, 0.0  ;;  %6970 = vperm.xlu1 %8727, %v10443_v41  }
 0x345   : > { %v3697_v42 = vmax.f32 %v3289_v56, 0.0  ;;  %v4270_v45 = vadd.f32 %v4269_v58, %v10388_v22  ;;  %v4271_v4 = vpop.f32.mrb[11].mxu0  ;;  %5435 = vmatmul.mubr.bf16.gmra.mrb[36].mxu1 %v10425_v16  ;;  %13912 = vst [vmem:[#allocation29_spill] sm:$0xff] %v10707_v40  ;;  %v4844_v28 = vmax.f32 %v4266_v54, 0.0  ;;  %v10712_v16 = vpop.permute.xlu1 %6582  ;;  %v9005_v40 = vld [vmem:[%s10111_s30 + $0xd8] sm:$0xff] }
 0x346   : > { %v3698_v10 = vmax.f32 %v3291_v3, 0.0  ;;  %v4272_v18 = vadd.f32 %v4271_v4, %v10391_v47  ;;  %5444 = vmatprep.mubr.bf16.mxu1 %v10454_v30  ;;  %v4845_v56 = vmax.f32 %v4268_v51, 0.0  ;;  %13913 = vst [vmem:[#allocation30_spill] sm:$0xff] %v10712_v16 }
 0x347   : > { %v3875_v59 = vpack.c.bf16 %v3697_v42, %v3695_v50  ;;  %v4846_v1 = vmax.f32 %v4270_v45, 0.0  ;;  %4534 = vmatmul.mubr.bf16.gmra.mrb[116].mxu0 %v3873_v33  ;;  %6879 = vrot.lane.b32.xlu0 %v10715_v8, %s9096_s24 }
 0x348   : > { %v4847_v58 = vmax.f32 %v4272_v18, 0.0  ;;  %v3294_v36 = vpop.f32.mrb[188].mxu1  ;;  %v3876_v13 = vpack.c.bf16 %v3698_v10, %v3696_v12  ;;  %v10722_v39 = vpop.permute.xlu0 %6455  ;;  %6974 = vperm.xlu1 %8727, %v10528_v0  }
 0x349   : > { %v10719_v4 = vpack.c.bf16 %v4846_v1, %v4844_v28  ;;  %v3295_v30 = vadd.f32 %v3294_v36, %v9963_v14  ;;  %v3296_v41 = vpop.f32.mrb[189].mxu1  ;;  %13914 = vst [vmem:[#allocation31_spill] sm:$0xff] %v10722_v39  ;;  %v10732_v10 = vpop.permute.xlu1 %6586  ;;  %v10735_v1 = vld [vmem:[%s10111_s30 + $0xc8] sm:$0xff] }
 0x34a   : > { %v3297_v33 = vadd.f32 %v3296_v41, %v9967_v17  ;;  %v3298_v18 = vpop.f32.mrb[190].mxu1  ;;  %v4275_v54 = vpop.f32.mrb[12].mxu0  ;;  %4543 = vmatprep.mubr.bf16.mxu0 %v3876_v13  ;;  %v10725_v3 = vpack.c.bf16 %v4847_v58, %v4845_v56  ;;  %13915 = vst [vmem:[#allocation32_spill] sm:$0xff] %v10732_v10 }
 0x34b   : > { %v3299_v51 = vadd.f32 %v3298_v18, %v9963_v14  ;;  %v4276_v28 = vadd.f32 %v4275_v54, %v10388_v22  ;;  %v3300_v50 = vpop.f32.mrb[191].mxu1  ;;  %v4277_v42 = vpop.f32.mrb[13].mxu0  ;;  %6883 = vrot.lane.b32.xlu0 %v10735_v1, %s9096_s24  ;;  %v3699_v13 = vmax.f32 %v3295_v30, 0.0 }
 0x34c   : > { %v3301_v36 = vadd.f32 %v3300_v50, %v9967_v17  ;;  %v4278_v45 = vadd.f32 %v4277_v42, %v10391_v47  ;;  %v4279_v12 = vpop.f32.mrb[14].mxu0  ;;  %v10741_v41 = vpop.permute.xlu0 %6465  ;;  %v3700_v18 = vmax.f32 %v3297_v33, 0.0  ;;  %6982 = vperm.xlu1 %8727, %v10553_v61  }
 0x34d   : > { %v3701_v0 = vmax.f32 %v3299_v51, 0.0  ;;  %v4280_v56 = vadd.f32 %v4279_v12, %v10388_v22  ;;  %v4281_v58 = vpop.f32.mrb[15].mxu0  ;;  %5445 = vmatmul.mubr.bf16.gmra.mrb[40].mxu1 %v10450_v32  ;;  %13916 = vst [vmem:[#allocation33_spill] sm:$0xff] %v10741_v41  ;;  %v4848_v10 = vmax.f32 %v4276_v28, 0.0  ;;  %v10746_v32 = vpop.permute.xlu1 %6594  ;;  %v9007_v41 = vld [vmem:[%s10111_s30 + $0xf8] sm:$0xff] }
 0x34e   : > { %v3702_v54 = vmax.f32 %v3301_v36, 0.0  ;;  %v4282_v50 = vadd.f32 %v4281_v58, %v10391_v47  ;;  %5454 = vmatprep.mubr.bf16.mxu1 %v10478_v55  ;;  %v4849_v51 = vmax.f32 %v4278_v45, 0.0  ;;  %13917 = vst [vmem:[#allocation34_spill] sm:$0xff] %v10746_v32 }
 0x34f   : > { %v3877_v42 = vpack.c.bf16 %v3701_v0, %v3699_v13  ;;  %v4850_v30 = vmax.f32 %v4280_v56, 0.0  ;;  %4544 = vmatmul.mubr.bf16.gmra.mrb[120].mxu0 %v3875_v59  ;;  %6887 = vrot.lane.b32.xlu0 %v9005_v40, %s9096_s24 }
 0x350   : > { %v4851_v12 = vmax.f32 %v4282_v50, 0.0  ;;  %v3304_v16 = vpop.f32.mrb[192].mxu1  ;;  %v3878_v39 = vpack.c.bf16 %v3702_v54, %v3700_v18  ;;  %v10753_v61 = vpop.permute.xlu0 %6475  ;;  %6990 = vperm.xlu1 %8727, %v10568_v25   ;;  %v9006_v50 = vld [vmem:[%s10111_s30 + $0xe8] sm:$0xff] }
 0x351   : > { %v10750_v33 = vpack.c.bf16 %v4850_v30, %v4848_v10  ;;  %v3305_v36 = vadd.f32 %v3304_v16, %v9963_v14  ;;  %v3306_v55 = vpop.f32.mrb[193].mxu1  ;;  %13918 = vst [vmem:[#allocation35_spill] sm:$0xff] %v10753_v61  ;;  %v10763_v54 = vpop.permute.xlu1 %6602 }
 0x352   : > { %v3307_v28 = vadd.f32 %v3306_v55, %v9967_v17  ;;  %v3308_v59 = vpop.f32.mrb[194].mxu1  ;;  %v4285_v45 = vpop.f32.mrb[16].mxu0  ;;  %4553 = vmatprep.mubr.bf16.mxu0 %v3878_v39  ;;  %v10756_v13 = vpack.c.bf16 %v4851_v12, %v4849_v51  ;;  %13919 = vst [vmem:[#allocation36_spill] sm:$0xff] %v10763_v54  ;;  %v10874_v54 = vld [vmem:[%s10111_s30 + $0x60] sm:$0xff] }
 0x353   : > { %v3309_v0 = vadd.f32 %v3308_v59, %v9963_v14  ;;  %v4286_v40 = vadd.f32 %v4285_v45, %v10388_v22  ;;  %v3310_v10 = vpop.f32.mrb[195].mxu1  ;;  %v4287_v56 = vpop.f32.mrb[17].mxu0  ;;  %6891 = vrot.lane.b32.xlu0 %v9006_v50, %s9096_s24  ;;  %v3703_v39 = vmax.f32 %v3305_v36, 0.0 }
 0x354   : > { %v3311_v16 = vadd.f32 %v3310_v10, %v9967_v17  ;;  %v4288_v58 = vadd.f32 %v4287_v56, %v10391_v47  ;;  %v4289_v18 = vpop.f32.mrb[18].mxu0  ;;  %v10769_v12 = vpop.permute.xlu0 %6485  ;;  %v3704_v55 = vmax.f32 %v3307_v28, 0.0  ;;  %6998 = vperm.xlu1 %8727, %v10589_v34  }
 0x355   : > { %v3705_v30 = vmax.f32 %v3309_v0, 0.0  ;;  %v4290_v25 = vadd.f32 %v4289_v18, %v10388_v22  ;;  %v4291_v51 = vpop.f32.mrb[19].mxu0  ;;  %5455 = vmatmul.mubr.bf16.gmra.mrb[44].mxu1 %v10474_v20  ;;  %13920 = vst [vmem:[#allocation37_spill] sm:$0xff] %v10769_v12  ;;  %v4852_v56 = vmax.f32 %v4286_v40, 0.0  ;;  %v10774_v20 = vpop.permute.xlu1 %6610  ;;  %v10804_v12 = vld [vmem:[%s10111_s30 + $0x20] sm:$0xff] }
 0x356   : > { %v3706_v59 = vmax.f32 %v3311_v16, 0.0  ;;  %v4292_v45 = vadd.f32 %v4291_v51, %v10391_v47  ;;  %5464 = vmatprep.mubr.bf16.mxu1 %v10502_v57  ;;  %v4853_v0 = vmax.f32 %v4288_v58, 0.0  ;;  %13921 = vst [vmem:[#allocation38_spill] sm:$0xff] %v10774_v20 }
 0x357   : > { %v3879_v10 = vpack.c.bf16 %v3705_v30, %v3703_v39  ;;  %v4854_v36 = vmax.f32 %v4290_v25, 0.0  ;;  %4554 = vmatmul.mubr.bf16.gmra.mrb[124].mxu0 %v3877_v42  ;;  %6895 = vrot.lane.b32.xlu0 %v9007_v41, %s9096_s24 }
 0x358   : > { %v4855_v18 = vmax.f32 %v4292_v45, 0.0  ;;  %v3314_v50 = vpop.f32.mrb[196].mxu1  ;;  %v3880_v61 = vpack.c.bf16 %v3706_v59, %v3704_v55  ;;  %v10781_v51 = vpop.permute.xlu0 %6495  ;;  %7006 = vperm.xlu1 %8727, %v10604_v7  }
 0x359   : > { %v10778_v28 = vpack.c.bf16 %v4854_v36, %v4852_v56  ;;  %v3315_v16 = vadd.f32 %v3314_v50, %v9963_v14  ;;  %v3316_v57 = vpop.f32.mrb[197].mxu1  ;;  %13922 = vst [vmem:[#allocation39_spill] sm:$0xff] %v10781_v51  ;;  %v10791_v56 = vpop.permute.xlu1 %6618 }
 0x35a   : > { %v3317_v34 = vadd.f32 %v3316_v57, %v9967_v17  ;;  %v3318_v40 = vpop.f32.mrb[198].mxu1  ;;  %v4295_v42 = vpop.f32.mrb[20].mxu0  ;;  %4563 = vmatprep.mubr.bf16.mxu0 %v3880_v61  ;;  %v10784_v58 = vpack.c.bf16 %v4855_v18, %v4853_v0  ;;  %13923 = vst [vmem:[#allocation40_spill] sm:$0xff] %v10791_v56  ;;  %v10842_v56 = vld [vmem:[%s10111_s30 + $0x40] sm:$0xff] }
 0x35b   : > { %v3319_v39 = vadd.f32 %v3318_v40, %v9963_v14  ;;  %v4296_v41 = vadd.f32 %v4295_v42, %v10388_v22  ;;  %v3320_v30 = vpop.f32.mrb[199].mxu1  ;;  %v4297_v25 = vpop.f32.mrb[21].mxu0  ;;  %6966 = vperm.xlu0 %8728, %v10513_v38   ;;  %v3707_v61 = vmax.f32 %v3315_v16, 0.0 }
 0x35c   : > { %v3321_v55 = vadd.f32 %v3320_v30, %v9967_v17  ;;  %v4298_v59 = vadd.f32 %v4297_v25, %v10391_v47  ;;  %v4299_v45 = vpop.f32.mrb[22].mxu0  ;;  %v10796_v18 = vpop.permute.xlu0 %6505  ;;  %v3708_v50 = vmax.f32 %v3317_v34, 0.0  ;;  %7014 = vperm.xlu1 %8727, %v10625_v60  }
 0x35d   : > { %v3709_v36 = vmax.f32 %v3319_v39, 0.0  ;;  %v4300_v0 = vadd.f32 %v4299_v45, %v10388_v22  ;;  %v4301_v7 = vpop.f32.mrb[23].mxu0  ;;  %5465 = vmatmul.mubr.bf16.gmra.mrb[48].mxu1 %v10498_v15  ;;  %13924 = vst [vmem:[#allocation41_spill] sm:$0xff] %v10796_v18  ;;  %v4856_v30 = vmax.f32 %v4296_v41, 0.0  ;;  %v10801_v15 = vpop.permute.xlu1 %6626 }
 0x35e   : > { %v3710_v57 = vmax.f32 %v3321_v55, 0.0  ;;  %v4302_v40 = vadd.f32 %v4301_v7, %v10391_v47  ;;  %5474 = vmatprep.mubr.bf16.mxu1 %v10536_v27  ;;  %v4857_v39 = vmax.f32 %v4298_v59, 0.0  ;;  %13925 = vst [vmem:[#allocation42_spill] sm:$0xff] %v10801_v15 }
 0x35f   : > { %v3881_v42 = vpack.c.bf16 %v3709_v36, %v3707_v61  ;;  %v4858_v16 = vmax.f32 %v4300_v0, 0.0  ;;  %4564 = vmatmul.mubr.bf16.gmra.mrb[128].mxu0 %v3879_v10  ;;  %6978 = vperm.xlu0 %8728, %v10804_v12   ;;  %v8976_v36 = vld [vmem:[%s13721_s10 + $0x48] sm:$0xff]  }
 0x360   : > { %v4859_v25 = vmax.f32 %v4302_v40, 0.0  ;;  %v3324_v45 = vpop.f32.mrb[200].mxu1  ;;  %v3882_v51 = vpack.c.bf16 %v3710_v57, %v3708_v50  ;;  %v10810_v60 = vpop.permute.xlu0 %6578  ;;  %v8977_v0 = vld [vmem:[%s13721_s10 + $0x8] sm:$0xff]   ;;  %7022 = vperm.xlu1 %8727, %v10640_v52   ;;  %8566 = vmatprep.subr.bf16.mxu0 %v8976_v36 }
 0x361   : > { %v10807_v34 = vpack.c.bf16 %v4858_v16, %v4856_v30  ;;  %v3325_v27 = vadd.f32 %v3324_v45, %v9963_v14  ;;  %v3326_v55 = vpop.f32.mrb[201].mxu1  ;;  %13926 = vst [vmem:[#allocation43_spill] sm:$0xff] %v10810_v60  ;;  %8567 = vmatpush3.bf16.msra.mxu0 %v8977_v0 }
 0x362   : > { %v3327_v41 = vadd.f32 %v3326_v55, %v9967_v17  ;;  %v3328_v10 = vpop.f32.mrb[202].mxu1  ;;  %v4305_v59 = vpop.f32.mrb[24].mxu0  ;;  %4573 = vmatprep.mubr.bf16.mxu0 %v3882_v51  ;;  %v10813_v61 = vpack.c.bf16 %v4859_v25, %v4857_v39  ;;  %v10829_v25 = vld [vmem:[%s10111_s30 + $0x30] sm:$0xff] }
 0x363   : > { %v3329_v7 = vadd.f32 %v3328_v10, %v9963_v14  ;;  %v4306_v50 = vadd.f32 %v4305_v59, %v10388_v22  ;;  %v3330_v57 = vpop.f32.mrb[203].mxu1  ;;  %v4307_v40 = vpop.f32.mrb[25].mxu0  ;;  %6986 = vperm.xlu0 %8728, %v10829_v25   ;;  %v3711_v45 = vmax.f32 %v3325_v27, 0.0 }
 0x364   : > { %v3331_v51 = vadd.f32 %v3330_v57, %v9967_v17  ;;  %v4308_v30 = vadd.f32 %v4307_v40, %v10391_v47  ;;  %v4309_v16 = vpop.f32.mrb[26].mxu0  ;;  %v10826_v39 = vpop.permute.xlu1 %6634  ;;  %v3712_v57 = vmax.f32 %v3327_v41, 0.0  ;;  %7030 = vperm.xlu1 %8727, %v10661_v43  }
 0x365   : > { %13927 = vst [vmem:[#allocation44_spill] sm:$0xff] %v10826_v39  ;;  %v3713_v52 = vmax.f32 %v3329_v7, 0.0  ;;  %v4310_v55 = vadd.f32 %v4309_v16, %v10388_v22  ;;  %v4311_v10 = vpop.f32.mrb[27].mxu0  ;;  %5475 = vmatmul.mubr.bf16.gmra.mrb[52].mxu1 %v10532_v5  ;;  %v10834_v59 = vpop.permute.xlu0 %6590  ;;  %v4860_v27 = vmax.f32 %v4306_v50, 0.0 }
 0x366   : > { %13928 = vst [vmem:[#allocation45_spill] sm:$0xff] %v10834_v59  ;;  %v3714_v40 = vmax.f32 %v3331_v51, 0.0  ;;  %v4312_v36 = vadd.f32 %v4311_v10, %v10391_v47  ;;  %5484 = vmatprep.mubr.bf16.mxu1 %v10578_v9  ;;  %v4861_v16 = vmax.f32 %v4308_v30, 0.0 }
 0x367   : > { %v3883_v18 = vpack.c.bf16 %v3713_v52, %v3711_v45  ;;  %v4862_v7 = vmax.f32 %v4310_v55, 0.0  ;;  %4574 = vmatmul.mubr.bf16.gmra.mrb[132].mxu0 %v3881_v42  ;;  %6994 = vperm.xlu0 %8728, %v10842_v56  }
 0x368   : > { %v4863_v39 = vmax.f32 %v4312_v36, 0.0  ;;  %v3334_v15 = vpop.f32.mrb[204].mxu1  ;;  %v3884_v5 = vpack.c.bf16 %v3714_v40, %v3712_v57  ;;  %v10839_v0 = vpop.permute.xlu1 %6642  ;;  %7038 = vperm.xlu1 %8727, %v10677_v6  }
 0x369   : > { %13929 = vst [vmem:[#allocation46_spill] sm:$0xff] %v10839_v0  ;;  %v10845_v41 = vpack.c.bf16 %v4862_v7, %v4860_v27  ;;  %v3335_v9 = vadd.f32 %v3334_v15, %v9963_v14  ;;  %v3336_v51 = vpop.f32.mrb[205].mxu1  ;;  %v10848_v43 = vpop.permute.xlu0 %6598  ;;  %v10861_v7 = vld [vmem:[%s10111_s30 + $0x50] sm:$0xff] }
 0x36a   : > { %13930 = vst [vmem:[#allocation47_spill] sm:$0xff] %v10848_v43  ;;  %v3337_v42 = vadd.f32 %v3336_v51, %v9967_v17  ;;  %v3338_v50 = vpop.f32.mrb[206].mxu1  ;;  %v4315_v30 = vpop.f32.mrb[28].mxu0  ;;  %4583 = vmatprep.mubr.bf16.mxu0 %v3884_v5  ;;  %v10851_v45 = vpack.c.bf16 %v4863_v39, %v4861_v16 }
 0x36b   : > { %v3339_v52 = vadd.f32 %v3338_v50, %v9963_v14  ;;  %v4316_v55 = vadd.f32 %v4315_v30, %v10388_v22  ;;  %v3340_v10 = vpop.f32.mrb[207].mxu1  ;;  %v4317_v57 = vpop.f32.mrb[29].mxu0  ;;  %7002 = vperm.xlu0 %8728, %v10861_v7   ;;  %v3715_v39 = vmax.f32 %v3335_v9, 0.0 }
 0x36c   : > { %v3341_v15 = vadd.f32 %v3340_v10, %v9967_v17  ;;  %v4318_v40 = vadd.f32 %v4317_v57, %v10391_v47  ;;  %v4319_v36 = vpop.f32.mrb[30].mxu0  ;;  %v10858_v27 = vpop.permute.xlu1 %6650  ;;  %v3716_v50 = vmax.f32 %v3337_v42, 0.0  ;;  %7046 = vperm.xlu1 %8727, %v10701_v48  }
 0x36d   : > { %13931 = vst [vmem:[#allocation48_spill] sm:$0xff] %v10858_v27  ;;  %v3717_v16 = vmax.f32 %v3339_v52, 0.0  ;;  %v4320_v6 = vadd.f32 %v4319_v36, %v10388_v22  ;;  %v4321_v5 = vpop.f32.mrb[31].mxu0  ;;  %5485 = vmatmul.mubr.bf16.gmra.mrb[56].mxu1 %v10572_v62  ;;  %v10866_v51 = vpop.permute.xlu0 %6606  ;;  %v4864_v27 = vmax.f32 %v4316_v55, 0.0 }
 0x36e   : > { %13932 = vst [vmem:[#allocation49_spill] sm:$0xff] %v10866_v51  ;;  %v3718_v30 = vmax.f32 %v3341_v15, 0.0  ;;  %v4322_v10 = vadd.f32 %v4321_v5, %v10391_v47  ;;  %5494 = vmatprep.mubr.bf16.mxu1 %v10614_v19  ;;  %v4865_v52 = vmax.f32 %v4318_v40, 0.0  ;;  %v10906_v51 = vld [vmem:[%s10111_s30 + $0x80] sm:$0xff] }
 0x36f   : > { %v3885_v57 = vpack.c.bf16 %v3717_v16, %v3715_v39  ;;  %v4866_v9 = vmax.f32 %v4320_v6, 0.0  ;;  %4584 = vmatmul.mubr.bf16.gmra.mrb[136].mxu0 %v3883_v18  ;;  %7010 = vperm.xlu0 %8728, %v10874_v54  }
 0x370   : > { %v4867_v36 = vmax.f32 %v4322_v10, 0.0  ;;  %v3344_v0 = vpop.f32.mrb[208].mxu1  ;;  %v3886_v20 = vpack.c.bf16 %v3718_v30, %v3716_v50  ;;  %v10871_v62 = vpop.permute.xlu1 %6658  ;;  %7054 = vperm.xlu1 %8727, %v10715_v8  }
 0x371   : > { %13933 = vst [vmem:[#allocation50_spill] sm:$0xff] %v10871_v62  ;;  %v10877_v42 = vpack.c.bf16 %v4866_v9, %v4864_v27  ;;  %v3345_v19 = vadd.f32 %v3344_v0, %v9963_v14  ;;  %v3346_v15 = vpop.f32.mrb[209].mxu1  ;;  %v10880_v48 = vpop.permute.xlu0 %6614  ;;  %v10893_v9 = vld [vmem:[%s10111_s30 + $0x70] sm:$0xff] }
 0x372   : > { %13934 = vst [vmem:[#allocation51_spill] sm:$0xff] %v10880_v48  ;;  %v3347_v18 = vadd.f32 %v3346_v15, %v9967_v17  ;;  %v3348_v55 = vpop.f32.mrb[210].mxu1  ;;  %v4325_v40 = vpop.f32.mrb[32].mxu0  ;;  %4593 = vmatprep.mubr.bf16.mxu0 %v3886_v20  ;;  %v10883_v39 = vpack.c.bf16 %v4867_v36, %v4865_v52 }
 0x373   : > { %v3349_v16 = vadd.f32 %v3348_v55, %v9963_v14  ;;  %v4326_v27 = vadd.f32 %v4325_v40, %v10388_v22  ;;  %v3350_v6 = vpop.f32.mrb[211].mxu1  ;;  %v4327_v5 = vpop.f32.mrb[33].mxu0  ;;  %7018 = vperm.xlu0 %8728, %v10893_v9   ;;  %v3719_v20 = vmax.f32 %v3345_v19, 0.0 }
 0x374   : > { %v3351_v0 = vadd.f32 %v3350_v6, %v9967_v17  ;;  %v4328_v50 = vadd.f32 %v4327_v5, %v10391_v47  ;;  %v4329_v30 = vpop.f32.mrb[34].mxu0  ;;  %v10890_v10 = vpop.permute.xlu1 %6666  ;;  %v3720_v55 = vmax.f32 %v3347_v18, 0.0  ;;  %7062 = vperm.xlu1 %8727, %v10735_v1  }
 0x375   : > { %13935 = vst [vmem:[#allocation52_spill] sm:$0xff] %v10890_v10  ;;  %v3721_v52 = vmax.f32 %v3349_v16, 0.0  ;;  %v4330_v8 = vadd.f32 %v4329_v30, %v10388_v22  ;;  %v4331_v36 = vpop.f32.mrb[35].mxu0  ;;  %5495 = vmatmul.mubr.bf16.gmra.mrb[60].mxu1 %v10608_v23  ;;  %v10898_v15 = vpop.permute.xlu0 %6622  ;;  %v4868_v10 = vmax.f32 %v4326_v27, 0.0 }
 0x376   : > { %13936 = vst [vmem:[#allocation53_spill] sm:$0xff] %v10898_v15  ;;  %v3722_v40 = vmax.f32 %v3351_v0, 0.0  ;;  %v4332_v6 = vadd.f32 %v4331_v36, %v10391_v47  ;;  %5504 = vmatprep.mubr.bf16.mxu1 %v10650_v37  ;;  %v4869_v16 = vmax.f32 %v4328_v50, 0.0 }
 0x377   : > { %v3887_v5 = vpack.c.bf16 %v3721_v52, %v3719_v20  ;;  %v4870_v19 = vmax.f32 %v4330_v8, 0.0  ;;  %4594 = vmatmul.mubr.bf16.gmra.mrb[140].mxu0 %v3885_v57  ;;  %7026 = vperm.xlu0 %8728, %v10906_v51   ;;  %v13769_v52 = vmov 3  }
 0x378   : > { %v4871_v30 = vmax.f32 %v4332_v6, 0.0  ;;  %v3354_v62 = vpop.f32.mrb[212].mxu1  ;;  %v3888_v48 = vpack.c.bf16 %v3722_v40, %v3720_v55  ;;  %v10903_v23 = vpop.permute.xlu1 %6674  ;;  %8730 = vset.pattern.permute.xlu1 %v13769_v52 }
 0x379   : > { %13937 = vst [vmem:[#allocation54_spill] sm:$0xff] %v10903_v23  ;;  %v10909_v18 = vpack.c.bf16 %v4870_v19, %v4868_v10  ;;  %v3355_v37 = vadd.f32 %v3354_v62, %v9963_v14  ;;  %v3356_v0 = vpop.f32.mrb[213].mxu1  ;;  %v10912_v1 = vpop.permute.xlu0 %6630  ;;  %7350 = vperm.xlu1 %8730, %v10513_v38  }
 0x37a   : > { %13938 = vst [vmem:[#allocation55_spill] sm:$0xff] %v10912_v1  ;;  %v10914_v27 = vpack.c.bf16 %v4871_v30, %v4869_v16  ;;  %v3357_v57 = vadd.f32 %v3356_v0, %v9967_v17  ;;  %v3358_v50 = vpop.f32.mrb[214].mxu1  ;;  %v4335_v20 = vpop.f32.mrb[36].mxu0  ;;  %4603 = vmatprep.mubr.bf16.mxu0 %v3888_v48  ;;  %v10926_v16 = vld [vmem:[%s10111_s30 + $0x90] sm:$0xff] }
 0x37b   : > { %v3359_v8 = vadd.f32 %v3358_v50, %v9963_v14  ;;  %v4336_v10 = vadd.f32 %v4335_v20, %v10388_v22  ;;  %v3360_v36 = vpop.f32.mrb[215].mxu1  ;;  %v4337_v62 = vpop.f32.mrb[37].mxu0  ;;  %7034 = vperm.xlu0 %8728, %v10926_v16   ;;  %v3723_v48 = vmax.f32 %v3355_v37, 0.0  ;;  %v9016_v37 = vld [vmem:[%s10111_s30 + $0x10] sm:$0xff] }
 0x37c   : > { %v3361_v55 = vadd.f32 %v3360_v36, %v9967_v17  ;;  %v4338_v40 = vadd.f32 %v4337_v62, %v10391_v47  ;;  %v4339_v6 = vpop.f32.mrb[38].mxu0  ;;  %v10923_v19 = vpop.permute.xlu1 %6682  ;;  %v3724_v20 = vmax.f32 %v3357_v57, 0.0 }
 0x37d   : > { %13939 = vst [vmem:[#allocation56_spill] sm:$0xff] %v10923_v19  ;;  %v3725_v30 = vmax.f32 %v3359_v8, 0.0  ;;  %v4340_v0 = vadd.f32 %v4339_v6, %v10388_v22  ;;  %v4341_v50 = vpop.f32.mrb[39].mxu0  ;;  %5505 = vmatmul.mubr.bf16.gmra.mrb[64].mxu1 %v10644_v2  ;;  %v10931_v38 = vpop.permute.xlu0 %6638  ;;  %v4872_v19 = vmax.f32 %v4336_v10, 0.0  ;;  %7354 = vperm.xlu1 %8730, %v9016_v37   ;;  %v10958_v37 = vld [vmem:[%s10111_s30 + $0xb0] sm:$0xff] }
 0x37e   : > { %13940 = vst [vmem:[#allocation57_spill] sm:$0xff] %v10931_v38  ;;  %v3726_v36 = vmax.f32 %v3361_v55, 0.0  ;;  %v4342_v62 = vadd.f32 %v4341_v50, %v10391_v47  ;;  %5514 = vmatprep.mubr.bf16.mxu1 %v10688_v29  ;;  %v4873_v8 = vmax.f32 %v4338_v40, 0.0  ;;  %v10939_v38 = vld [vmem:[%s10111_s30 + $0xa0] sm:$0xff] }
 0x37f   : > { %v3889_v52 = vpack.c.bf16 %v3725_v30, %v3723_v48  ;;  %v4874_v23 = vmax.f32 %v4340_v0, 0.0  ;;  %4604 = vmatmul.mubr.bf16.gmra.mrb[144].mxu0 %v3887_v5  ;;  %7042 = vperm.xlu0 %8728, %v10939_v38  }
 0x380   : > { %v4875_v6 = vmax.f32 %v4342_v62, 0.0  ;;  %v3364_v1 = vpop.f32.mrb[216].mxu1  ;;  %v3890_v15 = vpack.c.bf16 %v3726_v36, %v3724_v20  ;;  %v10936_v2 = vpop.permute.xlu1 %6690 }
 0x381   : > { %13941 = vst [vmem:[#allocation58_spill] sm:$0xff] %v10936_v2  ;;  %v10942_v57 = vpack.c.bf16 %v4874_v23, %v4872_v19  ;;  %v3365_v29 = vadd.f32 %v3364_v1, %v9963_v14  ;;  %v3366_v55 = vpop.f32.mrb[217].mxu1  ;;  %v10945_v10 = vpop.permute.xlu0 %6646  ;;  %7362 = vperm.xlu1 %8730, %v10804_v12  }
 0x382   : > { %13942 = vst [vmem:[#allocation59_spill] sm:$0xff] %v10945_v10  ;;  %v10947_v5 = vpack.c.bf16 %v4875_v6, %v4873_v8  ;;  %v3367_v40 = vadd.f32 %v3366_v55, %v9967_v17  ;;  %v3368_v48 = vpop.f32.mrb[218].mxu1  ;;  %v4345_v30 = vpop.f32.mrb[40].mxu0  ;;  %4613 = vmatprep.mubr.bf16.mxu0 %v3890_v15 }
 0x383   : > { %v3369_v0 = vadd.f32 %v3368_v48, %v9963_v14  ;;  %v4346_v50 = vadd.f32 %v4345_v30, %v10388_v22  ;;  %v3370_v20 = vpop.f32.mrb[219].mxu1  ;;  %v4347_v23 = vpop.f32.mrb[41].mxu0  ;;  %7050 = vperm.xlu0 %8728, %v10958_v37   ;;  %v3727_v15 = vmax.f32 %v3365_v29, 0.0 }
 0x384   : > { %v3371_v1 = vadd.f32 %v3370_v20, %v9967_v17  ;;  %v4348_v19 = vadd.f32 %v4347_v23, %v10391_v47  ;;  %v4349_v36 = vpop.f32.mrb[42].mxu0  ;;  %v10955_v62 = vpop.permute.xlu1 %6698  ;;  %v3728_v12 = vmax.f32 %v3367_v40, 0.0 }
 0x385   : > { %13943 = vst [vmem:[#allocation60_spill] sm:$0xff] %v10955_v62  ;;  %v3729_v8 = vmax.f32 %v3369_v0, 0.0  ;;  %v4350_v6 = vadd.f32 %v4349_v36, %v10388_v22  ;;  %v4351_v55 = vpop.f32.mrb[43].mxu0  ;;  %5515 = vmatmul.mubr.bf16.gmra.mrb[68].mxu1 %v10681_v49  ;;  %v10963_v48 = vpop.permute.xlu0 %6654  ;;  %v4876_v62 = vmax.f32 %v4346_v50, 0.0  ;;  %7370 = vperm.xlu1 %8730, %v10829_v25   ;;  %v13945_v49 = vmov 3  }
 0x386   : > { %13944 = vst [vmem:[#allocation61_spill] sm:$0xff] %v10963_v48  ;;  %v3730_v30 = vmax.f32 %v3371_v1, 0.0  ;;  %v4352_v20 = vadd.f32 %v4351_v55, %v10391_v47  ;;  %5524 = vmatprep.mubr.bf16.mxu1 %v10725_v3  ;;  %v4877_v29 = vmax.f32 %v4348_v19, 0.0 }
 0x387   : > { %v3891_v23 = vpack.c.bf16 %v3729_v8, %v3727_v15  ;;  %v4878_v2 = vmax.f32 %v4350_v6, 0.0  ;;  %4614 = vmatmul.mubr.bf16.gmra.mrb[148].mxu0 %v3889_v52  ;;  %8729 = vset.pattern.permute.xlu0 %v13945_v49 }
 0x388   : > { %v4879_v0 = vmax.f32 %v4352_v20, 0.0  ;;  %v3374_v36 = vpop.f32.mrb[220].mxu1  ;;  %v3892_v10 = vpack.c.bf16 %v3730_v30, %v3728_v12  ;;  %v10968_v43 = vpop.permute.xlu1 %6833  ;;  %7346 = vperm.xlu0 %8729, %v10691_v11  }
 0x389   : > { %v10971_v40 = vpack.c.bf16 %v4878_v2, %v4876_v62  ;;  %v3375_v1 = vadd.f32 %v3374_v36, %v9963_v14  ;;  %v3376_v55 = vpop.f32.mrb[221].mxu1  ;;  %v10974_v3 = vpop.permute.xlu0 %6662  ;;  %7378 = vperm.xlu1 %8730, %v10842_v56  }
 0x38a   : > { %13946 = vst [vmem:[#allocation62_spill] sm:$0xff] %v10974_v3  ;;  %v10977_v52 = vpack.c.bf16 %v4879_v0, %v4877_v29  ;;  %v3377_v25 = vadd.f32 %v3376_v55, %v9967_v17  ;;  %v3378_v50 = vpop.f32.mrb[222].mxu1  ;;  %v4355_v19 = vpop.f32.mrb[44].mxu0  ;;  %4623 = vmatprep.mubr.bf16.mxu0 %v3892_v10  ;;  %v10992_v55 = vld [vmem:[%s10111_s30 + $0x18] sm:$0xff] }
 0x38b   : > { %v3379_v15 = vadd.f32 %v3378_v50, %v9963_v14  ;;  %v4356_v2 = vadd.f32 %v4355_v19, %v10388_v22  ;;  %v3380_v62 = vpop.f32.mrb[223].mxu1  ;;  %v4357_v8 = vpop.f32.mrb[45].mxu0  ;;  %v3731_v20 = vmax.f32 %v3375_v1, 0.0 }
 0x38c   : > { %v3381_v6 = vadd.f32 %v3380_v62, %v9967_v17  ;;  %v4358_v11 = vadd.f32 %v4357_v8, %v10391_v47  ;;  %v4359_v12 = vpop.f32.mrb[46].mxu0  ;;  %v10985_v30 = vpop.permute.xlu1 %6837  ;;  %7358 = vperm.xlu0 %8729, %v10992_v55   ;;  %v3732_v56 = vmax.f32 %v3377_v25, 0.0 }
 0x38d   : > { %v3733_v29 = vmax.f32 %v3379_v15, 0.0  ;;  %v4360_v10 = vadd.f32 %v4359_v12, %v10388_v22  ;;  %v4361_v0 = vpop.f32.mrb[47].mxu0  ;;  %5525 = vmatmul.mubr.bf16.gmra.mrb[72].mxu1 %v10719_v4  ;;  %v10989_v36 = vpop.permute.xlu0 %6670  ;;  %v4880_v15 = vmax.f32 %v4356_v2, 0.0  ;;  %7386 = vperm.xlu1 %8730, %v10861_v7  }
 0x38e   : > { %13947 = vst [vmem:[#allocation63_spill] sm:$0xff] %v10989_v36  ;;  %v3734_v50 = vmax.f32 %v3381_v6, 0.0  ;;  %v4362_v19 = vadd.f32 %v4361_v0, %v10391_v47  ;;  %5534 = vmatprep.mubr.bf16.mxu1 %v10756_v13  ;;  %v4881_v4 = vmax.f32 %v4358_v11, 0.0  ;;  %v11006_v13 = vld [vmem:[%s10111_s30 + $0x28] sm:$0xff] }
 0x38f   : > { %v3893_v1 = vpack.c.bf16 %v3733_v29, %v3731_v20  ;;  %v4882_v62 = vmax.f32 %v4360_v10, 0.0  ;;  %4624 = vmatmul.mubr.bf16.gmra.mrb[152].mxu0 %v3891_v23 }
 0x390   : > { %v4883_v8 = vmax.f32 %v4362_v19, 0.0  ;;  %v3384_v12 = vpop.f32.mrb[224].mxu1  ;;  %v3894_v36 = vpack.c.bf16 %v3734_v50, %v3732_v56  ;;  %v10998_v3 = vpop.permute.xlu1 %6841  ;;  %7366 = vperm.xlu0 %8729, %v11006_v13  }
 0x391   : > { %13948 = vst [vmem:[#allocation64_spill] sm:$0xff] %v10998_v3  ;;  %v11000_v48 = vpack.c.bf16 %v4882_v62, %v4880_v15  ;;  %v3385_v25 = vadd.f32 %v3384_v12, %v9963_v14  ;;  %v3386_v6 = vpop.f32.mrb[225].mxu1  ;;  %v11003_v0 = vpop.permute.xlu0 %6678  ;;  %7394 = vperm.xlu1 %8730, %v10874_v54  }
 0x392   : > { %13949 = vst [vmem:[#allocation65_spill] sm:$0xff] %v11003_v0  ;;  %v11009_v23 = vpack.c.bf16 %v4883_v8, %v4881_v4  ;;  %v3387_v7 = vadd.f32 %v3386_v6, %v9967_v17  ;;  %v3388_v2 = vpop.f32.mrb[226].mxu1  ;;  %v4365_v11 = vpop.f32.mrb[48].mxu0  ;;  %4633 = vmatprep.mubr.bf16.mxu0 %v3894_v36 }
 0x393   : > { %v3389_v20 = vadd.f32 %v3388_v2, %v9963_v14  ;;  %v4366_v29 = vadd.f32 %v4365_v11, %v10388_v22  ;;  %v3390_v10 = vpop.f32.mrb[227].mxu1  ;;  %v4367_v56 = vpop.f32.mrb[49].mxu0  ;;  %v3735_v4 = vmax.f32 %v3385_v25, 0.0  ;;  %v11024_v2 = vld [vmem:[%s10111_s30 + $0x38] sm:$0xff] }
 0x394   : > { %v3391_v50 = vadd.f32 %v3390_v10, %v9967_v17  ;;  %v4368_v19 = vadd.f32 %v4367_v56, %v10391_v47  ;;  %v4369_v15 = vpop.f32.mrb[50].mxu0  ;;  %v11017_v62 = vpop.permute.xlu1 %6845  ;;  %7374 = vperm.xlu0 %8729, %v11024_v2   ;;  %v3736_v54 = vmax.f32 %v3387_v7, 0.0 }
 0x395   : > { %13950 = vst [vmem:[#allocation66_spill] sm:$0xff] %v11017_v62  ;;  %v3737_v8 = vmax.f32 %v3389_v20, 0.0  ;;  %v4370_v36 = vadd.f32 %v4369_v15, %v10388_v22  ;;  %v4371_v12 = vpop.f32.mrb[51].mxu0  ;;  %5535 = vmatmul.mubr.bf16.gmra.mrb[76].mxu1 %v10750_v33  ;;  %v11021_v6 = vpop.permute.xlu0 %6686  ;;  %v4884_v20 = vmax.f32 %v4366_v29, 0.0  ;;  %7402 = vperm.xlu1 %8730, %v10893_v9   ;;  %v11203_v62 = vld [vmem:[%s10111_s30 + $0xe8] sm:$0xff] }
 0x396   : > { %13951 = vst [vmem:[#allocation67_spill] sm:$0xff] %v11021_v6  ;;  %v3738_v11 = vmax.f32 %v3391_v50, 0.0  ;;  %v4372_v10 = vadd.f32 %v4371_v12, %v10391_v47  ;;  %5544 = vmatprep.mubr.bf16.mxu1 %v10784_v58  ;;  %v4885_v33 = vmax.f32 %v4368_v19, 0.0  ;;  %v11038_v58 = vld [vmem:[%s10111_s30 + $0x48] sm:$0xff] }
 0x397   : > { %v3895_v25 = vpack.c.bf16 %v3737_v8, %v3735_v4  ;;  %v4886_v56 = vmax.f32 %v4370_v36, 0.0  ;;  %4634 = vmatmul.mubr.bf16.gmra.mrb[156].mxu0 %v3893_v1 }
 0x398   : > { %v4887_v15 = vmax.f32 %v4372_v10, 0.0  ;;  %v3394_v6 = vpop.f32.mrb[228].mxu1  ;;  %v3896_v0 = vpack.c.bf16 %v3738_v11, %v3736_v54  ;;  %v11030_v32 = vpop.permute.xlu1 %6849  ;;  %7382 = vperm.xlu0 %8729, %v11038_v58  }
 0x399   : > { %13952 = vst [vmem:[#allocation68_spill] sm:$0xff] %v11030_v32  ;;  %v11032_v59 = vpack.c.bf16 %v4886_v56, %v4884_v20  ;;  %v3395_v7 = vadd.f32 %v3394_v6, %v9963_v14  ;;  %v3396_v50 = vpop.f32.mrb[229].mxu1  ;;  %v11035_v12 = vpop.permute.xlu0 %6694  ;;  %7410 = vperm.xlu1 %8730, %v10906_v51  }
 0x39a   : > { %13953 = vst [vmem:[#allocation69_spill] sm:$0xff] %v11035_v12  ;;  %v11041_v1 = vpack.c.bf16 %v4887_v15, %v4885_v33  ;;  %v3397_v9 = vadd.f32 %v3396_v50, %v9967_v17  ;;  %v3398_v29 = vpop.f32.mrb[230].mxu1  ;;  %v4375_v19 = vpop.f32.mrb[52].mxu0  ;;  %4643 = vmatprep.mubr.bf16.mxu0 %v3896_v0 }
 0x39b   : > { %v3399_v4 = vadd.f32 %v3398_v29, %v9963_v14  ;;  %v4376_v8 = vadd.f32 %v4375_v19, %v10388_v22  ;;  %v3400_v36 = vpop.f32.mrb[231].mxu1  ;;  %v4377_v6 = vpop.f32.mrb[53].mxu0  ;;  %v3739_v56 = vmax.f32 %v3395_v7, 0.0  ;;  %v11056_v29 = vld [vmem:[%s10111_s30 + $0x58] sm:$0xff] }
 0x39c   : > { %v3401_v54 = vadd.f32 %v3400_v36, %v9967_v17  ;;  %v4378_v11 = vadd.f32 %v4377_v6, %v10391_v47  ;;  %v4379_v10 = vpop.f32.mrb[54].mxu0  ;;  %v11049_v20 = vpop.permute.xlu1 %6853  ;;  %7390 = vperm.xlu0 %8729, %v11056_v29   ;;  %v3740_v51 = vmax.f32 %v3397_v9, 0.0 }
 0x39d   : > { %13954 = vst [vmem:[#allocation70_spill] sm:$0xff] %v11049_v20  ;;  %v3741_v33 = vmax.f32 %v3399_v4, 0.0  ;;  %v4380_v0 = vadd.f32 %v4379_v10, %v10388_v22  ;;  %v4381_v15 = vpop.f32.mrb[55].mxu0  ;;  %5545 = vmatmul.mubr.bf16.gmra.mrb[80].mxu1 %v10778_v28  ;;  %v11053_v50 = vpop.permute.xlu0 %6702  ;;  %v4888_v4 = vmax.f32 %v4376_v8, 0.0  ;;  %7418 = vperm.xlu1 %8730, %v10926_v16  }
 0x39e   : > { %13955 = vst [vmem:[#allocation71_spill] sm:$0xff] %v11053_v50  ;;  %v3742_v19 = vmax.f32 %v3401_v54, 0.0  ;;  %v4382_v36 = vadd.f32 %v4381_v15, %v10391_v47  ;;  %5554 = vmatprep.mubr.bf16.mxu1 %v10813_v61  ;;  %v4889_v28 = vmax.f32 %v4378_v11, 0.0  ;;  %v11070_v61 = vld [vmem:[%s10111_s30 + $0x68] sm:$0xff] }
 0x39f   : > { %v3897_v7 = vpack.c.bf16 %v3741_v33, %v3739_v56  ;;  %v4890_v6 = vmax.f32 %v4380_v0, 0.0  ;;  %4644 = vmatmul.mubr.bf16.gmra.mrb[160].mxu0 %v3895_v25  ;;  %v8978_v56 = vld [vmem:[%s13721_s10 + $0x50] sm:$0xff]  }
 0x3a0   : > { %v4891_v10 = vmax.f32 %v4382_v36, 0.0  ;;  %v3404_v50 = vpop.f32.mrb[232].mxu1  ;;  %v3898_v12 = vpack.c.bf16 %v3742_v19, %v3740_v51  ;;  %v11062_v60 = vpop.permute.xlu1 %6857  ;;  %7398 = vperm.xlu0 %8729, %v11070_v61   ;;  %v8979_v33 = vld [vmem:[%s13721_s10 + $0x10] sm:$0xff]   ;;  %8568 = vmatprep.subr.bf16.mxu0 %v8978_v56 }
 0x3a1   : > { %13956 = vst [vmem:[#allocation72_spill] sm:$0xff] %v11062_v60  ;;  %v11064_v53 = vpack.c.bf16 %v4890_v6, %v4888_v4  ;;  %v3405_v9 = vadd.f32 %v3404_v50, %v9963_v14  ;;  %v3406_v54 = vpop.f32.mrb[233].mxu1  ;;  %v11067_v15 = vpop.permute.xlu0 %6835  ;;  %7426 = vperm.xlu1 %8730, %v10939_v38   ;;  %8569 = vmatpush3.bf16.msra.mxu0 %v8979_v33 }
 0x3a2   : > { %13957 = vst [vmem:[#allocation73_spill] sm:$0xff] %v11067_v15  ;;  %v11073_v25 = vpack.c.bf16 %v4891_v10, %v4889_v28  ;;  %v3407_v16 = vadd.f32 %v3406_v54, %v9967_v17  ;;  %v3408_v8 = vpop.f32.mrb[234].mxu1  ;;  %v4385_v11 = vpop.f32.mrb[56].mxu0  ;;  %4653 = vmatprep.mubr.bf16.mxu0 %v3898_v12 }
 0x3a3   : > { %v3409_v0 = vadd.f32 %v3408_v8, %v9963_v14  ;;  %v4386_v50 = vadd.f32 %v4385_v11, %v10388_v22  ;;  %v3410_v51 = vpop.f32.mrb[235].mxu1  ;;  %v4387_v19 = vpop.f32.mrb[57].mxu0  ;;  %v3743_v28 = vmax.f32 %v3405_v9, 0.0 }
 0x3a4   : > { %v3411_v36 = vadd.f32 %v3410_v51, %v9967_v17  ;;  %v4388_v12 = vadd.f32 %v4387_v19, %v10391_v47  ;;  %v4389_v4 = vpop.f32.mrb[58].mxu0  ;;  %v11087_v6 = vpop.permute.xlu1 %6861  ;;  %v3744_v38 = vmax.f32 %v3407_v16, 0.0  ;;  %v11096_v19 = vld [vmem:[%s10111_s30 + $0x78] sm:$0xff] }
 0x3a5   : > { %13958 = vst [vmem:[#allocation74_spill] sm:$0xff] %v11087_v6  ;;  %v3745_v10 = vmax.f32 %v3409_v0, 0.0  ;;  %v4390_v54 = vadd.f32 %v4389_v4, %v10388_v22  ;;  %v4391_v8 = vpop.f32.mrb[59].mxu0  ;;  %5555 = vmatmul.mubr.bf16.gmra.mrb[84].mxu1 %v10807_v34  ;;  %v11091_v11 = vpop.permute.xlu0 %6839  ;;  %7406 = vperm.xlu0 %8729, %v11096_v19   ;;  %v4892_v56 = vmax.f32 %v4386_v50, 0.0 }
 0x3a6   : > { %13959 = vst [vmem:[#allocation75_spill] sm:$0xff] %v11091_v11  ;;  %v3746_v31 = vmax.f32 %v3411_v36, 0.0  ;;  %v4392_v51 = vadd.f32 %v4391_v8, %v10391_v47  ;;  %5564 = vmatprep.mubr.bf16.mxu1 %v10851_v45  ;;  %7434 = vperm.xlu1 %8730, %v10958_v37   ;;  %v4893_v34 = vmax.f32 %v4388_v12, 0.0 }
 0x3a7   : > { %v3899_v9 = vpack.c.bf16 %v3745_v10, %v3743_v28  ;;  %v4894_v0 = vmax.f32 %v4390_v54, 0.0  ;;  %4654 = vmatmul.mubr.bf16.gmra.mrb[164].mxu0 %v3897_v7 }
 0x3a8   : > { %v4895_v33 = vmax.f32 %v4392_v51, 0.0  ;;  %v3414_v4 = vpop.f32.mrb[236].mxu1  ;;  %v3900_v16 = vpack.c.bf16 %v3746_v31, %v3744_v38  ;;  %v11100_v36 = vpop.permute.xlu1 %6865  ;;  %v11113_v38 = vld [vmem:[%s10111_s30 + $0x88] sm:$0xff]  ;;  %v11117_v51 = vld [vmem:[%s10111_s30 + $0xc0] sm:$0xff] }
 0x3a9   : > { %13960 = vst [vmem:[#allocation76_spill] sm:$0xff] %v11100_v36  ;;  %v11102_v8 = vpack.c.bf16 %v4894_v0, %v4892_v56  ;;  %v3415_v45 = vadd.f32 %v3414_v4, %v9963_v14  ;;  %v3416_v35 = vpop.f32.mrb[237].mxu1  ;;  %v11105_v63 = vpop.permute.xlu0 %6843  ;;  %7414 = vperm.xlu0 %8729, %v11113_v38  }
 0x3aa   : > { %13961 = vst [vmem:[#allocation77_spill] sm:$0xff] %v11105_v63  ;;  %v11107_v50 = vpack.c.bf16 %v4895_v33, %v4893_v34  ;;  %v3417_v7 = vadd.f32 %v3416_v35, %v9967_v17  ;;  %v3418_v37 = vpop.f32.mrb[238].mxu1  ;;  %v4395_v12 = vpop.f32.mrb[60].mxu0  ;;  %4663 = vmatprep.mubr.bf16.mxu0 %v3900_v16  ;;  %7442 = vperm.xlu1 %8730, %v11117_v51  }
 0x3ab   : > { %v3419_v28 = vadd.f32 %v3418_v37, %v9963_v14  ;;  %v4396_v31 = vadd.f32 %v4395_v12, %v10388_v22  ;;  %v3420_v10 = vpop.f32.mrb[239].mxu1  ;;  %v4397_v54 = vpop.f32.mrb[61].mxu0  ;;  %v3747_v33 = vmax.f32 %v3415_v45, 0.0  ;;  %v11131_v45 = vld [vmem:[%s10111_s30 + $0x98] sm:$0xff] }
 0x3ac   : > { %v3421_v56 = vadd.f32 %v3420_v10, %v9967_v17  ;;  %v4398_v35 = vadd.f32 %v4397_v54, %v10391_v47  ;;  %v4399_v0 = vpop.f32.mrb[62].mxu0  ;;  %v11122_v34 = vpop.permute.xlu1 %6869  ;;  %v3748_v24 = vmax.f32 %v3417_v7, 0.0 }
 0x3ad   : > { %13962 = vst [vmem:[#allocation78_spill] sm:$0xff] %v11122_v34  ;;  %v3749_v4 = vmax.f32 %v3419_v28, 0.0  ;;  %v4400_v16 = vadd.f32 %v4399_v0, %v10388_v22  ;;  %v4401_v37 = vpop.f32.mrb[63].mxu0  ;;  %5565 = vmatmul.mubr.bf16.gmra.mrb[88].mxu1 %v10845_v41  ;;  %v11126_v12 = vpop.permute.xlu0 %6847  ;;  %v4896_v54 = vmax.f32 %v4396_v31, 0.0  ;;  %7422 = vperm.xlu0 %8729, %v11131_v45  }
 0x3ae   : > { %13963 = vst [vmem:[#allocation79_spill] sm:$0xff] %v11126_v12  ;;  %v3750_v21 = vmax.f32 %v3421_v56, 0.0  ;;  %v4402_v26 = vadd.f32 %v4401_v37, %v10391_v47  ;;  %5574 = vmatprep.mubr.bf16.mxu1 %v10883_v39  ;;  %v4897_v28 = vmax.f32 %v4398_v35, 0.0  ;;  %v13964_v12 = vmov 2  }
 0x3af   : > { %v3901_v10 = vpack.c.bf16 %v3749_v4, %v3747_v33  ;;  %v4898_v63 = vmax.f32 %v4400_v16, 0.0  ;;  %4664 = vmatmul.mubr.bf16.gmra.mrb[168].mxu0 %v3899_v9  ;;  %8732 = vset.pattern.permute.xlu1 %v13964_v12  ;;  %v11141_v33 = vld [vmem:[%s10111_s30 + $0xd0] sm:$0xff] }
 0x3b0   : > { %v4899_v0 = vmax.f32 %v4402_v26, 0.0  ;;  %v3424_v41 = vpop.f32.mrb[240].mxu1  ;;  %v3902_v34 = vpack.c.bf16 %v3750_v21, %v3748_v24  ;;  %v11135_v7 = vpop.permute.xlu1 %6873  ;;  %7066 = vperm.xlu1 %8732, %v11141_v33  }
 0x3b1   : > { %13965 = vst [vmem:[#allocation80_spill] sm:$0xff] %v11135_v7  ;;  %v11137_v56 = vpack.c.bf16 %v4898_v63, %v4896_v54  ;;  %v3425_v39 = vadd.f32 %v3424_v41, %v9963_v14  ;;  %v3426_v31 = vpop.f32.mrb[241].mxu1  ;;  %v11144_v9 = vpop.permute.xlu0 %6851  ;;  %v11152_v54 = vld [vmem:[%s10111_s30 + $0xa8] sm:$0xff] }
 0x3b2   : > { %13966 = vst [vmem:[#allocation81_spill] sm:$0xff] %v11144_v9  ;;  %v11146_v35 = vpack.c.bf16 %v4899_v0, %v4897_v28  ;;  %v3427_v24 = vadd.f32 %v3426_v31, %v9967_v17  ;;  %v3428_v26 = vpop.f32.mrb[242].mxu1  ;;  %v4405_v21 = vpop.f32.mrb[64].mxu0  ;;  %4673 = vmatprep.mubr.bf16.mxu0 %v3902_v34  ;;  %7430 = vperm.xlu0 %8729, %v11152_v54  }
 0x3b3   : > { %v3429_v4 = vadd.f32 %v3428_v26, %v9963_v14  ;;  %v4406_v63 = vadd.f32 %v4405_v21, %v10388_v22  ;;  %v3430_v16 = vpop.f32.mrb[243].mxu1  ;;  %v4407_v37 = vpop.f32.mrb[65].mxu0  ;;  %v3751_v31 = vmax.f32 %v3425_v39, 0.0 }
 0x3b4   : > { %v3431_v41 = vadd.f32 %v3430_v16, %v9967_v17  ;;  %v4408_v28 = vadd.f32 %v4407_v37, %v10391_v47  ;;  %v4409_v0 = vpop.f32.mrb[66].mxu0  ;;  %v11157_v9 = vpop.permute.xlu1 %6877  ;;  %8733 = vset.pattern.permute.xlu1 %v13945_v49  ;;  %v3752_v36 = vmax.f32 %v3427_v24, 0.0 }
 0x3b5   : > { %13967 = vst [vmem:[#allocation82_spill] sm:$0xff] %v11157_v9  ;;  %v3753_v34 = vmax.f32 %v3429_v4, 0.0  ;;  %v4410_v26 = vadd.f32 %v4409_v0, %v10388_v22  ;;  %v4411_v7 = vpop.f32.mrb[67].mxu0  ;;  %5575 = vmatmul.mubr.bf16.gmra.mrb[92].mxu1 %v10877_v42  ;;  %v11162_v21 = vpop.permute.xlu0 %6855  ;;  %7450 = vperm.xlu1 %8733, %v11141_v33   ;;  %v4900_v37 = vmax.f32 %v4406_v63, 0.0  ;;  %v11168_v0 = vld [vmem:[%s10111_s30 + $0xb8] sm:$0xff] }
 0x3b6   : > { %13968 = vst [vmem:[#allocation83_spill] sm:$0xff] %v11162_v21  ;;  %v3754_v11 = vmax.f32 %v3431_v41, 0.0  ;;  %v4412_v16 = vadd.f32 %v4411_v7, %v10391_v47  ;;  %5584 = vmatprep.mubr.bf16.mxu1 %v10914_v27  ;;  %7438 = vperm.xlu0 %8729, %v11168_v0   ;;  %v4901_v42 = vmax.f32 %v4408_v28, 0.0 }
 0x3b7   : > { %v3903_v39 = vpack.c.bf16 %v3753_v34, %v3751_v31  ;;  %v4902_v4 = vmax.f32 %v4410_v26, 0.0  ;;  %4674 = vmatmul.mubr.bf16.gmra.mrb[172].mxu0 %v3901_v10 }
 0x3b8   : > { %v4903_v9 = vmax.f32 %v4412_v16, 0.0  ;;  %v3434_v6 = vpop.f32.mrb[244].mxu1  ;;  %v3904_v24 = vpack.c.bf16 %v3754_v11, %v3752_v36  ;;  %v11171_v41 = vpop.permute.xlu1 %6881 }
 0x3b9   : > { %13969 = vst [vmem:[#allocation84_spill] sm:$0xff] %v11171_v41  ;;  %v11173_v7 = vpack.c.bf16 %v4902_v4, %v4900_v37  ;;  %v3435_v27 = vadd.f32 %v3434_v6, %v9963_v14  ;;  %v3436_v31 = vpop.f32.mrb[245].mxu1  ;;  %v11176_v63 = vpop.permute.xlu0 %6859  ;;  %v11184_v37 = vld [vmem:[%s10111_s30 + $0xd8] sm:$0xff]  ;;  %v11188_v6 = vld [vmem:[%s10111_s30 + $0xc8] sm:$0xff] }
 0x3ba   : > { %13970 = vst [vmem:[#allocation85_spill] sm:$0xff] %v11176_v63  ;;  %v11178_v10 = vpack.c.bf16 %v4903_v9, %v4901_v42  ;;  %v3437_v34 = vadd.f32 %v3436_v31, %v9967_v17  ;;  %v3438_v26 = vpop.f32.mrb[246].mxu1  ;;  %v4415_v28 = vpop.f32.mrb[68].mxu0  ;;  %4683 = vmatprep.mubr.bf16.mxu0 %v3904_v24  ;;  %7454 = vperm.xlu1 %8733, %v11184_v37  }
 0x3bb   : > { %v3439_v16 = vadd.f32 %v3438_v26, %v9963_v14  ;;  %v4416_v11 = vadd.f32 %v4415_v28, %v10388_v22  ;;  %v3440_v36 = vpop.f32.mrb[247].mxu1  ;;  %v4417_v41 = vpop.f32.mrb[69].mxu0  ;;  %7446 = vperm.xlu0 %8729, %v11188_v6   ;;  %v3755_v31 = vmax.f32 %v3435_v27, 0.0 }
 0x3bc   : > { %v3441_v9 = vadd.f32 %v3440_v36, %v9967_v17  ;;  %v4418_v4 = vadd.f32 %v4417_v41, %v10391_v47  ;;  %v4419_v42 = vpop.f32.mrb[70].mxu0  ;;  %v11193_v24 = vpop.permute.xlu1 %6885  ;;  %v3756_v15 = vmax.f32 %v3437_v34, 0.0 }
 0x3bd   : > { %13971 = vst [vmem:[#allocation86_spill] sm:$0xff] %v11193_v24  ;;  %v3757_v26 = vmax.f32 %v3439_v16, 0.0  ;;  %v4420_v28 = vadd.f32 %v4419_v42, %v10388_v22  ;;  %v4421_v63 = vpop.f32.mrb[71].mxu0  ;;  %5585 = vmatmul.mubr.bf16.gmra.mrb[96].mxu1 %v10909_v18  ;;  %v11197_v21 = vpop.permute.xlu0 %6863  ;;  %v4904_v36 = vmax.f32 %v4416_v11, 0.0 }
 0x3be   : > { %13972 = vst [vmem:[#allocation87_spill] sm:$0xff] %v11197_v21  ;;  %v3758_v60 = vmax.f32 %v3441_v9, 0.0  ;;  %v4422_v20 = vadd.f32 %v4421_v63, %v10391_v47  ;;  %5594 = vmatprep.mubr.bf16.mxu1 %v10947_v5  ;;  %8734 = vset.pattern.permute.xlu1 %v13964_v12  ;;  %v4905_v27 = vmax.f32 %v4418_v4, 0.0 }
 0x3bf   : > { %v3905_v41 = vpack.c.bf16 %v3757_v26, %v3755_v31  ;;  %v4906_v32 = vmax.f32 %v4420_v28, 0.0  ;;  %4684 = vmatmul.mubr.bf16.gmra.mrb[176].mxu0 %v3903_v39  ;;  %7078 = vperm.xlu1 %8734, %v11203_v62  }
 0x3c0   : > { %v4907_v16 = vmax.f32 %v4422_v20, 0.0  ;;  %v3444_v42 = vpop.f32.mrb[248].mxu1  ;;  %v3906_v24 = vpack.c.bf16 %v3758_v60, %v3756_v15  ;;  %8731 = vset.pattern.permute.xlu0 %v13964_v12  ;;  %v11207_v18 = vpop.permute.xlu1 %6889 }
 0x3c1   : > { %13973 = vst [vmem:[#allocation88_spill] sm:$0xff] %v11207_v18  ;;  %v11209_v63 = vpack.c.bf16 %v4906_v32, %v4904_v36  ;;  %v3445_v5 = vadd.f32 %v3444_v42, %v9963_v14  ;;  %v3446_v34 = vpop.f32.mrb[249].mxu1  ;;  %7058 = vperm.xlu0 %8731, %v11117_v51   ;;  %v11213_v39 = vpop.permute.xlu0 %6867 }
 0x3c2   : > { %13974 = vst [vmem:[#allocation89_spill] sm:$0xff] %v11213_v39  ;;  %v11215_v20 = vpack.c.bf16 %v4907_v16, %v4905_v27  ;;  %v3447_v60 = vadd.f32 %v3446_v34, %v9967_v17  ;;  %v3448_v15 = vpop.f32.mrb[250].mxu1  ;;  %v4425_v11 = vpop.f32.mrb[72].mxu0  ;;  %4693 = vmatprep.mubr.bf16.mxu0 %v3906_v24 }
 0x3c3   : > { %v3449_v9 = vadd.f32 %v3448_v15, %v9963_v14  ;;  %v4426_v4 = vadd.f32 %v4425_v11, %v10388_v22  ;;  %v3450_v32 = vpop.f32.mrb[251].mxu1  ;;  %v4427_v31 = vpop.f32.mrb[73].mxu0  ;;  %8736 = vset.pattern.permute.xlu1 %v13945_v49  ;;  %v3759_v27 = vmax.f32 %v3445_v5, 0.0 }
 0x3c4   : > { %v3451_v26 = vadd.f32 %v3450_v32, %v9967_v17  ;;  %v4428_v28 = vadd.f32 %v4427_v31, %v10391_v47  ;;  %v4429_v51 = vpop.f32.mrb[74].mxu0  ;;  %v11223_v36 = vpop.permute.xlu1 %6893  ;;  %7462 = vperm.xlu1 %8736, %v11203_v62   ;;  %v3760_v15 = vmax.f32 %v3447_v60, 0.0 }
 0x3c5   : > { %13975 = vst [vmem:[#allocation90_spill] sm:$0xff] %v11223_v36  ;;  %v3761_v16 = vmax.f32 %v3449_v9, 0.0  ;;  %v4430_v42 = vadd.f32 %v4429_v51, %v10388_v22  ;;  %v4431_v24 = vpop.f32.mrb[75].mxu0  ;;  %5595 = vmatmul.mubr.bf16.gmra.mrb[100].mxu1 %v10942_v57  ;;  %v11228_v34 = vpop.permute.xlu0 %6871  ;;  %7070 = vperm.xlu0 %8731, %v11184_v37   ;;  %v4908_v5 = vmax.f32 %v4426_v4, 0.0 }
 0x3c6   : > { %13976 = vst [vmem:[#allocation91_spill] sm:$0xff] %v11228_v34  ;;  %v3762_v11 = vmax.f32 %v3451_v26, 0.0  ;;  %v4432_v32 = vadd.f32 %v4431_v24, %v10391_v47  ;;  %5604 = vmatprep.mubr.bf16.mxu1 %v10977_v52  ;;  %v4909_v51 = vmax.f32 %v4428_v28, 0.0 }
 0x3c7   : > { %v3907_v31 = vpack.c.bf16 %v3761_v16, %v3759_v27  ;;  %v4910_v9 = vmax.f32 %v4430_v42, 0.0  ;;  %4694 = vmatmul.mubr.bf16.gmra.mrb[180].mxu0 %v3905_v41  ;;  %v11245_v16 = vld [vmem:[%s10111_s30 + $0xe0] sm:$0xff] }
 0x3c8   : > { %v4911_v36 = vmax.f32 %v4432_v32, 0.0  ;;  %v3454_v57 = vpop.f32.mrb[252].mxu1  ;;  %v3908_v39 = vpack.c.bf16 %v3762_v11, %v3760_v15  ;;  %v11233_v18 = vpop.permute.xlu1 %6962  ;;  %8737 = vset.pattern.permute.xlu1 %v13964_v12  ;;  %v11251_v32 = vld [vmem:[%s10111_s30 + $0xf0] sm:$0xff] }
 0x3c9   : > { %13977 = vst [vmem:[#allocation92_spill] sm:$0xff] %v11233_v18  ;;  %v11235_v34 = vpack.c.bf16 %v4910_v9, %v4908_v5  ;;  %v3455_v60 = vadd.f32 %v3454_v57, %v9963_v14  ;;  %v3456_v26 = vpop.f32.mrb[253].mxu1  ;;  %v11239_v52 = vpop.permute.xlu0 %6875  ;;  %7074 = vperm.xlu0 %8731, %v11245_v16   ;;  %7082 = vperm.xlu1 %8737, %v11251_v32  }
 0x3ca   : > { %13978 = vst [vmem:[#allocation93_spill] sm:$0xff] %v11239_v52  ;;  %v11241_v4 = vpack.c.bf16 %v4911_v36, %v4909_v51  ;;  %v3457_v41 = vadd.f32 %v3456_v26, %v9967_v17  ;;  %v3458_v28 = vpop.f32.mrb[254].mxu1  ;;  %v4435_v27 = vpop.f32.mrb[76].mxu0  ;;  %4703 = vmatprep.mubr.bf16.mxu0 %v3908_v39 }
 0x3cb   : > { %v3459_v42 = vadd.f32 %v3458_v28, %v9963_v14  ;;  %v4436_v24 = vadd.f32 %v4435_v27, %v10388_v22  ;;  %v3460_v15 = vpop.f32.mrb[255].mxu1  ;;  %v4437_v11 = vpop.f32.mrb[77].mxu0  ;;  %v3763_v51 = vmax.f32 %v3455_v60, 0.0 }
 0x3cc   : > { %v3461_v36 = vadd.f32 %v3460_v15, %v9967_v17  ;;  %v4438_v5 = vadd.f32 %v4437_v11, %v10391_v47  ;;  %v4439_v9 = vpop.f32.mrb[78].mxu0  ;;  %v11256_v39 = vpop.permute.xlu1 %6970  ;;  %v3764_v18 = vmax.f32 %v3457_v41, 0.0 }
 0x3cd   : > { %13979 = vst [vmem:[#allocation94_spill] sm:$0xff] %v11256_v39  ;;  %v3765_v57 = vmax.f32 %v3459_v42, 0.0  ;;  %v4440_v26 = vadd.f32 %v4439_v9, %v10388_v22  ;;  %v4441_v28 = vpop.f32.mrb[79].mxu0  ;;  %5605 = vmatmul.mubr.bf16.gmra.mrb[104].mxu1 %v10971_v40  ;;  %v11260_v27 = vpop.permute.xlu0 %6879  ;;  %8735 = vset.pattern.permute.xlu0 %v13945_v49  ;;  %v4912_v11 = vmax.f32 %v4436_v24, 0.0 }
 0x3ce   : > { %13980 = vst [vmem:[#allocation95_spill] sm:$0xff] %v11260_v27  ;;  %v3766_v52 = vmax.f32 %v3461_v36, 0.0  ;;  %v4442_v21 = vadd.f32 %v4441_v28, %v10391_v47  ;;  %5614 = vmatprep.mubr.bf16.mxu1 %v11009_v23  ;;  %8739 = vset.pattern.permute.xlu1 %v13945_v49  ;;  %v4913_v60 = vmax.f32 %v4438_v5, 0.0 }
 0x3cf   : > { %v3909_v15 = vpack.c.bf16 %v3765_v57, %v3763_v51  ;;  %v4914_v39 = vmax.f32 %v4440_v26, 0.0  ;;  %4704 = vmatmul.mubr.bf16.gmra.mrb[184].mxu0 %v3907_v31  ;;  %7458 = vperm.xlu0 %8735, %v11245_v16  }
 0x3d0   : > { %v4915_v42 = vmax.f32 %v4442_v21, 0.0  ;;  %v3464_v9 = vpop.f32.mrb[0].mxu1  ;;  %v3910_v40 = vpack.c.bf16 %v3766_v52, %v3764_v18  ;;  %7466 = vperm.xlu1 %8739, %v11251_v32   ;;  %v11268_v41 = vpop.permute.xlu1 %6974 }
 0x3d1   : > { %13981 = vst [vmem:[#allocation96_spill] sm:$0xff] %v11268_v41  ;;  %v11270_v36 = vpack.c.bf16 %v4914_v39, %v4912_v11  ;;  %v3465_v23 = vadd.f32 %v3464_v9, %v9963_v14  ;;  %v3466_v24 = vpop.f32.mrb[1].mxu1  ;;  %v11273_v51 = vpop.permute.xlu0 %6883 }
 0x3d2   : > { %13982 = vst [vmem:[#allocation97_spill] sm:$0xff] %v11273_v51  ;;  %v11275_v31 = vpack.c.bf16 %v4915_v42, %v4913_v60  ;;  %v3467_v49 = vadd.f32 %v3466_v24, %v9967_v17  ;;  %v3468_v21 = vpop.f32.mrb[2].mxu1  ;;  %v4445_v18 = vpop.f32.mrb[80].mxu0  ;;  %4713 = vmatprep.mubr.bf16.mxu0 %v3910_v40  ;;  %v11284_v60 = vld [vmem:[%s10111_s30 + $0xf8] sm:$0xff] }
 0x3d3   : > { %v3469_v52 = vadd.f32 %v3468_v21, %v9963_v14  ;;  %v4446_v5 = vadd.f32 %v4445_v18, %v10388_v22  ;;  %v3470_v57 = vpop.f32.mrb[3].mxu1  ;;  %v4447_v39 = vpop.f32.mrb[81].mxu0  ;;  %8738 = vset.pattern.permute.xlu0 %v13964_v12  ;;  %v3767_v9 = vmax.f32 %v3465_v23, 0.0 }
 0x3d4   : > { %v3471_v26 = vadd.f32 %v3470_v57, %v9967_v17  ;;  %v4448_v28 = vadd.f32 %v4447_v39, %v10391_v47  ;;  %v4449_v11 = vpop.f32.mrb[82].mxu0  ;;  %7470 = vperm.xlu1 %8739, %v11284_v60   ;;  %v11287_v42 = vpop.permute.xlu1 %6982  ;;  %7086 = vperm.xlu0 %8738, %v11284_v60   ;;  %v3768_v57 = vmax.f32 %v3467_v49, 0.0 }
 0x3d5   : > { %13983 = vst [vmem:[#allocation98_spill] sm:$0xff] %v11287_v42  ;;  %v3769_v40 = vmax.f32 %v3469_v52, 0.0  ;;  %v4450_v24 = vadd.f32 %v4449_v11, %v10388_v22  ;;  %v4451_v21 = vpop.f32.mrb[83].mxu0  ;;  %5615 = vmatmul.mubr.bf16.gmra.mrb[108].mxu1 %v11000_v48  ;;  %v11292_v18 = vpop.permute.xlu0 %6887  ;;  %v4916_v51 = vmax.f32 %v4446_v5, 0.0  ;;  %v13986_v48 = vmov 0  }
 0x3d6   : > { %13984 = vst [vmem:[#allocation99_spill] sm:$0xff] %v11292_v18  ;;  %v3770_v39 = vmax.f32 %v3471_v26, 0.0  ;;  %v4452_v12 = vadd.f32 %v4451_v21, %v10391_v47  ;;  %5624 = vmatprep.mubr.bf16.mxu1 %v11041_v1  ;;  %v4917_v23 = vmax.f32 %v4448_v28, 0.0 }
 0x3d7   : > { %v3911_v41 = vpack.c.bf16 %v3769_v40, %v3767_v9  ;;  %v4918_v42 = vmax.f32 %v4450_v24, 0.0  ;;  %4714 = vmatmul.mubr.bf16.gmra.mrb[188].mxu0 %v3909_v15 }
 0x3d8   : > { %v4919_v52 = vmax.f32 %v4452_v12, 0.0  ;;  %v3474_v11 = vpop.f32.mrb[4].mxu1  ;;  %v3912_v27 = vpack.c.bf16 %v3770_v39, %v3768_v57  ;;  %v11296_v3 = vpop.permute.xlu1 %6990  ;;  %8741 = vset.pattern.permute.xlu1 %v13986_v48  ;;  %8740 = vset.pattern.permute.xlu0 %v13986_v48 }
 0x3d9   : > { %13985 = vst [vmem:[#allocation100_spill] sm:$0xff] %v11296_v3  ;;  %v11299_v46 = vpack.c.bf16 %v4918_v42, %v4916_v51  ;;  %v3475_v49 = vadd.f32 %v3474_v11, %v9963_v14  ;;  %v3476_v26 = vpop.f32.mrb[5].mxu1  ;;  %v11302_v21 = vpop.permute.xlu0 %6891 }
 0x3da   : > { %13987 = vst [vmem:[#allocation101_spill] sm:$0xff] %v11302_v21  ;;  %v11305_v1 = vpack.c.bf16 %v4919_v52, %v4917_v23  ;;  %v3477_v15 = vadd.f32 %v3476_v26, %v9967_v17  ;;  %v3478_v5 = vpop.f32.mrb[6].mxu1  ;;  %v4455_v28 = vpop.f32.mrb[84].mxu0  ;;  %4723 = vmatprep.mubr.bf16.mxu0 %v3912_v27 }
 0x3db   : > { %v3479_v9 = vadd.f32 %v3478_v5, %v9963_v14  ;;  %v4456_v40 = vadd.f32 %v4455_v28, %v10388_v22  ;;  %v3480_v51 = vpop.f32.mrb[7].mxu1  ;;  %v4457_v42 = vpop.f32.mrb[85].mxu0  ;;  %v3771_v23 = vmax.f32 %v3475_v49, 0.0 }
 0x3dc   : > { %v3481_v24 = vadd.f32 %v3480_v51, %v9967_v17  ;;  %v4458_v57 = vadd.f32 %v4457_v42, %v10391_v47  ;;  %v4459_v39 = vpop.f32.mrb[86].mxu0  ;;  %v11312_v12 = vpop.permute.xlu1 %6998  ;;  %v3772_v26 = vmax.f32 %v3477_v15, 0.0 }
 0x3dd   : > { %13988 = vst [vmem:[#allocation102_spill] sm:$0xff] %v11312_v12  ;;  %v3773_v52 = vmax.f32 %v3479_v9, 0.0  ;;  %v4460_v11 = vadd.f32 %v4459_v39, %v10388_v22  ;;  %v4461_v48 = vpop.f32.mrb[87].mxu0  ;;  %5625 = vmatmul.mubr.bf16.gmra.mrb[112].mxu1 %v11032_v59  ;;  %v11316_v27 = vpop.permute.xlu0 %6895  ;;  %v4920_v42 = vmax.f32 %v4456_v40, 0.0 }
 0x3de   : > { %13989 = vst [vmem:[#allocation103_spill] sm:$0xff] %v11316_v27  ;;  %v3774_v5 = vmax.f32 %v3481_v24, 0.0  ;;  %v4462_v28 = vadd.f32 %v4461_v48, %v10391_v47  ;;  %5634 = vmatprep.mubr.bf16.mxu1 %v11073_v25  ;;  %v4921_v49 = vmax.f32 %v4458_v57, 0.0  ;;  %v11328_v48 = vld [vmem:[%s10111_s30 + $0x8] sm:$0xff]  ;;  %v11333_v25 = vld [vmem:[%s10111_s30] sm:$0xff] }
 0x3df   : > { %v3913_v51 = vpack.c.bf16 %v3773_v52, %v3771_v23  ;;  %v4922_v12 = vmax.f32 %v4460_v11, 0.0  ;;  %4724 = vmatmul.mubr.bf16.gmra.mrb[192].mxu0 %v3911_v41  ;;  %7219 = vrot.lane.b32.xlu1 %v11328_v48, %s9099_s26  ;;  %v8980_v23 = vld [vmem:[%s13721_s10 + $0x58] sm:$0xff]  }
 0x3e0   : > { %v4923_v9 = vmax.f32 %v4462_v28, 0.0  ;;  %v3484_v39 = vpop.f32.mrb[8].mxu1  ;;  %v3914_v3 = vpack.c.bf16 %v3774_v5, %v3772_v26  ;;  %v11320_v21 = vpop.permute.xlu1 %7006  ;;  %7217 = vrot.lane.b32.xlu0 %v11333_v25, %s9099_s26  ;;  %v8981_v52 = vld [vmem:[%s13721_s10 + $0x18] sm:$0xff]   ;;  %8570 = vmatprep.subr.bf16.mxu0 %v8980_v23 }
 0x3e1   : > { %13990 = vst [vmem:[#allocation104_spill] sm:$0xff] %v11320_v21  ;;  %v11322_v59 = vpack.c.bf16 %v4922_v12, %v4920_v42  ;;  %v3485_v15 = vadd.f32 %v3484_v39, %v9963_v14  ;;  %v3486_v24 = vpop.f32.mrb[9].mxu1  ;;  %v11325_v27 = vpop.permute.xlu0 %6966  ;;  %8571 = vmatpush3.bf16.msra.mxu0 %v8981_v52 }
 0x3e2   : > { %13991 = vst [vmem:[#allocation105_spill] sm:$0xff] %v11325_v27  ;;  %v11337_v41 = vpack.c.bf16 %v4923_v9, %v4921_v49  ;;  %v3487_v40 = vadd.f32 %v3486_v24, %v9967_v17  ;;  %v3488_v57 = vpop.f32.mrb[10].mxu1  ;;  %v4465_v12 = vpop.f32.mrb[88].mxu0  ;;  %4733 = vmatprep.mubr.bf16.mxu0 %v3914_v3 }
 0x3e3   : > { %v3489_v11 = vadd.f32 %v3488_v57, %v9963_v14  ;;  %v4466_v26 = vadd.f32 %v4465_v12, %v10388_v22  ;;  %v3490_v5 = vpop.f32.mrb[11].mxu1  ;;  %v4467_v28 = vpop.f32.mrb[89].mxu0  ;;  %v3775_v39 = vmax.f32 %v3485_v15, 0.0  ;;  %7223 = vrot.lane.b32.xlu1 %v10992_v55, %s9099_s26 }
 0x3e4   : > { %v3491_v42 = vadd.f32 %v3490_v5, %v9967_v17  ;;  %v4468_v49 = vadd.f32 %v4467_v28, %v10391_v47  ;;  %v4469_v9 = vpop.f32.mrb[90].mxu0  ;;  %v11350_v3 = vpop.permute.xlu1 %7014  ;;  %v3776_v12 = vmax.f32 %v3487_v40, 0.0  ;;  %v11361_v28 = vld [vmem:[%s10111_s30 + $0x10] sm:$0xff] }
 0x3e5   : > { %13992 = vst [vmem:[#allocation106_spill] sm:$0xff] %v11350_v3  ;;  %v3777_v24 = vmax.f32 %v3489_v11, 0.0  ;;  %v4470_v21 = vadd.f32 %v4469_v9, %v10388_v22  ;;  %v4471_v27 = vpop.f32.mrb[91].mxu0  ;;  %5635 = vmatmul.mubr.bf16.gmra.mrb[116].mxu1 %v11064_v53  ;;  %v11354_v57 = vpop.permute.xlu0 %6978  ;;  %v4924_v23 = vmax.f32 %v4466_v26, 0.0  ;;  %7221 = vrot.lane.b32.xlu0 %v11361_v28, %s9099_s26 }
 0x3e6   : > { %13993 = vst [vmem:[#allocation107_spill] sm:$0xff] %v11354_v57  ;;  %v3778_v18 = vmax.f32 %v3491_v42, 0.0  ;;  %v4472_v5 = vadd.f32 %v4471_v27, %v10391_v47  ;;  %5644 = vmatprep.mubr.bf16.mxu1 %v11107_v50  ;;  %v4925_v53 = vmax.f32 %v4468_v49, 0.0  ;;  %v11693_v57 = vld [vmem:[%s10111_s30 + $0x38] sm:$0xff] }
 0x3e7   : > { %v3915_v15 = vpack.c.bf16 %v3777_v24, %v3775_v39  ;;  %v4926_v11 = vmax.f32 %v4470_v21, 0.0  ;;  %4734 = vmatmul.mubr.bf16.gmra.mrb[196].mxu0 %v3913_v51  ;;  %7227 = vrot.lane.b32.xlu1 %v11006_v13, %s9099_s26 }
 0x3e8   : > { %v4927_v52 = vmax.f32 %v4472_v5, 0.0  ;;  %v3494_v40 = vpop.f32.mrb[12].mxu1  ;;  %v3916_v42 = vpack.c.bf16 %v3778_v18, %v3776_v12  ;;  %v11365_v27 = vpop.permute.xlu1 %7022 }
 0x3e9   : > { %13994 = vst [vmem:[#allocation108_spill] sm:$0xff] %v11365_v27  ;;  %v11367_v50 = vpack.c.bf16 %v4926_v11, %v4924_v23  ;;  %v3495_v55 = vadd.f32 %v3494_v40, %v9963_v14  ;;  %v3496_v9 = vpop.f32.mrb[13].mxu1  ;;  %v11370_v26 = vpop.permute.xlu0 %6986  ;;  %v11380_v23 = vld [vmem:[%s10111_s30 + $0x20] sm:$0xff] }
 0x3ea   : > { %13995 = vst [vmem:[#allocation109_spill] sm:$0xff] %v11370_v26  ;;  %v11372_v21 = vpack.c.bf16 %v4927_v52, %v4925_v53  ;;  %v3497_v51 = vadd.f32 %v3496_v9, %v9967_v17  ;;  %v3498_v39 = vpop.f32.mrb[14].mxu1  ;;  %v4475_v24 = vpop.f32.mrb[92].mxu0  ;;  %4743 = vmatprep.mubr.bf16.mxu0 %v3916_v42  ;;  %7225 = vrot.lane.b32.xlu0 %v11380_v23, %s9099_s26 }
 0x3eb   : > { %v3499_v18 = vadd.f32 %v3498_v39, %v9963_v14  ;;  %v4476_v49 = vadd.f32 %v4475_v24, %v10388_v22  ;;  %v3500_v12 = vpop.f32.mrb[15].mxu1  ;;  %v4477_v5 = vpop.f32.mrb[93].mxu0  ;;  %v3779_v13 = vmax.f32 %v3495_v55, 0.0  ;;  %7231 = vrot.lane.b32.xlu1 %v11024_v2, %s9099_s26 }
 0x3ec   : > { %v3501_v11 = vadd.f32 %v3500_v12, %v9967_v17  ;;  %v4478_v53 = vadd.f32 %v4477_v5, %v10391_v47  ;;  %v4479_v52 = vpop.f32.mrb[94].mxu0  ;;  %v11386_v40 = vpop.permute.xlu1 %7030  ;;  %v3780_v27 = vmax.f32 %v3497_v51, 0.0 }
 0x3ed   : > { %13996 = vst [vmem:[#allocation110_spill] sm:$0xff] %v11386_v40  ;;  %v3781_v42 = vmax.f32 %v3499_v18, 0.0  ;;  %v4480_v9 = vadd.f32 %v4479_v52, %v10388_v22  ;;  %v4481_v39 = vpop.f32.mrb[95].mxu0  ;;  %5645 = vmatmul.mubr.bf16.gmra.mrb[120].mxu1 %v11102_v8  ;;  %v11390_v24 = vpop.permute.xlu0 %6994  ;;  %v4928_v5 = vmax.f32 %v4476_v49, 0.0  ;;  %v11397_v18 = vld [vmem:[%s10111_s30 + $0x30] sm:$0xff] }
 0x3ee   : > { %13997 = vst [vmem:[#allocation111_spill] sm:$0xff] %v11390_v24  ;;  %v3782_v3 = vmax.f32 %v3501_v11, 0.0  ;;  %v4482_v26 = vadd.f32 %v4481_v39, %v10391_v47  ;;  %5654 = vmatprep.mubr.bf16.mxu1 %v11146_v35  ;;  %7229 = vrot.lane.b32.xlu0 %v11397_v18, %s9099_s26  ;;  %v4929_v8 = vmax.f32 %v4478_v53, 0.0 }
 0x3ef   : > { %v3917_v12 = vpack.c.bf16 %v3781_v42, %v3779_v13  ;;  %v4930_v55 = vmax.f32 %v4480_v9, 0.0  ;;  %4744 = vmatmul.mubr.bf16.gmra.mrb[200].mxu0 %v3915_v15  ;;  %7235 = vrot.lane.b32.xlu1 %v11038_v58, %s9099_s26 }
 0x3f0   : > { %v4931_v52 = vmax.f32 %v4482_v26, 0.0  ;;  %v3504_v51 = vpop.f32.mrb[16].mxu1  ;;  %v3918_v11 = vpack.c.bf16 %v3782_v3, %v3780_v27  ;;  %v11401_v39 = vpop.permute.xlu1 %7038 }
 0x3f1   : > { %13998 = vst [vmem:[#allocation112_spill] sm:$0xff] %v11401_v39  ;;  %v11403_v35 = vpack.c.bf16 %v4930_v55, %v4928_v5  ;;  %v3505_v2 = vadd.f32 %v3504_v51, %v9963_v14  ;;  %v3506_v13 = vpop.f32.mrb[17].mxu1  ;;  %v11406_v49 = vpop.permute.xlu0 %7002  ;;  %v11416_v5 = vld [vmem:[%s10111_s30 + $0x40] sm:$0xff] }
 0x3f2   : > { %13999 = vst [vmem:[#allocation113_spill] sm:$0xff] %v11406_v49  ;;  %v11408_v15 = vpack.c.bf16 %v4931_v52, %v4929_v8  ;;  %v3507_v42 = vadd.f32 %v3506_v13, %v9967_v17  ;;  %v3508_v9 = vpop.f32.mrb[18].mxu1  ;;  %v4485_v40 = vpop.f32.mrb[96].mxu0  ;;  %4753 = vmatprep.mubr.bf16.mxu0 %v3918_v11  ;;  %7233 = vrot.lane.b32.xlu0 %v11416_v5, %s9099_s26 }
 0x3f3   : > { %v3509_v3 = vadd.f32 %v3508_v9, %v9963_v14  ;;  %v4486_v27 = vadd.f32 %v4485_v40, %v10388_v22  ;;  %v3510_v26 = vpop.f32.mrb[19].mxu1  ;;  %v4487_v53 = vpop.f32.mrb[97].mxu0  ;;  %v3783_v58 = vmax.f32 %v3505_v2, 0.0  ;;  %7239 = vrot.lane.b32.xlu1 %v11056_v29, %s9099_s26 }
 0x3f4   : > { %v3511_v55 = vadd.f32 %v3510_v26, %v9967_v17  ;;  %v4488_v8 = vadd.f32 %v4487_v53, %v10391_v47  ;;  %v4489_v52 = vpop.f32.mrb[98].mxu0  ;;  %v11422_v51 = vpop.permute.xlu1 %7046  ;;  %v3784_v39 = vmax.f32 %v3507_v42, 0.0 }
 0x3f5   : > { %14000 = vst [vmem:[#allocation114_spill] sm:$0xff] %v11422_v51  ;;  %v3785_v11 = vmax.f32 %v3509_v3, 0.0  ;;  %v4490_v13 = vadd.f32 %v4489_v52, %v10388_v22  ;;  %v4491_v40 = vpop.f32.mrb[99].mxu0  ;;  %5655 = vmatmul.mubr.bf16.gmra.mrb[124].mxu1 %v11137_v56  ;;  %v11426_v9 = vpop.permute.xlu0 %7010  ;;  %v4932_v53 = vmax.f32 %v4486_v27, 0.0  ;;  %v11433_v3 = vld [vmem:[%s10111_s30 + $0x50] sm:$0xff] }
 0x3f6   : > { %14001 = vst [vmem:[#allocation115_spill] sm:$0xff] %v11426_v9  ;;  %v3786_v49 = vmax.f32 %v3511_v55, 0.0  ;;  %v4492_v24 = vadd.f32 %v4491_v40, %v10391_v47  ;;  %5664 = vmatprep.mubr.bf16.mxu1 %v11178_v10  ;;  %7237 = vrot.lane.b32.xlu0 %v11433_v3, %s9099_s26  ;;  %v4933_v56 = vmax.f32 %v4488_v8, 0.0 }
 0x3f7   : > { %v3919_v26 = vpack.c.bf16 %v3785_v11, %v3783_v58  ;;  %v4934_v2 = vmax.f32 %v4490_v13, 0.0  ;;  %4754 = vmatmul.mubr.bf16.gmra.mrb[204].mxu0 %v3917_v12  ;;  %7243 = vrot.lane.b32.xlu1 %v11070_v61, %s9099_s26 }
 0x3f8   : > { %v4935_v52 = vmax.f32 %v4492_v24, 0.0  ;;  %v3514_v42 = vpop.f32.mrb[20].mxu1  ;;  %v3920_v55 = vpack.c.bf16 %v3786_v49, %v3784_v39  ;;  %v11437_v40 = vpop.permute.xlu1 %7054 }
 0x3f9   : > { %14002 = vst [vmem:[#allocation116_spill] sm:$0xff] %v11437_v40  ;;  %v11439_v10 = vpack.c.bf16 %v4934_v2, %v4932_v53  ;;  %v3515_v29 = vadd.f32 %v3514_v42, %v9963_v14  ;;  %v3516_v58 = vpop.f32.mrb[21].mxu1  ;;  %v11442_v27 = vpop.permute.xlu0 %7018  ;;  %v11452_v53 = vld [vmem:[%s10111_s30 + $0x60] sm:$0xff] }
 0x3fa   : > { %14003 = vst [vmem:[#allocation117_spill] sm:$0xff] %v11442_v27  ;;  %v11444_v12 = vpack.c.bf16 %v4935_v52, %v4933_v56  ;;  %v3517_v11 = vadd.f32 %v3516_v58, %v9967_v17  ;;  %v3518_v13 = vpop.f32.mrb[22].mxu1  ;;  %v4495_v51 = vpop.f32.mrb[100].mxu0  ;;  %4763 = vmatprep.mubr.bf16.mxu0 %v3920_v55  ;;  %7241 = vrot.lane.b32.xlu0 %v11452_v53, %s9099_s26 }
 0x3fb   : > { %v3519_v24 = vadd.f32 %v3518_v13, %v9963_v14  ;;  %v4496_v39 = vadd.f32 %v4495_v51, %v10388_v22  ;;  %v3520_v49 = vpop.f32.mrb[23].mxu1  ;;  %v4497_v8 = vpop.f32.mrb[101].mxu0  ;;  %v3787_v61 = vmax.f32 %v3515_v29, 0.0  ;;  %7247 = vrot.lane.b32.xlu1 %v11096_v19, %s9099_s26 }
 0x3fc   : > { %v3521_v2 = vadd.f32 %v3520_v49, %v9967_v17  ;;  %v4498_v56 = vadd.f32 %v4497_v8, %v10391_v47  ;;  %v4499_v52 = vpop.f32.mrb[102].mxu0  ;;  %v11458_v42 = vpop.permute.xlu1 %7062  ;;  %v3788_v40 = vmax.f32 %v3517_v11, 0.0 }
 0x3fd   : > { %14004 = vst [vmem:[#allocation118_spill] sm:$0xff] %v11458_v42  ;;  %v3789_v55 = vmax.f32 %v3519_v24, 0.0  ;;  %v4500_v58 = vadd.f32 %v4499_v52, %v10388_v22  ;;  %v4501_v51 = vpop.f32.mrb[103].mxu0  ;;  %5665 = vmatmul.mubr.bf16.gmra.mrb[128].mxu1 %v11173_v7  ;;  %v11462_v13 = vpop.permute.xlu0 %7026  ;;  %v4936_v8 = vmax.f32 %v4496_v39, 0.0  ;;  %v11469_v24 = vld [vmem:[%s10111_s30 + $0x70] sm:$0xff] }
 0x3fe   : > { %14005 = vst [vmem:[#allocation119_spill] sm:$0xff] %v11462_v13  ;;  %v3790_v27 = vmax.f32 %v3521_v2, 0.0  ;;  %v4502_v9 = vadd.f32 %v4501_v51, %v10391_v47  ;;  %5674 = vmatprep.mubr.bf16.mxu1 %v11215_v20  ;;  %7245 = vrot.lane.b32.xlu0 %v11469_v24, %s9099_s26  ;;  %v4937_v7 = vmax.f32 %v4498_v56, 0.0 }
 0x3ff   : > { %v3921_v49 = vpack.c.bf16 %v3789_v55, %v3787_v61  ;;  %v4938_v29 = vmax.f32 %v4500_v58, 0.0  ;;  %4764 = vmatmul.mubr.bf16.gmra.mrb[208].mxu0 %v3919_v26  ;;  %7251 = vrot.lane.b32.xlu1 %v11113_v38, %s9099_s26 }
 0x400   : > { %v4939_v52 = vmax.f32 %v4502_v9, 0.0  ;;  %v3524_v11 = vpop.f32.mrb[24].mxu1  ;;  %v3922_v2 = vpack.c.bf16 %v3790_v27, %v3788_v40  ;;  %v11473_v51 = vpop.permute.xlu1 %7350 }
 0x401   : > { %14006 = vst [vmem:[#allocation120_spill] sm:$0xff] %v11473_v51  ;;  %v11475_v20 = vpack.c.bf16 %v4938_v29, %v4936_v8  ;;  %v3525_v19 = vadd.f32 %v3524_v11, %v9963_v14  ;;  %v3526_v61 = vpop.f32.mrb[25].mxu1  ;;  %v11478_v39 = vpop.permute.xlu0 %7034  ;;  %v11488_v8 = vld [vmem:[%s10111_s30 + $0x80] sm:$0xff] }
 0x402   : > { %14007 = vst [vmem:[#allocation121_spill] sm:$0xff] %v11478_v39  ;;  %v11480_v26 = vpack.c.bf16 %v4939_v52, %v4937_v7  ;;  %v3527_v55 = vadd.f32 %v3526_v61, %v9967_v17  ;;  %v3528_v58 = vpop.f32.mrb[26].mxu1  ;;  %v4505_v42 = vpop.f32.mrb[104].mxu0  ;;  %4773 = vmatprep.mubr.bf16.mxu0 %v3922_v2  ;;  %7249 = vrot.lane.b32.xlu0 %v11488_v8, %s9099_s26 }
 0x403   : > { %v3529_v9 = vadd.f32 %v3528_v58, %v9963_v14  ;;  %v4506_v40 = vadd.f32 %v4505_v42, %v10388_v22  ;;  %v3530_v27 = vpop.f32.mrb[27].mxu1  ;;  %v4507_v56 = vpop.f32.mrb[105].mxu0  ;;  %v3791_v38 = vmax.f32 %v3525_v19, 0.0  ;;  %7255 = vrot.lane.b32.xlu1 %v11131_v45, %s9099_s26 }
 0x404   : > { %v3531_v29 = vadd.f32 %v3530_v27, %v9967_v17  ;;  %v4508_v7 = vadd.f32 %v4507_v56, %v10391_v47  ;;  %v4509_v52 = vpop.f32.mrb[106].mxu0  ;;  %v11494_v11 = vpop.permute.xlu1 %7354  ;;  %v3792_v51 = vmax.f32 %v3527_v55, 0.0 }
 0x405   : > { %14008 = vst [vmem:[#allocation122_spill] sm:$0xff] %v11494_v11  ;;  %v3793_v2 = vmax.f32 %v3529_v9, 0.0  ;;  %v4510_v61 = vadd.f32 %v4509_v52, %v10388_v22  ;;  %v4511_v42 = vpop.f32.mrb[107].mxu0  ;;  %5675 = vmatmul.mubr.bf16.gmra.mrb[132].mxu1 %v11209_v63  ;;  %v11498_v58 = vpop.permute.xlu0 %7042  ;;  %v4940_v56 = vmax.f32 %v4506_v40, 0.0  ;;  %v11505_v9 = vld [vmem:[%s10111_s30 + $0x90] sm:$0xff] }
 0x406   : > { %14009 = vst [vmem:[#allocation123_spill] sm:$0xff] %v11498_v58  ;;  %v3794_v39 = vmax.f32 %v3531_v29, 0.0  ;;  %v4512_v13 = vadd.f32 %v4511_v42, %v10391_v47  ;;  %5684 = vmatprep.mubr.bf16.mxu1 %v11241_v4  ;;  %7253 = vrot.lane.b32.xlu0 %v11505_v9, %s9099_s26  ;;  %v4941_v63 = vmax.f32 %v4508_v7, 0.0 }
 0x407   : > { %v3923_v27 = vpack.c.bf16 %v3793_v2, %v3791_v38  ;;  %v4942_v19 = vmax.f32 %v4510_v61, 0.0  ;;  %4774 = vmatmul.mubr.bf16.gmra.mrb[212].mxu0 %v3921_v49  ;;  %7259 = vrot.lane.b32.xlu1 %v11152_v54, %s9099_s26 }
 0x408   : > { %v4943_v52 = vmax.f32 %v4512_v13, 0.0  ;;  %v3534_v55 = vpop.f32.mrb[28].mxu1  ;;  %v3924_v29 = vpack.c.bf16 %v3794_v39, %v3792_v51  ;;  %v11509_v42 = vpop.permute.xlu1 %7362 }
 0x409   : > { %14010 = vst [vmem:[#allocation124_spill] sm:$0xff] %v11509_v42  ;;  %v11511_v4 = vpack.c.bf16 %v4942_v19, %v4940_v56  ;;  %v3535_v45 = vadd.f32 %v3534_v55, %v9963_v14  ;;  %v3536_v38 = vpop.f32.mrb[29].mxu1  ;;  %v11514_v40 = vpop.permute.xlu0 %7050  ;;  %v11524_v56 = vld [vmem:[%s10111_s30 + $0xa0] sm:$0xff] }
 0x40a   : > { %14011 = vst [vmem:[#allocation125_spill] sm:$0xff] %v11514_v40  ;;  %v11516_v49 = vpack.c.bf16 %v4943_v52, %v4941_v63  ;;  %v3537_v2 = vadd.f32 %v3536_v38, %v9967_v17  ;;  %v3538_v61 = vpop.f32.mrb[30].mxu1  ;;  %v4515_v11 = vpop.f32.mrb[108].mxu0  ;;  %4783 = vmatprep.mubr.bf16.mxu0 %v3924_v29  ;;  %7257 = vrot.lane.b32.xlu0 %v11524_v56, %s9099_s26 }
 0x40b   : > { %v3539_v13 = vadd.f32 %v3538_v61, %v9963_v14  ;;  %v4516_v51 = vadd.f32 %v4515_v11, %v10388_v22  ;;  %v3540_v39 = vpop.f32.mrb[31].mxu1  ;;  %v4517_v7 = vpop.f32.mrb[109].mxu0  ;;  %v3795_v54 = vmax.f32 %v3535_v45, 0.0  ;;  %7263 = vrot.lane.b32.xlu1 %v11168_v0, %s9099_s26 }
 0x40c   : > { %v3541_v19 = vadd.f32 %v3540_v39, %v9967_v17  ;;  %v4518_v63 = vadd.f32 %v4517_v7, %v10391_v47  ;;  %v4519_v52 = vpop.f32.mrb[110].mxu0  ;;  %v11530_v55 = vpop.permute.xlu1 %7370  ;;  %v3796_v61 = vmax.f32 %v3537_v2, 0.0 }
 0x40d   : > { %14012 = vst [vmem:[#allocation126_spill] sm:$0xff] %v11530_v55  ;;  %v3797_v29 = vmax.f32 %v3539_v13, 0.0  ;;  %v4520_v14 = vadd.f32 %v4519_v52, %v10388_v22  ;;  %v4521_v11 = vpop.f32.mrb[111].mxu0  ;;  %5685 = vmatmul.mubr.bf16.gmra.mrb[136].mxu1 %v11235_v34  ;;  %v11534_v38 = vpop.permute.xlu0 %7346  ;;  %v4944_v39 = vmax.f32 %v4516_v51, 0.0  ;;  %v11541_v13 = vld [vmem:[%s10111_s30 + $0xb0] sm:$0xff] }
 0x40e   : > { %14013 = vst [vmem:[#allocation127_spill] sm:$0xff] %v11534_v38  ;;  %v3798_v42 = vmax.f32 %v3541_v19, 0.0  ;;  %v4522_v40 = vadd.f32 %v4521_v11, %v10391_v47  ;;  %5694 = vmatprep.mubr.bf16.mxu1 %v11275_v31  ;;  %7261 = vrot.lane.b32.xlu0 %v11541_v13, %s9099_s26  ;;  %v4945_v34 = vmax.f32 %v4518_v63, 0.0 }
 0x40f   : > { %v3925_v17 = vpack.c.bf16 %v3797_v29, %v3795_v54  ;;  %v4946_v45 = vmax.f32 %v4520_v14, 0.0  ;;  %4784 = vmatmul.mubr.bf16.gmra.mrb[216].mxu0 %v3923_v27  ;;  %7267 = vrot.lane.b32.xlu1 %v11188_v6, %s9099_s26  ;;  %v11565_v14 = vld [vmem:[%s10111_s30 + $0xc0] sm:$0xff] }
 0x410   : > { %v4947_v2 = vmax.f32 %v4522_v40, 0.0  ;;  %v11545_v7 = vpop.f32.mrb[32].mxu1  ;;  %v3926_v19 = vpack.c.bf16 %v3798_v42, %v3796_v61  ;;  %v11547_v52 = vpop.permute.xlu1 %7378 }
 0x411   : > { %14014 = vst [vmem:[#allocation128_spill] sm:$0xff] %v11547_v52  ;;  %v11549_v31 = vpack.c.bf16 %v4946_v45, %v4944_v39  ;;  %v11551_v0 = vpop.f32.mrb[33].mxu1  ;;  %v11553_v51 = vpop.permute.xlu0 %7358 }
 0x412   : > { %14015 = vst [vmem:[#allocation129_spill] sm:$0xff] %v11553_v51  ;;  %v11555_v27 = vpack.c.bf16 %v4947_v2, %v4945_v34  ;;  %v4525_v54 = vpop.f32.mrb[112].mxu0  ;;  %4793 = vmatprep.mubr.bf16.mxu0 %v3926_v19  ;;  %v11557_v29 = vpop.f32.mrb[34].mxu1  ;;  %7265 = vrot.lane.b32.xlu0 %v11565_v14, %s9099_s26 }
 0x413   : > { %v4526_v40 = vadd.f32 %v4525_v54, %v10388_v22  ;;  %v4527_v42 = vpop.f32.mrb[113].mxu0  ;;  %v11562_v63 = vpop.f32.mrb[35].mxu1  ;;  %7271 = vrot.lane.b32.xlu1 %v11184_v37, %s9099_s26 }
 0x414   : > { %v4528_v11 = vadd.f32 %v4527_v42, %v10391_v47  ;;  %v4529_v61 = vpop.f32.mrb[114].mxu0  ;;  %v11570_v39 = vpop.permute.xlu1 %7386 }
 0x415   : > { %14016 = vst [vmem:[#allocation130_spill] sm:$0xff] %v11570_v39  ;;  %v4530_v45 = vadd.f32 %v4529_v61, %v10388_v22  ;;  %v4531_v34 = vpop.f32.mrb[115].mxu0  ;;  %5695 = vmatmul.mubr.bf16.gmra.mrb[140].mxu1 %v11270_v36  ;;  %v11574_v6 = vpop.permute.xlu0 %7366  ;;  %v4948_v19 = vmax.f32 %v4526_v40, 0.0 }
 0x416   : > { %14017 = vst [vmem:[#allocation131_spill] sm:$0xff] %v11574_v6  ;;  %v4532_v2 = vadd.f32 %v4531_v34, %v10391_v47  ;;  %5704 = vmatprep.mubr.bf16.mxu1 %v11305_v1  ;;  %7269 = vrot.lane.b32.xlu0 %v11141_v33, %s9099_s26  ;;  %v4949_v42 = vmax.f32 %v4528_v11, 0.0  ;;  %v11653_v6 = vld [vmem:[%s10111_s30 + $0x18] sm:$0xff] }
 0x417   : > { %v4950_v54 = vmax.f32 %v4530_v45, 0.0  ;;  %4794 = vmatmul.mubr.bf16.gmra.mrb[220].mxu0 %v3925_v17  ;;  %7275 = vrot.lane.b32.xlu1 %v11203_v62, %s9099_s26 }
 0x418   : > { %v4951_v61 = vmax.f32 %v4532_v2, 0.0  ;;  %v11582_v39 = vpop.f32.mrb[36].mxu1  ;;  %v11584_v36 = vpop.permute.xlu1 %7394 }
 0x419   : > { %14018 = vst [vmem:[#allocation132_spill] sm:$0xff] %v11584_v36  ;;  %v11586_v52 = vpack.c.bf16 %v4950_v54, %v4948_v19  ;;  %v11588_v34 = vpop.f32.mrb[37].mxu1  ;;  %v11590_v1 = vpop.permute.xlu0 %7374 }
 0x41a   : > { %14019 = vst [vmem:[#allocation133_spill] sm:$0xff] %v11590_v1  ;;  %v11592_v55 = vpack.c.bf16 %v4951_v61, %v4949_v42  ;;  %v4535_v37 = vpop.f32.mrb[116].mxu0  ;;  %v11594_v40 = vpop.f32.mrb[38].mxu1  ;;  %7273 = vrot.lane.b32.xlu0 %v11245_v16, %s9099_s26 }
 0x41b   : > { %v4536_v33 = vadd.f32 %v4535_v37, %v10388_v22  ;;  %v4537_v17 = vpop.f32.mrb[117].mxu0  ;;  %v11599_v11 = vpop.f32.mrb[39].mxu1  ;;  %7279 = vrot.lane.b32.xlu1 %v11284_v60, %s9099_s26 }
 0x41c   : > { %v4538_v45 = vadd.f32 %v4537_v17, %v10391_v47  ;;  %v4539_v2 = vpop.f32.mrb[118].mxu0  ;;  %v11604_v19 = vpop.permute.xlu1 %7402 }
 0x41d   : > { %14020 = vst [vmem:[#allocation134_spill] sm:$0xff] %v11604_v19  ;;  %v4540_v54 = vadd.f32 %v4539_v2, %v10388_v22  ;;  %v4541_v42 = vpop.f32.mrb[119].mxu0  ;;  %5705 = vmatmul.mubr.bf16.gmra.mrb[144].mxu1 %v11299_v46  ;;  %v11608_v61 = vpop.permute.xlu0 %7382  ;;  %v4952_v16 = vmax.f32 %v4536_v33, 0.0 }
 0x41e   : > { %14021 = vst [vmem:[#allocation135_spill] sm:$0xff] %v11608_v61  ;;  %v4542_v62 = vadd.f32 %v4541_v42, %v10391_v47  ;;  %5714 = vmatprep.mubr.bf16.mxu1 %v11337_v41  ;;  %7277 = vrot.lane.b32.xlu0 %v11251_v32, %s9099_s26  ;;  %v4953_v17 = vmax.f32 %v4538_v45, 0.0  ;;  %v8982_v32 = vld [vmem:[%s13721_s10 + $0x60] sm:$0xff]  }
 0x41f   : > { %v4954_v37 = vmax.f32 %v4540_v54, 0.0  ;;  %v8983_v45 = vld [vmem:[%s13721_s10 + $0x20] sm:$0xff]   ;;  %7603 = vrot.lane.b32.xlu1 %v11328_v48, %s9100_s20  ;;  %8572 = vmatprep.subr.bf16.mxu0 %v8982_v32 }
 0x420   : > { %v4955_v19 = vmax.f32 %v4542_v62, 0.0  ;;  %v11616_v2 = vpop.f32.mrb[40].mxu1  ;;  %v11618_v36 = vpop.permute.xlu1 %7410  ;;  %8573 = vmatpush3.bf16.msra.mxu0 %v8983_v45 }
 0x421   : > { %14022 = vst [vmem:[#allocation136_spill] sm:$0xff] %v11618_v36  ;;  %v11620_v46 = vpack.c.bf16 %v4954_v37, %v4952_v16  ;;  %v11622_v61 = vpop.f32.mrb[41].mxu1  ;;  %v11624_v42 = vpop.permute.xlu0 %7390 }
 0x422   : > { %14023 = vst [vmem:[#allocation137_spill] sm:$0xff] %v11624_v42  ;;  %v11626_v41 = vpack.c.bf16 %v4955_v19, %v4953_v17  ;;  %v4545_v60 = vpop.f32.mrb[120].mxu0  ;;  %v11628_v33 = vpop.f32.mrb[42].mxu1  ;;  %7601 = vrot.lane.b32.xlu0 %v11333_v25, %s9100_s20 }
 0x423   : > { %v4546_v54 = vadd.f32 %v4545_v60, %v10388_v22  ;;  %v4547_v19 = vpop.f32.mrb[121].mxu0  ;;  %v11639_v62 = vpop.f32.mrb[43].mxu1  ;;  %7607 = vrot.lane.b32.xlu1 %v11653_v6, %s9100_s20 }
 0x424   : > { %v4548_v16 = vadd.f32 %v4547_v19, %v10391_v47  ;;  %v4549_v37 = vpop.f32.mrb[122].mxu0  ;;  %v11644_v17 = vpop.permute.xlu1 %7418 }
 0x425   : > { %14024 = vst [vmem:[#allocation138_spill] sm:$0xff] %v11644_v17  ;;  %v4550_v36 = vadd.f32 %v4549_v37, %v10388_v22  ;;  %v4551_v42 = vpop.f32.mrb[123].mxu0  ;;  %5715 = vmatmul.mubr.bf16.gmra.mrb[148].mxu1 %v11322_v59  ;;  %v11648_v1 = vpop.permute.xlu0 %7398  ;;  %v4956_v32 = vmax.f32 %v4546_v54, 0.0 }
 0x426   : > { %14025 = vst [vmem:[#allocation139_spill] sm:$0xff] %v11648_v1  ;;  %v4552_v60 = vadd.f32 %v4551_v42, %v10391_v47  ;;  %5724 = vmatprep.mubr.bf16.mxu1 %v11372_v21  ;;  %7605 = vrot.lane.b32.xlu0 %v11361_v28, %s9100_s20  ;;  %v4957_v37 = vmax.f32 %v4548_v16, 0.0 }
 0x427   : > { %v4958_v19 = vmax.f32 %v4550_v36, 0.0  ;;  %v11674_v36 = vld [vmem:[%s10111_s30 + $0x28] sm:$0xff] }
 0x428   : > { %v4959_v59 = vmax.f32 %v4552_v60, 0.0  ;;  %v11659_v45 = vpop.f32.mrb[44].mxu1  ;;  %v11661_v17 = vpop.permute.xlu1 %7426  ;;  %7611 = vrot.lane.b32.xlu1 %v11674_v36, %s9100_s20 }
 0x429   : > { %14026 = vst [vmem:[#allocation140_spill] sm:$0xff] %v11661_v17  ;;  %v11663_v42 = vpack.c.bf16 %v4958_v19, %v4956_v32  ;;  %v11665_v21 = vpop.f32.mrb[45].mxu1  ;;  %v11667_v1 = vpop.permute.xlu0 %7406 }
 0x42a   : > { %14028 = vst [vmem:[#allocation142_spill] sm:$0xff] %v11665_v21  ;;  %14029 = vst [vmem:[#allocation143_spill] sm:$0xff] %v11667_v1  ;;  %v11669_v51 = vpack.c.bf16 %v4959_v59, %v4957_v37  ;;  %v4555_v38 = vpop.f32.mrb[124].mxu0  ;;  %v11671_v54 = vpop.f32.mrb[46].mxu1  ;;  %7609 = vrot.lane.b32.xlu0 %v11380_v23, %s9100_s20 }
 0x42b   : > { %14027 = vst [vmem:[#allocation141_spill] sm:$0xff] %v11663_v42  ;;  %14030 = vst [vmem:[#allocation144_spill] sm:$0xff] %v11671_v54  ;;  %v4556_v16 = vadd.f32 %v4555_v38, %v10388_v22  ;;  %v4557_v60 = vpop.f32.mrb[125].mxu0  ;;  %v11679_v32 = vpop.f32.mrb[47].mxu1 }
 0x42c   : > { %14031 = vst [vmem:[#allocation145_spill] sm:$0xff] %v11679_v32  ;;  %v4558_v19 = vadd.f32 %v4557_v60, %v10391_v47  ;;  %v4559_v37 = vpop.f32.mrb[126].mxu0  ;;  %v11684_v59 = vpop.permute.xlu1 %7434  ;;  %7615 = vrot.lane.b32.xlu1 %v11693_v57, %s9100_s20 }
 0x42d   : > { %14032 = vst [vmem:[#allocation146_spill] sm:$0xff] %v11684_v59  ;;  %v4560_v17 = vadd.f32 %v4559_v37, %v10388_v22  ;;  %v4561_v1 = vpop.f32.mrb[127].mxu0  ;;  %5725 = vmatmul.mubr.bf16.gmra.mrb[152].mxu1 %v11367_v50  ;;  %v11688_v58 = vpop.permute.xlu0 %7414  ;;  %v4960_v60 = vmax.f32 %v4556_v16, 0.0 }
 0x42e   : > { %14033 = vst [vmem:[#allocation147_spill] sm:$0xff] %v11688_v58  ;;  %v4562_v38 = vadd.f32 %v4561_v1, %v10391_v47  ;;  %5734 = vmatprep.mubr.bf16.mxu1 %v11408_v15  ;;  %7613 = vrot.lane.b32.xlu0 %v11397_v18, %s9100_s20  ;;  %v4961_v37 = vmax.f32 %v4558_v19, 0.0 }
 0x42f   : > { %v4962_v42 = vmax.f32 %v4560_v17, 0.0  ;;  %v11714_v17 = vld [vmem:[%s10111_s30 + $0x48] sm:$0xff] }
 0x430   : > { %v4963_v59 = vmax.f32 %v4562_v38, 0.0  ;;  %v11699_v50 = vpop.f32.mrb[48].mxu1  ;;  %v11701_v58 = vpop.permute.xlu1 %7442  ;;  %7619 = vrot.lane.b32.xlu1 %v11714_v17, %s9100_s20 }
 0x431   : > { %14034 = vst [vmem:[#allocation148_spill] sm:$0xff] %v11699_v50  ;;  %14035 = vst [vmem:[#allocation149_spill] sm:$0xff] %v11701_v58  ;;  %v11703_v1 = vpack.c.bf16 %v4962_v42, %v4960_v60  ;;  %v11705_v15 = vpop.f32.mrb[49].mxu1  ;;  %v11707_v32 = vpop.permute.xlu0 %7422 }
 0x432   : > { %14037 = vst [vmem:[#allocation151_spill] sm:$0xff] %v11705_v15  ;;  %14038 = vst [vmem:[#allocation152_spill] sm:$0xff] %v11707_v32  ;;  %v11709_v54 = vpack.c.bf16 %v4963_v59, %v4961_v37  ;;  %v4565_v21 = vpop.f32.mrb[128].mxu0  ;;  %v11711_v16 = vpop.f32.mrb[50].mxu1  ;;  %7617 = vrot.lane.b32.xlu0 %v11416_v5, %s9100_s20 }
 0x433   : > { %14036 = vst [vmem:[#allocation150_spill] sm:$0xff] %v11703_v1  ;;  %14040 = vst [vmem:[#allocation154_spill] sm:$0xff] %v11711_v16  ;;  %v4566_v19 = vadd.f32 %v4565_v21, %v10388_v22  ;;  %v4567_v38 = vpop.f32.mrb[129].mxu0  ;;  %v11719_v42 = vpop.f32.mrb[51].mxu1 }
 0x434   : > { %14039 = vst [vmem:[#allocation153_spill] sm:$0xff] %v11709_v54  ;;  %14041 = vst [vmem:[#allocation155_spill] sm:$0xff] %v11719_v42  ;;  %v4568_v59 = vadd.f32 %v4567_v38, %v10391_v47  ;;  %v4569_v60 = vpop.f32.mrb[130].mxu0  ;;  %v11724_v37 = vpop.permute.xlu1 %7066  ;;  %v11733_v42 = vld [vmem:[%s10111_s30 + $0x58] sm:$0xff] }
 0x435   : > { %14042 = vst [vmem:[#allocation156_spill] sm:$0xff] %v11724_v37  ;;  %v4570_v58 = vadd.f32 %v4569_v60, %v10388_v22  ;;  %v4571_v32 = vpop.f32.mrb[131].mxu0  ;;  %5735 = vmatmul.mubr.bf16.gmra.mrb[156].mxu1 %v11403_v35  ;;  %v11728_v1 = vpop.permute.xlu0 %7430  ;;  %7623 = vrot.lane.b32.xlu1 %v11733_v42, %s9100_s20  ;;  %v4964_v38 = vmax.f32 %v4566_v19, 0.0 }
 0x436   : > { %14043 = vst [vmem:[#allocation157_spill] sm:$0xff] %v11728_v1  ;;  %v4572_v21 = vadd.f32 %v4571_v32, %v10391_v47  ;;  %5744 = vmatprep.mubr.bf16.mxu1 %v11444_v12  ;;  %7621 = vrot.lane.b32.xlu0 %v11433_v3, %s9100_s20  ;;  %v4965_v60 = vmax.f32 %v4568_v59, 0.0 }
 0x437   : > { %v4966_v54 = vmax.f32 %v4570_v58, 0.0  ;;  %v11754_v58 = vld [vmem:[%s10111_s30 + $0x68] sm:$0xff] }
 0x438   : > { %v4967_v37 = vmax.f32 %v4572_v21, 0.0  ;;  %v11739_v35 = vpop.f32.mrb[52].mxu1  ;;  %v11741_v1 = vpop.permute.xlu1 %7450 }
 0x439   : > { %14044 = vst [vmem:[#allocation158_spill] sm:$0xff] %v11739_v35  ;;  %14045 = vst [vmem:[#allocation159_spill] sm:$0xff] %v11741_v1  ;;  %v11743_v32 = vpack.c.bf16 %v4966_v54, %v4964_v38  ;;  %v11745_v12 = vpop.f32.mrb[53].mxu1  ;;  %v11747_v16 = vpop.permute.xlu0 %7438  ;;  %7627 = vrot.lane.b32.xlu1 %v11754_v58, %s9100_s20 }
 0x43a   : > { %14047 = vst [vmem:[#allocation161_spill] sm:$0xff] %v11745_v12  ;;  %14048 = vst [vmem:[#allocation162_spill] sm:$0xff] %v11747_v16  ;;  %v11749_v15 = vpack.c.bf16 %v4967_v37, %v4965_v60  ;;  %v4575_v50 = vpop.f32.mrb[132].mxu0  ;;  %v11751_v19 = vpop.f32.mrb[54].mxu1  ;;  %7625 = vrot.lane.b32.xlu0 %v11452_v53, %s9100_s20 }
 0x43b   : > { %14046 = vst [vmem:[#allocation160_spill] sm:$0xff] %v11743_v32  ;;  %14050 = vst [vmem:[#allocation164_spill] sm:$0xff] %v11751_v19  ;;  %v4576_v59 = vadd.f32 %v4575_v50, %v10388_v22  ;;  %v4577_v21 = vpop.f32.mrb[133].mxu0  ;;  %v11759_v54 = vpop.f32.mrb[55].mxu1 }
 0x43c   : > { %14049 = vst [vmem:[#allocation163_spill] sm:$0xff] %v11749_v15  ;;  %14051 = vst [vmem:[#allocation165_spill] sm:$0xff] %v11759_v54  ;;  %v4578_v37 = vadd.f32 %v4577_v21, %v10391_v47  ;;  %v4579_v38 = vpop.f32.mrb[134].mxu0  ;;  %v11764_v60 = vpop.permute.xlu1 %7454  ;;  %v11773_v15 = vld [vmem:[%s10111_s30 + $0x78] sm:$0xff] }
 0x43d   : > { %14052 = vst [vmem:[#allocation166_spill] sm:$0xff] %v11764_v60  ;;  %v4580_v1 = vadd.f32 %v4579_v38, %v10388_v22  ;;  %v4581_v16 = vpop.f32.mrb[135].mxu0  ;;  %5745 = vmatmul.mubr.bf16.gmra.mrb[160].mxu1 %v11439_v10  ;;  %v11768_v32 = vpop.permute.xlu0 %7446  ;;  %7631 = vrot.lane.b32.xlu1 %v11773_v15, %s9100_s20  ;;  %v4968_v21 = vmax.f32 %v4576_v59, 0.0 }
 0x43e   : > { %14053 = vst [vmem:[#allocation167_spill] sm:$0xff] %v11768_v32  ;;  %v4582_v50 = vadd.f32 %v4581_v16, %v10391_v47  ;;  %5754 = vmatprep.mubr.bf16.mxu1 %v11480_v26  ;;  %7629 = vrot.lane.b32.xlu0 %v11469_v24, %s9100_s20  ;;  %v4969_v38 = vmax.f32 %v4578_v37, 0.0 }
 0x43f   : > { %v4970_v54 = vmax.f32 %v4580_v1, 0.0  ;;  %v11794_v1 = vld [vmem:[%s10111_s30 + $0x88] sm:$0xff] }
 0x440   : > { %v4971_v60 = vmax.f32 %v4582_v50, 0.0  ;;  %v11779_v10 = vpop.f32.mrb[56].mxu1  ;;  %v11781_v32 = vpop.permute.xlu1 %7078 }
 0x441   : > { %14054 = vst [vmem:[#allocation168_spill] sm:$0xff] %v11779_v10  ;;  %14055 = vst [vmem:[#allocation169_spill] sm:$0xff] %v11781_v32  ;;  %v11783_v16 = vpack.c.bf16 %v4970_v54, %v4968_v21  ;;  %v11785_v26 = vpop.f32.mrb[57].mxu1  ;;  %v11787_v19 = vpop.permute.xlu0 %7058  ;;  %7635 = vrot.lane.b32.xlu1 %v11794_v1, %s9100_s20 }
 0x442   : > { %14057 = vst [vmem:[#allocation171_spill] sm:$0xff] %v11785_v26  ;;  %14058 = vst [vmem:[#allocation172_spill] sm:$0xff] %v11787_v19  ;;  %v11789_v12 = vpack.c.bf16 %v4971_v60, %v4969_v38  ;;  %v4585_v35 = vpop.f32.mrb[136].mxu0  ;;  %v11791_v59 = vpop.f32.mrb[58].mxu1  ;;  %7633 = vrot.lane.b32.xlu0 %v11488_v8, %s9100_s20 }
 0x443   : > { %14056 = vst [vmem:[#allocation170_spill] sm:$0xff] %v11783_v16  ;;  %14060 = vst [vmem:[#allocation174_spill] sm:$0xff] %v11791_v59  ;;  %v4586_v37 = vadd.f32 %v4585_v35, %v10388_v22  ;;  %v4587_v50 = vpop.f32.mrb[137].mxu0  ;;  %v11799_v54 = vpop.f32.mrb[59].mxu1 }
 0x444   : > { %14059 = vst [vmem:[#allocation173_spill] sm:$0xff] %v11789_v12  ;;  %14061 = vst [vmem:[#allocation175_spill] sm:$0xff] %v11799_v54  ;;  %v4588_v60 = vadd.f32 %v4587_v50, %v10391_v47  ;;  %v4589_v21 = vpop.f32.mrb[138].mxu0  ;;  %v11810_v35 = vpop.permute.xlu1 %7462  ;;  %v11813_v12 = vld [vmem:[%s10111_s30 + $0x98] sm:$0xff] }
 0x445   : > { %v4590_v38 = vadd.f32 %v4589_v21, %v10388_v22  ;;  %v4591_v32 = vpop.f32.mrb[139].mxu0  ;;  %5755 = vmatmul.mubr.bf16.gmra.mrb[164].mxu1 %v11475_v20  ;;  %v11806_v19 = vpop.permute.xlu0 %7070  ;;  %14063 = vst [vmem:[#allocation177_spill] sm:$0xff] %v11810_v35  ;;  %7639 = vrot.lane.b32.xlu1 %v11813_v12, %s9100_s20  ;;  %v4972_v50 = vmax.f32 %v4586_v37, 0.0  ;;  %v11832_v37 = vld [vmem:[%s10111_s30 + $0xa8] sm:$0xff] }
 0x446   : > { %14062 = vst [vmem:[#allocation176_spill] sm:$0xff] %v11806_v19  ;;  %v4592_v16 = vadd.f32 %v4591_v32, %v10391_v47  ;;  %5764 = vmatprep.mubr.bf16.mxu1 %v11516_v49  ;;  %7637 = vrot.lane.b32.xlu0 %v11505_v9, %s9100_s20  ;;  %v4973_v20 = vmax.f32 %v4588_v60, 0.0 }
 0x447   : > { %v4974_v54 = vmax.f32 %v4590_v38, 0.0 }
 0x448   : > { %v4975_v21 = vmax.f32 %v4592_v16, 0.0  ;;  %v11819_v19 = vpop.f32.mrb[60].mxu1 }
 0x449   : > { %14064 = vst [vmem:[#allocation178_spill] sm:$0xff] %v11819_v19  ;;  %v11821_v32 = vpack.c.bf16 %v4974_v54, %v4972_v50  ;;  %v11823_v49 = vpop.f32.mrb[61].mxu1  ;;  %v11825_v59 = vpop.permute.xlu0 %7074  ;;  %7643 = vrot.lane.b32.xlu1 %v11832_v37, %s9100_s20 }
 0x44a   : > { %14066 = vst [vmem:[#allocation180_spill] sm:$0xff] %v11823_v49  ;;  %14067 = vst [vmem:[#allocation181_spill] sm:$0xff] %v11825_v59  ;;  %v11827_v35 = vpack.c.bf16 %v4975_v21, %v4973_v20  ;;  %v4595_v26 = vpop.f32.mrb[140].mxu0  ;;  %v11829_v10 = vpop.f32.mrb[62].mxu1  ;;  %7641 = vrot.lane.b32.xlu0 %v11524_v56, %s9100_s20 }
 0x44b   : > { %14065 = vst [vmem:[#allocation179_spill] sm:$0xff] %v11821_v32  ;;  %14069 = vst [vmem:[#allocation183_spill] sm:$0xff] %v11829_v10  ;;  %v4596_v16 = vadd.f32 %v4595_v26, %v10388_v22  ;;  %v4597_v60 = vpop.f32.mrb[141].mxu0  ;;  %v11837_v54 = vpop.f32.mrb[63].mxu1  ;;  %v11849_v26 = vld [vmem:[%s10111_s30 + $0xb8] sm:$0xff]  ;;  %v11866_v10 = vadd.f32 %v11333_v25, %v10968_v43  ;;  %v11887_v43 = vld [vmem:[%s10111_s30 + $0xc8] sm:$0xff] }
 0x44c   : > { %14068 = vst [vmem:[#allocation182_spill] sm:$0xff] %v11827_v35  ;;  %14070 = vst [vmem:[#allocation184_spill] sm:$0xff] %v11837_v54  ;;  %v4598_v38 = vadd.f32 %v4597_v60, %v10391_v47  ;;  %v4599_v50 = vpop.f32.mrb[142].mxu0  ;;  %v11842_v20 = vpop.permute.xlu1 %7082  ;;  %v5220_v60 = vld [vmem:[%s13720_s9] sm:$0x3]  ;;  %v14077_v25 = vld [vmem:[#allocation64_spill] sm:$0xff] }
 0x44d   : > { %14071 = vst [vmem:[#allocation185_spill] sm:$0xff] %v11842_v20  ;;  %v4600_v21 = vadd.f32 %v4599_v50, %v10388_v22  ;;  %v4601_v59 = vpop.f32.mrb[143].mxu0  ;;  %5765 = vmatmul.mubr.bf16.gmra.mrb[168].mxu1 %v11511_v4  ;;  %7647 = vrot.lane.b32.xlu1 %v11849_v26, %s9100_s20  ;;  %v4976_v35 = vmax.f32 %v4596_v16, 0.0 }
 0x44e   : > { %v4602_v32 = vadd.f32 %v4601_v59, %v10391_v47  ;;  %5774 = vmatprep.mubr.bf16.mxu1 %v11555_v27  ;;  %v11856_v50 = vpop.permute.xlu0 %7458  ;;  %7645 = vrot.lane.b32.xlu0 %v11541_v13, %s9100_s20  ;;  %v4977_v4 = vmax.f32 %v4598_v38, 0.0 }
 0x44f   : > { %v4978_v20 = vmax.f32 %v4600_v21, 0.0  ;;  %14072 = vst [vmem:[#allocation186_spill] sm:$0xff] %v11856_v50  ;;  %v11874_v21 = vadd.f32 %v11361_v28, %v10985_v30  ;;  %v11877_v50 = vrot.slane %v5220_v60, %v9616_v44  ;;  %v11893_v30 = vadd.f32 %v11380_v23, %v14077_v25  ;;  %v14078_v28 = vld [vmem:[#allocation66_spill] sm:$0xff]  ;;  %v14084_v25 = vld [vmem:[#allocation72_spill] sm:$0xff] }
 0x450   : > { %v4979_v59 = vmax.f32 %v4602_v32, 0.0  ;;  %v11860_v27 = vpop.f32.mrb[64].mxu1  ;;  %v11862_v54 = vpop.permute.xlu1 %7466  ;;  %v14076_v32 = vld [vmem:[#allocation3_spill] sm:$0xff]  ;;  %v11897_v44 = vadd.f32 %v11397_v18, %v14078_v28  ;;  %v11914_v18 = vadd.f32 %v11452_v53, %v14084_v25  ;;  %v14086_v28 = vld [vmem:[#allocation73_spill] sm:$0xff]  ;;  %v14091_v53 = vld [vmem:[#allocation76_spill] sm:$0xff] }
 0x451   : > { %14073 = vst [vmem:[#allocation187_spill] sm:$0xff] %v11860_v27  ;;  %14074 = vst [vmem:[#allocation188_spill] sm:$0xff] %v11862_v54  ;;  %v11868_v49 = vpack.c.bf16 %v4978_v20, %v4976_v35  ;;  %v11870_v16 = vpop.f32.mrb[65].mxu1  ;;  %v11880_v38 = vrot.slane %v5220_v60, %v14076_v32  ;;  %7651 = vrot.lane.b32.xlu1 %v11887_v43, %s9100_s20  ;;  %v14080_v35 = vld [vmem:[#allocation68_spill] sm:$0xff]  ;;  %v14082_v32 = vld [vmem:[#allocation70_spill] sm:$0xff]  ;;  %v11933_v25 = vadd.f32 %v11488_v8, %v14091_v53 }
 0x452   : > { %v11882_v27 = vpack.c.bf16 %v4979_v59, %v4977_v4  ;;  %v4605_v54 = vpop.f32.mrb[144].mxu0  ;;  %v11884_v19 = vpop.f32.mrb[66].mxu1  ;;  %14079 = vst [vmem:[#allocation3_spill] sm:$0xff] %v11897_v44  ;;  %v11901_v20 = vadd.f32 %v11416_v5, %v14080_v35  ;;  %7649 = vrot.lane.b32.xlu0 %v11565_v14, %s9100_s20  ;;  %v11910_v23 = vadd.f32 %v11433_v3, %v14082_v32  ;;  %14085 = vst [vmem:[#allocation68_spill] sm:$0xff] %v11914_v18  ;;  %v14090_v3 = vld [vmem:[#allocation75_spill] sm:$0xff]  ;;  %v9064_v8 = vld [vmem:[%s10111_s30 + $0xd8] sm:$0xff] }
 0x453   : > { %14075 = vst [vmem:[#allocation189_spill] sm:$0xff] %v11868_v49  ;;  %v4606_v60 = vadd.f32 %v4605_v54, %v10388_v22  ;;  %v4607_v4 = vpop.f32.mrb[145].mxu0  ;;  %v11904_v59 = vpop.f32.mrb[67].mxu1  ;;  %v11918_v5 = vadd.f32 %v11328_v48, %v14086_v28  ;;  %v11929_v32 = vadd.f32 %v11653_v6, %v14090_v3  ;;  %14092 = vst [vmem:[#allocation73_spill] sm:$0xff] %v11933_v25  ;;  %v14098_v53 = vld [vmem:[#allocation80_spill] sm:$0xff]  ;;  %v9065_v25 = vld [vmem:[%s10111_s30 + $0xd0] sm:$0xff] }
 0x454   : > { %14081 = vst [vmem:[#allocation64_spill] sm:$0xff] %v11901_v20  ;;  %14083 = vst [vmem:[#allocation66_spill] sm:$0xff] %v11910_v23  ;;  %v4608_v54 = vadd.f32 %v4607_v4, %v10391_v47  ;;  %v4609_v35 = vpop.f32.mrb[146].mxu0  ;;  %v11921_v49 = vpop.permute.xlu1 %7470  ;;  %v14088_v20 = vld [vmem:[#allocation74_spill] sm:$0xff]  ;;  %v14131_v18 = vld [vmem:[#allocation101_spill] sm:$0xff] }
 0x455   : > { %14087 = vst [vmem:[#allocation70_spill] sm:$0xff] %v11921_v49  ;;  %v11925_v44 = vadd.f32 %v11469_v24, %v14088_v20  ;;  %v4610_v48 = vadd.f32 %v4609_v35, %v10388_v22  ;;  %v4611_v28 = vpop.f32.mrb[147].mxu0  ;;  %5775 = vmatmul.mubr.bf16.gmra.mrb[172].mxu1 %v11549_v31  ;;  %v11937_v4 = vpop.permute.xlu0 %7086  ;;  %v14094_v49 = vld [vmem:[#allocation77_spill] sm:$0xff]  ;;  %v14095_v20 = vld [vmem:[#allocation78_spill] sm:$0xff]  ;;  %7655 = vrot.lane.b32.xlu1 %v9064_v8, %s9100_s20  ;;  %v14097_v35 = vld [vmem:[#allocation79_spill] sm:$0xff] }
 0x456   : > { %14093 = vst [vmem:[#allocation74_spill] sm:$0xff] %v11937_v4  ;;  %v11941_v24 = vadd.f32 %v11674_v36, %v14094_v49  ;;  %v11945_v6 = vadd.f32 %v11505_v9, %v14095_v20  ;;  %v4612_v3 = vadd.f32 %v4611_v28, %v10391_v47  ;;  %5784 = vmatprep.mubr.bf16.mxu1 %v11592_v55  ;;  %v4980_v36 = vmax.f32 %v4606_v60, 0.0  ;;  %v14100_v9 = vld [vmem:[#allocation81_spill] sm:$0xff]  ;;  %v14101_v28 = vld [vmem:[#allocation82_spill] sm:$0xff]  ;;  %v14103_v60 = vld [vmem:[#allocation83_spill] sm:$0xff] }
 0x457   : > { %14089 = vst [vmem:[#allocation72_spill] sm:$0xff] %v11925_v44  ;;  %v11953_v31 = vadd.f32 %v11693_v57, %v14097_v35  ;;  %v11957_v4 = vadd.f32 %v11524_v56, %v14098_v53  ;;  %v4982_v49 = vmax.f32 %v4610_v48, 0.0  ;;  %7653 = vrot.lane.b32.xlu0 %v9065_v25, %s9100_s20  ;;  %v11963_v55 = vadd.f32 %v11714_v17, %v14100_v9  ;;  %v14105_v53 = vld [vmem:[#allocation84_spill] sm:$0xff]  ;;  %v14107_v17 = vld [vmem:[#allocation85_spill] sm:$0xff] }
 0x458   : > { %14096 = vst [vmem:[#allocation75_spill] sm:$0xff] %v11945_v6  ;;  %v11967_v20 = vadd.f32 %v11541_v13, %v14101_v28  ;;  %v4981_v57 = vmax.f32 %v4608_v54, 0.0  ;;  %v4983_v35 = vmax.f32 %v4612_v3, 0.0  ;;  %v11969_v6 = vpop.f32.mrb[68].mxu1  ;;  %v11971_v56 = vpop.permute.xlu1 %7219  ;;  %v11975_v48 = vadd.f32 %v11733_v42, %v14103_v60  ;;  %v14110_v28 = vld [vmem:[#allocation86_spill] sm:$0xff]  ;;  %v14112_v42 = vld [vmem:[#allocation87_spill] sm:$0xff] }
 0x459   : > { %14099 = vst [vmem:[#allocation76_spill] sm:$0xff] %v11957_v4  ;;  %v11979_v4 = vadd.f32 %v11565_v14, %v14105_v53  ;;  %v11983_v13 = vadd.f32 %v11754_v58, %v14107_v17  ;;  %v11985_v54 = vpack.c.bf16 %v4982_v49, %v4980_v36  ;;  %v11987_v3 = vpop.f32.mrb[69].mxu1  ;;  %v11989_v9 = vpop.permute.xlu0 %7217  ;;  %v11996_v60 = vadd.f32 %v11773_v15, %v14112_v42  ;;  %v9066_v14 = vld [vmem:[%s10111_s30 + $0xe0] sm:$0xff]  ;;  %v14114_v53 = vld [vmem:[#allocation88_spill] sm:$0xff]  ;;  %v14117_v17 = vld [vmem:[#allocation89_spill] sm:$0xff] }
 0x45a   : > { %14102 = vst [vmem:[#allocation77_spill] sm:$0xff] %v11967_v20  ;;  %14104 = vst [vmem:[#allocation78_spill] sm:$0xff] %v11975_v48  ;;  %v11992_v20 = vadd.f32 %v9065_v25, %v14110_v28  ;;  %v12002_v44 = vpack.c.bf16 %v4983_v35, %v4981_v57  ;;  %v4615_v58 = vpop.f32.mrb[148].mxu0  ;;  %v12004_v36 = vpop.f32.mrb[70].mxu1  ;;  %v9067_v49 = vld [vmem:[%s10111_s30 + $0xe8] sm:$0xff]  ;;  %v5427_v25 = vadd.f32 %v11545_v7, %v11877_v50  ;;  %v9068_v15 = vld [vmem:[%s10111_s30 + $0xf0] sm:$0xff] }
 0x45b   : > { %14106 = vst [vmem:[#allocation79_spill] sm:$0xff] %v11979_v4  ;;  %14108 = vst [vmem:[#allocation80_spill] sm:$0xff] %v11983_v13  ;;  %v12000_v4 = vadd.f32 %v9066_v14, %v14114_v53  ;;  %7659 = vrot.lane.b32.xlu1 %v9067_v49, %s9100_s20  ;;  %v12012_v28 = vadd.f32 %v11794_v1, %v14117_v17  ;;  %v14119_v42 = vld [vmem:[#allocation90_spill] sm:$0xff]  ;;  %v4616_v57 = vadd.f32 %v4615_v58, %v10388_v22  ;;  %v4617_v35 = vpop.f32.mrb[149].mxu0  ;;  %v12019_v53 = vpop.f32.mrb[71].mxu1  ;;  %v14123_v1 = vld [vmem:[#allocation93_spill] sm:$0xff] }
 0x45c   : > { %14109 = vst [vmem:[#allocation81_spill] sm:$0xff] %v11985_v54  ;;  %14111 = vst [vmem:[#allocation82_spill] sm:$0xff] %v11992_v20  ;;  %v12016_v20 = vadd.f32 %v9068_v15, %v14119_v42  ;;  %7657 = vrot.lane.b32.xlu0 %v9066_v14, %s9100_s20  ;;  %v12030_v17 = vadd.f32 %v11832_v37, %v14123_v1  ;;  %v4618_v42 = vadd.f32 %v4617_v35, %v10391_v47  ;;  %v4619_v58 = vpop.f32.mrb[150].mxu0  ;;  %v14127_v1 = vld [vmem:[#allocation97_spill] sm:$0xff] }
 0x45d   : > { %14113 = vst [vmem:[#allocation83_spill] sm:$0xff] %v11996_v60  ;;  %14115 = vst [vmem:[#allocation84_spill] sm:$0xff] %v12000_v4  ;;  %v5429_v4 = vadd.f32 %v11551_v0, %v11880_v38  ;;  %v14121_v60 = vld [vmem:[#allocation91_spill] sm:$0xff]  ;;  %v5431_v14 = vadd.f32 %v11557_v29, %v11877_v50  ;;  %v5433_v0 = vadd.f32 %v11562_v63, %v11880_v38  ;;  %5785 = vmatmul.mubr.bf16.gmra.mrb[176].mxu1 %v11586_v52  ;;  %v12045_v37 = vpop.permute.xlu0 %7221 }
 0x45e   : > { %14116 = vst [vmem:[#allocation85_spill] sm:$0xff] %v12002_v44  ;;  %14118 = vst [vmem:[#allocation86_spill] sm:$0xff] %v12012_v28  ;;  %v12026_v7 = vadd.f32 %v11813_v12, %v14121_v60  ;;  %v14125_v28 = vld [vmem:[#allocation95_spill] sm:$0xff]  ;;  %v4620_v60 = vadd.f32 %v4619_v58, %v10388_v22  ;;  %v5437_v35 = vadd.f32 %v11582_v39, %v11877_v50  ;;  %5794 = vmatprep.mubr.bf16.mxu1 %v11626_v41 }
 0x45f   : > { %14120 = vst [vmem:[#allocation87_spill] sm:$0xff] %v12016_v20  ;;  %14124 = vst [vmem:[#allocation89_spill] sm:$0xff] %v12030_v17  ;;  %v12033_v20 = vpop.permute.xlu1 %7223  ;;  %v12041_v12 = vadd.f32 %v11849_v26, %v14125_v28  ;;  %v12051_v29 = vadd.f32 %v11887_v43, %v14127_v1  ;;  %v9069_v26 = vld [vmem:[%s10111_s30 + $0xf8] sm:$0xff]  ;;  %v6065_v28 = vmax.f32 %v5427_v25, 0.0  ;;  %v14129_v58 = vld [vmem:[#allocation99_spill] sm:$0xff]  ;;  %v4984_v52 = vmax.f32 %v4616_v57, 0.0 }
 0x460   : > { %14122 = vst [vmem:[#allocation88_spill] sm:$0xff] %v12026_v7  ;;  %v4621_v7 = vpop.f32.mrb[151].mxu0  ;;  %7663 = vrot.lane.b32.xlu1 %v9069_v26, %s9100_s20  ;;  %v4986_v17 = vmax.f32 %v4620_v60, 0.0  ;;  %7661 = vrot.lane.b32.xlu0 %v9068_v15, %s9100_s20  ;;  %v6066_v39 = vmax.f32 %v5429_v4, 0.0  ;;  %v12062_v54 = vadd.f32 %v9067_v49, %v14131_v18  ;;  %v4985_v43 = vmax.f32 %v4618_v42, 0.0  ;;  %v14134_v49 = vld [vmem:[#allocation103_spill] sm:$0xff] }
 0x461   : > { %14126 = vst [vmem:[#allocation90_spill] sm:$0xff] %v12041_v12  ;;  %14128 = vst [vmem:[#allocation91_spill] sm:$0xff] %v12051_v29  ;;  %v4622_v63 = vadd.f32 %v4621_v7, %v10391_v47  ;;  %v12058_v12 = vadd.f32 %v9064_v8, %v14129_v58  ;;  %v12064_v7 = vpop.f32.mrb[72].mxu1  ;;  %v6067_v29 = vmax.f32 %v5431_v14, 0.0  ;;  %v6068_v13 = vmax.f32 %v5433_v0, 0.0  ;;  %v12074_v15 = vpop.permute.xlu0 %7225 }
 0x462   : > { %14132 = vst [vmem:[#allocation95_spill] sm:$0xff] %v12062_v54  ;;  %v5439_v8 = vadd.f32 %v11588_v34, %v11880_v38  ;;  %v12070_v25 = vpack.c.bf16 %v4986_v17, %v4984_v52  ;;  %v12072_v57 = vpop.f32.mrb[73].mxu1  ;;  %v6069_v4 = vmax.f32 %v5437_v35, 0.0  ;;  %v5441_v18 = vadd.f32 %v11594_v40, %v11877_v50  ;;  %v4625_v14 = vpop.f32.mrb[152].mxu0  ;;  %v8984_v34 = vld [vmem:[%s13721_s10 + $0x68] sm:$0xff]   ;;  %v14137_v35 = vld [vmem:[#allocation13_spill] sm:$0xff] }
 0x463   : > { %14130 = vst [vmem:[#allocation93_spill] sm:$0xff] %v12058_v12  ;;  %v4987_v1 = vmax.f32 %v4622_v63, 0.0  ;;  %v12066_v41 = vpop.permute.xlu1 %7227  ;;  %v12079_v42 = vadd.f32 %v9069_v26, %v14134_v49  ;;  %v12083_v0 = vpop.f32.mrb[74].mxu1  ;;  %v8985_v17 = vld [vmem:[%s13721_s10 + $0x28] sm:$0xff]   ;;  %v12092_v63 = vmul.f32 %v14137_v35, %v6065_v28  ;;  %v5443_v40 = vadd.f32 %v11599_v11, %v11880_v38  ;;  %8574 = vmatprep.subr.bf16.mxu0 %v8984_v34 }
 0x464   : > { %14133 = vst [vmem:[#allocation97_spill] sm:$0xff] %v12070_v25  ;;  %v5447_v26 = vadd.f32 %v11616_v2, %v11877_v50  ;;  %v4626_v58 = vadd.f32 %v4625_v14, %v10388_v22  ;;  %v4627_v52 = vpop.f32.mrb[153].mxu0  ;;  %v5449_v49 = vadd.f32 %v11622_v61, %v11880_v38  ;;  %v5451_v28 = vadd.f32 %v11628_v33, %v11877_v50  ;;  %v14140_v2 = vld [vmem:[#allocation8_spill] sm:$0xff]  ;;  %v14143_v33 = vld [vmem:[#allocation15_spill] sm:$0xff] }
 0x465   : > { %14135 = vst [vmem:[#allocation99_spill] sm:$0xff] %v12079_v42  ;;  %v12081_v60 = vpack.c.bf16 %v4987_v1, %v4985_v43  ;;  %14138 = vst [vmem:[#allocation103_spill] sm:$0xff] %v12092_v63  ;;  %v12099_v43 = vpop.f32.mrb[75].mxu1  ;;  %v12102_v1 = vmul.f32 %v14137_v35, %v6066_v39  ;;  %v4628_v42 = vadd.f32 %v4627_v52, %v10391_v47  ;;  %v4629_v11 = vpop.f32.mrb[154].mxu0  ;;  %v6070_v39 = vmax.f32 %v5439_v8, 0.0 }
 0x466   : > { %v12112_v14 = vmul.f32 %v14140_v2, %v6067_v29  ;;  %v12115_v12 = vmul.f32 %v14140_v2, %v6068_v13  ;;  %v4630_v35 = vadd.f32 %v4629_v11, %v10388_v22  ;;  %v4631_v25 = vpop.f32.mrb[155].mxu0  ;;  %5795 = vmatmul.mubr.bf16.gmra.mrb[180].mxu1 %v11620_v46  ;;  %v12119_v61 = vpop.permute.xlu0 %7229  ;;  %8575 = vmatpush3.bf16.msra.mxu0 %v8985_v17  ;;  %v6071_v34 = vmax.f32 %v5441_v18, 0.0 }
 0x467   : > { %14136 = vst [vmem:[#allocation101_spill] sm:$0xff] %v12081_v60  ;;  %14139 = vst [vmem:[#allocation13_spill] sm:$0xff] %v12102_v1  ;;  %v12109_v54 = vpop.permute.xlu1 %7231  ;;  %v12122_v52 = vmul.f32 %v14143_v33, %v6069_v4  ;;  %v5453_v29 = vadd.f32 %v11639_v62, %v11880_v38  ;;  %v4632_v60 = vadd.f32 %v4631_v25, %v10391_v47  ;;  %5804 = vmatprep.mubr.bf16.mxu1 %v11669_v51  ;;  %v14146_v51 = vld [vmem:[#allocation142_spill] sm:$0xff] }
 0x468   : > { %14141 = vst [vmem:[#allocation8_spill] sm:$0xff] %v12112_v14  ;;  %14142 = vst [vmem:[#allocation190_spill] sm:$0xff] %v12115_v12  ;;  %v6072_v13 = vmax.f32 %v5443_v40, 0.0  ;;  %v6073_v8 = vmax.f32 %v5447_v26, 0.0  ;;  %v4988_v11 = vmax.f32 %v4626_v58, 0.0  ;;  %v4990_v2 = vmax.f32 %v4630_v35, 0.0 }
 0x469   : > { %14144 = vst [vmem:[#allocation15_spill] sm:$0xff] %v12122_v52  ;;  %v6074_v23 = vmax.f32 %v5449_v49, 0.0  ;;  %v6075_v46 = vmax.f32 %v5451_v28, 0.0  ;;  %v4989_v12 = vmax.f32 %v4628_v42, 0.0  ;;  %v4991_v14 = vmax.f32 %v4632_v60, 0.0  ;;  %v12128_v17 = vpop.f32.mrb[76].mxu1 }
 0x46a   : > { %v12133_v18 = vmul.f32 %v14143_v33, %v6070_v39  ;;  %v5457_v62 = vadd.f32 %v11659_v45, %v11877_v50  ;;  %v5459_v25 = vadd.f32 %v14146_v51, %v11880_v38  ;;  %v12139_v40 = vpack.c.bf16 %v4990_v2, %v4988_v11  ;;  %v12141_v26 = vpop.f32.mrb[77].mxu1  ;;  %v12143_v58 = vpop.permute.xlu0 %7233  ;;  %v14148_v42 = vld [vmem:[#allocation16_spill] sm:$0xff]  ;;  %v14154_v11 = vld [vmem:[#allocation10_spill] sm:$0xff] }
 0x46b   : > { %v12130_v4 = vpop.permute.xlu1 %7235  ;;  %v12146_v60 = vmul.f32 %v14148_v42, %v6071_v34  ;;  %v6076_v49 = vmax.f32 %v5453_v29, 0.0  ;;  %v14150_v28 = vld [vmem:[#allocation144_spill] sm:$0xff]  ;;  %v12150_v35 = vpack.c.bf16 %v4991_v14, %v4989_v12  ;;  %v4635_v33 = vpop.f32.mrb[156].mxu0  ;;  %v12155_v51 = vmul.f32 %v14148_v42, %v6072_v13  ;;  %v14159_v14 = vld [vmem:[#allocation17_spill] sm:$0xff] }
 0x46c   : > { %14145 = vst [vmem:[#allocation191_spill] sm:$0xff] %v12133_v18  ;;  %14147 = vst [vmem:[#allocation142_spill] sm:$0xff] %v12139_v40  ;;  %v5461_v39 = vadd.f32 %v14150_v28, %v11877_v50  ;;  %v12152_v45 = vpop.f32.mrb[78].mxu1  ;;  %v12158_v2 = vmul.f32 %v14154_v11, %v6073_v8  ;;  %v14156_v40 = vld [vmem:[#allocation145_spill] sm:$0xff]  ;;  %v4636_v34 = vadd.f32 %v4635_v33, %v10388_v22  ;;  %v4637_v29 = vpop.f32.mrb[157].mxu0  ;;  %v14161_v13 = vld [vmem:[#allocation148_spill] sm:$0xff] }
 0x46d   : > { %14149 = vst [vmem:[#allocation16_spill] sm:$0xff] %v12146_v60  ;;  %14151 = vst [vmem:[#allocation144_spill] sm:$0xff] %v12150_v35  ;;  %v5463_v18 = vadd.f32 %v14156_v40, %v11880_v38  ;;  %v12163_v60 = vpop.f32.mrb[79].mxu1  ;;  %v12166_v12 = vmul.f32 %v14154_v11, %v6074_v23  ;;  %v12169_v28 = vmul.f32 %v14159_v14, %v6075_v46  ;;  %v6077_v40 = vmax.f32 %v5457_v62, 0.0  ;;  %v14163_v33 = vld [vmem:[#allocation151_spill] sm:$0xff]  ;;  %v14164_v11 = vld [vmem:[#allocation141_spill] sm:$0xff] }
 0x46e   : > { %14152 = vst [vmem:[#allocation192_spill] sm:$0xff] %v12152_v45  ;;  %14153 = vst [vmem:[#allocation193_spill] sm:$0xff] %v12155_v51  ;;  %v5467_v42 = vadd.f32 %v14161_v13, %v11877_v50  ;;  %v4638_v8 = vadd.f32 %v4637_v29, %v10391_v47  ;;  %v4639_v45 = vpop.f32.mrb[158].mxu0  ;;  %v6078_v35 = vmax.f32 %v5459_v25, 0.0  ;;  %v5469_v51 = vadd.f32 %v14163_v33, %v11880_v38  ;;  %v12180_v46 = vpop.permute.xlu0 %7237  ;;  %v14167_v29 = vld [vmem:[#allocation154_spill] sm:$0xff]  ;;  %v14168_v25 = vld [vmem:[#allocation153_spill] sm:$0xff] }
 0x46f   : > { %14155 = vst [vmem:[#allocation10_spill] sm:$0xff] %v12158_v2  ;;  %14157 = vst [vmem:[#allocation145_spill] sm:$0xff] %v12163_v60  ;;  %v12174_v2 = vpop.permute.xlu1 %7239  ;;  %v4640_v60 = vadd.f32 %v4639_v45, %v10388_v22  ;;  %v4641_v23 = vpop.f32.mrb[159].mxu0  ;;  %5805 = vmatmul.mubr.bf16.gmra.mrb[184].mxu1 %v14164_v11  ;;  %v6079_v13 = vmax.f32 %v5461_v39, 0.0  ;;  %v6080_v52 = vmax.f32 %v5463_v18, 0.0  ;;  %v14169_v33 = vld [vmem:[#allocation155_spill] sm:$0xff] }
 0x470   : > { %14158 = vst [vmem:[#allocation194_spill] sm:$0xff] %v12166_v12  ;;  %14160 = vst [vmem:[#allocation17_spill] sm:$0xff] %v12169_v28  ;;  %v12183_v28 = vmul.f32 %v14159_v14, %v6076_v49  ;;  %v5471_v12 = vadd.f32 %v14167_v29, %v11877_v50  ;;  %v4642_v62 = vadd.f32 %v4641_v23, %v10391_v47  ;;  %5814 = vmatprep.mubr.bf16.mxu1 %v14168_v25  ;;  %v12193_v39 = vpop.f32.mrb[80].mxu1  ;;  %v14173_v29 = vld [vmem:[#allocation9_spill] sm:$0xff] }
 0x471   : > { %14162 = vst [vmem:[#allocation148_spill] sm:$0xff] %v12174_v2  ;;  %14165 = vst [vmem:[#allocation151_spill] sm:$0xff] %v12180_v46  ;;  %v5473_v45 = vadd.f32 %v14169_v33, %v11880_v38  ;;  %v4992_v1 = vmax.f32 %v4636_v34, 0.0  ;;  %v4994_v63 = vmax.f32 %v4640_v60, 0.0  ;;  %v6081_v11 = vmax.f32 %v5467_v42, 0.0  ;;  %v14170_v46 = vld [vmem:[#allocation158_spill] sm:$0xff] }
 0x472   : > { %14166 = vst [vmem:[#allocation141_spill] sm:$0xff] %v12183_v28  ;;  %v5477_v2 = vadd.f32 %v14170_v46, %v11877_v50  ;;  %v4993_v49 = vmax.f32 %v4638_v8, 0.0  ;;  %v4995_v14 = vmax.f32 %v4642_v62, 0.0  ;;  %14171 = vst [vmem:[#allocation154_spill] sm:$0xff] %v12193_v39  ;;  %v12198_v23 = vmul.f32 %v14173_v29, %v6077_v40  ;;  %v12205_v60 = vpop.f32.mrb[81].mxu1  ;;  %v12207_v34 = vpop.permute.xlu0 %7241  ;;  %v14179_v42 = vld [vmem:[#allocation18_spill] sm:$0xff] }
 0x473   : > { %v12195_v28 = vpop.permute.xlu1 %7243  ;;  %v12201_v18 = vmul.f32 %v14173_v29, %v6078_v35  ;;  %v6082_v25 = vmax.f32 %v5469_v51, 0.0  ;;  %v12203_v33 = vpack.c.bf16 %v4994_v63, %v4992_v1  ;;  %14177 = vst [vmem:[#allocation195_spill] sm:$0xff] %v12205_v60  ;;  %14178 = vst [vmem:[#allocation196_spill] sm:$0xff] %v12207_v34  ;;  %v12210_v8 = vmul.f32 %v14179_v42, %v6079_v13  ;;  %v14181_v62 = vld [vmem:[#allocation161_spill] sm:$0xff]  ;;  %v4645_v40 = vpop.f32.mrb[160].mxu0  ;;  %v14185_v1 = vld [vmem:[#allocation164_spill] sm:$0xff] }
 0x474   : > { %14172 = vst [vmem:[#allocation153_spill] sm:$0xff] %v12195_v28  ;;  %14174 = vst [vmem:[#allocation155_spill] sm:$0xff] %v12198_v23  ;;  %v6083_v46 = vmax.f32 %v5471_v12, 0.0  ;;  %v5479_v39 = vadd.f32 %v14181_v62, %v11880_v38  ;;  %v12214_v28 = vpack.c.bf16 %v4995_v14, %v4993_v49  ;;  %v12216_v23 = vpop.f32.mrb[82].mxu1  ;;  %v12219_v35 = vmul.f32 %v14179_v42, %v6080_v52  ;;  %v4647_v13 = vpop.f32.mrb[161].mxu0  ;;  %v14187_v12 = vld [vmem:[#allocation20_spill] sm:$0xff] }
 0x475   : > { %14175 = vst [vmem:[#allocation158_spill] sm:$0xff] %v12201_v18  ;;  %14176 = vst [vmem:[#allocation9_spill] sm:$0xff] %v12203_v33  ;;  %v6084_v63 = vmax.f32 %v5473_v45, 0.0  ;;  %v5481_v51 = vadd.f32 %v14185_v1, %v11877_v50  ;;  %v4646_v29 = vadd.f32 %v4645_v40, %v10388_v22  ;;  %v12224_v60 = vpop.f32.mrb[83].mxu1  ;;  %v12227_v33 = vmul.f32 %v14187_v12, %v6081_v11  ;;  %v14189_v14 = vld [vmem:[#allocation165_spill] sm:$0xff]  ;;  %v4649_v52 = vpop.f32.mrb[162].mxu0 }
 0x476   : > { %14180 = vst [vmem:[#allocation18_spill] sm:$0xff] %v12210_v8  ;;  %14182 = vst [vmem:[#allocation161_spill] sm:$0xff] %v12214_v28  ;;  %v6085_v49 = vmax.f32 %v5477_v2, 0.0  ;;  %v5483_v62 = vadd.f32 %v14189_v14, %v11880_v38  ;;  %v12235_v45 = vmul.f32 %v14187_v12, %v6082_v25  ;;  %v14192_v40 = vld [vmem:[#allocation168_spill] sm:$0xff]  ;;  %v4650_v11 = vadd.f32 %v4649_v52, %v10388_v22  ;;  %v4651_v2 = vpop.f32.mrb[163].mxu0  ;;  %v12243_v14 = vpop.permute.xlu0 %7245  ;;  %v14198_v25 = vld [vmem:[#allocation174_spill] sm:$0xff] }
 0x477   : > { %14183 = vst [vmem:[#allocation197_spill] sm:$0xff] %v12216_v23  ;;  %14184 = vst [vmem:[#allocation198_spill] sm:$0xff] %v12219_v35  ;;  %v4648_v23 = vadd.f32 %v4647_v13, %v10391_v47  ;;  %v12232_v42 = vpop.permute.xlu1 %7247  ;;  %v5487_v1 = vadd.f32 %v14192_v40, %v11877_v50  ;;  %v14196_v13 = vld [vmem:[#allocation4_spill] sm:$0xff]  ;;  %v6086_v18 = vmax.f32 %v5479_v39, 0.0  ;;  %v5491_v12 = vadd.f32 %v14198_v25, %v11877_v50  ;;  %v14199_v40 = vld [vmem:[#allocation163_spill] sm:$0xff] }
 0x478   : > { %14186 = vst [vmem:[#allocation164_spill] sm:$0xff] %v12224_v60  ;;  %14188 = vst [vmem:[#allocation20_spill] sm:$0xff] %v12227_v33  ;;  %v14193_v60 = vld [vmem:[#allocation171_spill] sm:$0xff]  ;;  %v14194_v33 = vld [vmem:[#allocation150_spill] sm:$0xff]  ;;  %v12246_v8 = vmul.f32 %v14196_v13, %v6083_v46  ;;  %v6087_v52 = vmax.f32 %v5481_v51, 0.0  ;;  %v4996_v28 = vmax.f32 %v4646_v29, 0.0 }
 0x479   : > { %14190 = vst [vmem:[#allocation165_spill] sm:$0xff] %v12232_v42  ;;  %14191 = vst [vmem:[#allocation199_spill] sm:$0xff] %v12235_v45  ;;  %v5489_v35 = vadd.f32 %v14193_v60, %v11880_v38  ;;  %5815 = vmatmul.mubr.bf16.gmra.mrb[188].mxu1 %v14194_v33  ;;  %v4652_v45 = vadd.f32 %v4651_v2, %v10391_v47  ;;  %v12253_v60 = vmul.f32 %v14196_v13, %v6084_v63  ;;  %v14201_v33 = vld [vmem:[#allocation11_spill] sm:$0xff]  ;;  %v12258_v39 = vpop.f32.mrb[84].mxu1  ;;  %v14211_v13 = vld [vmem:[#allocation6_spill] sm:$0xff] }
 0x47a   : > { %14195 = vst [vmem:[#allocation168_spill] sm:$0xff] %v12243_v14  ;;  %14197 = vst [vmem:[#allocation171_spill] sm:$0xff] %v12246_v8  ;;  %5824 = vmatprep.mubr.bf16.mxu1 %v14199_v40  ;;  %v4998_v42 = vmax.f32 %v4650_v11, 0.0  ;;  %v12256_v34 = vmul.f32 %v14201_v33, %v6085_v49  ;;  %v6088_v14 = vmax.f32 %v5483_v62, 0.0  ;;  %v4997_v46 = vmax.f32 %v4648_v23, 0.0  ;;  %v14204_v40 = vld [vmem:[#allocation175_spill] sm:$0xff]  ;;  %v12268_v29 = vpop.permute.xlu0 %7249 }
 0x47b   : > { %14200 = vst [vmem:[#allocation150_spill] sm:$0xff] %v12253_v60  ;;  %v4999_v8 = vmax.f32 %v4652_v45, 0.0  ;;  %14203 = vst [vmem:[#allocation174_spill] sm:$0xff] %v12258_v39  ;;  %v12260_v48 = vpop.permute.xlu1 %7251  ;;  %v6089_v25 = vmax.f32 %v5487_v1, 0.0  ;;  %v6090_v2 = vmax.f32 %v5489_v35, 0.0  ;;  %v5493_v44 = vadd.f32 %v14204_v40, %v11880_v38  ;;  %v12266_v51 = vpop.f32.mrb[85].mxu1 }
 0x47c   : > { %14202 = vst [vmem:[#allocation4_spill] sm:$0xff] %v12256_v34  ;;  %v12264_v63 = vpack.c.bf16 %v4998_v42, %v4996_v28  ;;  %14206 = vst [vmem:[#allocation11_spill] sm:$0xff] %v12266_v51  ;;  %v12271_v49 = vmul.f32 %v14201_v33, %v6086_v18  ;;  %v6091_v23 = vmax.f32 %v5491_v12, 0.0  ;;  %v14208_v62 = vld [vmem:[#allocation178_spill] sm:$0xff]  ;;  %v4655_v1 = vpop.f32.mrb[164].mxu0  ;;  %v12277_v35 = vpop.f32.mrb[86].mxu1  ;;  %v12280_v40 = vmul.f32 %v14211_v13, %v6087_v52 }
 0x47d   : > { %v5497_v45 = vadd.f32 %v14208_v62, %v11877_v50  ;;  %v12275_v11 = vpack.c.bf16 %v4999_v8, %v4997_v46  ;;  %14210 = vst [vmem:[#allocation200_spill] sm:$0xff] %v12277_v35  ;;  %v14213_v28 = vld [vmem:[#allocation180_spill] sm:$0xff]  ;;  %v14214_v51 = vld [vmem:[#allocation183_spill] sm:$0xff]  ;;  %v4656_v18 = vadd.f32 %v4655_v1, %v10388_v22  ;;  %v4657_v12 = vpop.f32.mrb[165].mxu0  ;;  %v12287_v33 = vpop.f32.mrb[87].mxu1  ;;  %v12290_v8 = vmul.f32 %v14211_v13, %v6088_v14 }
 0x47e   : > { %14205 = vst [vmem:[#allocation163_spill] sm:$0xff] %v12264_v63  ;;  %14207 = vst [vmem:[#allocation175_spill] sm:$0xff] %v12271_v49  ;;  %v5499_v42 = vadd.f32 %v14213_v28, %v11880_v38  ;;  %v5501_v39 = vadd.f32 %v14214_v51, %v11877_v50  ;;  %v14217_v46 = vld [vmem:[#allocation184_spill] sm:$0xff]  ;;  %v14218_v52 = vld [vmem:[#allocation187_spill] sm:$0xff]  ;;  %v4659_v28 = vpop.f32.mrb[166].mxu0  ;;  %v5509_v60 = vadd.f32 %v11870_v16, %v11880_v38 }
 0x47f   : > { %14209 = vst [vmem:[#allocation178_spill] sm:$0xff] %v12275_v11  ;;  %14212 = vst [vmem:[#allocation6_spill] sm:$0xff] %v12280_v40  ;;  %v5503_v62 = vadd.f32 %v14217_v46, %v11880_v38  ;;  %v5507_v35 = vadd.f32 %v14218_v52, %v11877_v50  ;;  %v4658_v40 = vadd.f32 %v4657_v12, %v10391_v47  ;;  %v12297_v49 = vpop.permute.xlu1 %7255  ;;  %v14220_v51 = vld [vmem:[#allocation23_spill] sm:$0xff]  ;;  %v4661_v13 = vpop.f32.mrb[167].mxu0  ;;  %v14225_v52 = vld [vmem:[#allocation14_spill] sm:$0xff]  ;;  %v6093_v12 = vmax.f32 %v5497_v45, 0.0 }
 0x480   : > { %14215 = vst [vmem:[#allocation180_spill] sm:$0xff] %v12287_v33  ;;  %14216 = vst [vmem:[#allocation183_spill] sm:$0xff] %v12290_v8  ;;  %v12300_v34 = vmul.f32 %v14220_v51, %v6089_v25  ;;  %v12303_v1 = vmul.f32 %v14220_v51, %v6090_v2  ;;  %v6092_v33 = vmax.f32 %v5493_v44, 0.0  ;;  %v4660_v14 = vadd.f32 %v4659_v28, %v10388_v22  ;;  %v14223_v8 = vld [vmem:[#allocation160_spill] sm:$0xff]  ;;  %v12307_v46 = vpop.permute.xlu0 %7253 }
 0x481   : > { %14219 = vst [vmem:[#allocation184_spill] sm:$0xff] %v12297_v49  ;;  %5825 = vmatmul.mubr.bf16.gmra.mrb[192].mxu1 %v14223_v8  ;;  %14224 = vst [vmem:[#allocation160_spill] sm:$0xff] %v12307_v46  ;;  %v12310_v63 = vmul.f32 %v14225_v52, %v6091_v23  ;;  %v4662_v25 = vadd.f32 %v4661_v13, %v10391_v47  ;;  %v6094_v2 = vmax.f32 %v5499_v42, 0.0  ;;  %v6095_v44 = vmax.f32 %v5501_v39, 0.0  ;;  %v12316_v46 = vpop.f32.mrb[88].mxu1  ;;  %v14230_v13 = vld [vmem:[#allocation25_spill] sm:$0xff] }
 0x482   : > { %14221 = vst [vmem:[#allocation187_spill] sm:$0xff] %v12300_v34  ;;  %14222 = vst [vmem:[#allocation23_spill] sm:$0xff] %v12303_v1  ;;  %v14226_v34 = vld [vmem:[#allocation173_spill] sm:$0xff]  ;;  %v5000_v51 = vmax.f32 %v4656_v18, 0.0  ;;  %v5002_v28 = vmax.f32 %v4660_v14, 0.0  ;;  %v6096_v1 = vmax.f32 %v5503_v62, 0.0  ;;  %v12321_v45 = vmul.f32 %v14225_v52, %v6092_v33 }
 0x483   : > { %5834 = vmatprep.mubr.bf16.mxu1 %v14226_v34  ;;  %v6097_v11 = vmax.f32 %v5507_v35, 0.0  ;;  %v5001_v8 = vmax.f32 %v4658_v40, 0.0  ;;  %v5003_v49 = vmax.f32 %v4662_v25, 0.0  ;;  %14227 = vst [vmem:[#allocation14_spill] sm:$0xff] %v12316_v46  ;;  %v12318_v23 = vpop.permute.xlu1 %7259  ;;  %v5511_v16 = vadd.f32 %v11884_v19, %v11877_v50  ;;  %v12329_v42 = vpop.f32.mrb[89].mxu1  ;;  %v14231_v25 = vld [vmem:[#allocation5_spill] sm:$0xff] }
 0x484   : > { %v5513_v34 = vadd.f32 %v11904_v59, %v11880_v38  ;;  %v12327_v39 = vpack.c.bf16 %v5002_v28, %v5000_v51  ;;  %14228 = vst [vmem:[#allocation173_spill] sm:$0xff] %v12329_v42  ;;  %v12331_v35 = vpop.permute.xlu0 %7257  ;;  %v6098_v40 = vmax.f32 %v5509_v60, 0.0  ;;  %v5517_v18 = vadd.f32 %v11969_v6, %v11877_v50  ;;  %v4665_v14 = vpop.f32.mrb[168].mxu0 }
 0x485   : > { %v5519_v33 = vadd.f32 %v11987_v3, %v11880_v38  ;;  %v12337_v62 = vpack.c.bf16 %v5003_v49, %v5001_v8  ;;  %v12339_v19 = vpop.f32.mrb[90].mxu1  ;;  %v12342_v59 = vmul.f32 %v14230_v13, %v6093_v12  ;;  %v12345_v52 = vmul.f32 %v14230_v13, %v6094_v2  ;;  %v4667_v6 = vpop.f32.mrb[169].mxu0  ;;  %v14235_v49 = vld [vmem:[#allocation27_spill] sm:$0xff] }
 0x486   : > { %14229 = vst [vmem:[#allocation201_spill] sm:$0xff] %v12339_v19  ;;  %v12348_v51 = vmul.f32 %v14231_v25, %v6095_v44  ;;  %v4666_v60 = vadd.f32 %v4665_v14, %v10388_v22  ;;  %v12351_v28 = vpop.f32.mrb[91].mxu1  ;;  %v12354_v3 = vmul.f32 %v14231_v25, %v6096_v1  ;;  %v12357_v8 = vmul.f32 %v14235_v49, %v6097_v11  ;;  %v4669_v13 = vpop.f32.mrb[170].mxu0  ;;  %v14237_v25 = vld [vmem:[#allocation170_spill] sm:$0xff] }
 0x487   : > { %14233 = vst [vmem:[#allocation5_spill] sm:$0xff] %v12351_v28  ;;  %v5521_v12 = vadd.f32 %v12004_v36, %v11877_v50  ;;  %v4668_v2 = vadd.f32 %v4667_v6, %v10391_v47  ;;  %v12362_v19 = vpop.permute.xlu1 %7263  ;;  %v6099_v44 = vmax.f32 %v5511_v16, 0.0  ;;  %v6100_v42 = vmax.f32 %v5513_v34, 0.0  ;;  %v4671_v1 = vpop.f32.mrb[171].mxu0 }
 0x488   : > { %14232 = vst [vmem:[#allocation25_spill] sm:$0xff] %v12348_v51  ;;  %14234 = vst [vmem:[#allocation202_spill] sm:$0xff] %v12354_v3  ;;  %v5523_v14 = vadd.f32 %v12019_v53, %v11880_v38  ;;  %v4670_v28 = vadd.f32 %v4669_v13, %v10388_v22  ;;  %v12368_v11 = vpop.permute.xlu0 %7261  ;;  %v12371_v46 = vmul.f32 %v14235_v49, %v6098_v40  ;;  %v6101_v36 = vmax.f32 %v5517_v18, 0.0  ;;  %v14239_v3 = vld [vmem:[#allocation182_spill] sm:$0xff]  ;;  %v12381_v18 = vpop.f32.mrb[92].mxu1 }
 0x489   : > { %14236 = vst [vmem:[#allocation27_spill] sm:$0xff] %v12357_v8  ;;  %5835 = vmatmul.mubr.bf16.gmra.mrb[196].mxu1 %v14237_v25  ;;  %v6102_v6 = vmax.f32 %v5519_v33, 0.0  ;;  %v4672_v8 = vadd.f32 %v4671_v1, %v10391_v47  ;;  %v5527_v16 = vadd.f32 %v12064_v7, %v11877_v50  ;;  %v5529_v53 = vadd.f32 %v12072_v57, %v11880_v38  ;;  %v14241_v1 = vld [vmem:[#allocation7_spill] sm:$0xff] }
 0x48a   : > { %14238 = vst [vmem:[#allocation170_spill] sm:$0xff] %v12371_v46  ;;  %5844 = vmatprep.mubr.bf16.mxu1 %v14239_v3  ;;  %v5004_v34 = vmax.f32 %v4666_v60, 0.0  ;;  %v5006_v13 = vmax.f32 %v4670_v28, 0.0  ;;  %v6103_v25 = vmax.f32 %v5521_v12, 0.0  ;;  %v5531_v51 = vadd.f32 %v12083_v0, %v11877_v50  ;;  %14240 = vst [vmem:[#allocation182_spill] sm:$0xff] %v12381_v18  ;;  %v12393_v60 = vpop.f32.mrb[93].mxu1 }
 0x48b   : > { %v5005_v40 = vmax.f32 %v4668_v2, 0.0  ;;  %v5007_v49 = vmax.f32 %v4672_v8, 0.0  ;;  %v12383_v33 = vpop.permute.xlu1 %7267  ;;  %v12386_v3 = vmul.f32 %v14241_v1, %v6099_v44  ;;  %v12389_v7 = vmul.f32 %v14241_v1, %v6100_v42  ;;  %14244 = vst [vmem:[#allocation204_spill] sm:$0xff] %v12393_v60  ;;  %v4675_v12 = vpop.f32.mrb[172].mxu0  ;;  %v14250_v60 = vld [vmem:[#allocation19_spill] sm:$0xff] }
 0x48c   : > { %v6104_v46 = vmax.f32 %v5523_v14, 0.0  ;;  %v12391_v57 = vpack.c.bf16 %v5006_v13, %v5004_v34  ;;  %v12395_v28 = vpop.permute.xlu0 %7265  ;;  %v5533_v0 = vadd.f32 %v12099_v43, %v11880_v38  ;;  %v12401_v2 = vpop.f32.mrb[94].mxu1  ;;  %v12405_v44 = vadd.f32 %v11971_v56, %v11918_v5  ;;  %v14246_v14 = vld [vmem:[#allocation29_spill] sm:$0xff] }
 0x48d   : > { %14242 = vst [vmem:[#allocation7_spill] sm:$0xff] %v12386_v3  ;;  %14243 = vst [vmem:[#allocation203_spill] sm:$0xff] %v12389_v7  ;;  %v12399_v8 = vpack.c.bf16 %v5007_v49, %v5005_v40  ;;  %v12409_v42 = vadd.f32 %v11989_v9, %v11866_v10  ;;  %v12412_v34 = vmul.f32 %v14246_v14, %v6101_v36  ;;  %v6105_v13 = vmax.f32 %v5527_v16, 0.0  ;;  %v4677_v40 = vpop.f32.mrb[173].mxu0  ;;  %v12415_v49 = vpop.f32.mrb[95].mxu1  ;;  %v14293_v7 = vld [vmem:[#allocation191_spill] sm:$0xff] }
 0x48e   : > { %14245 = vst [vmem:[#allocation205_spill] sm:$0xff] %v12401_v2  ;;  %v6106_v1 = vmax.f32 %v5529_v53, 0.0  ;;  %v4676_v43 = vadd.f32 %v4675_v12, %v10388_v22  ;;  %14248 = vst [vmem:[#allocation206_spill] sm:$0xff] %v12415_v49  ;;  %v12418_v2 = vmul.f32 %v14246_v14, %v6102_v6  ;;  %v12421_v5 = vmul.f32 %v14250_v60, %v6103_v25  ;;  %v4679_v9 = vpop.f32.mrb[174].mxu0  ;;  %v14253_v12 = vld [vmem:[#allocation179_spill] sm:$0xff] }
 0x48f   : > { %14247 = vst [vmem:[#allocation29_spill] sm:$0xff] %v12412_v34  ;;  %v6107_v56 = vmax.f32 %v5531_v51, 0.0  ;;  %v4678_v10 = vadd.f32 %v4677_v40, %v10391_v47  ;;  %v12424_v18 = vpop.permute.xlu1 %7271  ;;  %v12427_v36 = vmul.f32 %v14250_v60, %v6104_v46  ;;  %v4680_v16 = vadd.f32 %v4679_v9, %v10388_v22  ;;  %v4681_v53 = vpop.f32.mrb[175].mxu0  ;;  %v14257_v9 = vld [vmem:[#allocation12_spill] sm:$0xff]  ;;  %v14274_v34 = vld [vmem:[#allocation13_spill] sm:$0xff] }
 0x490   : > { %14249 = vst [vmem:[#allocation207_spill] sm:$0xff] %v12418_v2  ;;  %14251 = vst [vmem:[#allocation19_spill] sm:$0xff] %v12421_v5  ;;  %v12433_v6 = vadd.f32 %v12033_v20, %v11929_v32  ;;  %v12437_v51 = vadd.f32 %v12045_v37, %v11874_v21  ;;  %v12439_v25 = vpop.permute.xlu0 %7269  ;;  %v6108_v14 = vmax.f32 %v5533_v0, 0.0  ;;  %v4682_v40 = vadd.f32 %v4681_v53, %v10391_v47  ;;  %v14254_v32 = vld [vmem:[#allocation31_spill] sm:$0xff]  ;;  %v5586_v49 = vpop.f32.mrb[96].mxu1  ;;  %v14270_v5 = vld [vmem:[#allocation148_spill] sm:$0xff] }
 0x491   : > { %14252 = vst [vmem:[#allocation208_spill] sm:$0xff] %v12427_v36  ;;  %5845 = vmatmul.mubr.bf16.gmra.mrb[200].mxu1 %v14253_v12  ;;  %v12445_v46 = vadd.f32 %v12066_v41, %v11941_v24  ;;  %v12449_v60 = vadd.f32 %v12074_v15, %v11893_v30  ;;  %v12452_v20 = vmul.f32 %v14254_v32, %v6105_v13  ;;  %v5008_v37 = vmax.f32 %v4676_v43, 0.0  ;;  %v14261_v43 = vld [vmem:[#allocation3_spill] sm:$0xff]  ;;  %v14269_v36 = vld [vmem:[#allocation78_spill] sm:$0xff] }
 0x492   : > { %5854 = vmatprep.mubr.bf16.mxu1 %v11882_v27  ;;  %v12455_v21 = vmul.f32 %v14254_v32, %v6106_v1  ;;  %v5010_v0 = vmax.f32 %v4680_v16, 0.0  ;;  %v12458_v53 = vmul.f32 %v14257_v9, %v6107_v56  ;;  %v5009_v27 = vmax.f32 %v4678_v10, 0.0  ;;  %v5588_v1 = vpop.f32.mrb[97].mxu1 }
 0x493   : > { %14255 = vst [vmem:[#allocation179_spill] sm:$0xff] %v12452_v20  ;;  %v5011_v12 = vmax.f32 %v4682_v40, 0.0  ;;  %v12462_v24 = vadd.f32 %v12109_v54, %v11953_v31  ;;  %v12464_v30 = vpop.permute.xlu1 %7275  ;;  %v12468_v41 = vadd.f32 %v12128_v17, %v11877_v50  ;;  %v5587_v13 = vadd.f32 %v5586_v49, %v11877_v50  ;;  %v4685_v17 = vpop.f32.mrb[176].mxu0 }
 0x494   : > { %14256 = vst [vmem:[#allocation31_spill] sm:$0xff] %v12455_v21  ;;  %14258 = vst [vmem:[#allocation12_spill] sm:$0xff] %v12458_v53  ;;  %v12470_v15 = vpack.c.bf16 %v5010_v0, %v5008_v37  ;;  %v12475_v56 = vadd.f32 %v12119_v61, %v14261_v43  ;;  %v12477_v10 = vpop.permute.xlu0 %7273  ;;  %v12480_v31 = vmul.f32 %v14257_v9, %v6108_v14  ;;  %v5590_v40 = vpop.f32.mrb[98].mxu1 }
 0x495   : > { %14259 = vst [vmem:[#allocation209_spill] sm:$0xff] %v12464_v30  ;;  %14260 = vst [vmem:[#allocation210_spill] sm:$0xff] %v12468_v41  ;;  %v12482_v54 = vpack.c.bf16 %v5011_v12, %v5009_v27  ;;  %v5589_v16 = vadd.f32 %v5588_v1, %v11880_v38  ;;  %v12487_v32 = vadd.f32 %v12130_v4, %v11963_v55  ;;  %v6129_v61 = vmax.f32 %v5587_v13, 0.0  ;;  %v4687_v0 = vpop.f32.mrb[177].mxu0  ;;  %v5592_v9 = vpop.f32.mrb[99].mxu1  ;;  %v14266_v13 = vld [vmem:[#allocation43_spill] sm:$0xff] }
 0x496   : > { %14262 = vst [vmem:[#allocation3_spill] sm:$0xff] %v12480_v31  ;;  %v12491_v49 = vadd.f32 %v12141_v26, %v11880_v38  ;;  %v4686_v37 = vadd.f32 %v4685_v17, %v10388_v22  ;;  %v5591_v14 = vadd.f32 %v5590_v40, %v11877_v50  ;;  %v4688_v12 = vadd.f32 %v4687_v0, %v10391_v47  ;;  %v4689_v43 = vpop.f32.mrb[178].mxu0  ;;  %v14264_v31 = vld [vmem:[#allocation64_spill] sm:$0xff]  ;;  %v14273_v41 = vld [vmem:[#allocation30_spill] sm:$0xff] }
 0x497   : > { %v6130_v27 = vmax.f32 %v5589_v16, 0.0  ;;  %v5593_v1 = vadd.f32 %v5592_v9, %v11880_v38  ;;  %v12499_v55 = vadd.f32 %v12143_v58, %v14264_v31  ;;  %v12501_v4 = vpop.permute.xlu1 %7279  ;;  %v6705_v17 = vmul.f32 %v14266_v13, %v6129_v61  ;;  %v4691_v21 = vpop.f32.mrb[179].mxu0  ;;  %v14267_v16 = vld [vmem:[#allocation189_spill] sm:$0xff]  ;;  %v14271_v61 = vld [vmem:[#allocation103_spill] sm:$0xff] }
 0x498   : > { %14263 = vst [vmem:[#allocation211_spill] sm:$0xff] %v12491_v49  ;;  %14265 = vst [vmem:[#allocation64_spill] sm:$0xff] %v12501_v4  ;;  %v6131_v53 = vmax.f32 %v5591_v14, 0.0  ;;  %v4690_v40 = vadd.f32 %v4689_v43, %v10388_v22  ;;  %v12507_v0 = vpop.permute.xlu0 %7277  ;;  %v4692_v58 = vadd.f32 %v4691_v21, %v10391_v47  ;;  %v14268_v31 = vld [vmem:[#allocation85_spill] sm:$0xff]  ;;  %v12514_v26 = vadd.f32 %v14270_v5, %v14269_v36  ;;  %v14276_v49 = vld [vmem:[#allocation8_spill] sm:$0xff] }
 0x499   : > { %5855 = vmatmul.mubr.bf16.gmra.mrb[204].mxu1 %v14267_v16  ;;  %v6706_v9 = vmul.f32 %v14266_v13, %v6130_v27  ;;  %v6132_v20 = vmax.f32 %v5593_v1, 0.0  ;;  %v12517_v14 = vadd.f32 %v6705_v17, %v14271_v61  ;;  %v5012_v43 = vmax.f32 %v4686_v37, 0.0  ;;  %v5596_v13 = vpop.f32.mrb[100].mxu1 }
 0x49a   : > { %5864 = vmatprep.mubr.bf16.mxu1 %v14268_v31  ;;  %v6707_v2 = vmul.f32 %v14273_v41, %v6131_v53  ;;  %v5014_v16 = vmax.f32 %v4690_v40, 0.0  ;;  %v5013_v27 = vmax.f32 %v4688_v12, 0.0  ;;  %v5015_v21 = vmax.f32 %v4692_v58, 0.0  ;;  %v5598_v37 = vpop.f32.mrb[101].mxu1  ;;  %v14279_v40 = vld [vmem:[#allocation190_spill] sm:$0xff] }
 0x49b   : > { %14272 = vst [vmem:[#allocation43_spill] sm:$0xff] %v12517_v14  ;;  %v12521_v4 = vadd.f32 %v6706_v9, %v14274_v34  ;;  %v6708_v1 = vmul.f32 %v14273_v41, %v6132_v20  ;;  %v7604_v31 = vpop.permute.xlu1 %7603  ;;  %v5597_v36 = vadd.f32 %v5596_v13, %v11877_v50  ;;  %v5599_v20 = vadd.f32 %v5598_v37, %v11880_v38  ;;  %v4695_v41 = vpop.f32.mrb[180].mxu0  ;;  %v14282_v13 = vld [vmem:[#allocation151_spill] sm:$0xff] }
 0x49c   : > { %v12525_v30 = vadd.f32 %v6707_v2, %v14276_v49  ;;  %v12527_v5 = vpack.c.bf16 %v5014_v16, %v5012_v43  ;;  %v7698_v53 = vadd.f32 %v7604_v31, %v12405_v44  ;;  %v7602_v17 = vpop.permute.xlu0 %7601  ;;  %v12534_v12 = vpack.c.bf16 %v5015_v21, %v5013_v27  ;;  %v5600_v9 = vpop.f32.mrb[102].mxu1  ;;  %v14281_v44 = vld [vmem:[#allocation66_spill] sm:$0xff] }
 0x49d   : > { %14275 = vst [vmem:[#allocation189_spill] sm:$0xff] %v12521_v4  ;;  %v12532_v34 = vadd.f32 %v6708_v1, %v14279_v40  ;;  %v7697_v2 = vadd.f32 %v7602_v17, %v12409_v42  ;;  %v6133_v49 = vmax.f32 %v5597_v36, 0.0  ;;  %v4696_v58 = vadd.f32 %v4695_v41, %v10388_v22  ;;  %v4697_v43 = vpop.f32.mrb[181].mxu0  ;;  %v5602_v16 = vpop.f32.mrb[103].mxu1  ;;  %v14283_v40 = vld [vmem:[#allocation80_spill] sm:$0xff]  ;;  %v14284_v42 = vld [vmem:[#allocation153_spill] sm:$0xff] }
 0x49e   : > { %14277 = vst [vmem:[#allocation85_spill] sm:$0xff] %v12525_v30  ;;  %14278 = vst [vmem:[#allocation78_spill] sm:$0xff] %v12527_v5  ;;  %v5601_v61 = vadd.f32 %v5600_v9, %v11877_v50  ;;  %v12542_v31 = vadd.f32 %v14282_v13, %v14281_v44  ;;  %7807 = vperm.xlu1 %8741, %v7698_v53   ;;  %v6134_v27 = vmax.f32 %v5599_v20, 0.0  ;;  %v4699_v37 = vpop.f32.mrb[182].mxu0  ;;  %v14285_v17 = vld [vmem:[#allocation32_spill] sm:$0xff]  ;;  %v14286_v44 = vld [vmem:[#allocation81_spill] sm:$0xff] }
 0x49f   : > { %14280 = vst [vmem:[#allocation148_spill] sm:$0xff] %v12532_v34  ;;  %v4698_v1 = vadd.f32 %v4697_v43, %v10391_v47  ;;  %v5603_v21 = vadd.f32 %v5602_v16, %v11880_v38  ;;  %v12548_v36 = vadd.f32 %v14284_v42, %v14283_v40  ;;  %7802 = vperm.xlu0 %8740, %v7697_v2   ;;  %v4701_v30 = vpop.f32.mrb[183].mxu0  ;;  %v14287_v53 = vld [vmem:[#allocation68_spill] sm:$0xff]  ;;  %v5016_v4 = vmax.f32 %v4696_v58, 0.0  ;;  %v14289_v2 = vld [vmem:[#allocation101_spill] sm:$0xff] }
 0x4a0   : > { %v6709_v41 = vmul.f32 %v14285_v17, %v6133_v49  ;;  %v6135_v9 = vmax.f32 %v5601_v61, 0.0  ;;  %v4700_v34 = vadd.f32 %v4699_v37, %v10388_v22  ;;  %v14288_v20 = vld [vmem:[#allocation196_spill] sm:$0xff]  ;;  %v7606_v43 = vpop.permute.xlu0 %7605  ;;  %v6710_v16 = vmul.f32 %v14285_v17, %v6134_v27  ;;  %v14290_v49 = vld [vmem:[#allocation15_spill] sm:$0xff]  ;;  %v14292_v37 = vld [vmem:[#allocation45_spill] sm:$0xff] }
 0x4a1   : > { %5865 = vmatmul.mubr.bf16.gmra.mrb[208].mxu1 %v14286_v44  ;;  %v12555_v13 = vadd.f32 %v14288_v20, %v14287_v53  ;;  %v6136_v14 = vmax.f32 %v5603_v21, 0.0  ;;  %v4702_v40 = vadd.f32 %v4701_v30, %v10391_v47  ;;  %v7699_v44 = vadd.f32 %v7606_v43, %v12437_v51  ;;  %v5606_v21 = vpop.f32.mrb[104].mxu1  ;;  %v14295_v17 = vld [vmem:[#allocation16_spill] sm:$0xff]  ;;  %v14300_v51 = vld [vmem:[#allocation193_spill] sm:$0xff] }
 0x4a2   : > { %5874 = vmatprep.mubr.bf16.mxu1 %v14289_v2  ;;  %v12561_v61 = vadd.f32 %v6709_v41, %v14290_v49  ;;  %v6711_v42 = vmul.f32 %v14292_v37, %v6135_v9  ;;  %v5018_v5 = vmax.f32 %v4700_v34, 0.0  ;;  %v12566_v53 = vadd.f32 %v6710_v16, %v14293_v7  ;;  %v5608_v49 = vpop.f32.mrb[105].mxu1  ;;  %v14298_v9 = vld [vmem:[#allocation83_spill] sm:$0xff]  ;;  %v14299_v34 = vld [vmem:[#allocation165_spill] sm:$0xff]  ;;  %v4705_v16 = vpop.f32.mrb[184].mxu0 }
 0x4a3   : > { %v5017_v20 = vmax.f32 %v4698_v1, 0.0  ;;  %v6712_v27 = vmul.f32 %v14292_v37, %v6136_v14  ;;  %v5019_v58 = vmax.f32 %v4702_v40, 0.0  ;;  %v5607_v41 = vadd.f32 %v5606_v21, %v11877_v50  ;;  %7812 = vperm.xlu1 %8741, %v7699_v44   ;;  %v5610_v40 = vpop.f32.mrb[106].mxu1  ;;  %v8987_v37 = vld [vmem:[%s13721_s10 + $0x30] sm:$0xff]   ;;  %v14303_v21 = vld [vmem:[#allocation72_spill] sm:$0xff] }
 0x4a4   : > { %14291 = vst [vmem:[#allocation103_spill] sm:$0xff] %v12561_v61  ;;  %14294 = vst [vmem:[#allocation30_spill] sm:$0xff] %v12566_v53  ;;  %v12570_v30 = vadd.f32 %v6711_v42, %v14295_v17  ;;  %v12572_v2 = vpack.c.bf16 %v5018_v5, %v5016_v4  ;;  %v12577_v61 = vadd.f32 %v14299_v34, %v14298_v9  ;;  %v7610_v7 = vpop.permute.xlu0 %7609  ;;  %v8986_v5 = vld [vmem:[%s13721_s10 + $0x70] sm:$0xff]   ;;  %v14304_v17 = vld [vmem:[#allocation168_spill] sm:$0xff] }
 0x4a5   : > { %v12580_v1 = vadd.f32 %v6712_v27, %v14300_v51  ;;  %v12582_v14 = vpack.c.bf16 %v5019_v58, %v5017_v20  ;;  %v5609_v43 = vadd.f32 %v5608_v49, %v11880_v38  ;;  %v7701_v4 = vadd.f32 %v7610_v7, %v12449_v60  ;;  %v4707_v27 = vpop.f32.mrb[185].mxu0  ;;  %v5612_v58 = vpop.f32.mrb[107].mxu1  ;;  %v14305_v51 = vld [vmem:[#allocation86_spill] sm:$0xff]  ;;  %8576 = vmatprep.subr.bf16.mxu0 %v8986_v5 }
 0x4a6   : > { %14296 = vst [vmem:[#allocation13_spill] sm:$0xff] %v12570_v30  ;;  %14297 = vst [vmem:[#allocation8_spill] sm:$0xff] %v12572_v2  ;;  %v6137_v42 = vmax.f32 %v5607_v41, 0.0  ;;  %v4706_v44 = vadd.f32 %v4705_v16, %v10388_v22  ;;  %v5611_v20 = vadd.f32 %v5610_v40, %v11877_v50  ;;  %v12596_v49 = vadd.f32 %v14304_v17, %v14303_v21  ;;  %v4709_v7 = vpop.f32.mrb[186].mxu0  ;;  %v14306_v41 = vld [vmem:[#allocation34_spill] sm:$0xff]  ;;  %v14307_v21 = vld [vmem:[#allocation97_spill] sm:$0xff]  ;;  %v7608_v5 = vpop.permute.xlu1 %7607 }
 0x4a7   : > { %14301 = vst [vmem:[#allocation190_spill] sm:$0xff] %v12580_v1  ;;  %14302 = vst [vmem:[#allocation66_spill] sm:$0xff] %v12582_v14  ;;  %v6138_v60 = vmax.f32 %v5609_v43, 0.0  ;;  %v4708_v9 = vadd.f32 %v4707_v27, %v10391_v47  ;;  %v5613_v34 = vadd.f32 %v5612_v58, %v11880_v38  ;;  %v12602_v1 = vadd.f32 %v12260_v48, %v14305_v51  ;;  %v4711_v2 = vpop.f32.mrb[187].mxu0  ;;  %v14308_v48 = vld [vmem:[#allocation144_spill] sm:$0xff] }
 0x4a8   : > { %v6713_v16 = vmul.f32 %v14306_v41, %v6137_v42  ;;  %v5020_v40 = vmax.f32 %v4706_v44, 0.0  ;;  %v6139_v30 = vmax.f32 %v5611_v20, 0.0  ;;  %v4710_v53 = vadd.f32 %v4709_v7, %v10388_v22  ;;  %7822 = vperm.xlu1 %8741, %v7701_v4   ;;  %v7614_v43 = vpop.permute.xlu0 %7613  ;;  %8577 = vmatpush3.bf16.msra.mxu0 %v8987_v37  ;;  %v14309_v42 = vld [vmem:[#allocation10_spill] sm:$0xff]  ;;  %v14311_v20 = vld [vmem:[#allocation47_spill] sm:$0xff] }
 0x4a9   : > { %5875 = vmatmul.mubr.bf16.gmra.mrb[212].mxu1 %v14307_v21  ;;  %v6714_v27 = vmul.f32 %v14306_v41, %v6138_v60  ;;  %v5021_v58 = vmax.f32 %v4708_v9, 0.0  ;;  %v6140_v17 = vmax.f32 %v5613_v34, 0.0  ;;  %v4712_v14 = vadd.f32 %v4711_v2, %v10391_v47  ;;  %v14312_v4 = vld [vmem:[#allocation194_spill] sm:$0xff]  ;;  %v5616_v34 = vpop.f32.mrb[108].mxu1  ;;  %v14314_v41 = vld [vmem:[#allocation17_spill] sm:$0xff] }
 0x4aa   : > { %5884 = vmatprep.mubr.bf16.mxu1 %v14308_v48  ;;  %v12611_v44 = vadd.f32 %v6713_v16, %v14309_v42  ;;  %v6715_v7 = vmul.f32 %v14311_v20, %v6139_v30  ;;  %v5022_v51 = vmax.f32 %v4710_v53, 0.0  ;;  %v7703_v21 = vadd.f32 %v7614_v43, %v12475_v56  ;;  %v5618_v30 = vpop.f32.mrb[109].mxu1  ;;  %v14317_v53 = vld [vmem:[#allocation73_spill] sm:$0xff] }
 0x4ab   : > { %v12616_v3 = vadd.f32 %v6714_v27, %v14312_v4  ;;  %v6716_v60 = vmul.f32 %v14311_v20, %v6140_v17  ;;  %v5023_v9 = vmax.f32 %v4712_v14, 0.0  ;;  %v7700_v2 = vadd.f32 %v7608_v5, %v12433_v6  ;;  %v14318_v27 = vld [vmem:[#allocation141_spill] sm:$0xff]  ;;  %v4715_v5 = vpop.f32.mrb[188].mxu0  ;;  %v5620_v42 = vpop.f32.mrb[110].mxu1  ;;  %v14320_v4 = vld [vmem:[#allocation88_spill] sm:$0xff] }
 0x4ac   : > { %14310 = vst [vmem:[#allocation151_spill] sm:$0xff] %v12611_v44  ;;  %v12621_v37 = vadd.f32 %v6715_v7, %v14314_v41  ;;  %v12623_v48 = vpack.c.bf16 %v5022_v51, %v5020_v40  ;;  %v5617_v16 = vadd.f32 %v5616_v34, %v11877_v50  ;;  %v12628_v56 = vadd.f32 %v12268_v29, %v14317_v53  ;;  %v7618_v43 = vpop.permute.xlu0 %7617  ;;  %v4717_v51 = vpop.f32.mrb[189].mxu0  ;;  %v14321_v34 = vld [vmem:[#allocation184_spill] sm:$0xff]  ;;  %v14322_v53 = vld [vmem:[#allocation75_spill] sm:$0xff] }
 0x4ad   : > { %14313 = vst [vmem:[#allocation80_spill] sm:$0xff] %v12616_v3  ;;  %7832 = vperm.xlu1 %8741, %v7703_v21   ;;  %v12631_v17 = vadd.f32 %v6716_v60, %v14318_v27  ;;  %v12633_v14 = vpack.c.bf16 %v5023_v9, %v5021_v58  ;;  %v5619_v6 = vadd.f32 %v5618_v30, %v11880_v38  ;;  %v5622_v21 = vpop.f32.mrb[111].mxu1  ;;  %v4719_v30 = vpop.f32.mrb[190].mxu0 }
 0x4ae   : > { %14315 = vst [vmem:[#allocation153_spill] sm:$0xff] %v12621_v37  ;;  %14316 = vst [vmem:[#allocation32_spill] sm:$0xff] %v12623_v48  ;;  %v7705_v40 = vadd.f32 %v7618_v43, %v12499_v55  ;;  %7817 = vperm.xlu0 %8740, %v7700_v2   ;;  %v6141_v20 = vmax.f32 %v5617_v16, 0.0  ;;  %v4716_v7 = vadd.f32 %v4715_v5, %v10388_v22  ;;  %v14323_v55 = vld [vmem:[#allocation160_spill] sm:$0xff]  ;;  %v7612_v16 = vpop.permute.xlu1 %7611  ;;  %v4721_v37 = vpop.f32.mrb[191].mxu0  ;;  %v14329_v48 = vld [vmem:[#allocation158_spill] sm:$0xff] }
 0x4af   : > { %14319 = vst [vmem:[#allocation81_spill] sm:$0xff] %v12631_v17  ;;  %v5621_v29 = vadd.f32 %v5620_v42, %v11877_v50  ;;  %v12641_v60 = vadd.f32 %v14321_v34, %v14320_v4  ;;  %v6142_v58 = vmax.f32 %v5619_v6, 0.0  ;;  %v4718_v9 = vadd.f32 %v4717_v51, %v10391_v47  ;;  %v14324_v43 = vld [vmem:[#allocation36_spill] sm:$0xff]  ;;  %v14325_v4 = vld [vmem:[#allocation142_spill] sm:$0xff] }
 0x4b0   : > { %v5623_v41 = vadd.f32 %v5622_v21, %v11880_v38  ;;  %v12647_v2 = vadd.f32 %v14323_v55, %v14322_v53  ;;  %v6717_v27 = vmul.f32 %v14324_v43, %v6141_v20  ;;  %v5024_v5 = vmax.f32 %v4716_v7, 0.0  ;;  %v7622_v6 = vpop.permute.xlu0 %7621  ;;  %v14326_v53 = vld [vmem:[#allocation161_spill] sm:$0xff]  ;;  %v14327_v55 = vld [vmem:[#allocation155_spill] sm:$0xff] }
 0x4b1   : > { %v6143_v42 = vmax.f32 %v5621_v29, 0.0  ;;  %v4720_v17 = vadd.f32 %v4719_v30, %v10388_v22  ;;  %5885 = vmatmul.mubr.bf16.gmra.mrb[216].mxu1 %v14325_v4  ;;  %7842 = vperm.xlu1 %8741, %v7705_v40   ;;  %v6718_v51 = vmul.f32 %v14324_v43, %v6142_v58  ;;  %v5025_v21 = vmax.f32 %v4718_v9, 0.0  ;;  %v14328_v20 = vld [vmem:[#allocation49_spill] sm:$0xff]  ;;  %v5626_v9 = vpop.f32.mrb[112].mxu1  ;;  %v14330_v43 = vld [vmem:[#allocation18_spill] sm:$0xff] }
 0x4b2   : > { %v6144_v34 = vmax.f32 %v5623_v41, 0.0  ;;  %v4722_v3 = vadd.f32 %v4721_v37, %v10391_v47  ;;  %5894 = vmatprep.mubr.bf16.mxu1 %v14326_v53  ;;  %v12656_v44 = vadd.f32 %v6717_v27, %v14327_v55  ;;  %v7707_v30 = vadd.f32 %v7622_v6, %v12542_v31  ;;  %v7616_v37 = vpop.permute.xlu1 %7615  ;;  %v14332_v6 = vld [vmem:[#allocation198_spill] sm:$0xff] }
 0x4b3   : > { %v6719_v7 = vmul.f32 %v14328_v20, %v6143_v42  ;;  %v5026_v29 = vmax.f32 %v4720_v17, 0.0  ;;  %v12661_v4 = vadd.f32 %v6718_v51, %v14329_v48  ;;  %v7702_v41 = vadd.f32 %v7612_v16, %v12445_v46  ;;  %v5628_v17 = vpop.f32.mrb[113].mxu1  ;;  %v4725_v16 = vpop.f32.mrb[192].mxu0 }
 0x4b4   : > { %v6720_v40 = vmul.f32 %v14328_v20, %v6144_v34  ;;  %v5027_v58 = vmax.f32 %v4722_v3, 0.0  ;;  %v5627_v42 = vadd.f32 %v5626_v9, %v11877_v50  ;;  %v7626_v31 = vpop.permute.xlu0 %7625  ;;  %v7704_v48 = vadd.f32 %v7616_v37, %v12462_v24  ;;  %v5630_v34 = vpop.f32.mrb[114].mxu1  ;;  %v14334_v24 = vld [vmem:[#allocation89_spill] sm:$0xff] }
 0x4b5   : > { %v12666_v53 = vadd.f32 %v6719_v7, %v14330_v43  ;;  %v12668_v27 = vpack.c.bf16 %v5026_v29, %v5024_v5  ;;  %7852 = vperm.xlu1 %8741, %v7707_v30   ;;  %v5629_v46 = vadd.f32 %v5628_v17, %v11880_v38  ;;  %v7709_v55 = vadd.f32 %v7626_v31, %v12555_v13  ;;  %v4727_v29 = vpop.f32.mrb[193].mxu0  ;;  %v5632_v30 = vpop.f32.mrb[115].mxu1  ;;  %v14335_v43 = vld [vmem:[#allocation76_spill] sm:$0xff] }
 0x4b6   : > { %v12673_v51 = vadd.f32 %v6720_v40, %v14332_v6  ;;  %v12675_v3 = vpack.c.bf16 %v5027_v58, %v5025_v21  ;;  %7827 = vperm.xlu0 %8740, %v7702_v41   ;;  %v6145_v5 = vmax.f32 %v5627_v42, 0.0  ;;  %v4726_v20 = vadd.f32 %v4725_v16, %v10388_v22  ;;  %v4729_v37 = vpop.f32.mrb[194].mxu0  ;;  %v7620_v41 = vpop.permute.xlu1 %7619  ;;  %v14336_v42 = vld [vmem:[#allocation38_spill] sm:$0xff] }
 0x4b7   : > { %14331 = vst [vmem:[#allocation68_spill] sm:$0xff] %v12666_v53  ;;  %v5631_v7 = vadd.f32 %v5630_v34, %v11877_v50  ;;  %v12683_v40 = vadd.f32 %v12318_v23, %v14334_v24  ;;  %v6146_v21 = vmax.f32 %v5629_v46, 0.0  ;;  %v4728_v58 = vadd.f32 %v4727_v29, %v10391_v47  ;;  %v4731_v34 = vpop.f32.mrb[195].mxu0  ;;  %v14337_v23 = vld [vmem:[#allocation9_spill] sm:$0xff] }
 0x4b8   : > { %14333 = vst [vmem:[#allocation196_spill] sm:$0xff] %v12673_v51  ;;  %v5633_v9 = vadd.f32 %v5632_v30, %v11880_v38  ;;  %v12689_v13 = vadd.f32 %v12331_v35, %v14335_v43  ;;  %v6721_v17 = vmul.f32 %v14336_v42, %v6145_v5  ;;  %v5028_v31 = vmax.f32 %v4726_v20, 0.0  ;;  %v7630_v46 = vpop.permute.xlu0 %7629  ;;  %v14338_v35 = vld [vmem:[#allocation178_spill] sm:$0xff]  ;;  %v14339_v43 = vld [vmem:[#allocation20_spill] sm:$0xff]  ;;  %v14340_v20 = vld [vmem:[#allocation51_spill] sm:$0xff] }
 0x4b9   : > { %v6147_v6 = vmax.f32 %v5631_v7, 0.0  ;;  %v4730_v16 = vadd.f32 %v4729_v37, %v10388_v22  ;;  %5895 = vmatmul.mubr.bf16.gmra.mrb[220].mxu1 %v14337_v23  ;;  %7862 = vperm.xlu1 %8741, %v7709_v55   ;;  %v6722_v29 = vmul.f32 %v14336_v42, %v6146_v21  ;;  %v5029_v30 = vmax.f32 %v4728_v58, 0.0  ;;  %v14341_v23 = vld [vmem:[#allocation199_spill] sm:$0xff] }
 0x4ba   : > { %v6148_v24 = vmax.f32 %v5633_v9, 0.0  ;;  %v4732_v51 = vadd.f32 %v4731_v34, %v10391_v47  ;;  %5904 = vmatprep.mubr.bf16.mxu1 %v14338_v35  ;;  %7837 = vperm.xlu0 %8740, %v7704_v48   ;;  %v12698_v5 = vadd.f32 %v6721_v17, %v14339_v43  ;;  %v7711_v53 = vadd.f32 %v7630_v46, %v12596_v49  ;;  %v5636_v9 = vpop.f32.mrb[116].mxu1  ;;  %v7624_v34 = vpop.permute.xlu1 %7623  ;;  %v14342_v35 = vld [vmem:[#allocation171_spill] sm:$0xff] }
 0x4bb   : > { %v6723_v7 = vmul.f32 %v14340_v20, %v6147_v6  ;;  %v5030_v37 = vmax.f32 %v4730_v16, 0.0  ;;  %v12703_v55 = vadd.f32 %v6722_v29, %v14341_v23  ;;  %v7706_v42 = vadd.f32 %v7620_v41, %v12487_v32  ;;  %v5638_v16 = vpop.f32.mrb[117].mxu1  ;;  %v14343_v29 = vld [vmem:[#allocation150_spill] sm:$0xff]  ;;  %v4735_v41 = vpop.f32.mrb[196].mxu0 }
 0x4bc   : > { %v6724_v21 = vmul.f32 %v14340_v20, %v6148_v24  ;;  %v5031_v58 = vmax.f32 %v4732_v51, 0.0  ;;  %v5637_v6 = vadd.f32 %v5636_v9, %v11877_v50  ;;  %v7634_v49 = vpop.permute.xlu0 %7633  ;;  %v7708_v46 = vadd.f32 %v7624_v34, %v12514_v26  ;;  %v5640_v24 = vpop.f32.mrb[118].mxu1  ;;  %v14345_v26 = vld [vmem:[#allocation90_spill] sm:$0xff] }
 0x4bd   : > { %v12708_v48 = vadd.f32 %v6723_v7, %v14342_v35  ;;  %v12710_v17 = vpack.c.bf16 %v5030_v37, %v5028_v31  ;;  %7872 = vperm.xlu1 %8741, %v7711_v53   ;;  %v5639_v32 = vadd.f32 %v5638_v16, %v11880_v38  ;;  %v7713_v20 = vadd.f32 %v7634_v49, %v12628_v56  ;;  %v4737_v37 = vpop.f32.mrb[197].mxu0  ;;  %v5642_v23 = vpop.f32.mrb[119].mxu1  ;;  %v14346_v35 = vld [vmem:[#allocation77_spill] sm:$0xff] }
 0x4be   : > { %v12715_v43 = vadd.f32 %v6724_v21, %v14343_v29  ;;  %v12717_v51 = vpack.c.bf16 %v5031_v58, %v5029_v30  ;;  %7847 = vperm.xlu0 %8740, %v7706_v42   ;;  %v6149_v31 = vmax.f32 %v5637_v6, 0.0  ;;  %v4736_v7 = vadd.f32 %v4735_v41, %v10388_v22  ;;  %v4739_v34 = vpop.f32.mrb[198].mxu0  ;;  %v7628_v42 = vpop.permute.xlu1 %7627  ;;  %v14347_v6 = vld [vmem:[#allocation40_spill] sm:$0xff] }
 0x4bf   : > { %v5641_v53 = vadd.f32 %v5640_v24, %v11877_v50  ;;  %v12725_v21 = vadd.f32 %v12362_v19, %v14345_v26  ;;  %v6150_v30 = vmax.f32 %v5639_v32, 0.0  ;;  %v4738_v58 = vadd.f32 %v4737_v37, %v10391_v47  ;;  %v4741_v24 = vpop.f32.mrb[199].mxu0  ;;  %v14348_v19 = vld [vmem:[#allocation163_spill] sm:$0xff] }
 0x4c0   : > { %14344 = vst [vmem:[#allocation101_spill] sm:$0xff] %v12715_v43  ;;  %v5643_v9 = vadd.f32 %v5642_v23, %v11880_v38  ;;  %v12731_v56 = vadd.f32 %v12368_v11, %v14346_v35  ;;  %v6725_v16 = vmul.f32 %v14347_v6, %v6149_v31  ;;  %v5032_v49 = vmax.f32 %v4736_v7, 0.0  ;;  %v7638_v32 = vpop.permute.xlu0 %7637  ;;  %v14349_v11 = vld [vmem:[#allocation4_spill] sm:$0xff]  ;;  %v14350_v7 = vld [vmem:[#allocation53_spill] sm:$0xff] }
 0x4c1   : > { %v6151_v29 = vmax.f32 %v5641_v53, 0.0  ;;  %v4740_v41 = vadd.f32 %v4739_v34, %v10388_v22  ;;  %5905 = vmatmul.mubr.bf16.gmra.mrb[224].mxu1 %v14348_v19  ;;  %7882 = vperm.xlu1 %8741, %v7713_v20   ;;  %v6726_v37 = vmul.f32 %v14347_v6, %v6150_v30  ;;  %v5033_v23 = vmax.f32 %v4738_v58, 0.0  ;;  %v14351_v19 = vld [vmem:[#allocation175_spill] sm:$0xff] }
 0x4c2   : > { %v6152_v26 = vmax.f32 %v5643_v9, 0.0  ;;  %v4742_v43 = vadd.f32 %v4741_v24, %v10391_v47  ;;  %5914 = vmatprep.mubr.bf16.mxu1 %v12337_v62  ;;  %7857 = vperm.xlu0 %8740, %v7708_v46   ;;  %v12740_v31 = vadd.f32 %v6725_v16, %v14349_v11  ;;  %v7715_v35 = vadd.f32 %v7638_v32, %v12647_v2  ;;  %v5646_v9 = vpop.f32.mrb[120].mxu1  ;;  %v7632_v24 = vpop.permute.xlu1 %7631  ;;  %v14352_v62 = vld [vmem:[#allocation6_spill] sm:$0xff] }
 0x4c3   : > { %v6727_v53 = vmul.f32 %v14350_v7, %v6151_v29  ;;  %v5034_v34 = vmax.f32 %v4740_v41, 0.0  ;;  %v12745_v20 = vadd.f32 %v6726_v37, %v14351_v19  ;;  %v7710_v6 = vadd.f32 %v7628_v42, %v12548_v36  ;;  %v5648_v41 = vpop.f32.mrb[121].mxu1  ;;  %v14353_v37 = vld [vmem:[#allocation183_spill] sm:$0xff]  ;;  %v4745_v42 = vpop.f32.mrb[200].mxu0 }
 0x4c4   : > { %v6728_v30 = vmul.f32 %v14350_v7, %v6152_v26  ;;  %v5035_v58 = vmax.f32 %v4742_v43, 0.0  ;;  %v5647_v29 = vadd.f32 %v5646_v9, %v11877_v50  ;;  %v7642_v2 = vpop.permute.xlu0 %7641  ;;  %v7712_v32 = vadd.f32 %v7632_v24, %v12577_v61  ;;  %v5650_v26 = vpop.f32.mrb[122].mxu1  ;;  %v14354_v61 = vld [vmem:[#allocation91_spill] sm:$0xff] }
 0x4c5   : > { %v12750_v46 = vadd.f32 %v6727_v53, %v14352_v62  ;;  %v12752_v16 = vpack.c.bf16 %v5034_v34, %v5032_v49  ;;  %7892 = vperm.xlu1 %8741, %v7715_v35   ;;  %v5649_v36 = vadd.f32 %v5648_v41, %v11880_v38  ;;  %v7717_v7 = vadd.f32 %v7642_v2, %v12689_v13  ;;  %v4747_v35 = vpop.f32.mrb[201].mxu0  ;;  %v5652_v19 = vpop.f32.mrb[123].mxu1  ;;  %v14355_v62 = vld [vmem:[#allocation79_spill] sm:$0xff] }
 0x4c6   : > { %v12757_v11 = vadd.f32 %v6728_v30, %v14353_v37  ;;  %v12759_v43 = vpack.c.bf16 %v5035_v58, %v5033_v23  ;;  %7867 = vperm.xlu0 %8740, %v7710_v6   ;;  %v6153_v49 = vmax.f32 %v5647_v29, 0.0  ;;  %v4746_v53 = vadd.f32 %v4745_v42, %v10388_v22  ;;  %v4749_v24 = vpop.f32.mrb[202].mxu0  ;;  %v7636_v6 = vpop.permute.xlu1 %7635  ;;  %v14356_v29 = vld [vmem:[#allocation42_spill] sm:$0xff] }
 0x4c7   : > { %v5651_v34 = vadd.f32 %v5650_v26, %v11877_v50  ;;  %v12767_v30 = vadd.f32 %v12383_v33, %v14354_v61  ;;  %v6154_v23 = vmax.f32 %v5649_v36, 0.0  ;;  %v4748_v58 = vadd.f32 %v4747_v35, %v10391_v47  ;;  %v4751_v26 = vpop.f32.mrb[203].mxu0 }
 0x4c8   : > { %v5653_v9 = vadd.f32 %v5652_v19, %v11880_v38  ;;  %v7337_v13 = vadd.f32 %v12395_v28, %v14355_v62  ;;  %v6729_v41 = vmul.f32 %v14356_v29, %v6153_v49  ;;  %v5036_v2 = vmax.f32 %v4746_v53, 0.0  ;;  %v7646_v33 = vpop.permute.xlu0 %7645  ;;  %v14357_v28 = vld [vmem:[#allocation187_spill] sm:$0xff] }
 0x4c9   : > { %v6155_v37 = vmax.f32 %v5651_v34, 0.0  ;;  %v4750_v42 = vadd.f32 %v4749_v24, %v10388_v22  ;;  %5915 = vmatmul.mubr.bf16.gmra.mrb[228].mxu1 %v12327_v39  ;;  %7902 = vperm.xlu1 %8741, %v7717_v7   ;;  %v6730_v36 = vmul.f32 %v14356_v29, %v6154_v23  ;;  %v5037_v35 = vmax.f32 %v4748_v58, 0.0  ;;  %v14358_v53 = vld [vmem:[#allocation55_spill] sm:$0xff] }
 0x4ca   : > { %v6156_v19 = vmax.f32 %v5653_v9, 0.0  ;;  %v4752_v61 = vadd.f32 %v4751_v26, %v10391_v47  ;;  %5924 = vmatprep.mubr.bf16.mxu1 %v12399_v8  ;;  %7877 = vperm.xlu0 %8740, %v7712_v32   ;;  %v12780_v49 = vadd.f32 %v6729_v41, %v14357_v28  ;;  %v7719_v62 = vadd.f32 %v7646_v33, %v12731_v56  ;;  %v14359_v39 = vld [vmem:[#allocation23_spill] sm:$0xff]  ;;  %v5656_v9 = vpop.f32.mrb[124].mxu1  ;;  %v7640_v26 = vpop.permute.xlu1 %7639 }
 0x4cb   : > { %v6731_v34 = vmul.f32 %v14358_v53, %v6155_v37  ;;  %v5038_v24 = vmax.f32 %v4750_v42, 0.0  ;;  %v12785_v7 = vadd.f32 %v6730_v36, %v14359_v39  ;;  %v7714_v29 = vadd.f32 %v7636_v6, %v12602_v1  ;;  %v5658_v37 = vpop.f32.mrb[125].mxu1  ;;  %v4755_v6 = vpop.f32.mrb[204].mxu0 }
 0x4cc   : > { %v6732_v23 = vmul.f32 %v14358_v53, %v6156_v19  ;;  %v5039_v58 = vmax.f32 %v4752_v61, 0.0  ;;  %v5657_v41 = vadd.f32 %v5656_v9, %v11877_v50  ;;  %v7650_v56 = vpop.permute.xlu0 %7649  ;;  %v7716_v42 = vadd.f32 %v7640_v26, %v12641_v60  ;;  %v5660_v19 = vpop.f32.mrb[126].mxu1  ;;  %v14362_v9 = vld [vmem:[#allocation44_spill] sm:$0xff] }
 0x4cd   : > { %v12790_v8 = vadd.f32 %v6731_v34, %v12310_v63  ;;  %v12792_v32 = vpack.c.bf16 %v5038_v24, %v5036_v2  ;;  %7912 = vperm.xlu1 %8741, %v7719_v62   ;;  %v5659_v1 = vadd.f32 %v5658_v37, %v11880_v38  ;;  %v7721_v63 = vadd.f32 %v7650_v56, %v7337_v13  ;;  %v4757_v53 = vpop.f32.mrb[205].mxu0  ;;  %v5662_v34 = vpop.f32.mrb[127].mxu1  ;;  %v14360_v24 = vld [vmem:[#allocation82_spill] sm:$0xff] }
 0x4ce   : > { %v12797_v33 = vadd.f32 %v6732_v23, %v12321_v45  ;;  %v12799_v36 = vpack.c.bf16 %v5039_v58, %v5037_v35  ;;  %7887 = vperm.xlu0 %8740, %v7714_v29   ;;  %v6157_v2 = vmax.f32 %v5657_v41, 0.0  ;;  %v4756_v61 = vadd.f32 %v4755_v6, %v10388_v22  ;;  %v4759_v39 = vpop.f32.mrb[206].mxu0  ;;  %v14361_v23 = vld [vmem:[#allocation84_spill] sm:$0xff]  ;;  %v7644_v58 = vpop.permute.xlu1 %7643 }
 0x4cf   : > { %v5661_v28 = vadd.f32 %v5660_v19, %v11877_v50  ;;  %v7339_v60 = vadd.f32 %v12439_v25, %v14360_v24  ;;  %v6158_v45 = vmax.f32 %v5659_v1, 0.0  ;;  %v4758_v35 = vadd.f32 %v4757_v53, %v10391_v47  ;;  %v4761_v56 = vpop.f32.mrb[207].mxu0 }
 0x4d0   : > { %v5663_v62 = vadd.f32 %v5662_v34, %v11880_v38  ;;  %v7341_v13 = vadd.f32 %v12477_v10, %v14361_v23  ;;  %v6733_v29 = vmul.f32 %v14362_v9, %v6157_v2  ;;  %v5040_v26 = vmax.f32 %v4756_v61, 0.0  ;;  %v7654_v25 = vpop.permute.xlu0 %7653  ;;  %v14363_v2 = vld [vmem:[#allocation57_spill] sm:$0xff] }
 0x4d1   : > { %v6159_v41 = vmax.f32 %v5661_v28, 0.0  ;;  %v4760_v37 = vadd.f32 %v4759_v39, %v10388_v22  ;;  %5925 = vmatmul.mubr.bf16.gmra.mrb[232].mxu1 %v12391_v57  ;;  %7922 = vperm.xlu1 %8741, %v7721_v63   ;;  %v6734_v1 = vmul.f32 %v14362_v9, %v6158_v45  ;;  %v5041_v6 = vmax.f32 %v4758_v35, 0.0  ;;  %v5666_v45 = vpop.f32.mrb[128].mxu1  ;;  %v14364_v39 = vld [vmem:[#allocation25_spill] sm:$0xff]  ;;  %v14366_v9 = vld [vmem:[#allocation202_spill] sm:$0xff] }
 0x4d2   : > { %v6160_v19 = vmax.f32 %v5663_v62, 0.0  ;;  %v4762_v53 = vadd.f32 %v4761_v56, %v10391_v47  ;;  %5934 = vmatprep.mubr.bf16.mxu1 %v12482_v54  ;;  %7897 = vperm.xlu0 %8740, %v7716_v42   ;;  %v12817_v10 = vadd.f32 %v6733_v29, %v12342_v59  ;;  %v7723_v34 = vadd.f32 %v7654_v25, %v7339_v60  ;;  %v7648_v62 = vpop.permute.xlu1 %7647  ;;  %v5668_v23 = vpop.f32.mrb[129].mxu1 }
 0x4d3   : > { %v6735_v61 = vmul.f32 %v14363_v2, %v6159_v41  ;;  %v5042_v28 = vmax.f32 %v4760_v37, 0.0  ;;  %v12821_v57 = vadd.f32 %v6734_v1, %v12345_v52  ;;  %v7718_v35 = vadd.f32 %v7644_v58, %v12683_v40  ;;  %v4765_v58 = vpop.f32.mrb[208].mxu0  ;;  %v5670_v37 = vpop.f32.mrb[130].mxu1 }
 0x4d4   : > { %v6736_v63 = vmul.f32 %v14363_v2, %v6160_v19  ;;  %v5043_v24 = vmax.f32 %v4762_v53, 0.0  ;;  %v5667_v59 = vadd.f32 %v5666_v45, %v11877_v50  ;;  %v7658_v60 = vpop.permute.xlu0 %7657  ;;  %v7720_v52 = vadd.f32 %v7648_v62, %v12725_v21  ;;  %v4767_v19 = vpop.f32.mrb[209].mxu0  ;;  %v14368_v2 = vld [vmem:[#allocation87_spill] sm:$0xff]  ;;  %v14370_v45 = vld [vmem:[#allocation46_spill] sm:$0xff] }
 0x4d5   : > { %v12826_v54 = vadd.f32 %v6735_v61, %v14364_v39  ;;  %v12828_v42 = vpack.c.bf16 %v5042_v28, %v5040_v26  ;;  %7932 = vperm.xlu1 %8741, %v7723_v34   ;;  %v5669_v40 = vadd.f32 %v5668_v23, %v11880_v38  ;;  %v7725_v56 = vadd.f32 %v7658_v60, %v7341_v13  ;;  %v5672_v53 = vpop.f32.mrb[131].mxu1  ;;  %v4769_v34 = vpop.f32.mrb[210].mxu0 }
 0x4d6   : > { %v12833_v29 = vadd.f32 %v6736_v63, %v14366_v9  ;;  %v12835_v41 = vpack.c.bf16 %v5043_v24, %v5041_v6  ;;  %7907 = vperm.xlu0 %8740, %v7718_v35   ;;  %v6161_v26 = vmax.f32 %v5667_v59, 0.0  ;;  %v4766_v25 = vadd.f32 %v4765_v58, %v10388_v22  ;;  %v14369_v63 = vld [vmem:[#allocation93_spill] sm:$0xff]  ;;  %v7652_v24 = vpop.permute.xlu1 %7651  ;;  %v4771_v23 = vpop.f32.mrb[211].mxu0 }
 0x4d7   : > { %14365 = vst [vmem:[#allocation15_spill] sm:$0xff] %v12826_v54  ;;  %v5671_v1 = vadd.f32 %v5670_v37, %v11877_v50  ;;  %v7343_v21 = vadd.f32 %v12507_v0, %v14368_v2  ;;  %v6162_v61 = vmax.f32 %v5669_v40, 0.0  ;;  %v4768_v6 = vadd.f32 %v4767_v19, %v10391_v47 }
 0x4d8   : > { %14367 = vst [vmem:[#allocation45_spill] sm:$0xff] %v12833_v29  ;;  %v5673_v28 = vadd.f32 %v5672_v53, %v11880_v38  ;;  %v7340_v13 = vadd.f32 %v12424_v18, %v14369_v63  ;;  %v6737_v35 = vmul.f32 %v14370_v45, %v6161_v26  ;;  %v5044_v62 = vmax.f32 %v4766_v25, 0.0  ;;  %v7662_v0 = vpop.permute.xlu0 %7661  ;;  %v14371_v18 = vld [vmem:[#allocation27_spill] sm:$0xff]  ;;  %v14374_v53 = vld [vmem:[#allocation170_spill] sm:$0xff] }
 0x4d9   : > { %v6163_v39 = vmax.f32 %v5671_v1, 0.0  ;;  %v4770_v59 = vadd.f32 %v4769_v34, %v10388_v22  ;;  %5935 = vmatmul.mubr.bf16.gmra.mrb[236].mxu1 %v12470_v15  ;;  %7942 = vperm.xlu1 %8741, %v7725_v56   ;;  %v6738_v60 = vmul.f32 %v14370_v45, %v6162_v61  ;;  %v5045_v9 = vmax.f32 %v4768_v6, 0.0  ;;  %v14373_v26 = vld [vmem:[#allocation59_spill] sm:$0xff]  ;;  %v5676_v61 = vpop.f32.mrb[132].mxu1 }
 0x4da   : > { %v6164_v40 = vmax.f32 %v5673_v28, 0.0  ;;  %v4772_v58 = vadd.f32 %v4771_v23, %v10391_v47  ;;  %5944 = vmatprep.mubr.bf16.mxu1 %v12534_v12  ;;  %7917 = vperm.xlu0 %8740, %v7720_v52   ;;  %v12853_v37 = vadd.f32 %v6737_v35, %v14371_v18  ;;  %v7727_v19 = vadd.f32 %v7662_v0, %v7343_v21  ;;  %v7656_v28 = vpop.permute.xlu1 %7655  ;;  %v14376_v12 = vld [vmem:[#allocation192_spill] sm:$0xff]  ;;  %v14377_v34 = vld [vmem:[#allocation7_spill] sm:$0xff]  ;;  %v5678_v35 = vpop.f32.mrb[133].mxu1 }
 0x4db   : > { %v6739_v25 = vmul.f32 %v14373_v26, %v6163_v39  ;;  %v5046_v1 = vmax.f32 %v4770_v59, 0.0  ;;  %v12857_v15 = vadd.f32 %v6738_v60, %v14374_v53  ;;  %v7722_v6 = vadd.f32 %v7652_v24, %v12767_v30  ;;  %v14379_v39 = vld [vmem:[#allocation203_spill] sm:$0xff]  ;;  %v4775_v24 = vpop.f32.mrb[212].mxu0  ;;  %v5680_v0 = vpop.f32.mrb[134].mxu1 }
 0x4dc   : > { %14372 = vst [vmem:[#allocation191_spill] sm:$0xff] %v12853_v37  ;;  %v6740_v56 = vmul.f32 %v14373_v26, %v6164_v40  ;;  %v5047_v2 = vmax.f32 %v4772_v58, 0.0  ;;  %v12863_v52 = vadd.f32 %v14376_v12, %v11877_v50  ;;  %v5677_v21 = vadd.f32 %v5676_v61, %v11877_v50  ;;  %v4777_v18 = vpop.f32.mrb[213].mxu0  ;;  %v5682_v26 = vpop.f32.mrb[135].mxu1  ;;  %v14383_v53 = vld [vmem:[#allocation211_spill] sm:$0xff] }
 0x4dd   : > { %14375 = vst [vmem:[#allocation16_spill] sm:$0xff] %v12857_v15  ;;  %v12866_v63 = vadd.f32 %v6739_v25, %v14377_v34  ;;  %v12868_v45 = vpack.c.bf16 %v5046_v1, %v5044_v62  ;;  %7952 = vperm.xlu1 %8741, %v7727_v19   ;;  %v5679_v30 = vadd.f32 %v5678_v35, %v11880_v38  ;;  %v14381_v25 = vld [vmem:[#allocation95_spill] sm:$0xff]  ;;  %v14382_v1 = vld [vmem:[#allocation209_spill] sm:$0xff]  ;;  %v4779_v12 = vpop.f32.mrb[214].mxu0 }
 0x4de   : > { %v12872_v59 = vadd.f32 %v6740_v56, %v14379_v39  ;;  %v12874_v23 = vpack.c.bf16 %v5047_v2, %v5045_v9  ;;  %7927 = vperm.xlu0 %8740, %v7722_v6   ;;  %v7724_v60 = vadd.f32 %v7656_v28, %v7340_v13  ;;  %v6165_v40 = vmax.f32 %v5677_v21, 0.0  ;;  %v7660_v6 = vpop.permute.xlu1 %7659  ;;  %v14384_v13 = vld [vmem:[#allocation48_spill] sm:$0xff]  ;;  %v4781_v35 = vpop.f32.mrb[215].mxu0  ;;  %v14385_v39 = vld [vmem:[#allocation78_spill] sm:$0xff] }
 0x4df   : > { %14378 = vst [vmem:[#allocation83_spill] sm:$0xff] %v12866_v63  ;;  %v4776_v58 = vadd.f32 %v4775_v24, %v10388_v22  ;;  %v5681_v62 = vadd.f32 %v5680_v0, %v11877_v50  ;;  %v7342_v19 = vadd.f32 %v14382_v1, %v14381_v25  ;;  %v6110_v56 = vmax.f32 %v14383_v53, 0.0  ;;  %v14386_v24 = vld [vmem:[#allocation99_spill] sm:$0xff]  ;;  %v14387_v0 = vld [vmem:[#allocation64_spill] sm:$0xff] }
 0x4e0   : > { %14380 = vst [vmem:[#allocation165_spill] sm:$0xff] %v12872_v59  ;;  %v6166_v9 = vmax.f32 %v5679_v30, 0.0  ;;  %v4778_v2 = vadd.f32 %v4777_v18, %v10391_v47  ;;  %v5683_v61 = vadd.f32 %v5682_v26, %v11880_v38  ;;  %v6741_v28 = vmul.f32 %v14384_v13, %v6165_v40  ;;  %v14388_v26 = vld [vmem:[#allocation66_spill] sm:$0xff]  ;;  %v14389_v59 = vld [vmem:[#allocation29_spill] sm:$0xff] }
 0x4e1   : > { %v6167_v34 = vmax.f32 %v5681_v62, 0.0  ;;  %v4780_v21 = vadd.f32 %v4779_v12, %v10388_v22  ;;  %5945 = vmatmul.mubr.bf16.gmra.mrb[240].mxu1 %v14385_v39  ;;  %v7344_v25 = vadd.f32 %v14387_v0, %v14386_v24  ;;  %v5048_v30 = vmax.f32 %v4776_v58, 0.0  ;;  %v14391_v62 = vld [vmem:[#allocation61_spill] sm:$0xff]  ;;  %v14392_v39 = vld [vmem:[#allocation207_spill] sm:$0xff] }
 0x4e2   : > { %v6742_v1 = vmul.f32 %v14384_v13, %v6166_v9  ;;  %v6168_v53 = vmax.f32 %v5683_v61, 0.0  ;;  %v4782_v18 = vadd.f32 %v4781_v35, %v10391_v47  ;;  %5954 = vmatprep.mubr.bf16.mxu1 %v14388_v26  ;;  %7937 = vperm.xlu0 %8740, %v7724_v60   ;;  %v12893_v40 = vadd.f32 %v6741_v28, %v14389_v59  ;;  %v5686_v61 = vpop.f32.mrb[136].mxu1  ;;  %v7664_v13 = vpop.permute.xlu1 %7663  ;;  %v14394_v35 = vld [vmem:[#allocation145_spill] sm:$0xff]  ;;  %v14395_v60 = vld [vmem:[#allocation19_spill] sm:$0xff] }
 0x4e3   : > { %v6743_v12 = vmul.f32 %v14391_v62, %v6167_v34  ;;  %v5050_v63 = vmax.f32 %v4780_v21, 0.0  ;;  %v7726_v15 = vadd.f32 %v7660_v6, %v7342_v19  ;;  %v5049_v24 = vmax.f32 %v4778_v2, 0.0  ;;  %v5688_v19 = vpop.f32.mrb[137].mxu1  ;;  %v14397_v6 = vld [vmem:[#allocation208_spill] sm:$0xff] }
 0x4e4   : > { %14390 = vst [vmem:[#allocation193_spill] sm:$0xff] %v12893_v40  ;;  %v12897_v37 = vadd.f32 %v6742_v1, %v14392_v39  ;;  %v6744_v9 = vmul.f32 %v14391_v62, %v6168_v53  ;;  %v5051_v58 = vmax.f32 %v4782_v18, 0.0  ;;  %v5543_v0 = vadd.f32 %v14394_v35, %v11880_v38  ;;  %v4785_v1 = vpop.f32.mrb[216].mxu0  ;;  %v5690_v53 = vpop.f32.mrb[138].mxu1  ;;  %v8988_v62 = vld [vmem:[%s13721_s10 + $0x78] sm:$0xff]   ;;  %v14401_v39 = vld [vmem:[#allocation33_spill] sm:$0xff] }
 0x4e5   : > { %v12903_v26 = vadd.f32 %v6743_v12, %v14395_v60  ;;  %v12905_v59 = vpack.c.bf16 %v5050_v63, %v5048_v30  ;;  %v5687_v28 = vadd.f32 %v5686_v61, %v11877_v50  ;;  %v5689_v21 = vadd.f32 %v5688_v19, %v11880_v38  ;;  %v8989_v63 = vld [vmem:[%s13721_s10 + $0x38] sm:$0xff]   ;;  %8578 = vmatprep.subr.bf16.mxu0 %v8988_v62  ;;  %v14404_v62 = vld [vmem:[#allocation179_spill] sm:$0xff] }
 0x4e6   : > { %14393 = vst [vmem:[#allocation72_spill] sm:$0xff] %v12897_v37  ;;  %v12909_v34 = vadd.f32 %v6744_v9, %v14397_v6  ;;  %v12911_v2 = vpack.c.bf16 %v5051_v58, %v5049_v24  ;;  %7947 = vperm.xlu0 %8740, %v7726_v15   ;;  %v7728_v18 = vadd.f32 %v7664_v13, %v7344_v25  ;;  %v14399_v30 = vld [vmem:[#allocation210_spill] sm:$0xff]  ;;  %v4787_v15 = vpop.f32.mrb[217].mxu0  ;;  %v5692_v25 = vpop.f32.mrb[139].mxu1  ;;  %v6111_v13 = vmax.f32 %v12863_v52, 0.0 }
 0x4e7   : > { %14396 = vst [vmem:[#allocation168_spill] sm:$0xff] %v12903_v26  ;;  %v14400_v12 = vmax.f32 %v14399_v30, 0.0  ;;  %v6169_v24 = vmax.f32 %v5687_v28, 0.0  ;;  %v4786_v58 = vadd.f32 %v4785_v1, %v10388_v22  ;;  %v5691_v61 = vadd.f32 %v5690_v53, %v11877_v50  ;;  %v4789_v6 = vpop.f32.mrb[218].mxu0  ;;  %v14403_v53 = vld [vmem:[#allocation8_spill] sm:$0xff]  ;;  %8579 = vmatpush3.bf16.msra.mxu0 %v8989_v63 }
 0x4e8   : > { %14398 = vst [vmem:[#allocation86_spill] sm:$0xff] %v12909_v34  ;;  %v6170_v35 = vmax.f32 %v5689_v21, 0.0  ;;  %v4788_v60 = vadd.f32 %v4787_v15, %v10391_v47  ;;  %v5693_v19 = vadd.f32 %v5692_v25, %v11880_v38  ;;  %v6558_v30 = vmul.f32 %v14401_v39, %v6110_v56  ;;  %v4791_v26 = vpop.f32.mrb[219].mxu0 }
 0x4e9   : > { %v12923_v9 = vmul.f32 %v14401_v39, %v14400_v12  ;;  %v14402_v12 = vld [vmem:[#allocation50_spill] sm:$0xff]  ;;  %v6171_v28 = vmax.f32 %v5691_v61, 0.0  ;;  %v4790_v1 = vadd.f32 %v4789_v6, %v10388_v22  ;;  %5955 = vmatmul.mubr.bf16.gmra.mrb[244].mxu1 %v14403_v53  ;;  %v6112_v37 = vmax.f32 %v5543_v0, 0.0  ;;  %v14407_v6 = vld [vmem:[#allocation31_spill] sm:$0xff]  ;;  %v14410_v53 = vld [vmem:[#allocation12_spill] sm:$0xff] }
 0x4ea   : > { %v6745_v34 = vmul.f32 %v14402_v12, %v6169_v24  ;;  %v6746_v52 = vmul.f32 %v14402_v12, %v6170_v35  ;;  %v6172_v21 = vmax.f32 %v5693_v19, 0.0  ;;  %v4792_v15 = vadd.f32 %v4791_v26, %v10391_v47  ;;  %5964 = vmatprep.mubr.bf16.mxu1 %v12633_v14  ;;  %7957 = vperm.xlu0 %8740, %v7728_v18   ;;  %v14406_v24 = vld [vmem:[#allocation62_spill] sm:$0xff]  ;;  %v5696_v19 = vpop.f32.mrb[140].mxu1  ;;  %v14409_v12 = vld [vmem:[#allocation21_spill] sm:$0xff] }
 0x4eb   : > { %v5052_v39 = vmax.f32 %v4786_v58, 0.0  ;;  %v6747_v61 = vmul.f32 %v14406_v24, %v6171_v28  ;;  %v5054_v25 = vmax.f32 %v4790_v1, 0.0  ;;  %v5053_v63 = vmax.f32 %v4788_v60, 0.0  ;;  %v5698_v58 = vpop.f32.mrb[141].mxu1  ;;  %v14412_v1 = vld [vmem:[#allocation3_spill] sm:$0xff] }
 0x4ec   : > { %v12938_v56 = vadd.f32 %v6745_v34, %v14404_v62  ;;  %v12942_v40 = vadd.f32 %v6746_v52, %v14407_v6  ;;  %v6748_v0 = vmul.f32 %v14406_v24, %v6172_v21  ;;  %v5055_v35 = vmax.f32 %v4792_v15, 0.0  ;;  %v4795_v15 = vpop.f32.mrb[220].mxu0  ;;  %v5700_v62 = vpop.f32.mrb[142].mxu1 }
 0x4ed   : > { %v6559_v26 = vmul.f32 %v14409_v12, %v6111_v13  ;;  %v12947_v14 = vadd.f32 %v6747_v61, %v14410_v53  ;;  %v12949_v18 = vpack.c.bf16 %v5054_v25, %v5052_v39  ;;  %v5697_v34 = vadd.f32 %v5696_v19, %v11877_v50  ;;  %v14414_v13 = vld [vmem:[#allocation154_spill] sm:$0xff]  ;;  %v4797_v6 = vpop.f32.mrb[221].mxu0  ;;  %v5702_v19 = vpop.f32.mrb[143].mxu1 }
 0x4ee   : > { %14405 = vst [vmem:[#allocation34_spill] sm:$0xff] %v12938_v56  ;;  %14408 = vst [vmem:[#allocation97_spill] sm:$0xff] %v12942_v40  ;;  %v6560_v28 = vmul.f32 %v14409_v12, %v6112_v37  ;;  %v12954_v52 = vadd.f32 %v6748_v0, %v14412_v1  ;;  %v12956_v60 = vpack.c.bf16 %v5055_v35, %v5053_v63  ;;  %v14415_v37 = vld [vmem:[#allocation195_spill] sm:$0xff]  ;;  %v4799_v53 = vpop.f32.mrb[222].mxu0  ;;  %v14419_v40 = vld [vmem:[#allocation164_spill] sm:$0xff] }
 0x4ef   : > { %14411 = vst [vmem:[#allocation144_spill] sm:$0xff] %v12947_v14  ;;  %v5699_v21 = vadd.f32 %v5698_v58, %v11880_v38  ;;  %v5547_v24 = vadd.f32 %v14414_v13, %v11877_v50  ;;  %v6173_v61 = vmax.f32 %v5697_v34, 0.0  ;;  %v4796_v39 = vadd.f32 %v4795_v15, %v10388_v22  ;;  %v14416_v58 = vld [vmem:[#allocation197_spill] sm:$0xff]  ;;  %v14417_v13 = vld [vmem:[#allocation52_spill] sm:$0xff] }
 0x4f0   : > { %14413 = vst [vmem:[#allocation10_spill] sm:$0xff] %v12954_v52  ;;  %v5701_v25 = vadd.f32 %v5700_v62, %v11877_v50  ;;  %v5549_v0 = vadd.f32 %v14415_v37, %v11880_v38  ;;  %v4798_v63 = vadd.f32 %v4797_v6, %v10391_v47  ;;  %v5703_v35 = vadd.f32 %v5702_v19, %v11880_v38  ;;  %v4801_v62 = vpop.f32.mrb[223].mxu0  ;;  %v14418_v14 = vld [vmem:[#allocation32_spill] sm:$0xff]  ;;  %v5706_v54 = vpop.f32.mrb[144].mxu1 }
 0x4f1   : > { %v6174_v12 = vmax.f32 %v5699_v21, 0.0  ;;  %v5551_v1 = vadd.f32 %v14416_v58, %v11877_v50  ;;  %v6749_v34 = vmul.f32 %v14417_v13, %v6173_v61  ;;  %v4800_v15 = vadd.f32 %v4799_v53, %v10388_v22  ;;  %5965 = vmatmul.mubr.bf16.gmra.mrb[248].mxu1 %v14418_v14 }
 0x4f2   : > { %v6175_v52 = vmax.f32 %v5701_v25, 0.0  ;;  %v5553_v37 = vadd.f32 %v14419_v40, %v11880_v38  ;;  %v6176_v6 = vmax.f32 %v5703_v35, 0.0  ;;  %v4802_v19 = vadd.f32 %v4801_v62, %v10391_v47  ;;  %5974 = vmatprep.mubr.bf16.mxu1 %v12675_v3  ;;  %v14420_v25 = vld [vmem:[#allocation63_spill] sm:$0xff] }
 0x4f3   : > { %v6750_v21 = vmul.f32 %v14417_v13, %v6174_v12  ;;  %v12978_v58 = vadd.f32 %v6749_v34, %v12923_v9  ;;  %v5056_v61 = vmax.f32 %v4796_v39, 0.0  ;;  %v5058_v22 = vmax.f32 %v4800_v15, 0.0  ;;  %v5708_v9 = vpop.f32.mrb[145].mxu1 }
 0x4f4   : > { %v6751_v56 = vmul.f32 %v14420_v25, %v6175_v52  ;;  %v5057_v14 = vmax.f32 %v4798_v63, 0.0  ;;  %v6752_v29 = vmul.f32 %v14420_v25, %v6176_v6  ;;  %v5059_v40 = vmax.f32 %v4802_v19, 0.0  ;;  %v5710_v63 = vpop.f32.mrb[146].mxu1  ;;  %v14421_v6 = vld [vmem:[#allocation35_spill] sm:$0xff] }
 0x4f5   : > { %v12981_v53 = vadd.f32 %v6750_v21, %v6558_v30  ;;  %v6113_v12 = vmax.f32 %v5547_v24, 0.0  ;;  %v12986_v47 = vpack.c.bf16 %v5058_v22, %v5056_v61  ;;  %v5707_v3 = vadd.f32 %v5706_v54, %v11877_v50  ;;  %v5712_v24 = vpop.f32.mrb[147].mxu1  ;;  %v14424_v25 = vld [vmem:[#allocation11_spill] sm:$0xff] }
 0x4f6   : > { %v12984_v35 = vadd.f32 %v6751_v56, %v6559_v26  ;;  %v6114_v13 = vmax.f32 %v5549_v0, 0.0  ;;  %v12989_v39 = vadd.f32 %v6752_v29, %v6560_v28  ;;  %v12991_v52 = vpack.c.bf16 %v5059_v40, %v5057_v14  ;;  %v14422_v0 = vld [vmem:[#allocation174_spill] sm:$0xff] }
 0x4f7   : > { %v5709_v30 = vadd.f32 %v5708_v9, %v11880_v38  ;;  %v6115_v34 = vmax.f32 %v5551_v1, 0.0  ;;  %v6177_v15 = vmax.f32 %v5707_v3, 0.0  ;;  %v5711_v62 = vadd.f32 %v5710_v63, %v11877_v50  ;;  %v14423_v28 = vld [vmem:[#allocation54_spill] sm:$0xff]  ;;  %v14426_v3 = vld [vmem:[#allocation200_spill] sm:$0xff]  ;;  %v14427_v63 = vld [vmem:[#allocation65_spill] sm:$0xff] }
 0x4f8   : > { %v6116_v56 = vmax.f32 %v5553_v37, 0.0  ;;  %v5713_v21 = vadd.f32 %v5712_v24, %v11880_v38  ;;  %v6561_v54 = vmul.f32 %v14421_v6, %v6113_v12  ;;  %v5557_v29 = vadd.f32 %v14422_v0, %v11877_v50  ;;  %v14425_v40 = vld [vmem:[#allocation22_spill] sm:$0xff] }
 0x4f9   : > { %v6178_v26 = vmax.f32 %v5709_v30, 0.0  ;;  %v6753_v19 = vmul.f32 %v14423_v28, %v6177_v15  ;;  %v6179_v61 = vmax.f32 %v5711_v62, 0.0  ;;  %5975 = vmatmul.mubr.bf16.gmra.mrb[252].mxu1 %v12668_v27  ;;  %v6562_v1 = vmul.f32 %v14421_v6, %v6114_v13  ;;  %v14428_v13 = vld [vmem:[#allocation180_spill] sm:$0xff] }
 0x4fa   : > { %v5559_v22 = vadd.f32 %v14424_v25, %v11880_v38  ;;  %v6180_v14 = vmax.f32 %v5713_v21, 0.0  ;;  %5984 = vmatprep.mubr.bf16.mxu1 %v12717_v51  ;;  %v6563_v12 = vmul.f32 %v14425_v40, %v6115_v34  ;;  %v5561_v9 = vadd.f32 %v14426_v3, %v11877_v50  ;;  %v5716_v21 = vpop.f32.mrb[148].mxu1 }
 0x4fb   : > { %v6754_v37 = vmul.f32 %v14423_v28, %v6178_v26  ;;  %v13009_v30 = vadd.f32 %v6753_v19, %v6561_v54  ;;  %v6755_v15 = vmul.f32 %v14427_v63, %v6179_v61  ;;  %v6564_v27 = vmul.f32 %v14425_v40, %v6116_v56  ;;  %v5718_v0 = vpop.f32.mrb[149].mxu1 }
 0x4fc   : > { %v5563_v62 = vadd.f32 %v14428_v13, %v11880_v38  ;;  %v6756_v26 = vmul.f32 %v14427_v63, %v6180_v14  ;;  %v6117_v51 = vmax.f32 %v5557_v29, 0.0  ;;  %v5717_v34 = vadd.f32 %v5716_v21, %v11877_v50  ;;  %v5720_v56 = vpop.f32.mrb[150].mxu1  ;;  %v14430_v63 = vld [vmem:[#allocation14_spill] sm:$0xff] }
 0x4fd   : > { %v13015_v24 = vadd.f32 %v6754_v37, %v6562_v1  ;;  %v13018_v6 = vadd.f32 %v6755_v15, %v6563_v12  ;;  %v6118_v54 = vmax.f32 %v5559_v22, 0.0  ;;  %v5719_v19 = vadd.f32 %v5718_v0, %v11880_v38  ;;  %v5722_v37 = vpop.f32.mrb[151].mxu1  ;;  %v14429_v12 = vld [vmem:[#allocation37_spill] sm:$0xff]  ;;  %v14431_v22 = vld [vmem:[#allocation56_spill] sm:$0xff] }
 0x4fe   : > { %v13021_v28 = vadd.f32 %v6756_v26, %v6564_v27  ;;  %v6119_v61 = vmax.f32 %v5561_v9, 0.0  ;;  %v6181_v25 = vmax.f32 %v5717_v34, 0.0  ;;  %v5721_v1 = vadd.f32 %v5720_v56, %v11877_v50  ;;  %v14432_v26 = vld [vmem:[#allocation173_spill] sm:$0xff]  ;;  %v14433_v0 = vld [vmem:[#allocation24_spill] sm:$0xff] }
 0x4ff   : > { %v6120_v40 = vmax.f32 %v5563_v62, 0.0  ;;  %v6182_v14 = vmax.f32 %v5719_v19, 0.0  ;;  %v5723_v29 = vadd.f32 %v5722_v37, %v11880_v38  ;;  %v6565_v3 = vmul.f32 %v14429_v12, %v6117_v51  ;;  %v14434_v19 = vld [vmem:[#allocation201_spill] sm:$0xff] }
 0x500   : > { %v5567_v15 = vadd.f32 %v14430_v63, %v11877_v50  ;;  %v6757_v27 = vmul.f32 %v14431_v22, %v6181_v25  ;;  %v6183_v13 = vmax.f32 %v5721_v1, 0.0  ;;  %v6566_v9 = vmul.f32 %v14429_v12, %v6118_v54  ;;  %v14435_v25 = vld [vmem:[#allocation67_spill] sm:$0xff]  ;;  %v14436_v54 = vld [vmem:[#allocation5_spill] sm:$0xff] }
 0x501   : > { %5985 = vmatmul.mubr.bf16.gmra.mrb[0].mxu1 %v12710_v17  ;;  %v5569_v21 = vadd.f32 %v14432_v26, %v11880_v38  ;;  %v6758_v62 = vmul.f32 %v14431_v22, %v6182_v14  ;;  %v6184_v34 = vmax.f32 %v5723_v29, 0.0  ;;  %v6567_v51 = vmul.f32 %v14433_v0, %v6119_v61  ;;  %v5726_v29 = vpop.f32.mrb[152].mxu1 }
 0x502   : > { %5994 = vmatprep.mubr.bf16.mxu1 %v12759_v43  ;;  %v5571_v56 = vadd.f32 %v14434_v19, %v11877_v50  ;;  %v13039_v37 = vadd.f32 %v6757_v27, %v6565_v3  ;;  %v6759_v1 = vmul.f32 %v14435_v25, %v6183_v13  ;;  %v6568_v17 = vmul.f32 %v14433_v0, %v6120_v40  ;;  %v5728_v26 = vpop.f32.mrb[153].mxu1 }
 0x503   : > { %v5573_v12 = vadd.f32 %v14436_v54, %v11880_v38  ;;  %v13045_v63 = vadd.f32 %v6758_v62, %v6566_v9  ;;  %v6760_v14 = vmul.f32 %v14435_v25, %v6184_v34  ;;  %v6121_v43 = vmax.f32 %v5567_v15, 0.0  ;;  %v5730_v40 = vpop.f32.mrb[154].mxu1 }
 0x504   : > { %v13048_v22 = vadd.f32 %v6759_v1, %v6567_v51  ;;  %v5727_v61 = vadd.f32 %v5726_v29, %v11877_v50  ;;  %v6122_v3 = vmax.f32 %v5569_v21, 0.0  ;;  %v5729_v13 = vadd.f32 %v5728_v26, %v11880_v38  ;;  %v5732_v62 = vpop.f32.mrb[155].mxu1  ;;  %v14438_v51 = vld [vmem:[#allocation39_spill] sm:$0xff]  ;;  %v14439_v1 = vld [vmem:[#allocation182_spill] sm:$0xff] }
 0x505   : > { %v13051_v27 = vadd.f32 %v6760_v14, %v6568_v17  ;;  %v6123_v0 = vmax.f32 %v5571_v56, 0.0  ;;  %v5731_v9 = vadd.f32 %v5730_v40, %v11877_v50  ;;  %v6124_v54 = vmax.f32 %v5573_v12, 0.0  ;;  %v14440_v21 = vld [vmem:[#allocation58_spill] sm:$0xff] }
 0x506   : > { %v6185_v19 = vmax.f32 %v5727_v61, 0.0  ;;  %v6186_v34 = vmax.f32 %v5729_v13, 0.0  ;;  %v5733_v15 = vadd.f32 %v5732_v62, %v11880_v38  ;;  %v6569_v25 = vmul.f32 %v14438_v51, %v6121_v43  ;;  %v14441_v61 = vld [vmem:[#allocation204_spill] sm:$0xff]  ;;  %v14442_v40 = vld [vmem:[#allocation26_spill] sm:$0xff]  ;;  %v14443_v62 = vld [vmem:[#allocation205_spill] sm:$0xff] }
 0x507   : > { %14437 = vst [vmem:[#allocation47_spill] sm:$0xff] %v13051_v27  ;;  %v5577_v29 = vadd.f32 %v14439_v1, %v11877_v50  ;;  %v6187_v14 = vmax.f32 %v5731_v9, 0.0  ;;  %v6570_v56 = vmul.f32 %v14438_v51, %v6122_v3  ;;  %v5579_v26 = vadd.f32 %v14441_v61, %v11880_v38  ;;  %v14446_v3 = vld [vmem:[#allocation206_spill] sm:$0xff] }
 0x508   : > { %v6761_v17 = vmul.f32 %v14440_v21, %v6185_v19  ;;  %v6762_v12 = vmul.f32 %v14440_v21, %v6186_v34  ;;  %v6188_v13 = vmax.f32 %v5733_v15, 0.0  ;;  %v6571_v43 = vmul.f32 %v14442_v40, %v6123_v0  ;;  %v14445_v19 = vld [vmem:[#allocation69_spill] sm:$0xff]  ;;  %v5736_v15 = vpop.f32.mrb[156].mxu1 }
 0x509   : > { %5995 = vmatmul.mubr.bf16.gmra.mrb[4].mxu1 %v12752_v16  ;;  %v5581_v1 = vadd.f32 %v14443_v62, %v11877_v50  ;;  %v6763_v9 = vmul.f32 %v14445_v19, %v6187_v14  ;;  %v6572_v16 = vmul.f32 %v14442_v40, %v6124_v54  ;;  %v5583_v51 = vadd.f32 %v14446_v3, %v11880_v38  ;;  %v5738_v62 = vpop.f32.mrb[157].mxu1 }
 0x50a   : > { %6004 = vmatprep.mubr.bf16.mxu1 %v12799_v36  ;;  %v13069_v27 = vadd.f32 %v6761_v17, %v6569_v25  ;;  %v13075_v61 = vadd.f32 %v6762_v12, %v6570_v56  ;;  %v6764_v34 = vmul.f32 %v14445_v19, %v6188_v13  ;;  %v6125_v36 = vmax.f32 %v5577_v29, 0.0  ;;  %v5740_v54 = vpop.f32.mrb[158].mxu1 }
 0x50b   : > { %v13078_v21 = vadd.f32 %v6763_v9, %v6571_v43  ;;  %v5737_v0 = vadd.f32 %v5736_v15, %v11877_v50  ;;  %v6126_v25 = vmax.f32 %v5579_v26, 0.0  ;;  %v5739_v14 = vadd.f32 %v5738_v62, %v11880_v38  ;;  %v5742_v12 = vpop.f32.mrb[159].mxu1  ;;  %v14448_v43 = vld [vmem:[#allocation41_spill] sm:$0xff]  ;;  %v14449_v9 = vld [vmem:[#allocation60_spill] sm:$0xff]  ;;  %v14451_v62 = vld [vmem:[#allocation71_spill] sm:$0xff] }
 0x50c   : > { %14444 = vst [vmem:[#allocation194_spill] sm:$0xff] %v13069_v27  ;;  %v13081_v17 = vadd.f32 %v6764_v34, %v6572_v16  ;;  %v6127_v40 = vmax.f32 %v5581_v1, 0.0  ;;  %v5741_v56 = vadd.f32 %v5740_v54, %v11877_v50  ;;  %v6128_v3 = vmax.f32 %v5583_v51, 0.0  ;;  %v14450_v34 = vld [vmem:[#allocation28_spill] sm:$0xff] }
 0x50d   : > { %14447 = vst [vmem:[#allocation17_spill] sm:$0xff] %v13078_v21  ;;  %v6189_v27 = vmax.f32 %v5737_v0, 0.0  ;;  %v6190_v13 = vmax.f32 %v5739_v14, 0.0  ;;  %v5743_v29 = vadd.f32 %v5742_v12, %v11880_v38  ;;  %v6573_v19 = vmul.f32 %v14448_v43, %v6125_v36 }
 0x50e   : > { %v6191_v21 = vmax.f32 %v5741_v56, 0.0  ;;  %v6574_v26 = vmul.f32 %v14448_v43, %v6126_v25  ;;  %v6575_v0 = vmul.f32 %v14450_v34, %v6127_v40  ;;  %v6576_v36 = vmul.f32 %v14450_v34, %v6128_v3  ;;  %v14453_v34 = vld [vmem:[#allocation43_spill] sm:$0xff] }
 0x50f   : > { %v6765_v15 = vmul.f32 %v14449_v9, %v6189_v27  ;;  %v6766_v16 = vmul.f32 %v14449_v9, %v6190_v13  ;;  %v6192_v1 = vmax.f32 %v5743_v29, 0.0  ;;  %v14452_v9 = vld [vmem:[#allocation92_spill] sm:$0xff] }
 0x510   : > { %v6767_v14 = vmul.f32 %v14451_v62, %v6191_v21 }
 0x511   : > { %6005 = vmatmul.mubr.bf16.gmra.mrb[8].mxu1 %v12792_v32  ;;  %v13093_v51 = vadd.f32 %v6765_v15, %v6573_v19  ;;  %v13097_v54 = vadd.f32 %v6766_v16, %v6574_v26  ;;  %v6768_v27 = vmul.f32 %v14451_v62, %v6192_v1  ;;  %v5746_v32 = vpop.f32.mrb[160].mxu1  ;;  %v14454_v62 = vld [vmem:[#allocation105_spill] sm:$0xff] }
 0x512   : > { %6014 = vmatprep.mubr.bf16.mxu1 %v12835_v41  ;;  %v13100_v56 = vadd.f32 %v6767_v14, %v6575_v0  ;;  %v5747_v25 = vadd.f32 %v5746_v32, %v11877_v50  ;;  %v5748_v12 = vpop.f32.mrb[161].mxu1 }
 0x513   : > { %v13103_v13 = vadd.f32 %v6768_v27, %v6576_v36  ;;  %v5749_v41 = vadd.f32 %v5748_v12, %v11880_v38  ;;  %v5750_v40 = vpop.f32.mrb[162].mxu1  ;;  %v14455_v36 = vld [vmem:[#allocation189_spill] sm:$0xff] }
 0x514   : > { %v6193_v29 = vmax.f32 %v5747_v25, 0.0  ;;  %v5751_v21 = vadd.f32 %v5750_v40, %v11877_v50  ;;  %v5752_v43 = vpop.f32.mrb[163].mxu1  ;;  %v14456_v12 = vld [vmem:[#allocation85_spill] sm:$0xff] }
 0x515   : > { %v6194_v3 = vmax.f32 %v5749_v41, 0.0  ;;  %v5753_v19 = vadd.f32 %v5752_v43, %v11880_v38 }
 0x516   : > { %v7089_v15 = vmul.f32 %v14452_v9, %v6193_v29  ;;  %v6195_v26 = vmax.f32 %v5751_v21, 0.0  ;;  %v14457_v29 = vld [vmem:[#allocation148_spill] sm:$0xff] }
 0x517   : > { %v7090_v16 = vmul.f32 %v14452_v9, %v6194_v3  ;;  %v6196_v1 = vmax.f32 %v5753_v19, 0.0 }
 0x518   : > { %v13113_v0 = vadd.f32 %v7089_v15, %v14453_v34  ;;  %v7091_v14 = vmul.f32 %v14454_v62, %v6195_v26  ;;  %v5756_v25 = vpop.f32.mrb[164].mxu1 }
 0x519   : > { %6015 = vmatmul.mubr.bf16.gmra.mrb[12].mxu1 %v12828_v42  ;;  %v13117_v27 = vadd.f32 %v7090_v16, %v14455_v36  ;;  %v7092_v32 = vmul.f32 %v14454_v62, %v6196_v1  ;;  %v5757_v42 = vadd.f32 %v5756_v25, %v11877_v50  ;;  %v5758_v40 = vpop.f32.mrb[165].mxu1  ;;  %v14458_v16 = vld [vmem:[#allocation94_spill] sm:$0xff]  ;;  %v14459_v36 = vld [vmem:[#allocation103_spill] sm:$0xff]  ;;  %v14460_v25 = vld [vmem:[#allocation96_spill] sm:$0xff] }
 0x51a   : > { %6024 = vmatprep.mubr.bf16.mxu1 %v12874_v23  ;;  %v13121_v41 = vadd.f32 %v7091_v14, %v14456_v12  ;;  %v5759_v23 = vadd.f32 %v5758_v40, %v11880_v38  ;;  %v5760_v43 = vpop.f32.mrb[166].mxu1 }
 0x51b   : > { %v13125_v21 = vadd.f32 %v7092_v32, %v14457_v29  ;;  %v6197_v3 = vmax.f32 %v5757_v42, 0.0  ;;  %v5761_v19 = vadd.f32 %v5760_v43, %v11877_v50  ;;  %v5762_v9 = vpop.f32.mrb[167].mxu1  ;;  %v14461_v42 = vld [vmem:[#allocation30_spill] sm:$0xff]  ;;  %v14462_v43 = vld [vmem:[#allocation13_spill] sm:$0xff] }
 0x51c   : > { %v6198_v15 = vmax.f32 %v5759_v23, 0.0  ;;  %v5763_v26 = vadd.f32 %v5762_v9, %v11880_v38  ;;  %v14463_v9 = vld [vmem:[#allocation190_spill] sm:$0xff] }
 0x51d   : > { %v7093_v1 = vmul.f32 %v14458_v16, %v6197_v3  ;;  %v6199_v34 = vmax.f32 %v5761_v19, 0.0 }
 0x51e   : > { %v7094_v62 = vmul.f32 %v14458_v16, %v6198_v15  ;;  %v6200_v14 = vmax.f32 %v5763_v26, 0.0 }
 0x51f   : > { %v13135_v32 = vadd.f32 %v7093_v1, %v14459_v36  ;;  %v7095_v12 = vmul.f32 %v14460_v25, %v6199_v34  ;;  %v14464_v36 = vld [vmem:[#allocation107_spill] sm:$0xff] }
 0x520   : > { %v13139_v40 = vadd.f32 %v7094_v62, %v14461_v42  ;;  %v7096_v29 = vmul.f32 %v14460_v25, %v6200_v14  ;;  %v5766_v23 = vpop.f32.mrb[168].mxu1 }
 0x521   : > { %6025 = vmatmul.mubr.bf16.gmra.mrb[16].mxu1 %v12868_v45  ;;  %v13143_v3 = vadd.f32 %v7095_v12, %v14462_v43  ;;  %v5767_v45 = vadd.f32 %v5766_v23, %v11877_v50  ;;  %v5768_v19 = vpop.f32.mrb[169].mxu1 }
 0x522   : > { %6034 = vmatprep.mubr.bf16.mxu1 %v12911_v2  ;;  %v13147_v15 = vadd.f32 %v7096_v29, %v14463_v9  ;;  %v5769_v2 = vadd.f32 %v5768_v19, %v11880_v38  ;;  %v5770_v26 = vpop.f32.mrb[170].mxu1  ;;  %v14465_v29 = vld [vmem:[#allocation151_spill] sm:$0xff]  ;;  %v14467_v9 = vld [vmem:[#allocation80_spill] sm:$0xff] }
 0x523   : > { %v6201_v16 = vmax.f32 %v5767_v45, 0.0  ;;  %v5771_v1 = vadd.f32 %v5770_v26, %v11877_v50  ;;  %v5772_v34 = vpop.f32.mrb[171].mxu1  ;;  %v14466_v45 = vld [vmem:[#allocation98_spill] sm:$0xff] }
 0x524   : > { %v6202_v62 = vmax.f32 %v5769_v2, 0.0  ;;  %v5773_v14 = vadd.f32 %v5772_v34, %v11880_v38 }
 0x525   : > { %v7097_v25 = vmul.f32 %v14464_v36, %v6201_v16  ;;  %v6203_v12 = vmax.f32 %v5771_v1, 0.0  ;;  %v14469_v16 = vld [vmem:[#allocation153_spill] sm:$0xff] }
 0x526   : > { %v7098_v42 = vmul.f32 %v14464_v36, %v6202_v62  ;;  %v6204_v23 = vmax.f32 %v5773_v14, 0.0  ;;  %v14470_v14 = vld [vmem:[#allocation81_spill] sm:$0xff] }
 0x527   : > { %v13157_v43 = vadd.f32 %v7097_v25, %v14465_v29  ;;  %v7099_v19 = vmul.f32 %v14466_v45, %v6203_v12 }
 0x528   : > { %v13161_v26 = vadd.f32 %v7098_v42, %v14467_v9  ;;  %v7100_v2 = vmul.f32 %v14466_v45, %v6204_v23  ;;  %v5776_v34 = vpop.f32.mrb[172].mxu1  ;;  %v14471_v45 = vld [vmem:[#allocation109_spill] sm:$0xff] }
 0x529   : > { %6035 = vmatmul.mubr.bf16.gmra.mrb[20].mxu1 %v12905_v59  ;;  %v13165_v1 = vadd.f32 %v7099_v19, %v14469_v16  ;;  %v5777_v59 = vadd.f32 %v5776_v34, %v11877_v50  ;;  %v5778_v62 = vpop.f32.mrb[173].mxu1 }
 0x52a   : > { %6044 = vmatprep.mubr.bf16.mxu1 %v12956_v60  ;;  %14468 = vst [vmem:[#allocation73_spill] sm:$0xff] %v13161_v26  ;;  %v13169_v36 = vadd.f32 %v7100_v2, %v14470_v14  ;;  %v5779_v60 = vadd.f32 %v5778_v62, %v11880_v38  ;;  %v5780_v25 = vpop.f32.mrb[174].mxu1 }
 0x52b   : > { %v6205_v29 = vmax.f32 %v5777_v59, 0.0  ;;  %v5781_v12 = vadd.f32 %v5780_v25, %v11877_v50  ;;  %v5782_v42 = vpop.f32.mrb[175].mxu1  ;;  %v14472_v59 = vld [vmem:[#allocation100_spill] sm:$0xff] }
 0x52c   : > { %v6206_v9 = vmax.f32 %v5779_v60, 0.0  ;;  %v5783_v23 = vadd.f32 %v5782_v42, %v11880_v38 }
 0x52d   : > { %v7101_v26 = vmul.f32 %v14471_v45, %v6205_v29  ;;  %v6207_v19 = vmax.f32 %v5781_v12, 0.0  ;;  %v14473_v29 = vld [vmem:[#allocation68_spill] sm:$0xff] }
 0x52e   : > { %v7102_v34 = vmul.f32 %v14471_v45, %v6206_v9  ;;  %v6208_v16 = vmax.f32 %v5783_v23, 0.0  ;;  %v14474_v9 = vld [vmem:[#allocation196_spill] sm:$0xff] }
 0x52f   : > { %v13179_v2 = vadd.f32 %v7101_v26, %v12656_v44  ;;  %v7103_v62 = vmul.f32 %v14472_v59, %v6207_v19 }
 0x530   : > { %v13183_v14 = vadd.f32 %v7102_v34, %v12661_v4  ;;  %v7104_v60 = vmul.f32 %v14472_v59, %v6208_v16  ;;  %v5786_v25 = vpop.f32.mrb[176].mxu1  ;;  %v14475_v16 = vld [vmem:[#allocation111_spill] sm:$0xff] }
 0x531   : > { %6045 = vmatmul.mubr.bf16.gmra.mrb[24].mxu1 %v12949_v18  ;;  %v13187_v12 = vadd.f32 %v7103_v62, %v14473_v29  ;;  %v5787_v18 = vadd.f32 %v5786_v25, %v11877_v50  ;;  %v5788_v42 = vpop.f32.mrb[177].mxu1 }
 0x532   : > { %6054 = vmatprep.mubr.bf16.mxu1 %v12991_v52  ;;  %v13191_v23 = vadd.f32 %v7104_v60, %v14474_v9  ;;  %v5789_v44 = vadd.f32 %v5788_v42, %v11880_v38  ;;  %v5790_v52 = vpop.f32.mrb[178].mxu1  ;;  %v14476_v42 = vld [vmem:[#allocation102_spill] sm:$0xff] }
 0x533   : > { %v6209_v26 = vmax.f32 %v5787_v18, 0.0  ;;  %v5791_v45 = vadd.f32 %v5790_v52, %v11877_v50  ;;  %v5792_v4 = vpop.f32.mrb[179].mxu1 }
 0x534   : > { %v6210_v19 = vmax.f32 %v5789_v44, 0.0  ;;  %v5793_v34 = vadd.f32 %v5792_v4, %v11880_v38 }
 0x535   : > { %v7105_v59 = vmul.f32 %v14475_v16, %v6209_v26  ;;  %v6211_v62 = vmax.f32 %v5791_v45, 0.0  ;;  %v14478_v45 = vld [vmem:[#allocation101_spill] sm:$0xff] }
 0x536   : > { %v7106_v25 = vmul.f32 %v14475_v16, %v6210_v19  ;;  %v6212_v29 = vmax.f32 %v5793_v34, 0.0 }
 0x537   : > { %v13200_v60 = vadd.f32 %v7105_v59, %v12698_v5  ;;  %v7107_v9 = vmul.f32 %v14476_v42, %v6211_v62 }
 0x538   : > { %v13204_v18 = vadd.f32 %v7106_v25, %v12703_v55  ;;  %v7108_v44 = vmul.f32 %v14476_v42, %v6212_v29  ;;  %v14479_v29 = vld [vmem:[#allocation113_spill] sm:$0xff] }
 0x539   : > { %6055 = vmatmul.mubr.bf16.gmra.mrb[28].mxu1 %v12986_v47  ;;  %v5796_v52 = vpop.f32.mrb[180].mxu1  ;;  %v13208_v4 = vadd.f32 %v7107_v9, %v12708_v48 }
 0x53a   : > { %v5797_v26 = vadd.f32 %v5796_v52, %v11877_v50  ;;  %v5798_v47 = vpop.f32.mrb[181].mxu1  ;;  %v13212_v19 = vadd.f32 %v7108_v44, %v14478_v45  ;;  %v14480_v44 = vld [vmem:[#allocation104_spill] sm:$0xff] }
 0x53b   : > { %14477 = vst [vmem:[#allocation141_spill] sm:$0xff] %v13208_v4  ;;  %v5799_v5 = vadd.f32 %v5798_v47, %v11880_v38  ;;  %v5800_v34 = vpop.f32.mrb[182].mxu1 }
 0x53c   : > { %v6213_v16 = vmax.f32 %v5797_v26, 0.0  ;;  %v5801_v59 = vadd.f32 %v5800_v34, %v11877_v50  ;;  %v5802_v55 = vpop.f32.mrb[183].mxu1 }
 0x53d   : > { %v6214_v62 = vmax.f32 %v5799_v5, 0.0  ;;  %v5803_v25 = vadd.f32 %v5802_v55, %v11880_v38 }
 0x53e   : > { %v7109_v42 = vmul.f32 %v14479_v29, %v6213_v16  ;;  %v6215_v48 = vmax.f32 %v5801_v59, 0.0 }
 0x53f   : > { %v7110_v9 = vmul.f32 %v14479_v29, %v6214_v62  ;;  %v6216_v52 = vmax.f32 %v5803_v25, 0.0 }
 0x540   : > { %v13220_v4 = vadd.f32 %v7109_v42, %v12740_v31  ;;  %v7111_v45 = vmul.f32 %v14480_v44, %v6215_v48 }
 0x541   : > { %v13224_v47 = vadd.f32 %v7110_v9, %v12745_v20  ;;  %v7112_v26 = vmul.f32 %v14480_v44, %v6216_v52  ;;  %v14481_v9 = vld [vmem:[#allocation115_spill] sm:$0xff] }
 0x542   : > { %v5806_v34 = vpop.f32.mrb[184].mxu1  ;;  %v13228_v5 = vadd.f32 %v7111_v45, %v12750_v46 }
 0x543   : > { %v5807_v16 = vadd.f32 %v5806_v34, %v11877_v50  ;;  %v5808_v59 = vpop.f32.mrb[185].mxu1  ;;  %v13232_v55 = vadd.f32 %v7112_v26, %v12757_v11  ;;  %v14482_v11 = vld [vmem:[#allocation106_spill] sm:$0xff] }
 0x544   : > { %v5809_v31 = vadd.f32 %v5808_v59, %v11880_v38  ;;  %v5810_v62 = vpop.f32.mrb[186].mxu1 }
 0x545   : > { %v6217_v25 = vmax.f32 %v5807_v16, 0.0  ;;  %v5811_v29 = vadd.f32 %v5810_v62, %v11877_v50  ;;  %v5812_v20 = vpop.f32.mrb[187].mxu1 }
 0x546   : > { %v6218_v42 = vmax.f32 %v5809_v31, 0.0  ;;  %v5813_v48 = vadd.f32 %v5812_v20, %v11880_v38 }
 0x547   : > { %v7113_v52 = vmul.f32 %v14481_v9, %v6217_v25  ;;  %v6219_v46 = vmax.f32 %v5811_v29, 0.0 }
 0x548   : > { %v7114_v44 = vmul.f32 %v14481_v9, %v6218_v42  ;;  %v6220_v45 = vmax.f32 %v5813_v48, 0.0 }
 0x549   : > { %v13240_v34 = vadd.f32 %v7113_v52, %v12780_v49  ;;  %v7115_v26 = vmul.f32 %v14482_v11, %v6219_v46 }
 0x54a   : > { %v13244_v59 = vadd.f32 %v7114_v44, %v12785_v7  ;;  %v7116_v16 = vmul.f32 %v14482_v11, %v6220_v45  ;;  %v14484_v44 = vld [vmem:[#allocation117_spill] sm:$0xff] }
 0x54b   : > { %v13248_v31 = vadd.f32 %v7115_v26, %v12790_v8 }
 0x54c   : > { %v5816_v62 = vpop.f32.mrb[188].mxu1  ;;  %v13252_v20 = vadd.f32 %v7116_v16, %v12797_v33  ;;  %v14486_v33 = vld [vmem:[#allocation108_spill] sm:$0xff] }
 0x54d   : > { %v5817_v25 = vadd.f32 %v5816_v62, %v11877_v50  ;;  %v5818_v29 = vpop.f32.mrb[189].mxu1 }
 0x54e   : > { %14483 = vst [vmem:[#allocation88_spill] sm:$0xff] %v13252_v20  ;;  %v5819_v49 = vadd.f32 %v5818_v29, %v11880_v38  ;;  %v5820_v42 = vpop.f32.mrb[190].mxu1 }
 0x54f   : > { %v6221_v48 = vmax.f32 %v5817_v25, 0.0  ;;  %v5821_v9 = vadd.f32 %v5820_v42, %v11877_v50  ;;  %v5822_v7 = vpop.f32.mrb[191].mxu1 }
 0x550   : > { %v6222_v52 = vmax.f32 %v5819_v49, 0.0  ;;  %v5823_v46 = vadd.f32 %v5822_v7, %v11880_v38  ;;  %v14488_v49 = vld [vmem:[#allocation15_spill] sm:$0xff]  ;;  %v14490_v7 = vld [vmem:[#allocation45_spill] sm:$0xff] }
 0x551   : > { %v7117_v45 = vmul.f32 %v14484_v44, %v6221_v48  ;;  %v6223_v8 = vmax.f32 %v5821_v9, 0.0 }
 0x552   : > { %v7118_v11 = vmul.f32 %v14484_v44, %v6222_v52  ;;  %v6224_v26 = vmax.f32 %v5823_v46, 0.0 }
 0x553   : > { %v13260_v62 = vadd.f32 %v7117_v45, %v12817_v10  ;;  %v7119_v16 = vmul.f32 %v14486_v33, %v6223_v8 }
 0x554   : > { %v13264_v29 = vadd.f32 %v7118_v11, %v12821_v57  ;;  %v7120_v25 = vmul.f32 %v14486_v33, %v6224_v26  ;;  %v5826_v42 = vpop.f32.mrb[192].mxu1  ;;  %v14492_v26 = vld [vmem:[#allocation119_spill] sm:$0xff] }
 0x555   : > { %14485 = vst [vmem:[#allocation184_spill] sm:$0xff] %v13260_v62  ;;  %v13268_v20 = vadd.f32 %v7119_v16, %v14488_v49  ;;  %v5827_v48 = vadd.f32 %v5826_v42, %v11877_v50  ;;  %v5828_v9 = vpop.f32.mrb[193].mxu1 }
 0x556   : > { %14487 = vst [vmem:[#allocation75_spill] sm:$0xff] %v13264_v29  ;;  %v13272_v52 = vadd.f32 %v7120_v25, %v14490_v7  ;;  %v5829_v10 = vadd.f32 %v5828_v9, %v11880_v38  ;;  %v5830_v46 = vpop.f32.mrb[194].mxu1  ;;  %v14495_v25 = vld [vmem:[#allocation110_spill] sm:$0xff]  ;;  %v14496_v9 = vld [vmem:[#allocation16_spill] sm:$0xff] }
 0x557   : > { %14489 = vst [vmem:[#allocation160_spill] sm:$0xff] %v13268_v20  ;;  %v6225_v44 = vmax.f32 %v5827_v48, 0.0  ;;  %v5831_v45 = vadd.f32 %v5830_v46, %v11877_v50  ;;  %v5832_v57 = vpop.f32.mrb[195].mxu1  ;;  %v14493_v20 = vld [vmem:[#allocation191_spill] sm:$0xff] }
 0x558   : > { %14491 = vst [vmem:[#allocation36_spill] sm:$0xff] %v13272_v52  ;;  %v6226_v8 = vmax.f32 %v5829_v10, 0.0  ;;  %v5833_v11 = vadd.f32 %v5832_v57, %v11880_v38  ;;  %v14498_v10 = vld [vmem:[#allocation83_spill] sm:$0xff]  ;;  %v14500_v57 = vld [vmem:[#allocation165_spill] sm:$0xff] }
 0x559   : > { %v7121_v33 = vmul.f32 %v14492_v26, %v6225_v44  ;;  %v6227_v16 = vmax.f32 %v5831_v45, 0.0 }
 0x55a   : > { %v7122_v49 = vmul.f32 %v14492_v26, %v6226_v8  ;;  %v6228_v42 = vmax.f32 %v5833_v11, 0.0 }
 0x55b   : > { %v13280_v29 = vadd.f32 %v7121_v33, %v14493_v20  ;;  %v7123_v7 = vmul.f32 %v14495_v25, %v6227_v16 }
 0x55c   : > { %v13284_v52 = vadd.f32 %v7122_v49, %v14496_v9  ;;  %v7124_v48 = vmul.f32 %v14495_v25, %v6228_v42  ;;  %v5836_v46 = vpop.f32.mrb[196].mxu1  ;;  %v14502_v25 = vld [vmem:[#allocation121_spill] sm:$0xff] }
 0x55d   : > { %14494 = vst [vmem:[#allocation142_spill] sm:$0xff] %v13280_v29  ;;  %v13288_v62 = vadd.f32 %v7123_v7, %v14498_v10  ;;  %v5837_v44 = vadd.f32 %v5836_v46, %v11877_v50  ;;  %v5838_v45 = vpop.f32.mrb[197].mxu1 }
 0x55e   : > { %14497 = vst [vmem:[#allocation161_spill] sm:$0xff] %v13284_v52  ;;  %v13292_v8 = vadd.f32 %v7124_v48, %v14500_v57  ;;  %v5839_v20 = vadd.f32 %v5838_v45, %v11880_v38  ;;  %v5840_v11 = vpop.f32.mrb[198].mxu1  ;;  %v14505_v48 = vld [vmem:[#allocation112_spill] sm:$0xff] }
 0x55f   : > { %14499 = vst [vmem:[#allocation155_spill] sm:$0xff] %v13288_v62  ;;  %v6229_v26 = vmax.f32 %v5837_v44, 0.0  ;;  %v5841_v33 = vadd.f32 %v5840_v11, %v11877_v50  ;;  %v5842_v16 = vpop.f32.mrb[199].mxu1  ;;  %v14503_v62 = vld [vmem:[#allocation193_spill] sm:$0xff]  ;;  %v14506_v45 = vld [vmem:[#allocation72_spill] sm:$0xff] }
 0x560   : > { %14501 = vst [vmem:[#allocation49_spill] sm:$0xff] %v13292_v8  ;;  %v6230_v49 = vmax.f32 %v5839_v20, 0.0  ;;  %v5843_v42 = vadd.f32 %v5842_v16, %v11880_v38  ;;  %v14508_v20 = vld [vmem:[#allocation168_spill] sm:$0xff]  ;;  %v14510_v16 = vld [vmem:[#allocation86_spill] sm:$0xff] }
 0x561   : > { %v7125_v9 = vmul.f32 %v14502_v25, %v6229_v26  ;;  %v6231_v7 = vmax.f32 %v5841_v33, 0.0 }
 0x562   : > { %v7126_v10 = vmul.f32 %v14502_v25, %v6230_v49  ;;  %v6232_v46 = vmax.f32 %v5843_v42, 0.0 }
 0x563   : > { %v13300_v52 = vadd.f32 %v7125_v9, %v14503_v62  ;;  %v7127_v57 = vmul.f32 %v14505_v48, %v6231_v7 }
 0x564   : > { %v13304_v8 = vadd.f32 %v7126_v10, %v14506_v45  ;;  %v7128_v44 = vmul.f32 %v14505_v48, %v6232_v46  ;;  %v5846_v11 = vpop.f32.mrb[200].mxu1  ;;  %v14512_v48 = vld [vmem:[#allocation123_spill] sm:$0xff] }
 0x565   : > { %14504 = vst [vmem:[#allocation158_spill] sm:$0xff] %v13300_v52  ;;  %v13308_v29 = vadd.f32 %v7127_v57, %v14508_v20  ;;  %v5847_v26 = vadd.f32 %v5846_v11, %v11877_v50  ;;  %v5848_v33 = vpop.f32.mrb[201].mxu1 }
 0x566   : > { %14507 = vst [vmem:[#allocation18_spill] sm:$0xff] %v13304_v8  ;;  %v13312_v49 = vadd.f32 %v7128_v44, %v14510_v16  ;;  %v5849_v62 = vadd.f32 %v5848_v33, %v11880_v38  ;;  %v5850_v42 = vpop.f32.mrb[202].mxu1  ;;  %v14514_v44 = vld [vmem:[#allocation114_spill] sm:$0xff]  ;;  %v14515_v33 = vld [vmem:[#allocation97_spill] sm:$0xff] }
 0x567   : > { %14509 = vst [vmem:[#allocation198_spill] sm:$0xff] %v13308_v29  ;;  %v6233_v25 = vmax.f32 %v5847_v26, 0.0  ;;  %v5851_v9 = vadd.f32 %v5850_v42, %v11877_v50  ;;  %v5852_v7 = vpop.f32.mrb[203].mxu1  ;;  %v14513_v29 = vld [vmem:[#allocation34_spill] sm:$0xff] }
 0x568   : > { %14511 = vst [vmem:[#allocation89_spill] sm:$0xff] %v13312_v49  ;;  %v6234_v10 = vmax.f32 %v5849_v62, 0.0  ;;  %v5853_v46 = vadd.f32 %v5852_v7, %v11880_v38  ;;  %v14516_v62 = vld [vmem:[#allocation144_spill] sm:$0xff]  ;;  %v14518_v7 = vld [vmem:[#allocation10_spill] sm:$0xff] }
 0x569   : > { %v7129_v45 = vmul.f32 %v14512_v48, %v6233_v25  ;;  %v6235_v57 = vmax.f32 %v5851_v9, 0.0 }
 0x56a   : > { %v7130_v20 = vmul.f32 %v14512_v48, %v6234_v10  ;;  %v6236_v11 = vmax.f32 %v5853_v46, 0.0 }
 0x56b   : > { %v13320_v8 = vadd.f32 %v7129_v45, %v14513_v29  ;;  %v7131_v16 = vmul.f32 %v14514_v44, %v6235_v57 }
 0x56c   : > { %v13324_v49 = vadd.f32 %v7130_v20, %v14515_v33  ;;  %v7132_v26 = vmul.f32 %v14514_v44, %v6236_v11  ;;  %v5856_v42 = vpop.f32.mrb[204].mxu1  ;;  %v14519_v44 = vld [vmem:[#allocation125_spill] sm:$0xff] }
 0x56d   : > { %v13328_v52 = vadd.f32 %v7131_v16, %v14516_v62  ;;  %v5857_v25 = vadd.f32 %v5856_v42, %v11877_v50  ;;  %v5858_v9 = vpop.f32.mrb[205].mxu1 }
 0x56e   : > { %v13332_v10 = vadd.f32 %v7132_v26, %v14518_v7  ;;  %v5859_v29 = vadd.f32 %v5858_v9, %v11880_v38  ;;  %v5860_v46 = vpop.f32.mrb[206].mxu1  ;;  %v14520_v26 = vld [vmem:[#allocation116_spill] sm:$0xff] }
 0x56f   : > { %14517 = vst [vmem:[#allocation76_spill] sm:$0xff] %v13328_v52  ;;  %v6237_v48 = vmax.f32 %v5857_v25, 0.0  ;;  %v5861_v45 = vadd.f32 %v5860_v46, %v11877_v50  ;;  %v5862_v57 = vpop.f32.mrb[207].mxu1 }
 0x570   : > { %v6238_v20 = vmax.f32 %v5859_v29, 0.0  ;;  %v5863_v11 = vadd.f32 %v5862_v57, %v11880_v38 }
 0x571   : > { %v7133_v33 = vmul.f32 %v14519_v44, %v6237_v48  ;;  %v6239_v16 = vmax.f32 %v5861_v45, 0.0 }
 0x572   : > { %v7134_v62 = vmul.f32 %v14519_v44, %v6238_v20  ;;  %v6240_v42 = vmax.f32 %v5863_v11, 0.0 }
 0x573   : > { %v13340_v52 = vadd.f32 %v7133_v33, %v12978_v58  ;;  %v7135_v7 = vmul.f32 %v14520_v26, %v6239_v16 }
 0x574   : > { %v13344_v9 = vadd.f32 %v7134_v62, %v12981_v53  ;;  %v7136_v25 = vmul.f32 %v14520_v26, %v6240_v42  ;;  %v5866_v46 = vpop.f32.mrb[208].mxu1  ;;  %v14521_v62 = vld [vmem:[#allocation172_spill] sm:$0xff] }
 0x575   : > { %v13348_v29 = vadd.f32 %v7135_v7, %v12984_v35  ;;  %v5867_v48 = vadd.f32 %v5866_v46, %v11877_v50  ;;  %v5868_v45 = vpop.f32.mrb[209].mxu1 }
 0x576   : > { %v13352_v57 = vadd.f32 %v7136_v25, %v12989_v39  ;;  %v5869_v58 = vadd.f32 %v5868_v45, %v11880_v38  ;;  %v5870_v20 = vpop.f32.mrb[210].mxu1  ;;  %v14522_v39 = vld [vmem:[#allocation118_spill] sm:$0xff] }
 0x577   : > { %v6241_v11 = vmax.f32 %v5867_v48, 0.0  ;;  %v5871_v44 = vadd.f32 %v5870_v20, %v11877_v50  ;;  %v5872_v53 = vpop.f32.mrb[211].mxu1 }
 0x578   : > { %v6242_v33 = vmax.f32 %v5869_v58, 0.0  ;;  %v5873_v16 = vadd.f32 %v5872_v53, %v11880_v38 }
 0x579   : > { %v7137_v42 = vmul.f32 %v14521_v62, %v6241_v11  ;;  %v6243_v35 = vmax.f32 %v5871_v44, 0.0 }
 0x57a   : > { %v7138_v26 = vmul.f32 %v14521_v62, %v6242_v33  ;;  %v6244_v7 = vmax.f32 %v5873_v16, 0.0 }
 0x57b   : > { %v13360_v46 = vadd.f32 %v7137_v42, %v13009_v30  ;;  %v7139_v25 = vmul.f32 %v14522_v39, %v6243_v35 }
 0x57c   : > { %v13364_v45 = vadd.f32 %v7138_v26, %v13015_v24  ;;  %v7140_v48 = vmul.f32 %v14522_v39, %v6244_v7  ;;  %v5876_v20 = vpop.f32.mrb[212].mxu1  ;;  %v14523_v26 = vld [vmem:[#allocation156_spill] sm:$0xff] }
 0x57d   : > { %v13368_v58 = vadd.f32 %v7139_v25, %v13018_v6  ;;  %v5877_v11 = vadd.f32 %v5876_v20, %v11877_v50  ;;  %v5878_v44 = vpop.f32.mrb[213].mxu1 }
 0x57e   : > { %v13372_v53 = vadd.f32 %v7140_v48, %v13021_v28  ;;  %v5879_v30 = vadd.f32 %v5878_v44, %v11880_v38  ;;  %v5880_v33 = vpop.f32.mrb[214].mxu1  ;;  %v14524_v28 = vld [vmem:[#allocation176_spill] sm:$0xff] }
 0x57f   : > { %v6245_v16 = vmax.f32 %v5877_v11, 0.0  ;;  %v5881_v62 = vadd.f32 %v5880_v33, %v11877_v50  ;;  %v5882_v24 = vpop.f32.mrb[215].mxu1 }
 0x580   : > { %v6246_v42 = vmax.f32 %v5879_v30, 0.0  ;;  %v5883_v35 = vadd.f32 %v5882_v24, %v11880_v38  ;;  %v14527_v24 = vld [vmem:[#allocation47_spill] sm:$0xff] }
 0x581   : > { %v7141_v7 = vmul.f32 %v14523_v26, %v6245_v16  ;;  %v6247_v6 = vmax.f32 %v5881_v62, 0.0 }
 0x582   : > { %v7142_v39 = vmul.f32 %v14523_v26, %v6246_v42  ;;  %v6248_v25 = vmax.f32 %v5883_v35, 0.0 }
 0x583   : > { %v13380_v20 = vadd.f32 %v7141_v7, %v13039_v37  ;;  %v7143_v48 = vmul.f32 %v14524_v28, %v6247_v6 }
 0x584   : > { %v13384_v44 = vadd.f32 %v7142_v39, %v13045_v63  ;;  %v7144_v11 = vmul.f32 %v14524_v28, %v6248_v25  ;;  %v5886_v33 = vpop.f32.mrb[216].mxu1  ;;  %v14529_v25 = vld [vmem:[#allocation181_spill] sm:$0xff] }
 0x585   : > { %v13388_v30 = vadd.f32 %v7143_v48, %v13048_v22  ;;  %v5887_v16 = vadd.f32 %v5886_v33, %v11877_v50  ;;  %v5888_v62 = vpop.f32.mrb[217].mxu1 }
 0x586   : > { %14525 = vst [vmem:[#allocation38_spill] sm:$0xff] %v13384_v44  ;;  %v13392_v42 = vadd.f32 %v7144_v11, %v14527_v24  ;;  %v5889_v37 = vadd.f32 %v5888_v62, %v11880_v38  ;;  %v5890_v35 = vpop.f32.mrb[218].mxu1  ;;  %v14531_v11 = vld [vmem:[#allocation169_spill] sm:$0xff] }
 0x587   : > { %14526 = vst [vmem:[#allocation9_spill] sm:$0xff] %v13388_v30  ;;  %v6249_v26 = vmax.f32 %v5887_v16, 0.0  ;;  %v5891_v7 = vadd.f32 %v5890_v35, %v11877_v50  ;;  %v5892_v63 = vpop.f32.mrb[219].mxu1  ;;  %v14530_v30 = vld [vmem:[#allocation194_spill] sm:$0xff] }
 0x588   : > { %14528 = vst [vmem:[#allocation178_spill] sm:$0xff] %v13392_v42  ;;  %v6250_v6 = vmax.f32 %v5889_v37, 0.0  ;;  %v5893_v39 = vadd.f32 %v5892_v63, %v11880_v38  ;;  %v14532_v37 = vld [vmem:[#allocation17_spill] sm:$0xff] }
 0x589   : > { %v7145_v28 = vmul.f32 %v14529_v25, %v6249_v26  ;;  %v6251_v22 = vmax.f32 %v5891_v7, 0.0 }
 0x58a   : > { %v7146_v48 = vmul.f32 %v14529_v25, %v6250_v6  ;;  %v6252_v33 = vmax.f32 %v5893_v39, 0.0 }
 0x58b   : > { %v13400_v44 = vadd.f32 %v7145_v28, %v14530_v30  ;;  %v7147_v24 = vmul.f32 %v14531_v11, %v6251_v22 }
 0x58c   : > { %v13404_v62 = vadd.f32 %v7146_v48, %v13075_v61  ;;  %v7148_v16 = vmul.f32 %v14531_v11, %v6252_v33  ;;  %v5896_v35 = vpop.f32.mrb[220].mxu1  ;;  %v14533_v48 = vld [vmem:[#allocation185_spill] sm:$0xff] }
 0x58d   : > { %v13408_v42 = vadd.f32 %v7147_v24, %v14532_v37  ;;  %v5897_v26 = vadd.f32 %v5896_v35, %v11877_v50  ;;  %v5898_v7 = vpop.f32.mrb[221].mxu1 }
 0x58e   : > { %v13412_v63 = vadd.f32 %v7148_v16, %v13081_v17  ;;  %v5899_v30 = vadd.f32 %v5898_v7, %v11880_v38  ;;  %v5900_v6 = vpop.f32.mrb[222].mxu1  ;;  %v14534_v17 = vld [vmem:[#allocation74_spill] sm:$0xff] }
 0x58f   : > { %v6253_v39 = vmax.f32 %v5897_v26, 0.0  ;;  %v5901_v25 = vadd.f32 %v5900_v6, %v11877_v50  ;;  %v5902_v61 = vpop.f32.mrb[223].mxu1 }
 0x590   : > { %v6254_v28 = vmax.f32 %v5899_v30, 0.0  ;;  %v5903_v22 = vadd.f32 %v5902_v61, %v11880_v38 }
 0x591   : > { %v7149_v33 = vmul.f32 %v14533_v48, %v6253_v39  ;;  %v6255_v11 = vmax.f32 %v5901_v25, 0.0 }
 0x592   : > { %v7150_v24 = vmul.f32 %v14533_v48, %v6254_v28  ;;  %v6256_v35 = vmax.f32 %v5903_v22, 0.0 }
 0x593   : > { %v13420_v37 = vadd.f32 %v7149_v33, %v13093_v51  ;;  %v7151_v16 = vmul.f32 %v14534_v17, %v6255_v11 }
 0x594   : > { %v13424_v7 = vadd.f32 %v7150_v24, %v13097_v54  ;;  %v7152_v26 = vmul.f32 %v14534_v17, %v6256_v35  ;;  %v5906_v6 = vpop.f32.mrb[224].mxu1  ;;  %v14536_v24 = vld [vmem:[#allocation127_spill] sm:$0xff] }
 0x595   : > { %v13428_v30 = vadd.f32 %v7151_v16, %v13100_v56  ;;  %v5907_v39 = vadd.f32 %v5906_v6, %v11877_v50  ;;  %v5908_v25 = vpop.f32.mrb[225].mxu1 }
 0x596   : > { %v13432_v61 = vadd.f32 %v7152_v26, %v13103_v13  ;;  %v5909_v51 = vadd.f32 %v5908_v25, %v11880_v38  ;;  %v5910_v28 = vpop.f32.mrb[226].mxu1  ;;  %v14537_v13 = vld [vmem:[#allocation120_spill] sm:$0xff] }
 0x597   : > { %v6257_v22 = vmax.f32 %v5907_v39, 0.0  ;;  %v5911_v48 = vadd.f32 %v5910_v28, %v11877_v50  ;;  %v5912_v54 = vpop.f32.mrb[227].mxu1 }
 0x598   : > { %14535 = vst [vmem:[#allocation20_spill] sm:$0xff] %v13432_v61  ;;  %v6258_v33 = vmax.f32 %v5909_v51, 0.0  ;;  %v5913_v11 = vadd.f32 %v5912_v54, %v11880_v38 }
 0x599   : > { %v7473_v35 = vmul.f32 %v14536_v24, %v6257_v22  ;;  %v6259_v56 = vmax.f32 %v5911_v48, 0.0 }
 0x59a   : > { %v7474_v17 = vmul.f32 %v14536_v24, %v6258_v33  ;;  %v6260_v16 = vmax.f32 %v5913_v11, 0.0 }
 0x59b   : > { %v7537_v6 = vadd.f32 %v7473_v35, %v13113_v0  ;;  %v7475_v26 = vmul.f32 %v14537_v13, %v6259_v56 }
 0x59c   : > { %v7538_v25 = vadd.f32 %v7474_v17, %v13117_v27  ;;  %v7476_v39 = vmul.f32 %v14537_v13, %v6260_v16  ;;  %v5916_v61 = vpop.f32.mrb[228].mxu1  ;;  %v14538_v16 = vld [vmem:[#allocation122_spill] sm:$0xff] }
 0x59d   : > { %v7539_v28 = vadd.f32 %v7475_v26, %v13121_v41  ;;  %v5917_v51 = vadd.f32 %v5916_v61, %v11877_v50  ;;  %v5918_v54 = vpop.f32.mrb[229].mxu1 }
 0x59e   : > { %v7540_v22 = vadd.f32 %v7476_v39, %v13125_v21  ;;  %v5919_v48 = vadd.f32 %v5918_v54, %v11880_v38  ;;  %v5920_v33 = vpop.f32.mrb[230].mxu1  ;;  %v14539_v39 = vld [vmem:[#allocation129_spill] sm:$0xff] }
 0x59f   : > { %v7729_v11 = vpack.c.bf16 %v7539_v28, %v7537_v6  ;;  %v6261_v24 = vmax.f32 %v5917_v51, 0.0  ;;  %v5921_v0 = vadd.f32 %v5920_v33, %v11877_v50  ;;  %v5922_v35 = vpop.f32.mrb[231].mxu1 }
 0x5a0   : > { %v6262_v56 = vmax.f32 %v5919_v48, 0.0  ;;  %v5923_v27 = vadd.f32 %v5922_v35, %v11880_v38  ;;  %v7730_v17 = vpack.c.bf16 %v7540_v22, %v7538_v25 }
 0x5a1   : > { %v7477_v13 = vmul.f32 %v14538_v16, %v6261_v24  ;;  %v6263_v41 = vmax.f32 %v5921_v0, 0.0 }
 0x5a2   : > { %v7478_v61 = vmul.f32 %v14538_v16, %v6262_v56  ;;  %v6264_v26 = vmax.f32 %v5923_v27, 0.0  ;;  %8120 = vmatprep.mubr.bf16.mxu0 %v7730_v17  ;;  %v14540_v16 = vld [vmem:[#allocation124_spill] sm:$0xff] }
 0x5a3   : > { %v7541_v21 = vadd.f32 %v7477_v13, %v13135_v32  ;;  %v7479_v54 = vmul.f32 %v14539_v39, %v6263_v41  ;;  %8121 = vmatmul.mubr.bf16.vlgmr.msra.gmra.mrb[224].mxu0 %v7729_v11 }
 0x5a4   : > { %v7542_v6 = vadd.f32 %v7478_v61, %v13139_v40  ;;  %v7480_v28 = vmul.f32 %v14539_v39, %v6264_v26  ;;  %v5926_v51 = vpop.f32.mrb[232].mxu1  ;;  %v14541_v26 = vld [vmem:[#allocation131_spill] sm:$0xff] }
 0x5a5   : > { %v7543_v48 = vadd.f32 %v7479_v54, %v13143_v3  ;;  %v5927_v25 = vadd.f32 %v5926_v51, %v11877_v50  ;;  %v5928_v22 = vpop.f32.mrb[233].mxu1 }
 0x5a6   : > { %v7544_v33 = vadd.f32 %v7480_v28, %v13147_v15  ;;  %v5929_v24 = vadd.f32 %v5928_v22, %v11880_v38  ;;  %v5930_v0 = vpop.f32.mrb[234].mxu1 }
 0x5a7   : > { %v7731_v35 = vpack.c.bf16 %v7543_v48, %v7541_v21  ;;  %v6265_v32 = vmax.f32 %v5927_v25, 0.0  ;;  %v5931_v56 = vadd.f32 %v5930_v0, %v11877_v50  ;;  %v5932_v11 = vpop.f32.mrb[235].mxu1  ;;  %v14542_v21 = vld [vmem:[#allocation73_spill] sm:$0xff] }
 0x5a8   : > { %v6266_v27 = vmax.f32 %v5929_v24, 0.0  ;;  %v5933_v40 = vadd.f32 %v5932_v11, %v11880_v38  ;;  %v7732_v17 = vpack.c.bf16 %v7544_v33, %v7542_v6 }
 0x5a9   : > { %v7481_v13 = vmul.f32 %v14540_v16, %v6265_v32  ;;  %v6267_v3 = vmax.f32 %v5931_v56, 0.0 }
 0x5aa   : > { %v7482_v41 = vmul.f32 %v14540_v16, %v6266_v27  ;;  %v6268_v61 = vmax.f32 %v5933_v40, 0.0  ;;  %8128 = vmatprep.mubr.bf16.mxu0 %v7732_v17  ;;  %v14543_v40 = vld [vmem:[#allocation126_spill] sm:$0xff] }
 0x5ab   : > { %v7545_v15 = vadd.f32 %v7481_v13, %v13157_v43  ;;  %v7483_v39 = vmul.f32 %v14541_v26, %v6267_v3  ;;  %8129 = vmatmul.mubr.bf16.gmra.mrb[228].mxu0 %v7731_v35  ;;  %v14544_v3 = vld [vmem:[#allocation133_spill] sm:$0xff] }
 0x5ac   : > { %v7546_v54 = vadd.f32 %v7482_v41, %v14542_v21  ;;  %v7484_v28 = vmul.f32 %v14541_v26, %v6268_v61  ;;  %v5936_v51 = vpop.f32.mrb[236].mxu1 }
 0x5ad   : > { %v7547_v48 = vadd.f32 %v7483_v39, %v13165_v1  ;;  %v5937_v6 = vadd.f32 %v5936_v51, %v11877_v50  ;;  %v5938_v25 = vpop.f32.mrb[237].mxu1 }
 0x5ae   : > { %v7548_v22 = vadd.f32 %v7484_v28, %v13169_v36  ;;  %v5939_v33 = vadd.f32 %v5938_v25, %v11880_v38  ;;  %v5940_v24 = vpop.f32.mrb[238].mxu1 }
 0x5af   : > { %v7733_v0 = vpack.c.bf16 %v7547_v48, %v7545_v15  ;;  %v6269_v43 = vmax.f32 %v5937_v6, 0.0  ;;  %v5941_v32 = vadd.f32 %v5940_v24, %v11877_v50  ;;  %v5942_v35 = vpop.f32.mrb[239].mxu1 }
 0x5b0   : > { %v6270_v56 = vmax.f32 %v5939_v33, 0.0  ;;  %v5943_v11 = vadd.f32 %v5942_v35, %v11880_v38  ;;  %v7734_v27 = vpack.c.bf16 %v7548_v22, %v7546_v54 }
 0x5b1   : > { %v7485_v17 = vmul.f32 %v14543_v40, %v6269_v43  ;;  %v6271_v1 = vmax.f32 %v5941_v32, 0.0 }
 0x5b2   : > { %v7486_v16 = vmul.f32 %v14543_v40, %v6270_v56  ;;  %v6272_v13 = vmax.f32 %v5943_v11, 0.0  ;;  %8136 = vmatprep.mubr.bf16.mxu0 %v7734_v27  ;;  %v14546_v56 = vld [vmem:[#allocation135_spill] sm:$0xff] }
 0x5b3   : > { %v7549_v36 = vadd.f32 %v7485_v17, %v13179_v2  ;;  %v7487_v41 = vmul.f32 %v14544_v3, %v6271_v1  ;;  %8137 = vmatmul.mubr.bf16.gmra.mrb[232].mxu0 %v7733_v0  ;;  %v14545_v0 = vld [vmem:[#allocation128_spill] sm:$0xff]  ;;  %v14547_v1 = vld [vmem:[#allocation141_spill] sm:$0xff] }
 0x5b4   : > { %v7550_v61 = vadd.f32 %v7486_v16, %v13183_v14  ;;  %v7488_v15 = vmul.f32 %v14544_v3, %v6272_v13  ;;  %v5946_v26 = vpop.f32.mrb[240].mxu1 }
 0x5b5   : > { %v7551_v39 = vadd.f32 %v7487_v41, %v13187_v12  ;;  %v5947_v21 = vadd.f32 %v5946_v26, %v11877_v50  ;;  %v5948_v54 = vpop.f32.mrb[241].mxu1 }
 0x5b6   : > { %v7552_v28 = vadd.f32 %v7488_v15, %v13191_v23  ;;  %v5949_v51 = vadd.f32 %v5948_v54, %v11880_v38  ;;  %v5950_v48 = vpop.f32.mrb[242].mxu1 }
 0x5b7   : > { %v7735_v6 = vpack.c.bf16 %v7551_v39, %v7549_v36  ;;  %v6273_v2 = vmax.f32 %v5947_v21, 0.0  ;;  %v5951_v25 = vadd.f32 %v5950_v48, %v11877_v50  ;;  %v5952_v22 = vpop.f32.mrb[243].mxu1 }
 0x5b8   : > { %v6274_v33 = vmax.f32 %v5949_v51, 0.0  ;;  %v5953_v14 = vadd.f32 %v5952_v22, %v11880_v38  ;;  %v7736_v24 = vpack.c.bf16 %v7552_v28, %v7550_v61  ;;  %v14548_v28 = vld [vmem:[#allocation130_spill] sm:$0xff] }
 0x5b9   : > { %v7489_v43 = vmul.f32 %v14545_v0, %v6273_v2  ;;  %v6275_v12 = vmax.f32 %v5951_v25, 0.0  ;;  %v14549_v25 = vld [vmem:[#allocation137_spill] sm:$0xff] }
 0x5ba   : > { %v7490_v32 = vmul.f32 %v14545_v0, %v6274_v33  ;;  %v6276_v35 = vmax.f32 %v5953_v14, 0.0  ;;  %8144 = vmatprep.mubr.bf16.mxu0 %v7736_v24 }
 0x5bb   : > { %v7553_v23 = vadd.f32 %v7489_v43, %v13200_v60  ;;  %v7491_v11 = vmul.f32 %v14546_v56, %v6275_v12  ;;  %8145 = vmatmul.mubr.bf16.gmra.mrb[236].mxu0 %v7735_v6 }
 0x5bc   : > { %v7554_v27 = vadd.f32 %v7490_v32, %v13204_v18  ;;  %v7492_v40 = vmul.f32 %v14546_v56, %v6276_v35  ;;  %v5956_v17 = vpop.f32.mrb[244].mxu1 }
 0x5bd   : > { %v7555_v16 = vadd.f32 %v7491_v11, %v14547_v1  ;;  %v5957_v13 = vadd.f32 %v5956_v17, %v11877_v50  ;;  %v5958_v36 = vpop.f32.mrb[245].mxu1  ;;  %v14550_v1 = vld [vmem:[#allocation132_spill] sm:$0xff] }
 0x5be   : > { %v7556_v3 = vadd.f32 %v7492_v40, %v13212_v19  ;;  %v5959_v41 = vadd.f32 %v5958_v36, %v11880_v38  ;;  %v5960_v61 = vpop.f32.mrb[246].mxu1 }
 0x5bf   : > { %v7737_v15 = vpack.c.bf16 %v7555_v16, %v7553_v23  ;;  %v6277_v60 = vmax.f32 %v5957_v13, 0.0  ;;  %v5961_v26 = vadd.f32 %v5960_v61, %v11877_v50  ;;  %v5962_v39 = vpop.f32.mrb[247].mxu1 }
 0x5c0   : > { %v6278_v21 = vmax.f32 %v5959_v41, 0.0  ;;  %v5963_v18 = vadd.f32 %v5962_v39, %v11880_v38  ;;  %v7738_v54 = vpack.c.bf16 %v7556_v3, %v7554_v27  ;;  %v14551_v3 = vld [vmem:[#allocation139_spill] sm:$0xff] }
 0x5c1   : > { %v7493_v51 = vmul.f32 %v14548_v28, %v6277_v60  ;;  %v6279_v48 = vmax.f32 %v5961_v26, 0.0 }
 0x5c2   : > { %v7494_v6 = vmul.f32 %v14548_v28, %v6278_v21  ;;  %v6280_v2 = vmax.f32 %v5963_v18, 0.0  ;;  %8152 = vmatprep.mubr.bf16.mxu0 %v7738_v54  ;;  %v14552_v18 = vld [vmem:[#allocation88_spill] sm:$0xff] }
 0x5c3   : > { %v7557_v19 = vadd.f32 %v7493_v51, %v13220_v4  ;;  %v7495_v22 = vmul.f32 %v14549_v25, %v6279_v48  ;;  %8153 = vmatmul.mubr.bf16.gmra.mrb[240].mxu0 %v7737_v15 }
 0x5c4   : > { %v7558_v33 = vadd.f32 %v7494_v6, %v13224_v47  ;;  %v7496_v14 = vmul.f32 %v14549_v25, %v6280_v2  ;;  %v5966_v24 = vpop.f32.mrb[248].mxu1 }
 0x5c5   : > { %v7559_v0 = vadd.f32 %v7495_v22, %v13228_v5  ;;  %v5967_v43 = vadd.f32 %v5966_v24, %v11877_v50  ;;  %v5968_v12 = vpop.f32.mrb[249].mxu1  ;;  %v14553_v22 = vld [vmem:[#allocation134_spill] sm:$0xff] }
 0x5c6   : > { %v7560_v32 = vadd.f32 %v7496_v14, %v13232_v55  ;;  %v5969_v35 = vadd.f32 %v5968_v12, %v11880_v38  ;;  %v5970_v23 = vpop.f32.mrb[250].mxu1  ;;  %v14555_v12 = vld [vmem:[#allocation143_spill] sm:$0xff] }
 0x5c7   : > { %v7739_v56 = vpack.c.bf16 %v7559_v0, %v7557_v19  ;;  %v6281_v4 = vmax.f32 %v5967_v43, 0.0  ;;  %v5971_v11 = vadd.f32 %v5970_v23, %v11877_v50  ;;  %v5972_v27 = vpop.f32.mrb[251].mxu1  ;;  %v14554_v0 = vld [vmem:[#allocation184_spill] sm:$0xff] }
 0x5c8   : > { %v6282_v40 = vmax.f32 %v5969_v35, 0.0  ;;  %v5973_v47 = vadd.f32 %v5972_v27, %v11880_v38  ;;  %v7740_v17 = vpack.c.bf16 %v7560_v32, %v7558_v33  ;;  %v14556_v35 = vld [vmem:[#allocation75_spill] sm:$0xff] }
 0x5c9   : > { %v7497_v16 = vmul.f32 %v14550_v1, %v6281_v4  ;;  %v6283_v5 = vmax.f32 %v5971_v11, 0.0  ;;  %v14557_v11 = vld [vmem:[#allocation160_spill] sm:$0xff] }
 0x5ca   : > { %v7498_v13 = vmul.f32 %v14550_v1, %v6282_v40  ;;  %v6284_v36 = vmax.f32 %v5973_v47, 0.0  ;;  %8160 = vmatprep.mubr.bf16.mxu0 %v7740_v17  ;;  %v14558_v17 = vld [vmem:[#allocation36_spill] sm:$0xff] }
 0x5cb   : > { %v7561_v55 = vadd.f32 %v7497_v16, %v13240_v34  ;;  %v7499_v41 = vmul.f32 %v14551_v3, %v6283_v5  ;;  %8161 = vmatmul.mubr.bf16.gmra.mrb[244].mxu0 %v7739_v56 }
 0x5cc   : > { %v7562_v61 = vadd.f32 %v7498_v13, %v13244_v59  ;;  %v7500_v15 = vmul.f32 %v14551_v3, %v6284_v36  ;;  %v5976_v60 = vpop.f32.mrb[252].mxu1 }
 0x5cd   : > { %v7563_v26 = vadd.f32 %v7499_v41, %v13248_v31  ;;  %v5977_v39 = vadd.f32 %v5976_v60, %v11877_v50  ;;  %v5978_v21 = vpop.f32.mrb[253].mxu1  ;;  %v14559_v60 = vld [vmem:[#allocation136_spill] sm:$0xff] }
 0x5ce   : > { %v7564_v54 = vadd.f32 %v7500_v15, %v14552_v18  ;;  %v5979_v28 = vadd.f32 %v5978_v21, %v11880_v38  ;;  %v5980_v51 = vpop.f32.mrb[254].mxu1 }
 0x5cf   : > { %v7741_v48 = vpack.c.bf16 %v7563_v26, %v7561_v55  ;;  %v6285_v34 = vmax.f32 %v5977_v39, 0.0  ;;  %v5981_v6 = vadd.f32 %v5980_v51, %v11877_v50  ;;  %v5982_v2 = vpop.f32.mrb[255].mxu1  ;;  %v14561_v51 = vld [vmem:[#allocation147_spill] sm:$0xff] }
 0x5d0   : > { %v6286_v19 = vmax.f32 %v5979_v28, 0.0  ;;  %v5983_v59 = vadd.f32 %v5982_v2, %v11880_v38  ;;  %v7742_v25 = vpack.c.bf16 %v7564_v54, %v7562_v61  ;;  %v14560_v54 = vld [vmem:[#allocation142_spill] sm:$0xff] }
 0x5d1   : > { %v7501_v33 = vmul.f32 %v14553_v22, %v6285_v34  ;;  %v6287_v31 = vmax.f32 %v5981_v6, 0.0  ;;  %v14562_v34 = vld [vmem:[#allocation161_spill] sm:$0xff] }
 0x5d2   : > { %v7502_v14 = vmul.f32 %v14553_v22, %v6286_v19  ;;  %v6288_v24 = vmax.f32 %v5983_v59, 0.0  ;;  %8168 = vmatprep.mubr.bf16.mxu0 %v7742_v25  ;;  %v14563_v59 = vld [vmem:[#allocation155_spill] sm:$0xff] }
 0x5d3   : > { %v7565_v43 = vadd.f32 %v7501_v33, %v14554_v0  ;;  %v7503_v32 = vmul.f32 %v14555_v12, %v6287_v31  ;;  %8169 = vmatmul.mubr.bf16.gmra.mrb[248].mxu0 %v7741_v48  ;;  %v14564_v31 = vld [vmem:[#allocation49_spill] sm:$0xff] }
 0x5d4   : > { %v7566_v23 = vadd.f32 %v7502_v14, %v14556_v35  ;;  %v7504_v56 = vmul.f32 %v14555_v12, %v6288_v24  ;;  %v5986_v4 = vpop.f32.mrb[0].mxu1 }
 0x5d5   : > { %v7567_v27 = vadd.f32 %v7503_v32, %v14557_v11  ;;  %v5987_v40 = vadd.f32 %v5986_v4, %v11877_v50  ;;  %v5988_v47 = vpop.f32.mrb[1].mxu1  ;;  %v14565_v11 = vld [vmem:[#allocation138_spill] sm:$0xff] }
 0x5d6   : > { %v7568_v1 = vadd.f32 %v7504_v56, %v14558_v17  ;;  %v5989_v16 = vadd.f32 %v5988_v47, %v11880_v38  ;;  %v5990_v5 = vpop.f32.mrb[2].mxu1 }
 0x5d7   : > { %v7743_v13 = vpack.c.bf16 %v7567_v27, %v7565_v43  ;;  %v6289_v36 = vmax.f32 %v5987_v40, 0.0  ;;  %v5991_v55 = vadd.f32 %v5990_v5, %v11877_v50  ;;  %v5992_v3 = vpop.f32.mrb[3].mxu1  ;;  %v14567_v5 = vld [vmem:[#allocation152_spill] sm:$0xff] }
 0x5d8   : > { %v6290_v41 = vmax.f32 %v5989_v16, 0.0  ;;  %v5993_v61 = vadd.f32 %v5992_v3, %v11880_v38  ;;  %v7744_v15 = vpack.c.bf16 %v7568_v1, %v7566_v23  ;;  %v14566_v1 = vld [vmem:[#allocation158_spill] sm:$0xff] }
 0x5d9   : > { %v7505_v26 = vmul.f32 %v14559_v60, %v6289_v36  ;;  %v6291_v39 = vmax.f32 %v5991_v55, 0.0  ;;  %v14568_v36 = vld [vmem:[#allocation18_spill] sm:$0xff] }
 0x5da   : > { %v7506_v21 = vmul.f32 %v14559_v60, %v6290_v41  ;;  %v6292_v18 = vmax.f32 %v5993_v61, 0.0  ;;  %8176 = vmatprep.mubr.bf16.mxu0 %v7744_v15  ;;  %v14569_v61 = vld [vmem:[#allocation198_spill] sm:$0xff] }
 0x5db   : > { %v7569_v28 = vadd.f32 %v7505_v26, %v14560_v54  ;;  %v7507_v48 = vmul.f32 %v14561_v51, %v6291_v39  ;;  %8177 = vmatmul.mubr.bf16.gmra.mrb[252].mxu0 %v7743_v13  ;;  %v14570_v39 = vld [vmem:[#allocation89_spill] sm:$0xff] }
 0x5dc   : > { %v7570_v6 = vadd.f32 %v7506_v21, %v14562_v34  ;;  %v7508_v2 = vmul.f32 %v14561_v51, %v6292_v18  ;;  %v5996_v19 = vpop.f32.mrb[4].mxu1 }
 0x5dd   : > { %v7571_v25 = vadd.f32 %v7507_v48, %v14563_v59  ;;  %v5997_v22 = vadd.f32 %v5996_v19, %v11877_v50  ;;  %v5998_v33 = vpop.f32.mrb[5].mxu1  ;;  %v14571_v59 = vld [vmem:[#allocation140_spill] sm:$0xff] }
 0x5de   : > { %v7572_v14 = vadd.f32 %v7508_v2, %v14564_v31  ;;  %v5999_v24 = vadd.f32 %v5998_v33, %v11880_v38  ;;  %v6000_v0 = vpop.f32.mrb[6].mxu1 }
 0x5df   : > { %v7745_v43 = vpack.c.bf16 %v7571_v25, %v7569_v28  ;;  %v6293_v12 = vmax.f32 %v5997_v22, 0.0  ;;  %v6001_v32 = vadd.f32 %v6000_v0, %v11877_v50  ;;  %v6002_v35 = vpop.f32.mrb[7].mxu1 }
 0x5e0   : > { %v6294_v23 = vmax.f32 %v5999_v24, 0.0  ;;  %v6003_v56 = vadd.f32 %v6002_v35, %v11880_v38  ;;  %v7746_v4 = vpack.c.bf16 %v7572_v14, %v7570_v6  ;;  %v14572_v24 = vld [vmem:[#allocation157_spill] sm:$0xff]  ;;  %v14573_v35 = vld [vmem:[#allocation76_spill] sm:$0xff] }
 0x5e1   : > { %v7509_v27 = vmul.f32 %v14565_v11, %v6293_v12  ;;  %v6295_v40 = vmax.f32 %v6001_v32, 0.0 }
 0x5e2   : > { %v7510_v47 = vmul.f32 %v14565_v11, %v6294_v23  ;;  %v6296_v17 = vmax.f32 %v6003_v56, 0.0  ;;  %8184 = vmatprep.mubr.bf16.mxu0 %v7746_v4 }
 0x5e3   : > { %v7573_v16 = vadd.f32 %v7509_v27, %v14566_v1  ;;  %v7511_v13 = vmul.f32 %v14567_v5, %v6295_v40  ;;  %8185 = vmatmul.mubr.bf16.gmra.mrb[0].mxu0 %v7745_v43 }
 0x5e4   : > { %v7574_v55 = vadd.f32 %v7510_v47, %v14568_v36  ;;  %v7512_v3 = vmul.f32 %v14567_v5, %v6296_v17  ;;  %v6006_v41 = vpop.f32.mrb[8].mxu1 }
 0x5e5   : > { %v7575_v15 = vadd.f32 %v7511_v13, %v14569_v61  ;;  %v6007_v60 = vadd.f32 %v6006_v41, %v11877_v50  ;;  %v6008_v26 = vpop.f32.mrb[9].mxu1  ;;  %v14574_v13 = vld [vmem:[#allocation146_spill] sm:$0xff] }
 0x5e6   : > { %v7576_v21 = vadd.f32 %v7512_v3, %v14570_v39  ;;  %v6009_v18 = vadd.f32 %v6008_v26, %v11880_v38  ;;  %v6010_v54 = vpop.f32.mrb[10].mxu1  ;;  %v14575_v61 = vld [vmem:[#allocation162_spill] sm:$0xff] }
 0x5e7   : > { %v7747_v28 = vpack.c.bf16 %v7575_v15, %v7573_v16  ;;  %v6297_v51 = vmax.f32 %v6007_v60, 0.0  ;;  %v6011_v48 = vadd.f32 %v6010_v54, %v11877_v50  ;;  %v6012_v34 = vpop.f32.mrb[11].mxu1 }
 0x5e8   : > { %v6298_v6 = vmax.f32 %v6009_v18, 0.0  ;;  %v6013_v2 = vadd.f32 %v6012_v34, %v11880_v38  ;;  %v7748_v19 = vpack.c.bf16 %v7576_v21, %v7574_v55 }
 0x5e9   : > { %v7513_v25 = vmul.f32 %v14571_v59, %v6297_v51  ;;  %v6299_v22 = vmax.f32 %v6011_v48, 0.0 }
 0x5ea   : > { %v7514_v33 = vmul.f32 %v14571_v59, %v6298_v6  ;;  %v6300_v31 = vmax.f32 %v6013_v2, 0.0  ;;  %8192 = vmatprep.mubr.bf16.mxu0 %v7748_v19 }
 0x5eb   : > { %v7577_v14 = vadd.f32 %v7513_v25, %v13320_v8  ;;  %v7515_v0 = vmul.f32 %v14572_v24, %v6299_v22  ;;  %8193 = vmatmul.mubr.bf16.gmra.mrb[4].mxu0 %v7747_v28  ;;  %v14576_v25 = vld [vmem:[#allocation149_spill] sm:$0xff] }
 0x5ec   : > { %v7578_v43 = vadd.f32 %v7514_v33, %v13324_v49  ;;  %v7516_v12 = vmul.f32 %v14572_v24, %v6300_v31  ;;  %v6016_v32 = vpop.f32.mrb[12].mxu1 }
 0x5ed   : > { %v7579_v23 = vadd.f32 %v7515_v0, %v14573_v35  ;;  %v6017_v56 = vadd.f32 %v6016_v32, %v11877_v50  ;;  %v6018_v4 = vpop.f32.mrb[13].mxu1 }
 0x5ee   : > { %v7580_v11 = vadd.f32 %v7516_v12, %v13332_v10  ;;  %v6019_v27 = vadd.f32 %v6018_v4, %v11880_v38  ;;  %v6020_v40 = vpop.f32.mrb[14].mxu1 }
 0x5ef   : > { %v7749_v47 = vpack.c.bf16 %v7579_v23, %v7577_v14  ;;  %v6301_v8 = vmax.f32 %v6017_v56, 0.0  ;;  %v6021_v17 = vadd.f32 %v6020_v40, %v11877_v50  ;;  %v6022_v1 = vpop.f32.mrb[15].mxu1  ;;  %v14577_v14 = vld [vmem:[#allocation167_spill] sm:$0xff] }
 0x5f0   : > { %v6302_v16 = vmax.f32 %v6019_v27, 0.0  ;;  %v6023_v49 = vadd.f32 %v6022_v1, %v11880_v38  ;;  %v7750_v5 = vpack.c.bf16 %v7580_v11, %v7578_v43  ;;  %v14578_v1 = vld [vmem:[#allocation159_spill] sm:$0xff] }
 0x5f1   : > { %v7517_v36 = vmul.f32 %v14574_v13, %v6301_v8  ;;  %v6303_v55 = vmax.f32 %v6021_v17, 0.0 }
 0x5f2   : > { %v7518_v3 = vmul.f32 %v14574_v13, %v6302_v16  ;;  %v6304_v41 = vmax.f32 %v6023_v49, 0.0  ;;  %8200 = vmatprep.mubr.bf16.mxu0 %v7750_v5  ;;  %v14579_v13 = vld [vmem:[#allocation166_spill] sm:$0xff] }
 0x5f3   : > { %v7581_v10 = vadd.f32 %v7517_v36, %v13340_v52  ;;  %v7519_v15 = vmul.f32 %v14575_v61, %v6303_v55  ;;  %8201 = vmatmul.mubr.bf16.gmra.mrb[8].mxu0 %v7749_v47  ;;  %v14580_v55 = vld [vmem:[#allocation38_spill] sm:$0xff] }
 0x5f4   : > { %v7582_v60 = vadd.f32 %v7518_v3, %v13344_v9  ;;  %v7520_v26 = vmul.f32 %v14575_v61, %v6304_v41  ;;  %v6026_v39 = vpop.f32.mrb[16].mxu1  ;;  %v14581_v61 = vld [vmem:[#allocation9_spill] sm:$0xff] }
 0x5f5   : > { %v7583_v21 = vadd.f32 %v7519_v15, %v13348_v29  ;;  %v6027_v18 = vadd.f32 %v6026_v39, %v11877_v50  ;;  %v6028_v54 = vpop.f32.mrb[17].mxu1  ;;  %v14582_v39 = vld [vmem:[#allocation178_spill] sm:$0xff] }
 0x5f6   : > { %v7584_v28 = vadd.f32 %v7520_v26, %v13352_v57  ;;  %v6029_v51 = vadd.f32 %v6028_v54, %v11880_v38  ;;  %v6030_v48 = vpop.f32.mrb[18].mxu1 }
 0x5f7   : > { %v7751_v34 = vpack.c.bf16 %v7583_v21, %v7581_v10  ;;  %v6305_v52 = vmax.f32 %v6027_v18, 0.0  ;;  %v6031_v6 = vadd.f32 %v6030_v48, %v11877_v50  ;;  %v6032_v2 = vpop.f32.mrb[19].mxu1 }
 0x5f8   : > { %v6306_v19 = vmax.f32 %v6029_v51, 0.0  ;;  %v6033_v9 = vadd.f32 %v6032_v2, %v11880_v38  ;;  %v7752_v59 = vpack.c.bf16 %v7584_v28, %v7582_v60  ;;  %v14583_v2 = vld [vmem:[#allocation186_spill] sm:$0xff] }
 0x5f9   : > { %v7521_v22 = vmul.f32 %v14576_v25, %v6305_v52  ;;  %v6307_v29 = vmax.f32 %v6031_v6, 0.0 }
 0x5fa   : > { %v7522_v33 = vmul.f32 %v14576_v25, %v6306_v19  ;;  %v6308_v31 = vmax.f32 %v6033_v9, 0.0  ;;  %8208 = vmatprep.mubr.bf16.mxu0 %v7752_v59 }
 0x5fb   : > { %v7585_v57 = vadd.f32 %v7521_v22, %v13360_v46  ;;  %v7523_v24 = vmul.f32 %v14577_v14, %v6307_v29  ;;  %8209 = vmatmul.mubr.bf16.gmra.mrb[12].mxu0 %v7751_v34  ;;  %v14584_v29 = vld [vmem:[#allocation177_spill] sm:$0xff] }
 0x5fc   : > { %v7586_v0 = vadd.f32 %v7522_v33, %v13364_v45  ;;  %v7524_v43 = vmul.f32 %v14577_v14, %v6308_v31  ;;  %v6036_v12 = vpop.f32.mrb[20].mxu1 }
 0x5fd   : > { %v7587_v32 = vadd.f32 %v7523_v24, %v13368_v58  ;;  %v6037_v35 = vadd.f32 %v6036_v12, %v11877_v50  ;;  %v6038_v23 = vpop.f32.mrb[21].mxu1 }
 0x5fe   : > { %v7588_v56 = vadd.f32 %v7524_v43, %v13372_v53  ;;  %v6039_v4 = vadd.f32 %v6038_v23, %v11880_v38  ;;  %v6040_v11 = vpop.f32.mrb[22].mxu1 }
 0x5ff   : > { %v7753_v27 = vpack.c.bf16 %v7587_v32, %v7585_v57  ;;  %v6309_v46 = vmax.f32 %v6037_v35, 0.0  ;;  %v6041_v40 = vadd.f32 %v6040_v11, %v11877_v50  ;;  %v6042_v47 = vpop.f32.mrb[23].mxu1 }
 0x600   : > { %v6310_v8 = vmax.f32 %v6039_v4, 0.0  ;;  %v6043_v45 = vadd.f32 %v6042_v47, %v11880_v38  ;;  %v7754_v17 = vpack.c.bf16 %v7588_v56, %v7586_v0 }
 0x601   : > { %v7525_v16 = vmul.f32 %v14578_v1, %v6309_v46  ;;  %v6311_v58 = vmax.f32 %v6041_v40, 0.0  ;;  %v14585_v46 = vld [vmem:[#allocation188_spill] sm:$0xff] }
 0x602   : > { %v7526_v49 = vmul.f32 %v14578_v1, %v6310_v8  ;;  %v6312_v5 = vmax.f32 %v6043_v45, 0.0  ;;  %8216 = vmatprep.mubr.bf16.mxu0 %v7754_v17  ;;  %v14586_v45 = vld [vmem:[#allocation70_spill] sm:$0xff] }
 0x603   : > { %v7589_v53 = vadd.f32 %v7525_v16, %v13380_v20  ;;  %v7527_v36 = vmul.f32 %v14579_v13, %v6311_v58  ;;  %8217 = vmatmul.mubr.bf16.gmra.mrb[16].mxu0 %v7753_v27  ;;  %v14587_v16 = vld [vmem:[#allocation20_spill] sm:$0xff] }
 0x604   : > { %v7590_v3 = vadd.f32 %v7526_v49, %v14580_v55  ;;  %v7528_v41 = vmul.f32 %v14579_v13, %v6312_v5  ;;  %v6046_v10 = vpop.f32.mrb[24].mxu1 }
 0x605   : > { %v7591_v15 = vadd.f32 %v7527_v36, %v14581_v61  ;;  %v6047_v60 = vadd.f32 %v6046_v10, %v11877_v50  ;;  %v6048_v26 = vpop.f32.mrb[25].mxu1  ;;  %v7808_v36 = vpop.permute.xlu1 %7807 }
 0x606   : > { %v7592_v21 = vadd.f32 %v7528_v41, %v14582_v39  ;;  %v6049_v18 = vadd.f32 %v6048_v26, %v11880_v38  ;;  %v6050_v54 = vpop.f32.mrb[26].mxu1 }
 0x607   : > { %v7755_v28 = vpack.c.bf16 %v7591_v15, %v7589_v53  ;;  %v6313_v20 = vmax.f32 %v6047_v60, 0.0  ;;  %v6051_v51 = vadd.f32 %v6050_v54, %v11877_v50  ;;  %v6052_v48 = vpop.f32.mrb[27].mxu1  ;;  %v7803_v53 = vpop.permute.xlu0 %7802 }
 0x608   : > { %v6314_v34 = vmax.f32 %v6049_v18, 0.0  ;;  %v6053_v52 = vadd.f32 %v6052_v48, %v11880_v38  ;;  %v7756_v6 = vpack.c.bf16 %v7592_v21, %v7590_v3 }
 0x609   : > { %v7529_v19 = vmul.f32 %v14583_v2, %v6313_v20  ;;  %v6315_v9 = vmax.f32 %v6051_v51, 0.0  ;;  %v7813_v26 = vpop.permute.xlu1 %7812 }
 0x60a   : > { %v7530_v59 = vmul.f32 %v14583_v2, %v6314_v34  ;;  %v6316_v25 = vmax.f32 %v6053_v52, 0.0  ;;  %8224 = vmatprep.mubr.bf16.mxu0 %v7756_v6 }
 0x60b   : > { %v7593_v22 = vadd.f32 %v7529_v19, %v13400_v44  ;;  %v7531_v33 = vmul.f32 %v14584_v29, %v6315_v9  ;;  %8225 = vmatmul.mubr.bf16.gmra.mrb[20].mxu0 %v7755_v28  ;;  %v7818_v21 = vpop.permute.xlu0 %7817 }
 0x60c   : > { %v7594_v31 = vadd.f32 %v7530_v59, %v13404_v62  ;;  %v7532_v57 = vmul.f32 %v14584_v29, %v6316_v25  ;;  %v6056_v14 = vpop.f32.mrb[28].mxu1 }
 0x60d   : > { %v7595_v24 = vadd.f32 %v7531_v33, %v13408_v42  ;;  %v6057_v0 = vadd.f32 %v6056_v14, %v11877_v50  ;;  %v6058_v43 = vpop.f32.mrb[29].mxu1  ;;  %v7823_v2 = vpop.permute.xlu1 %7822 }
 0x60e   : > { %v7596_v12 = vadd.f32 %v7532_v57, %v13412_v63  ;;  %v6059_v32 = vadd.f32 %v6058_v43, %v11880_v38  ;;  %v6060_v35 = vpop.f32.mrb[30].mxu1 }
 0x60f   : > { %v7757_v23 = vpack.c.bf16 %v7595_v24, %v7593_v22  ;;  %v6317_v44 = vmax.f32 %v6057_v0, 0.0  ;;  %v6061_v56 = vadd.f32 %v6060_v35, %v11877_v50  ;;  %v6062_v4 = vpop.f32.mrb[31].mxu1  ;;  %v7828_v9 = vpop.permute.xlu0 %7827 }
 0x610   : > { %v6318_v11 = vmax.f32 %v6059_v32, 0.0  ;;  %v6063_v62 = vadd.f32 %v6062_v4, %v11880_v38  ;;  %v7758_v27 = vpack.c.bf16 %v7596_v12, %v7594_v31 }
 0x611   : > { %v7533_v40 = vmul.f32 %v14585_v46, %v6317_v44  ;;  %v6319_v42 = vmax.f32 %v6061_v56, 0.0  ;;  %v7833_v0 = vpop.permute.xlu1 %7832 }
 0x612   : > { %v7534_v47 = vmul.f32 %v14585_v46, %v6318_v11  ;;  %v6320_v8 = vmax.f32 %v6063_v62, 0.0  ;;  %8232 = vmatprep.mubr.bf16.mxu0 %v7758_v27 }
 0x613   : > { %v7597_v63 = vadd.f32 %v7533_v40, %v13420_v37  ;;  %v7535_v17 = vmul.f32 %v14586_v45, %v6319_v42  ;;  %8233 = vmatmul.mubr.bf16.gmra.mrb[24].mxu0 %v7757_v23  ;;  %v13628_v37 = vld [vmem:[%s13722_s11] ss:$0 sm:$0xff]  ;;  %v7838_v12 = vpop.permute.xlu0 %7837 }
 0x614   : > { %v7598_v1 = vadd.f32 %v7534_v47, %v13424_v7  ;;  %v7536_v50 = vmul.f32 %v14586_v45, %v6320_v8  ;;  %v7960_v55 = vmul.f32 %v13628_v37, %v7803_v53  ;;  %v7961_v10 = vmul.f32 %v13628_v37, %v7808_v36 }
 0x615   : > { %v7599_v38 = vadd.f32 %v7535_v17, %v13428_v30  ;;  %v7962_v54 = vmul.f32 %v13628_v37, %v7813_v26  ;;  %v7963_v48 = vmul.f32 %v13628_v37, %v7818_v21  ;;  %v7964_v25 = vmul.f32 %v13628_v37, %v7823_v2  ;;  %v7843_v46 = vpop.permute.xlu1 %7842 }
 0x616   : > { %v7600_v58 = vadd.f32 %v7536_v50, %v14587_v16  ;;  %v7965_v31 = vmul.f32 %v13628_v37, %v7828_v9  ;;  %v7966_v35 = vmul.f32 %v13628_v37, %v7833_v0  ;;  %v7967_v4 = vmul.f32 %v13628_v37, %v7838_v12 }
 0x617   : > { %v7759_v49 = vpack.c.bf16 %v7599_v38, %v7597_v63  ;;  %v7848_v42 = vpop.permute.xlu0 %7847  ;;  %v7968_v8 = vmul.f32 %v13628_v37, %v7843_v46 }
 0x618   : > { %v7760_v5 = vpack.c.bf16 %v7600_v58, %v7598_v1  ;;  %v7969_v1 = vmul.f32 %v13628_v37, %v7848_v42 }
 0x619   : > { %v7853_v58 = vpop.permute.xlu1 %7852 }
 0x61a   : > { %8240 = vmatprep.mubr.bf16.mxu0 %v7760_v5 }
 0x61b   : > { %8241 = vmatmul.mubr.bf16.gmra.mrb[28].mxu0 %v7759_v49  ;;  %v7858_v5 = vpop.permute.xlu0 %7857 }
 0x676   : > { %v8580_v13 = vpop.f32.mrb[224].mxu0 }
 0x677   : > { %v8581_v7 = vpop.f32.mrb[225].mxu0 }
 0x678   : > { %v8582_v3 = vadd.f32 %v8581_v7, %v8580_v13  ;;  %v8583_v41 = vpop.f32.mrb[226].mxu0  ;;  %v7970_v13 = vmul.f32 %v13628_v37, %v7853_v58 }
 0x679   : > { %v8584_v30 = vpop.f32.mrb[227].mxu0 }
 0x67a   : > { %v8123_v61 = vadd.f32 %v8582_v3, %v7960_v55  ;;  %v8585_v15 = vadd.f32 %v8584_v30, %v8583_v41  ;;  %v7971_v3 = vmul.f32 %v13628_v37, %v7858_v5 }
 0x67c   : > { %8249 = vst [vmem:[%s13636_s14] sm:$0xff] %v8123_v61  ;;  %v8126_v60 = vadd.f32 %v8585_v15, %v7961_v10  ;;  %v7863_v61 = vpop.permute.xlu1 %7862 }
 0x67e   : > { %8250 = vst [vmem:[%s13636_s14 + $0x8] sm:$0xff] %v8126_v60  ;;  %v8586_v39 = vpop.f32.mrb[228].mxu0  ;;  %v7868_v60 = vpop.permute.xlu0 %7867 }
 0x67f   : > { %v8587_v18 = vpop.f32.mrb[229].mxu0 }
 0x680   : > { %v8588_v28 = vadd.f32 %v8587_v18, %v8586_v39  ;;  %v8589_v20 = vpop.f32.mrb[230].mxu0  ;;  %v7972_v39 = vmul.f32 %v13628_v37, %v7863_v61 }
 0x681   : > { %v8590_v51 = vpop.f32.mrb[231].mxu0 }
 0x682   : > { %v8131_v34 = vadd.f32 %v8588_v28, %v7962_v54  ;;  %v8591_v52 = vadd.f32 %v8590_v51, %v8589_v20  ;;  %v7973_v28 = vmul.f32 %v13628_v37, %v7868_v60 }
 0x684   : > { %8251 = vst [vmem:[%s13636_s14 + $0x10] sm:$0xff] %v8131_v34  ;;  %v8134_v6 = vadd.f32 %v8591_v52, %v7963_v48  ;;  %v7873_v34 = vpop.permute.xlu1 %7872 }
 0x686   : > { %8252 = vst [vmem:[%s13636_s14 + $0x18] sm:$0xff] %v8134_v6  ;;  %v8592_v19 = vpop.f32.mrb[232].mxu0  ;;  %v7878_v6 = vpop.permute.xlu0 %7877 }
 0x687   : > { %v8593_v59 = vpop.f32.mrb[233].mxu0 }
 0x688   : > { %v8594_v22 = vadd.f32 %v8593_v59, %v8592_v19  ;;  %v8595_v29 = vpop.f32.mrb[234].mxu0  ;;  %v7974_v19 = vmul.f32 %v13628_v37, %v7873_v34 }
 0x689   : > { %v8596_v33 = vpop.f32.mrb[235].mxu0 }
 0x68a   : > { %v8139_v57 = vadd.f32 %v8594_v22, %v7964_v25  ;;  %v8597_v14 = vadd.f32 %v8596_v33, %v8595_v29  ;;  %v7975_v22 = vmul.f32 %v13628_v37, %v7878_v6 }
 0x68c   : > { %8253 = vst [vmem:[%s13636_s14 + $0x20] sm:$0xff] %v8139_v57  ;;  %v8142_v24 = vadd.f32 %v8597_v14, %v7965_v31  ;;  %v7883_v57 = vpop.permute.xlu1 %7882 }
 0x68e   : > { %8254 = vst [vmem:[%s13636_s14 + $0x28] sm:$0xff] %v8142_v24  ;;  %v8598_v43 = vpop.f32.mrb[236].mxu0  ;;  %v7888_v24 = vpop.permute.xlu0 %7887 }
 0x68f   : > { %v8599_v32 = vpop.f32.mrb[237].mxu0 }
 0x690   : > { %v8600_v23 = vadd.f32 %v8599_v32, %v8598_v43  ;;  %v8601_v44 = vpop.f32.mrb[238].mxu0  ;;  %v7976_v43 = vmul.f32 %v13628_v37, %v7883_v57 }
 0x691   : > { %v8602_v56 = vpop.f32.mrb[239].mxu0 }
 0x692   : > { %v8147_v11 = vadd.f32 %v8600_v23, %v7966_v35  ;;  %v8603_v62 = vadd.f32 %v8602_v56, %v8601_v44  ;;  %v7977_v23 = vmul.f32 %v13628_v37, %v7888_v24 }
 0x694   : > { %8255 = vst [vmem:[%s13636_s14 + $0x30] sm:$0xff] %v8147_v11  ;;  %v8150_v27 = vadd.f32 %v8603_v62, %v7967_v4  ;;  %v7893_v11 = vpop.permute.xlu1 %7892 }
 0x696   : > { %8256 = vst [vmem:[%s13636_s14 + $0x38] sm:$0xff] %v8150_v27  ;;  %v8604_v40 = vpop.f32.mrb[240].mxu0  ;;  %v7898_v27 = vpop.permute.xlu0 %7897 }
 0x697   : > { %v8605_v47 = vpop.f32.mrb[241].mxu0 }
 0x698   : > { %v8606_v63 = vadd.f32 %v8605_v47, %v8604_v40  ;;  %v8607_v45 = vpop.f32.mrb[242].mxu0  ;;  %v7978_v40 = vmul.f32 %v13628_v37, %v7893_v11 }
 0x699   : > { %v8608_v17 = vpop.f32.mrb[243].mxu0 }
 0x69a   : > { %v8155_v50 = vadd.f32 %v8606_v63, %v7968_v8  ;;  %v8609_v38 = vadd.f32 %v8608_v17, %v8607_v45  ;;  %v7979_v63 = vmul.f32 %v13628_v37, %v7898_v27 }
 0x69c   : > { %8257 = vst [vmem:[%s13636_s14 + $0x40] sm:$0xff] %v8155_v50  ;;  %v8158_v16 = vadd.f32 %v8609_v38, %v7969_v1  ;;  %v7903_v50 = vpop.permute.xlu1 %7902 }
 0x69e   : > { %8258 = vst [vmem:[%s13636_s14 + $0x48] sm:$0xff] %v8158_v16  ;;  %v8610_v49 = vpop.f32.mrb[244].mxu0  ;;  %v7908_v16 = vpop.permute.xlu0 %7907 }
 0x69f   : > { %v8611_v53 = vpop.f32.mrb[245].mxu0 }
 0x6a0   : > { %v8612_v36 = vadd.f32 %v8611_v53, %v8610_v49  ;;  %v8613_v7 = vpop.f32.mrb[246].mxu0  ;;  %v7980_v49 = vmul.f32 %v13628_v37, %v7903_v50 }
 0x6a1   : > { %v8614_v55 = vpop.f32.mrb[247].mxu0 }
 0x6a2   : > { %v8163_v41 = vadd.f32 %v8612_v36, %v7970_v13  ;;  %v8615_v30 = vadd.f32 %v8614_v55, %v8613_v7  ;;  %v7981_v36 = vmul.f32 %v13628_v37, %v7908_v16 }
 0x6a4   : > { %8259 = vst [vmem:[%s13636_s14 + $0x50] sm:$0xff] %v8163_v41  ;;  %v8166_v10 = vadd.f32 %v8615_v30, %v7971_v3  ;;  %v7913_v41 = vpop.permute.xlu1 %7912 }
 0x6a6   : > { %8260 = vst [vmem:[%s13636_s14 + $0x58] sm:$0xff] %v8166_v10  ;;  %v8616_v15 = vpop.f32.mrb[248].mxu0  ;;  %v7918_v10 = vpop.permute.xlu0 %7917 }
 0x6a7   : > { %v8617_v26 = vpop.f32.mrb[249].mxu0 }
 0x6a8   : > { %v8618_v21 = vadd.f32 %v8617_v26, %v8616_v15  ;;  %v8619_v18 = vpop.f32.mrb[250].mxu0  ;;  %v7982_v15 = vmul.f32 %v13628_v37, %v7913_v41 }
 0x6a9   : > { %v8620_v54 = vpop.f32.mrb[251].mxu0 }
 0x6aa   : > { %v8171_v20 = vadd.f32 %v8618_v21, %v7972_v39  ;;  %v8621_v51 = vadd.f32 %v8620_v54, %v8619_v18  ;;  %v7983_v21 = vmul.f32 %v13628_v37, %v7918_v10 }
 0x6ac   : > { %8261 = vst [vmem:[%s13636_s14 + $0x60] sm:$0xff] %v8171_v20  ;;  %v8174_v48 = vadd.f32 %v8621_v51, %v7973_v28  ;;  %v7923_v20 = vpop.permute.xlu1 %7922 }
 0x6ae   : > { %8262 = vst [vmem:[%s13636_s14 + $0x68] sm:$0xff] %v8174_v48  ;;  %v8622_v52 = vpop.f32.mrb[252].mxu0  ;;  %v7928_v48 = vpop.permute.xlu0 %7927 }
 0x6af   : > { %v8623_v2 = vpop.f32.mrb[253].mxu0 }
 0x6b0   : > { %v8624_v9 = vadd.f32 %v8623_v2, %v8622_v52  ;;  %v8625_v59 = vpop.f32.mrb[254].mxu0  ;;  %v7984_v52 = vmul.f32 %v13628_v37, %v7923_v20 }
 0x6b1   : > { %v8626_v25 = vpop.f32.mrb[255].mxu0 }
 0x6b2   : > { %v8179_v29 = vadd.f32 %v8624_v9, %v7974_v19  ;;  %v8627_v33 = vadd.f32 %v8626_v25, %v8625_v59  ;;  %v7985_v9 = vmul.f32 %v13628_v37, %v7928_v48 }
 0x6b4   : > { %8263 = vst [vmem:[%s13636_s14 + $0x70] sm:$0xff] %v8179_v29  ;;  %v8182_v31 = vadd.f32 %v8627_v33, %v7975_v22  ;;  %v7933_v29 = vpop.permute.xlu1 %7932 }
 0x6b6   : > { %8264 = vst [vmem:[%s13636_s14 + $0x78] sm:$0xff] %v8182_v31  ;;  %v8628_v14 = vpop.f32.mrb[0].mxu0  ;;  %v7938_v31 = vpop.permute.xlu0 %7937 }
 0x6b7   : > { %v8629_v0 = vpop.f32.mrb[1].mxu0 }
 0x6b8   : > { %v8630_v12 = vadd.f32 %v8629_v0, %v8628_v14  ;;  %v8631_v32 = vpop.f32.mrb[2].mxu0  ;;  %v7986_v14 = vmul.f32 %v13628_v37, %v7933_v29 }
 0x6b9   : > { %v8632_v35 = vpop.f32.mrb[3].mxu0 }
 0x6ba   : > { %v8187_v44 = vadd.f32 %v8630_v12, %v7976_v43  ;;  %v8633_v56 = vadd.f32 %v8632_v35, %v8631_v32  ;;  %v7987_v12 = vmul.f32 %v13628_v37, %v7938_v31 }
 0x6bc   : > { %8265 = vst [vmem:[%s13636_s14 + $0x80] sm:$0xff] %v8187_v44  ;;  %v8190_v4 = vadd.f32 %v8633_v56, %v7977_v23  ;;  %v7943_v44 = vpop.permute.xlu1 %7942 }
 0x6be   : > { %8266 = vst [vmem:[%s13636_s14 + $0x88] sm:$0xff] %v8190_v4  ;;  %v8634_v62 = vpop.f32.mrb[4].mxu0  ;;  %v7948_v4 = vpop.permute.xlu0 %7947 }
 0x6bf   : > { %v8635_v46 = vpop.f32.mrb[5].mxu0 }
 0x6c0   : > { %v8636_v42 = vadd.f32 %v8635_v46, %v8634_v62  ;;  %v8637_v47 = vpop.f32.mrb[6].mxu0  ;;  %v7988_v62 = vmul.f32 %v13628_v37, %v7943_v44 }
 0x6c1   : > { %v8638_v8 = vpop.f32.mrb[7].mxu0 }
 0x6c2   : > { %v8195_v45 = vadd.f32 %v8636_v42, %v7978_v40  ;;  %v8639_v17 = vadd.f32 %v8638_v8, %v8637_v47  ;;  %v7989_v42 = vmul.f32 %v13628_v37, %v7948_v4 }
 0x6c4   : > { %8267 = vst [vmem:[%s13636_s14 + $0x90] sm:$0xff] %v8195_v45  ;;  %v8198_v1 = vadd.f32 %v8639_v17, %v7979_v63  ;;  %v7953_v45 = vpop.permute.xlu1 %7952 }
 0x6c6   : > { %8268 = vst [vmem:[%s13636_s14 + $0x98] sm:$0xff] %v8198_v1  ;;  %v8640_v38 = vpop.f32.mrb[8].mxu0  ;;  %v7958_v1 = vpop.permute.xlu0 %7957 }
 0x6c7   : > { %v8641_v58 = vpop.f32.mrb[9].mxu0 }
 0x6c8   : > { %v8642_v5 = vadd.f32 %v8641_v58, %v8640_v38  ;;  %v8643_v53 = vpop.f32.mrb[10].mxu0  ;;  %v7990_v38 = vmul.f32 %v13628_v37, %v7953_v45 }
 0x6c9   : > { %v8644_v13 = vpop.f32.mrb[11].mxu0 }
 0x6ca   : > { %v8203_v7 = vadd.f32 %v8642_v5, %v7980_v49  ;;  %v8645_v55 = vadd.f32 %v8644_v13, %v8643_v53  ;;  %v7991_v5 = vmul.f32 %v13628_v37, %v7958_v1 }
 0x6cc   : > { %8269 = vst [vmem:[%s13636_s14 + $0xa0] sm:$0xff] %v8203_v7  ;;  %v8206_v3 = vadd.f32 %v8645_v55, %v7981_v36 }
 0x6ce   : > { %8270 = vst [vmem:[%s13636_s14 + $0xa8] sm:$0xff] %v8206_v3  ;;  %v8646_v30 = vpop.f32.mrb[12].mxu0 }
 0x6cf   : > { %v8647_v61 = vpop.f32.mrb[13].mxu0 }
 0x6d0   : > { %v8648_v60 = vadd.f32 %v8647_v61, %v8646_v30  ;;  %v8649_v26 = vpop.f32.mrb[14].mxu0 }
 0x6d1   : > { %v8650_v39 = vpop.f32.mrb[15].mxu0 }
 0x6d2   : > { %v8211_v18 = vadd.f32 %v8648_v60, %v7982_v15  ;;  %v8651_v54 = vadd.f32 %v8650_v39, %v8649_v26 }
 0x6d4   : > { %8271 = vst [vmem:[%s13636_s14 + $0xb0] sm:$0xff] %v8211_v18  ;;  %v8214_v28 = vadd.f32 %v8651_v54, %v7983_v21 }
 0x6d6   : > { %8272 = vst [vmem:[%s13636_s14 + $0xb8] sm:$0xff] %v8214_v28  ;;  %v8652_v51 = vpop.f32.mrb[16].mxu0 }
 0x6d7   : > { %v8653_v34 = vpop.f32.mrb[17].mxu0 }
 0x6d8   : > { %v8654_v6 = vadd.f32 %v8653_v34, %v8652_v51  ;;  %v8655_v2 = vpop.f32.mrb[18].mxu0 }
 0x6d9   : > { %v8656_v19 = vpop.f32.mrb[19].mxu0 }
 0x6da   : > { %v8219_v59 = vadd.f32 %v8654_v6, %v7984_v52  ;;  %v8657_v25 = vadd.f32 %v8656_v19, %v8655_v2 }
 0x6dc   : > { %8273 = vst [vmem:[%s13636_s14 + $0xc0] sm:$0xff] %v8219_v59  ;;  %v8222_v22 = vadd.f32 %v8657_v25, %v7985_v9 }
 0x6de   : > { %8274 = vst [vmem:[%s13636_s14 + $0xc8] sm:$0xff] %v8222_v22  ;;  %v8658_v33 = vpop.f32.mrb[20].mxu0 }
 0x6df   : > { %v8659_v57 = vpop.f32.mrb[21].mxu0 }
 0x6e0   : > { %v8660_v24 = vadd.f32 %v8659_v57, %v8658_v33  ;;  %v8661_v0 = vpop.f32.mrb[22].mxu0 }
 0x6e1   : > { %v8662_v43 = vpop.f32.mrb[23].mxu0 }
 0x6e2   : > { %v8227_v32 = vadd.f32 %v8660_v24, %v7986_v14  ;;  %v8663_v35 = vadd.f32 %v8662_v43, %v8661_v0 }
 0x6e4   : > { %8275 = vst [vmem:[%s13636_s14 + $0xd0] sm:$0xff] %v8227_v32  ;;  %v8230_v23 = vadd.f32 %v8663_v35, %v7987_v12 }
 0x6e6   : > { %8276 = vst [vmem:[%s13636_s14 + $0xd8] sm:$0xff] %v8230_v23  ;;  %v8664_v56 = vpop.f32.mrb[24].mxu0 }
 0x6e7   : > { %v8665_v11 = vpop.f32.mrb[25].mxu0 }
 0x6e8   : > { %v8666_v27 = vadd.f32 %v8665_v11, %v8664_v56  ;;  %v8667_v46 = vpop.f32.mrb[26].mxu0 }
 0x6e9   : > { %v8668_v40 = vpop.f32.mrb[27].mxu0 }
 0x6ea   : > { %v8235_v47 = vadd.f32 %v8666_v27, %v7988_v62  ;;  %v8669_v8 = vadd.f32 %v8668_v40, %v8667_v46 }
 0x6ec   : > { %8277 = vst [vmem:[%s13636_s14 + $0xe0] sm:$0xff] %v8235_v47  ;;  %v8238_v63 = vadd.f32 %v8669_v8, %v7989_v42 }
 0x6ee   : > { %8278 = vst [vmem:[%s13636_s14 + $0xe8] sm:$0xff] %v8238_v63  ;;  %v8670_v17 = vpop.f32.mrb[28].mxu0 }
 0x6ef   : > { %v8671_v50 = vpop.f32.mrb[29].mxu0 }
 0x6f0   : > { %v8672_v16 = vadd.f32 %v8671_v50, %v8670_v17  ;;  %v8673_v58 = vpop.f32.mrb[30].mxu0 }
 0x6f1   : > { %v8674_v49 = vpop.f32.mrb[31].mxu0 }
 0x6f2   : > { %v8243_v53 = vadd.f32 %v8672_v16, %v7990_v38  ;;  %v8675_v13 = vadd.f32 %v8674_v49, %v8673_v58 }
 0x6f4   : > { %8279 = vst [vmem:[%s13636_s14 + $0xf0] sm:$0xff] %v8243_v53  ;;  %v8246_v36 = vadd.f32 %v8675_v13, %v7991_v5 }
 0x6f6   : > { %8280 = vst [vmem:[%s13636_s14 + $0xf8] sm:$0xff] %v8246_v36 }
 0x6f7 PF: > { %p19_p9 = scmp.ge.s32.totalorder %s9183_s25, 4   ;;  %s14588_s21 = smov %s9088_s22 }
 0x6f8   : > { %s14589_s22 = smov %s9192_s28  ;;  %s14590_s23 = smov %s9183_s25 }
 0x6f9   :  { %21 = sbr.rel (!%p19_p9) target bundleno = 2 (0x2), region = 147 }

</bundles_post_ra>
